<compile_context>
chip_gen: v7x
topology: tpu7x:2x2x1
jax: 0.10.0
libtpu: 0.0.40
codegen_flags: <defaults>
</compile_context>

<pallas_src>
import math
import random

import jax
import jax.numpy as jnp
from jax.experimental import pallas as pl
from jax.experimental.pallas import tpu as pltpu


# ----------------------------- shared kernel bits --------------------------- #

def _lstm_gates(gates, c, hid_dim):
    """Gate order (i, f, g, o) matches torch.nn.LSTM."""
    H = hid_dim
    i = jax.nn.sigmoid(gates[:, 0 * H:1 * H])
    f = jax.nn.sigmoid(gates[:, 1 * H:2 * H])
    g = jnp.tanh(gates[:, 2 * H:3 * H])
    o = jax.nn.sigmoid(gates[:, 3 * H:4 * H])
    c_new = f * c + i * g
    h_new = o * jnp.tanh(c_new)
    return h_new, c_new


# ------------------------------ encoder kernel ------------------------------ #

def _make_encoder_kernel(n_layers, hid_dim, src_len, batch):
    def kernel(*refs):
        # refs: emb2d, (w_ih, w_hh, b) per layer, h_out, c_out
        emb_ref = refs[0]
        idx = 1
        layers = []
        for _ in range(n_layers):
            layers.append((refs[idx], refs[idx + 1], refs[idx + 2]))
            idx += 3
        h_ref, c_ref = refs[idx], refs[idx + 1]

        # Read weights once; reused across the statically-unrolled time loop.
        W = [(w_ih[...], w_hh[...], b[...]) for (w_ih, w_hh, b) in layers]

        # Hoisted layer-0 input projection: one (S*B, E) @ (E, 4H) matmul (real M for MXU).
        xproj = jnp.dot(emb_ref[...], W[0][0],
                        preferred_element_type=jnp.float32) + W[0][2]

        hs = [jnp.zeros((batch, hid_dim), jnp.float32) for _ in range(n_layers)]
        cs = [jnp.zeros((batch, hid_dim), jnp.float32) for _ in range(n_layers)]

        for t in range(src_len):                              # statically unrolled
            # Layer 0: only the recurrent h @ W_hh matmul remains per step.
            gates = xproj[t * batch:(t + 1) * batch, :] + jnp.dot(
                hs[0], W[0][1], preferred_element_type=jnp.float32)
            hs[0], cs[0] = _lstm_gates(gates, cs[0], hid_dim)
            x = hs[0]
            # Layers 1..L-1: two matmuls (no concat on the critical path).
            for l in range(1, n_layers):
                w_ih, w_hh, b = W[l]
                gates = (jnp.dot(x, w_ih, preferred_element_type=jnp.float32)
                         + jnp.dot(hs[l], w_hh, preferred_element_type=jnp.float32)
                         + b)
                hs[l], cs[l] = _lstm_gates(gates, cs[l], hid_dim)
                x = hs[l]

        for l in range(n_layers):
            h_ref[l] = hs[l]
            c_ref[l] = cs[l]

    return kernel


def encoder_forward(params, src):
    """src: (src_len, B) int32 -> (h, c), each (n_layers, B, H)."""
    enc_layers = params["enc_lstm"]
    n_layers = len(enc_layers)
    hid_dim = enc_layers[0]["w_hh"].shape[0]
    src_len, B = src.shape

    # Embedding lookup stays an XLA gather; hand the kernel a flat (S*B, E) slab.
    emb = params["enc_emb"][src].reshape(src_len * B, -1)

    def resident(x):
        nd = x.ndim
        return pl.BlockSpec(x.shape, lambda i: (0,) * nd)

    ins = [emb]
    in_specs = [resident(emb)]
    for l in range(n_layers):
        for name in ("w_ih", "w_hh", "b"):
            ins.append(enc_layers[l][name])
            in_specs.append(resident(enc_layers[l][name]))

    state_shape = jax.ShapeDtypeStruct((n_layers, B, hid_dim), jnp.float32)
    state_spec = pl.BlockSpec((n_layers, B, hid_dim), lambda i: (0, 0, 0))

    h, c = pl.pallas_call(
        _make_encoder_kernel(n_layers, hid_dim, src_len, B),
        grid=(1,),
        in_specs=in_specs,
        out_specs=(state_spec, state_spec),
        out_shape=(state_shape, state_shape),
        compiler_params=pltpu.CompilerParams(
            dimension_semantics=("arbitrary",)),
    )(*ins)
    return h, c


# ------------------------------ decoder kernel ------------------------------ #

def _make_decoder_kernel(n_layers, hid_dim, trg_len):
    def kernel(*refs):
        # refs: tf(SMEM prefetch), trg_emb, emb_tbl, (w_ih, w_hh, b)*L, fc_w, fc_b, h0, c0, out
        tf_ref = refs[0]                  # (T-1,) int32 in SMEM
        trg_emb_ref = refs[1]             # (T-1, B, E) teacher-forced input embeddings
        emb_ref = refs[2]                 # (V, E) decoder embedding table
        idx = 3
        layers = []
        for _ in range(n_layers):
            layers.append((refs[idx], refs[idx + 1], refs[idx + 2]))
            idx += 3
        fcw_ref, fcb_ref = refs[idx], refs[idx + 1]; idx += 2
        h0_ref, c0_ref = refs[idx], refs[idx + 1]; idx += 2
        out_ref = refs[idx]               # (T, B, V)

        B, V = out_ref.shape[1], out_ref.shape[2]

        W = [(w_ih[...], w_hh[...], b[...]) for (w_ih, w_hh, b) in layers]
        fc_w, fc_b = fcw_ref[...], fcb_ref[...]
        emb_tbl = emb_ref[...]

        hs = [h0_ref[l] for l in range(n_layers)]
        cs = [c0_ref[l] for l in range(n_layers)]

        out_ref[0] = jnp.zeros((B, V), jnp.float32)        # outputs[0] stays zero

        # Hoisted column iota for the in-kernel argmax -> one-hot.
        col = jax.lax.broadcasted_iota(jnp.int32, (B, V), 1).astype(jnp.float32)

        gen_emb = None
        for k in range(trg_len - 1):                       # statically unrolled
            x_tf = trg_emb_ref[k]
            if k == 0:
                x = x_tf                                   # step 1 always consumes trg[0]
            else:
                m = tf_ref[k].astype(jnp.float32)          # SMEM scalar 0/1
                x = m * x_tf + (1.0 - m) * gen_emb

            for l in range(n_layers):
                w_ih, w_hh, b = W[l]
                gates = (jnp.dot(x, w_ih, preferred_element_type=jnp.float32)
                         + jnp.dot(hs[l], w_hh, preferred_element_type=jnp.float32)
                         + b)
                hs[l], cs[l] = _lstm_gates(gates, cs[l], hid_dim)
                x = hs[l]

            logits = jnp.dot(x, fc_w, preferred_element_type=jnp.float32) + fc_b
            out_ref[k + 1] = logits                        # lane-dense (B, V) store

            if k < trg_len - 2:
                # argmax(logits) -> one-hot -> embedding of the generated token, consumed by
                # the next step when it is not teacher-forced (lowest-index tie-break, like
                # torch.argmax).
                row_max = jnp.max(logits, axis=1, keepdims=True)
                cand = jnp.where(logits == row_max, col, jnp.float32(V))
                top1 = jnp.min(cand, axis=1, keepdims=True)
                one_hot = (col == top1).astype(jnp.float32)
                gen_emb = jnp.dot(one_hot, emb_tbl, preferred_element_type=jnp.float32)

    return kernel


def decoder_forward(params, trg, tf_mask, h, c):
    """trg: (T, B) int32, tf_mask: (T-1,) int32, h/c: (L, B, H) -> (T, B, V) (row 0 = 0)."""
    dec_layers = params["dec_lstm"]
    n_layers = len(dec_layers)
    hid_dim = h.shape[-1]
    T, B = trg.shape
    V = params["fc_w"].shape[-1]

    # Teacher-forced input embeddings pre-gathered (XLA gather), like the encoder.
    trg_emb = params["dec_emb"][trg[:-1]]                  # (T-1, B, E)

    def resident(x):
        nd = x.ndim
        return pl.BlockSpec(x.shape, lambda i, tf: (0,) * nd)

    ins = [trg_emb, params["dec_emb"]]
    in_specs = [resident(trg_emb), resident(params["dec_emb"])]
    for l in range(n_layers):
        for name in ("w_ih", "w_hh", "b"):
            ins.append(dec_layers[l][name])
            in_specs.append(resident(dec_layers[l][name]))
    for x in (params["fc_w"], params["fc_b"], h, c):
        ins.append(x)
        in_specs.append(resident(x))

    grid_spec = pltpu.PrefetchScalarGridSpec(
        num_scalar_prefetch=1,
        grid=(1,),
        in_specs=in_specs,
        out_specs=pl.BlockSpec((T, B, V), lambda i, tf: (0, 0, 0)),
    )

    return pl.pallas_call(
        _make_decoder_kernel(n_layers, hid_dim, T),
        grid_spec=grid_spec,
        out_shape=jax.ShapeDtypeStruct((T, B, V), jnp.float32),
        compiler_params=pltpu.CompilerParams(
            dimension_semantics=("arbitrary",)),
    )(tf_mask, *ins)


# ------------------------------ parameters ---------------------------------- #

def init_params(key, input_dim, output_dim, enc_emb_dim, dec_emb_dim,
                hid_dim, n_layers):
    k = 1.0 / math.sqrt(hid_dim)
    keys = iter(jax.random.split(key, 128))

    def unif(shape):
        return jax.random.uniform(next(keys), shape, jnp.float32, -k, k)

    params = {
        "enc_emb": jax.random.normal(next(keys), (input_dim, enc_emb_dim), jnp.float32),
        "dec_emb": jax.random.normal(next(keys), (output_dim, dec_emb_dim), jnp.float32),
        "enc_lstm": [],
        "dec_lstm": [],
        "fc_w": unif((hid_dim, output_dim)),
        "fc_b": unif((1, output_dim)),
    }
    for layer in range(n_layers):
        enc_in = enc_emb_dim if layer == 0 else hid_dim
        dec_in = dec_emb_dim if layer == 0 else hid_dim
        # W_ih / W_hh kept separate (two matmuls per layer, no in-kernel concat);
        # bias combined once: b = b_ih + b_hh, as in torch's LSTM cell math.
        params["enc_lstm"].append(dict(
            w_ih=unif((enc_in, 4 * hid_dim)),
            w_hh=unif((hid_dim, 4 * hid_dim)),
            b=unif((1, 4 * hid_dim)) + unif((1, 4 * hid_dim))))
        params["dec_lstm"].append(dict(
            w_ih=unif((dec_in, 4 * hid_dim)),
            w_hh=unif((hid_dim, 4 * hid_dim)),
            b=unif((1, 4 * hid_dim)) + unif((1, 4 * hid_dim))))
    return params


# ------------------------------ model glue ---------------------------------- #

@jax.jit
def seq2seq_forward(params, src, trg, tf_mask):
    """Mirrors Seq2Seq.forward; outputs (trg_len, B, V), outputs[0] stays zero."""
    h, c = encoder_forward(params, src)
    return decoder_forward(params, trg, tf_mask, h, c)     # (T, B, V), row 0 zeroed in-kernel


def seq2seq(params, src, trg, teacher_forcing_ratio=0.5):
    trg_len = int(trg.shape[0])
    # Host-level coin flips, one per decoding step t=1..trg_len-1 (like the reference).
    # The flip at step t selects the input of step t+1; the last flip is unused.
    coins = [random.random() < teacher_forcing_ratio for _ in range(trg_len - 1)]
    tf_mask = jnp.asarray([1] + [int(c) for c in coins[:-1]], dtype=jnp.int32)
    return seq2seq_forward(params, src, trg, tf_mask)


# --------------------------------- main -------------------------------------- #

if __name__ == "__main__":
    # vreg/MXU-friendly toy dims: batch = 8 sublanes, feature/vocab dims = 128 lanes.
    INPUT_DIM = 128     # src vocab
    OUTPUT_DIM = 128    # trg vocab
    ENC_EMB_DIM = 128
    DEC_EMB_DIM = 128
    HID_DIM = 128
    N_LAYERS = 2
    SRC_LEN = 8
    TRG_LEN = 8
    BATCH = 8

    random.seed(0)      # teacher-forcing coin flips (host-level, as in PyTorch)

    key = jax.random.PRNGKey(0)
    kp, ks, kt = jax.random.split(key, 3)
    params = init_params(kp, INPUT_DIM, OUTPUT_DIM, ENC_EMB_DIM, DEC_EMB_DIM,
                         HID_DIM, N_LAYERS)

    src = jax.random.randint(ks, (SRC_LEN, BATCH), 0, INPUT_DIM, jnp.int32)
    trg = jax.random.randint(kt, (TRG_LEN, BATCH), 0, OUTPUT_DIM, jnp.int32)

    outputs = seq2seq(params, src, trg, teacher_forcing_ratio=0.5)
    outputs = jax.block_until_ready(outputs)

    assert outputs.shape == (TRG_LEN, BATCH, OUTPUT_DIM)
    assert outputs.dtype == jnp.float32
    assert bool(jnp.all(outputs[0] == 0.0))
    assert bool(jnp.all(jnp.isfinite(outputs)))
    print("KERNEL_OK")
</pallas_src>

<mosaic_0001>
module attributes {stable_mosaic.version = 11 : i64} {
  func.func @kernel(%arg0: i32, %arg1: memref<64x128xf32, #tpu.memory_space<vmem>>, %arg2: memref<128x512xf32, #tpu.memory_space<vmem>>, %arg3: memref<128x512xf32, #tpu.memory_space<vmem>>, %arg4: memref<1x512xf32, #tpu.memory_space<vmem>>, %arg5: memref<128x512xf32, #tpu.memory_space<vmem>>, %arg6: memref<128x512xf32, #tpu.memory_space<vmem>>, %arg7: memref<1x512xf32, #tpu.memory_space<vmem>>, %arg8: memref<2x8x128xf32, #tpu.memory_space<vmem>>, %arg9: memref<2x8x128xf32, #tpu.memory_space<vmem>>) attributes {dimension_semantics = [#tpu.dimension_semantics<arbitrary>], iteration_bounds = array<i64: 1>, scalar_prefetch = 0 : i64, scratch_operands = 0 : i64, tpu.core_type = #tpu.core_type<tc>, window_params = [{pipeline_mode = #tpu.pipeline_mode<synchronous>, transform_indices = @transform_0, window_bounds = array<i64: 64, 128>}, {pipeline_mode = #tpu.pipeline_mode<synchronous>, transform_indices = @transform_1, window_bounds = array<i64: 128, 512>}, {pipeline_mode = #tpu.pipeline_mode<synchronous>, transform_indices = @transform_2, window_bounds = array<i64: 128, 512>}, {pipeline_mode = #tpu.pipeline_mode<synchronous>, transform_indices = @transform_3, window_bounds = array<i64: 1, 512>}, {pipeline_mode = #tpu.pipeline_mode<synchronous>, transform_indices = @transform_4, window_bounds = array<i64: 128, 512>}, {pipeline_mode = #tpu.pipeline_mode<synchronous>, transform_indices = @transform_5, window_bounds = array<i64: 128, 512>}, {pipeline_mode = #tpu.pipeline_mode<synchronous>, transform_indices = @transform_6, window_bounds = array<i64: 1, 512>}, {pipeline_mode = #tpu.pipeline_mode<synchronous>, transform_indices = @transform_7, window_bounds = array<i64: 2, 8, 128>}, {pipeline_mode = #tpu.pipeline_mode<synchronous>, transform_indices = @transform_8, window_bounds = array<i64: 2, 8, 128>}]} {
    %c0 = arith.constant 0 : index
    %c0_0 = arith.constant 0 : index
    %0 = vector.load %arg2[%c0, %c0_0] : memref<128x512xf32, #tpu.memory_space<vmem>>, vector<128x512xf32>
    %c0_1 = arith.constant 0 : index
    %c0_2 = arith.constant 0 : index
    %1 = vector.load %arg3[%c0_1, %c0_2] : memref<128x512xf32, #tpu.memory_space<vmem>>, vector<128x512xf32>
    %c0_3 = arith.constant 0 : index
    %c0_4 = arith.constant 0 : index
    %2 = vector.load %arg4[%c0_3, %c0_4] : memref<1x512xf32, #tpu.memory_space<vmem>>, vector<1x512xf32>
    %c0_5 = arith.constant 0 : index
    %c0_6 = arith.constant 0 : index
    %3 = vector.load %arg5[%c0_5, %c0_6] : memref<128x512xf32, #tpu.memory_space<vmem>>, vector<128x512xf32>
    %c0_7 = arith.constant 0 : index
    %c0_8 = arith.constant 0 : index
    %4 = vector.load %arg6[%c0_7, %c0_8] : memref<128x512xf32, #tpu.memory_space<vmem>>, vector<128x512xf32>
    %c0_9 = arith.constant 0 : index
    %c0_10 = arith.constant 0 : index
    %5 = vector.load %arg7[%c0_9, %c0_10] : memref<1x512xf32, #tpu.memory_space<vmem>>, vector<1x512xf32>
    %c0_11 = arith.constant 0 : index
    %c0_12 = arith.constant 0 : index
    %6 = vector.load %arg1[%c0_11, %c0_12] : memref<64x128xf32, #tpu.memory_space<vmem>>, vector<64x128xf32>
    %cst = arith.constant dense<0.000000e+00> : vector<64x512xf32>
    %7 = tpu.matmul %6, %0, %cst {dimension_numbers = #tpu.dot_dimension_numbers<[1], [0], [0], [1], [0, 0, 1, 1], [], []>} : vector<64x128xf32>, vector<128x512xf32>, vector<64x512xf32> -> vector<64x512xf32>
    %8 = vector.broadcast %2 : vector<1x512xf32> to vector<64x512xf32>
    %9 = arith.addf %7, %8 : vector<64x512xf32>
    %cst_13 = arith.constant 0.000000e+00 : f32
    %10 = vector.broadcast %cst_13 : f32 to vector<8x128xf32>
    %cst_14 = arith.constant 0.000000e+00 : f32
    %11 = vector.broadcast %cst_14 : f32 to vector<8x128xf32>
    %cst_15 = arith.constant 0.000000e+00 : f32
    %12 = vector.broadcast %cst_15 : f32 to vector<8x128xf32>
    %cst_16 = arith.constant 0.000000e+00 : f32
    %13 = vector.broadcast %cst_16 : f32 to vector<8x128xf32>
    %14 = vector.extract_strided_slice %9 {offsets = [0, 0], sizes = [8, 512], strides = [1, 1]} : vector<64x512xf32> to vector<8x512xf32>
    %cst_17 = arith.constant dense<0.000000e+00> : vector<8x512xf32>
    %15 = tpu.matmul %10, %1, %cst_17 {dimension_numbers = #tpu.dot_dimension_numbers<[1], [0], [0], [1], [0, 0, 1, 1], [], []>} : vector<8x128xf32>, vector<128x512xf32>, vector<8x512xf32> -> vector<8x512xf32>
    %16 = arith.addf %14, %15 : vector<8x512xf32>
    %17 = vector.extract_strided_slice %16 {offsets = [0, 0], sizes = [8, 128], strides = [1, 1]} : vector<8x512xf32> to vector<8x128xf32>
    %18 = arith.negf %17 : vector<8x128xf32>
    %19 = math.exp %18 : vector<8x128xf32>
    %cst_18 = arith.constant 1.000000e+00 : f32
    %20 = vector.broadcast %cst_18 : f32 to vector<8x128xf32>
    %21 = arith.addf %20, %19 : vector<8x128xf32>
    %22 = arith.divf %20, %21 : vector<8x128xf32>
    %23 = vector.extract_strided_slice %16 {offsets = [0, 128], sizes = [8, 128], strides = [1, 1]} : vector<8x512xf32> to vector<8x128xf32>
    %24 = arith.negf %23 : vector<8x128xf32>
    %25 = math.exp %24 : vector<8x128xf32>
    %cst_19 = arith.constant 1.000000e+00 : f32
    %26 = vector.broadcast %cst_19 : f32 to vector<8x128xf32>
    %27 = arith.addf %26, %25 : vector<8x128xf32>
    %28 = arith.divf %26, %27 : vector<8x128xf32>
    %29 = vector.extract_strided_slice %16 {offsets = [0, 256], sizes = [8, 128], strides = [1, 1]} : vector<8x512xf32> to vector<8x128xf32>
    %30 = math.tanh %29 : vector<8x128xf32>
    %31 = vector.extract_strided_slice %16 {offsets = [0, 384], sizes = [8, 128], strides = [1, 1]} : vector<8x512xf32> to vector<8x128xf32>
    %32 = arith.negf %31 : vector<8x128xf32>
    %33 = math.exp %32 : vector<8x128xf32>
    %cst_20 = arith.constant 1.000000e+00 : f32
    %34 = vector.broadcast %cst_20 : f32 to vector<8x128xf32>
    %35 = arith.addf %34, %33 : vector<8x128xf32>
    %36 = arith.divf %34, %35 : vector<8x128xf32>
    %37 = arith.mulf %28, %12 : vector<8x128xf32>
    %38 = arith.mulf %22, %30 : vector<8x128xf32>
    %39 = arith.addf %37, %38 : vector<8x128xf32>
    %40 = math.tanh %39 : vector<8x128xf32>
    %41 = arith.mulf %36, %40 : vector<8x128xf32>
    %cst_21 = arith.constant dense<0.000000e+00> : vector<8x512xf32>
    %42 = tpu.matmul %41, %3, %cst_21 {dimension_numbers = #tpu.dot_dimension_numbers<[1], [0], [0], [1], [0, 0, 1, 1], [], []>} : vector<8x128xf32>, vector<128x512xf32>, vector<8x512xf32> -> vector<8x512xf32>
    %cst_22 = arith.constant dense<0.000000e+00> : vector<8x512xf32>
    %43 = tpu.matmul %11, %4, %cst_22 {dimension_numbers = #tpu.dot_dimension_numbers<[1], [0], [0], [1], [0, 0, 1, 1], [], []>} : vector<8x128xf32>, vector<128x512xf32>, vector<8x512xf32> -> vector<8x512xf32>
    %44 = arith.addf %42, %43 : vector<8x512xf32>
    %45 = vector.broadcast %5 : vector<1x512xf32> to vector<8x512xf32>
    %46 = arith.addf %44, %45 : vector<8x512xf32>
    %47 = vector.extract_strided_slice %46 {offsets = [0, 0], sizes = [8, 128], strides = [1, 1]} : vector<8x512xf32> to vector<8x128xf32>
    %48 = arith.negf %47 : vector<8x128xf32>
    %49 = math.exp %48 : vector<8x128xf32>
    %cst_23 = arith.constant 1.000000e+00 : f32
    %50 = vector.broadcast %cst_23 : f32 to vector<8x128xf32>
    %51 = arith.addf %50, %49 : vector<8x128xf32>
    %52 = arith.divf %50, %51 : vector<8x128xf32>
    %53 = vector.extract_strided_slice %46 {offsets = [0, 128], sizes = [8, 128], strides = [1, 1]} : vector<8x512xf32> to vector<8x128xf32>
    %54 = arith.negf %53 : vector<8x128xf32>
    %55 = math.exp %54 : vector<8x128xf32>
    %cst_24 = arith.constant 1.000000e+00 : f32
    %56 = vector.broadcast %cst_24 : f32 to vector<8x128xf32>
    %57 = arith.addf %56, %55 : vector<8x128xf32>
    %58 = arith.divf %56, %57 : vector<8x128xf32>
    %59 = vector.extract_strided_slice %46 {offsets = [0, 256], sizes = [8, 128], strides = [1, 1]} : vector<8x512xf32> to vector<8x128xf32>
    %60 = math.tanh %59 : vector<8x128xf32>
    %61 = vector.extract_strided_slice %46 {offsets = [0, 384], sizes = [8, 128], strides = [1, 1]} : vector<8x512xf32> to vector<8x128xf32>
    %62 = arith.negf %61 : vector<8x128xf32>
    %63 = math.exp %62 : vector<8x128xf32>
    %cst_25 = arith.constant 1.000000e+00 : f32
    %64 = vector.broadcast %cst_25 : f32 to vector<8x128xf32>
    %65 = arith.addf %64, %63 : vector<8x128xf32>
    %66 = arith.divf %64, %65 : vector<8x128xf32>
    %67 = arith.mulf %58, %13 : vector<8x128xf32>
    %68 = arith.mulf %52, %60 : vector<8x128xf32>
    %69 = arith.addf %67, %68 : vector<8x128xf32>
    %70 = math.tanh %69 : vector<8x128xf32>
    %71 = arith.mulf %66, %70 : vector<8x128xf32>
    %72 = vector.extract_strided_slice %9 {offsets = [8, 0], sizes = [8, 512], strides = [1, 1]} : vector<64x512xf32> to vector<8x512xf32>
    %cst_26 = arith.constant dense<0.000000e+00> : vector<8x512xf32>
    %73 = tpu.matmul %41, %1, %cst_26 {dimension_numbers = #tpu.dot_dimension_numbers<[1], [0], [0], [1], [0, 0, 1, 1], [], []>} : vector<8x128xf32>, vector<128x512xf32>, vector<8x512xf32> -> vector<8x512xf32>
    %74 = arith.addf %72, %73 : vector<8x512xf32>
    %75 = vector.extract_strided_slice %74 {offsets = [0, 0], sizes = [8, 128], strides = [1, 1]} : vector<8x512xf32> to vector<8x128xf32>
    %76 = arith.negf %75 : vector<8x128xf32>
    %77 = math.exp %76 : vector<8x128xf32>
    %cst_27 = arith.constant 1.000000e+00 : f32
    %78 = vector.broadcast %cst_27 : f32 to vector<8x128xf32>
    %79 = arith.addf %78, %77 : vector<8x128xf32>
    %80 = arith.divf %78, %79 : vector<8x128xf32>
    %81 = vector.extract_strided_slice %74 {offsets = [0, 128], sizes = [8, 128], strides = [1, 1]} : vector<8x512xf32> to vector<8x128xf32>
    %82 = arith.negf %81 : vector<8x128xf32>
    %83 = math.exp %82 : vector<8x128xf32>
    %cst_28 = arith.constant 1.000000e+00 : f32
    %84 = vector.broadcast %cst_28 : f32 to vector<8x128xf32>
    %85 = arith.addf %84, %83 : vector<8x128xf32>
    %86 = arith.divf %84, %85 : vector<8x128xf32>
    %87 = vector.extract_strided_slice %74 {offsets = [0, 256], sizes = [8, 128], strides = [1, 1]} : vector<8x512xf32> to vector<8x128xf32>
    %88 = math.tanh %87 : vector<8x128xf32>
    %89 = vector.extract_strided_slice %74 {offsets = [0, 384], sizes = [8, 128], strides = [1, 1]} : vector<8x512xf32> to vector<8x128xf32>
    %90 = arith.negf %89 : vector<8x128xf32>
    %91 = math.exp %90 : vector<8x128xf32>
    %cst_29 = arith.constant 1.000000e+00 : f32
    %92 = vector.broadcast %cst_29 : f32 to vector<8x128xf32>
    %93 = arith.addf %92, %91 : vector<8x128xf32>
    %94 = arith.divf %92, %93 : vector<8x128xf32>
    %95 = arith.mulf %86, %39 : vector<8x128xf32>
    %96 = arith.mulf %80, %88 : vector<8x128xf32>
    %97 = arith.addf %95, %96 : vector<8x128xf32>
    %98 = math.tanh %97 : vector<8x128xf32>
    %99 = arith.mulf %94, %98 : vector<8x128xf32>
    %cst_30 = arith.constant dense<0.000000e+00> : vector<8x512xf32>
    %100 = tpu.matmul %99, %3, %cst_30 {dimension_numbers = #tpu.dot_dimension_numbers<[1], [0], [0], [1], [0, 0, 1, 1], [], []>} : vector<8x128xf32>, vector<128x512xf32>, vector<8x512xf32> -> vector<8x512xf32>
    %cst_31 = arith.constant dense<0.000000e+00> : vector<8x512xf32>
    %101 = tpu.matmul %71, %4, %cst_31 {dimension_numbers = #tpu.dot_dimension_numbers<[1], [0], [0], [1], [0, 0, 1, 1], [], []>} : vector<8x128xf32>, vector<128x512xf32>, vector<8x512xf32> -> vector<8x512xf32>
    %102 = arith.addf %100, %101 : vector<8x512xf32>
    %103 = vector.broadcast %5 : vector<1x512xf32> to vector<8x512xf32>
    %104 = arith.addf %102, %103 : vector<8x512xf32>
    %105 = vector.extract_strided_slice %104 {offsets = [0, 0], sizes = [8, 128], strides = [1, 1]} : vector<8x512xf32> to vector<8x128xf32>
    %106 = arith.negf %105 : vector<8x128xf32>
    %107 = math.exp %106 : vector<8x128xf32>
    %cst_32 = arith.constant 1.000000e+00 : f32
    %108 = vector.broadcast %cst_32 : f32 to vector<8x128xf32>
    %109 = arith.addf %108, %107 : vector<8x128xf32>
    %110 = arith.divf %108, %109 : vector<8x128xf32>
    %111 = vector.extract_strided_slice %104 {offsets = [0, 128], sizes = [8, 128], strides = [1, 1]} : vector<8x512xf32> to vector<8x128xf32>
    %112 = arith.negf %111 : vector<8x128xf32>
    %113 = math.exp %112 : vector<8x128xf32>
    %cst_33 = arith.constant 1.000000e+00 : f32
    %114 = vector.broadcast %cst_33 : f32 to vector<8x128xf32>
    %115 = arith.addf %114, %113 : vector<8x128xf32>
    %116 = arith.divf %114, %115 : vector<8x128xf32>
    %117 = vector.extract_strided_slice %104 {offsets = [0, 256], sizes = [8, 128], strides = [1, 1]} : vector<8x512xf32> to vector<8x128xf32>
    %118 = math.tanh %117 : vector<8x128xf32>
    %119 = vector.extract_strided_slice %104 {offsets = [0, 384], sizes = [8, 128], strides = [1, 1]} : vector<8x512xf32> to vector<8x128xf32>
    %120 = arith.negf %119 : vector<8x128xf32>
    %121 = math.exp %120 : vector<8x128xf32>
    %cst_34 = arith.constant 1.000000e+00 : f32
    %122 = vector.broadcast %cst_34 : f32 to vector<8x128xf32>
    %123 = arith.addf %122, %121 : vector<8x128xf32>
    %124 = arith.divf %122, %123 : vector<8x128xf32>
    %125 = arith.mulf %116, %69 : vector<8x128xf32>
    %126 = arith.mulf %110, %118 : vector<8x128xf32>
    %127 = arith.addf %125, %126 : vector<8x128xf32>
    %128 = math.tanh %127 : vector<8x128xf32>
    %129 = arith.mulf %124, %128 : vector<8x128xf32>
    %130 = vector.extract_strided_slice %9 {offsets = [16, 0], sizes = [8, 512], strides = [1, 1]} : vector<64x512xf32> to vector<8x512xf32>
    %cst_35 = arith.constant dense<0.000000e+00> : vector<8x512xf32>
    %131 = tpu.matmul %99, %1, %cst_35 {dimension_numbers = #tpu.dot_dimension_numbers<[1], [0], [0], [1], [0, 0, 1, 1], [], []>} : vector<8x128xf32>, vector<128x512xf32>, vector<8x512xf32> -> vector<8x512xf32>
    %132 = arith.addf %130, %131 : vector<8x512xf32>
    %133 = vector.extract_strided_slice %132 {offsets = [0, 0], sizes = [8, 128], strides = [1, 1]} : vector<8x512xf32> to vector<8x128xf32>
    %134 = arith.negf %133 : vector<8x128xf32>
    %135 = math.exp %134 : vector<8x128xf32>
    %cst_36 = arith.constant 1.000000e+00 : f32
    %136 = vector.broadcast %cst_36 : f32 to vector<8x128xf32>
    %137 = arith.addf %136, %135 : vector<8x128xf32>
    %138 = arith.divf %136, %137 : vector<8x128xf32>
    %139 = vector.extract_strided_slice %132 {offsets = [0, 128], sizes = [8, 128], strides = [1, 1]} : vector<8x512xf32> to vector<8x128xf32>
    %140 = arith.negf %139 : vector<8x128xf32>
    %141 = math.exp %140 : vector<8x128xf32>
    %cst_37 = arith.constant 1.000000e+00 : f32
    %142 = vector.broadcast %cst_37 : f32 to vector<8x128xf32>
    %143 = arith.addf %142, %141 : vector<8x128xf32>
    %144 = arith.divf %142, %143 : vector<8x128xf32>
    %145 = vector.extract_strided_slice %132 {offsets = [0, 256], sizes = [8, 128], strides = [1, 1]} : vector<8x512xf32> to vector<8x128xf32>
    %146 = math.tanh %145 : vector<8x128xf32>
    %147 = vector.extract_strided_slice %132 {offsets = [0, 384], sizes = [8, 128], strides = [1, 1]} : vector<8x512xf32> to vector<8x128xf32>
    %148 = arith.negf %147 : vector<8x128xf32>
    %149 = math.exp %148 : vector<8x128xf32>
    %cst_38 = arith.constant 1.000000e+00 : f32
    %150 = vector.broadcast %cst_38 : f32 to vector<8x128xf32>
    %151 = arith.addf %150, %149 : vector<8x128xf32>
    %152 = arith.divf %150, %151 : vector<8x128xf32>
    %153 = arith.mulf %144, %97 : vector<8x128xf32>
    %154 = arith.mulf %138, %146 : vector<8x128xf32>
    %155 = arith.addf %153, %154 : vector<8x128xf32>
    %156 = math.tanh %155 : vector<8x128xf32>
    %157 = arith.mulf %152, %156 : vector<8x128xf32>
    %cst_39 = arith.constant dense<0.000000e+00> : vector<8x512xf32>
    %158 = tpu.matmul %157, %3, %cst_39 {dimension_numbers = #tpu.dot_dimension_numbers<[1], [0], [0], [1], [0, 0, 1, 1], [], []>} : vector<8x128xf32>, vector<128x512xf32>, vector<8x512xf32> -> vector<8x512xf32>
    %cst_40 = arith.constant dense<0.000000e+00> : vector<8x512xf32>
    %159 = tpu.matmul %129, %4, %cst_40 {dimension_numbers = #tpu.dot_dimension_numbers<[1], [0], [0], [1], [0, 0, 1, 1], [], []>} : vector<8x128xf32>, vector<128x512xf32>, vector<8x512xf32> -> vector<8x512xf32>
    %160 = arith.addf %158, %159 : vector<8x512xf32>
    %161 = vector.broadcast %5 : vector<1x512xf32> to vector<8x512xf32>
    %162 = arith.addf %160, %161 : vector<8x512xf32>
    %163 = vector.extract_strided_slice %162 {offsets = [0, 0], sizes = [8, 128], strides = [1, 1]} : vector<8x512xf32> to vector<8x128xf32>
    %164 = arith.negf %163 : vector<8x128xf32>
    %165 = math.exp %164 : vector<8x128xf32>
    %cst_41 = arith.constant 1.000000e+00 : f32
    %166 = vector.broadcast %cst_41 : f32 to vector<8x128xf32>
    %167 = arith.addf %166, %165 : vector<8x128xf32>
    %168 = arith.divf %166, %167 : vector<8x128xf32>
    %169 = vector.extract_strided_slice %162 {offsets = [0, 128], sizes = [8, 128], strides = [1, 1]} : vector<8x512xf32> to vector<8x128xf32>
    %170 = arith.negf %169 : vector<8x128xf32>
    %171 = math.exp %170 : vector<8x128xf32>
    %cst_42 = arith.constant 1.000000e+00 : f32
    %172 = vector.broadcast %cst_42 : f32 to vector<8x128xf32>
    %173 = arith.addf %172, %171 : vector<8x128xf32>
    %174 = arith.divf %172, %173 : vector<8x128xf32>
    %175 = vector.extract_strided_slice %162 {offsets = [0, 256], sizes = [8, 128], strides = [1, 1]} : vector<8x512xf32> to vector<8x128xf32>
    %176 = math.tanh %175 : vector<8x128xf32>
    %177 = vector.extract_strided_slice %162 {offsets = [0, 384], sizes = [8, 128], strides = [1, 1]} : vector<8x512xf32> to vector<8x128xf32>
    %178 = arith.negf %177 : vector<8x128xf32>
    %179 = math.exp %178 : vector<8x128xf32>
    %cst_43 = arith.constant 1.000000e+00 : f32
    %180 = vector.broadcast %cst_43 : f32 to vector<8x128xf32>
    %181 = arith.addf %180, %179 : vector<8x128xf32>
    %182 = arith.divf %180, %181 : vector<8x128xf32>
    %183 = arith.mulf %174, %127 : vector<8x128xf32>
    %184 = arith.mulf %168, %176 : vector<8x128xf32>
    %185 = arith.addf %183, %184 : vector<8x128xf32>
    %186 = math.tanh %185 : vector<8x128xf32>
    %187 = arith.mulf %182, %186 : vector<8x128xf32>
    %188 = vector.extract_strided_slice %9 {offsets = [24, 0], sizes = [8, 512], strides = [1, 1]} : vector<64x512xf32> to vector<8x512xf32>
    %cst_44 = arith.constant dense<0.000000e+00> : vector<8x512xf32>
    %189 = tpu.matmul %157, %1, %cst_44 {dimension_numbers = #tpu.dot_dimension_numbers<[1], [0], [0], [1], [0, 0, 1, 1], [], []>} : vector<8x128xf32>, vector<128x512xf32>, vector<8x512xf32> -> vector<8x512xf32>
    %190 = arith.addf %188, %189 : vector<8x512xf32>
    %191 = vector.extract_strided_slice %190 {offsets = [0, 0], sizes = [8, 128], strides = [1, 1]} : vector<8x512xf32> to vector<8x128xf32>
    %192 = arith.negf %191 : vector<8x128xf32>
    %193 = math.exp %192 : vector<8x128xf32>
    %cst_45 = arith.constant 1.000000e+00 : f32
    %194 = vector.broadcast %cst_45 : f32 to vector<8x128xf32>
    %195 = arith.addf %194, %193 : vector<8x128xf32>
    %196 = arith.divf %194, %195 : vector<8x128xf32>
    %197 = vector.extract_strided_slice %190 {offsets = [0, 128], sizes = [8, 128], strides = [1, 1]} : vector<8x512xf32> to vector<8x128xf32>
    %198 = arith.negf %197 : vector<8x128xf32>
    %199 = math.exp %198 : vector<8x128xf32>
    %cst_46 = arith.constant 1.000000e+00 : f32
    %200 = vector.broadcast %cst_46 : f32 to vector<8x128xf32>
    %201 = arith.addf %200, %199 : vector<8x128xf32>
    %202 = arith.divf %200, %201 : vector<8x128xf32>
    %203 = vector.extract_strided_slice %190 {offsets = [0, 256], sizes = [8, 128], strides = [1, 1]} : vector<8x512xf32> to vector<8x128xf32>
    %204 = math.tanh %203 : vector<8x128xf32>
    %205 = vector.extract_strided_slice %190 {offsets = [0, 384], sizes = [8, 128], strides = [1, 1]} : vector<8x512xf32> to vector<8x128xf32>
    %206 = arith.negf %205 : vector<8x128xf32>
    %207 = math.exp %206 : vector<8x128xf32>
    %cst_47 = arith.constant 1.000000e+00 : f32
    %208 = vector.broadcast %cst_47 : f32 to vector<8x128xf32>
    %209 = arith.addf %208, %207 : vector<8x128xf32>
    %210 = arith.divf %208, %209 : vector<8x128xf32>
    %211 = arith.mulf %202, %155 : vector<8x128xf32>
    %212 = arith.mulf %196, %204 : vector<8x128xf32>
    %213 = arith.addf %211, %212 : vector<8x128xf32>
    %214 = math.tanh %213 : vector<8x128xf32>
    %215 = arith.mulf %210, %214 : vector<8x128xf32>
    %cst_48 = arith.constant dense<0.000000e+00> : vector<8x512xf32>
    %216 = tpu.matmul %215, %3, %cst_48 {dimension_numbers = #tpu.dot_dimension_numbers<[1], [0], [0], [1], [0, 0, 1, 1], [], []>} : vector<8x128xf32>, vector<128x512xf32>, vector<8x512xf32> -> vector<8x512xf32>
    %cst_49 = arith.constant dense<0.000000e+00> : vector<8x512xf32>
    %217 = tpu.matmul %187, %4, %cst_49 {dimension_numbers = #tpu.dot_dimension_numbers<[1], [0], [0], [1], [0, 0, 1, 1], [], []>} : vector<8x128xf32>, vector<128x512xf32>, vector<8x512xf32> -> vector<8x512xf32>
    %218 = arith.addf %216, %217 : vector<8x512xf32>
    %219 = vector.broadcast %5 : vector<1x512xf32> to vector<8x512xf32>
    %220 = arith.addf %218, %219 : vector<8x512xf32>
    %221 = vector.extract_strided_slice %220 {offsets = [0, 0], sizes = [8, 128], strides = [1, 1]} : vector<8x512xf32> to vector<8x128xf32>
    %222 = arith.negf %221 : vector<8x128xf32>
    %223 = math.exp %222 : vector<8x128xf32>
    %cst_50 = arith.constant 1.000000e+00 : f32
    %224 = vector.broadcast %cst_50 : f32 to vector<8x128xf32>
    %225 = arith.addf %224, %223 : vector<8x128xf32>
    %226 = arith.divf %224, %225 : vector<8x128xf32>
    %227 = vector.extract_strided_slice %220 {offsets = [0, 128], sizes = [8, 128], strides = [1, 1]} : vector<8x512xf32> to vector<8x128xf32>
    %228 = arith.negf %227 : vector<8x128xf32>
    %229 = math.exp %228 : vector<8x128xf32>
    %cst_51 = arith.constant 1.000000e+00 : f32
    %230 = vector.broadcast %cst_51 : f32 to vector<8x128xf32>
    %231 = arith.addf %230, %229 : vector<8x128xf32>
    %232 = arith.divf %230, %231 : vector<8x128xf32>
    %233 = vector.extract_strided_slice %220 {offsets = [0, 256], sizes = [8, 128], strides = [1, 1]} : vector<8x512xf32> to vector<8x128xf32>
    %234 = math.tanh %233 : vector<8x128xf32>
    %235 = vector.extract_strided_slice %220 {offsets = [0, 384], sizes = [8, 128], strides = [1, 1]} : vector<8x512xf32> to vector<8x128xf32>
    %236 = arith.negf %235 : vector<8x128xf32>
    %237 = math.exp %236 : vector<8x128xf32>
    %cst_52 = arith.constant 1.000000e+00 : f32
    %238 = vector.broadcast %cst_52 : f32 to vector<8x128xf32>
    %239 = arith.addf %238, %237 : vector<8x128xf32>
    %240 = arith.divf %238, %239 : vector<8x128xf32>
    %241 = arith.mulf %232, %185 : vector<8x128xf32>
    %242 = arith.mulf %226, %234 : vector<8x128xf32>
    %243 = arith.addf %241, %242 : vector<8x128xf32>
    %244 = math.tanh %243 : vector<8x128xf32>
    %245 = arith.mulf %240, %244 : vector<8x128xf32>
    %246 = vector.extract_strided_slice %9 {offsets = [32, 0], sizes = [8, 512], strides = [1, 1]} : vector<64x512xf32> to vector<8x512xf32>
    %cst_53 = arith.constant dense<0.000000e+00> : vector<8x512xf32>
    %247 = tpu.matmul %215, %1, %cst_53 {dimension_numbers = #tpu.dot_dimension_numbers<[1], [0], [0], [1], [0, 0, 1, 1], [], []>} : vector<8x128xf32>, vector<128x512xf32>, vector<8x512xf32> -> vector<8x512xf32>
    %248 = arith.addf %246, %247 : vector<8x512xf32>
    %249 = vector.extract_strided_slice %248 {offsets = [0, 0], sizes = [8, 128], strides = [1, 1]} : vector<8x512xf32> to vector<8x128xf32>
    %250 = arith.negf %249 : vector<8x128xf32>
    %251 = math.exp %250 : vector<8x128xf32>
    %cst_54 = arith.constant 1.000000e+00 : f32
    %252 = vector.broadcast %cst_54 : f32 to vector<8x128xf32>
    %253 = arith.addf %252, %251 : vector<8x128xf32>
    %254 = arith.divf %252, %253 : vector<8x128xf32>
    %255 = vector.extract_strided_slice %248 {offsets = [0, 128], sizes = [8, 128], strides = [1, 1]} : vector<8x512xf32> to vector<8x128xf32>
    %256 = arith.negf %255 : vector<8x128xf32>
    %257 = math.exp %256 : vector<8x128xf32>
    %cst_55 = arith.constant 1.000000e+00 : f32
    %258 = vector.broadcast %cst_55 : f32 to vector<8x128xf32>
    %259 = arith.addf %258, %257 : vector<8x128xf32>
    %260 = arith.divf %258, %259 : vector<8x128xf32>
    %261 = vector.extract_strided_slice %248 {offsets = [0, 256], sizes = [8, 128], strides = [1, 1]} : vector<8x512xf32> to vector<8x128xf32>
    %262 = math.tanh %261 : vector<8x128xf32>
    %263 = vector.extract_strided_slice %248 {offsets = [0, 384], sizes = [8, 128], strides = [1, 1]} : vector<8x512xf32> to vector<8x128xf32>
    %264 = arith.negf %263 : vector<8x128xf32>
    %265 = math.exp %264 : vector<8x128xf32>
    %cst_56 = arith.constant 1.000000e+00 : f32
    %266 = vector.broadcast %cst_56 : f32 to vector<8x128xf32>
    %267 = arith.addf %266, %265 : vector<8x128xf32>
    %268 = arith.divf %266, %267 : vector<8x128xf32>
    %269 = arith.mulf %260, %213 : vector<8x128xf32>
    %270 = arith.mulf %254, %262 : vector<8x128xf32>
    %271 = arith.addf %269, %270 : vector<8x128xf32>
    %272 = math.tanh %271 : vector<8x128xf32>
    %273 = arith.mulf %268, %272 : vector<8x128xf32>
    %cst_57 = arith.constant dense<0.000000e+00> : vector<8x512xf32>
    %274 = tpu.matmul %273, %3, %cst_57 {dimension_numbers = #tpu.dot_dimension_numbers<[1], [0], [0], [1], [0, 0, 1, 1], [], []>} : vector<8x128xf32>, vector<128x512xf32>, vector<8x512xf32> -> vector<8x512xf32>
    %cst_58 = arith.constant dense<0.000000e+00> : vector<8x512xf32>
    %275 = tpu.matmul %245, %4, %cst_58 {dimension_numbers = #tpu.dot_dimension_numbers<[1], [0], [0], [1], [0, 0, 1, 1], [], []>} : vector<8x128xf32>, vector<128x512xf32>, vector<8x512xf32> -> vector<8x512xf32>
    %276 = arith.addf %274, %275 : vector<8x512xf32>
    %277 = vector.broadcast %5 : vector<1x512xf32> to vector<8x512xf32>
    %278 = arith.addf %276, %277 : vector<8x512xf32>
    %279 = vector.extract_strided_slice %278 {offsets = [0, 0], sizes = [8, 128], strides = [1, 1]} : vector<8x512xf32> to vector<8x128xf32>
    %280 = arith.negf %279 : vector<8x128xf32>
    %281 = math.exp %280 : vector<8x128xf32>
    %cst_59 = arith.constant 1.000000e+00 : f32
    %282 = vector.broadcast %cst_59 : f32 to vector<8x128xf32>
    %283 = arith.addf %282, %281 : vector<8x128xf32>
    %284 = arith.divf %282, %283 : vector<8x128xf32>
    %285 = vector.extract_strided_slice %278 {offsets = [0, 128], sizes = [8, 128], strides = [1, 1]} : vector<8x512xf32> to vector<8x128xf32>
    %286 = arith.negf %285 : vector<8x128xf32>
    %287 = math.exp %286 : vector<8x128xf32>
    %cst_60 = arith.constant 1.000000e+00 : f32
    %288 = vector.broadcast %cst_60 : f32 to vector<8x128xf32>
    %289 = arith.addf %288, %287 : vector<8x128xf32>
    %290 = arith.divf %288, %289 : vector<8x128xf32>
    %291 = vector.extract_strided_slice %278 {offsets = [0, 256], sizes = [8, 128], strides = [1, 1]} : vector<8x512xf32> to vector<8x128xf32>
    %292 = math.tanh %291 : vector<8x128xf32>
    %293 = vector.extract_strided_slice %278 {offsets = [0, 384], sizes = [8, 128], strides = [1, 1]} : vector<8x512xf32> to vector<8x128xf32>
    %294 = arith.negf %293 : vector<8x128xf32>
    %295 = math.exp %294 : vector<8x128xf32>
    %cst_61 = arith.constant 1.000000e+00 : f32
    %296 = vector.broadcast %cst_61 : f32 to vector<8x128xf32>
    %297 = arith.addf %296, %295 : vector<8x128xf32>
    %298 = arith.divf %296, %297 : vector<8x128xf32>
    %299 = arith.mulf %290, %243 : vector<8x128xf32>
    %300 = arith.mulf %284, %292 : vector<8x128xf32>
    %301 = arith.addf %299, %300 : vector<8x128xf32>
    %302 = math.tanh %301 : vector<8x128xf32>
    %303 = arith.mulf %298, %302 : vector<8x128xf32>
    %304 = vector.extract_strided_slice %9 {offsets = [40, 0], sizes = [8, 512], strides = [1, 1]} : vector<64x512xf32> to vector<8x512xf32>
    %cst_62 = arith.constant dense<0.000000e+00> : vector<8x512xf32>
    %305 = tpu.matmul %273, %1, %cst_62 {dimension_numbers = #tpu.dot_dimension_numbers<[1], [0], [0], [1], [0, 0, 1, 1], [], []>} : vector<8x128xf32>, vector<128x512xf32>, vector<8x512xf32> -> vector<8x512xf32>
    %306 = arith.addf %304, %305 : vector<8x512xf32>
    %307 = vector.extract_strided_slice %306 {offsets = [0, 0], sizes = [8, 128], strides = [1, 1]} : vector<8x512xf32> to vector<8x128xf32>
    %308 = arith.negf %307 : vector<8x128xf32>
    %309 = math.exp %308 : vector<8x128xf32>
    %cst_63 = arith.constant 1.000000e+00 : f32
    %310 = vector.broadcast %cst_63 : f32 to vector<8x128xf32>
    %311 = arith.addf %310, %309 : vector<8x128xf32>
    %312 = arith.divf %310, %311 : vector<8x128xf32>
    %313 = vector.extract_strided_slice %306 {offsets = [0, 128], sizes = [8, 128], strides = [1, 1]} : vector<8x512xf32> to vector<8x128xf32>
    %314 = arith.negf %313 : vector<8x128xf32>
    %315 = math.exp %314 : vector<8x128xf32>
    %cst_64 = arith.constant 1.000000e+00 : f32
    %316 = vector.broadcast %cst_64 : f32 to vector<8x128xf32>
    %317 = arith.addf %316, %315 : vector<8x128xf32>
    %318 = arith.divf %316, %317 : vector<8x128xf32>
    %319 = vector.extract_strided_slice %306 {offsets = [0, 256], sizes = [8, 128], strides = [1, 1]} : vector<8x512xf32> to vector<8x128xf32>
    %320 = math.tanh %319 : vector<8x128xf32>
    %321 = vector.extract_strided_slice %306 {offsets = [0, 384], sizes = [8, 128], strides = [1, 1]} : vector<8x512xf32> to vector<8x128xf32>
    %322 = arith.negf %321 : vector<8x128xf32>
    %323 = math.exp %322 : vector<8x128xf32>
    %cst_65 = arith.constant 1.000000e+00 : f32
    %324 = vector.broadcast %cst_65 : f32 to vector<8x128xf32>
    %325 = arith.addf %324, %323 : vector<8x128xf32>
    %326 = arith.divf %324, %325 : vector<8x128xf32>
    %327 = arith.mulf %318, %271 : vector<8x128xf32>
    %328 = arith.mulf %312, %320 : vector<8x128xf32>
    %329 = arith.addf %327, %328 : vector<8x128xf32>
    %330 = math.tanh %329 : vector<8x128xf32>
    %331 = arith.mulf %326, %330 : vector<8x128xf32>
    %cst_66 = arith.constant dense<0.000000e+00> : vector<8x512xf32>
    %332 = tpu.matmul %331, %3, %cst_66 {dimension_numbers = #tpu.dot_dimension_numbers<[1], [0], [0], [1], [0, 0, 1, 1], [], []>} : vector<8x128xf32>, vector<128x512xf32>, vector<8x512xf32> -> vector<8x512xf32>
    %cst_67 = arith.constant dense<0.000000e+00> : vector<8x512xf32>
    %333 = tpu.matmul %303, %4, %cst_67 {dimension_numbers = #tpu.dot_dimension_numbers<[1], [0], [0], [1], [0, 0, 1, 1], [], []>} : vector<8x128xf32>, vector<128x512xf32>, vector<8x512xf32> -> vector<8x512xf32>
    %334 = arith.addf %332, %333 : vector<8x512xf32>
    %335 = vector.broadcast %5 : vector<1x512xf32> to vector<8x512xf32>
    %336 = arith.addf %334, %335 : vector<8x512xf32>
    %337 = vector.extract_strided_slice %336 {offsets = [0, 0], sizes = [8, 128], strides = [1, 1]} : vector<8x512xf32> to vector<8x128xf32>
    %338 = arith.negf %337 : vector<8x128xf32>
    %339 = math.exp %338 : vector<8x128xf32>
    %cst_68 = arith.constant 1.000000e+00 : f32
    %340 = vector.broadcast %cst_68 : f32 to vector<8x128xf32>
    %341 = arith.addf %340, %339 : vector<8x128xf32>
    %342 = arith.divf %340, %341 : vector<8x128xf32>
    %343 = vector.extract_strided_slice %336 {offsets = [0, 128], sizes = [8, 128], strides = [1, 1]} : vector<8x512xf32> to vector<8x128xf32>
    %344 = arith.negf %343 : vector<8x128xf32>
    %345 = math.exp %344 : vector<8x128xf32>
    %cst_69 = arith.constant 1.000000e+00 : f32
    %346 = vector.broadcast %cst_69 : f32 to vector<8x128xf32>
    %347 = arith.addf %346, %345 : vector<8x128xf32>
    %348 = arith.divf %346, %347 : vector<8x128xf32>
    %349 = vector.extract_strided_slice %336 {offsets = [0, 256], sizes = [8, 128], strides = [1, 1]} : vector<8x512xf32> to vector<8x128xf32>
    %350 = math.tanh %349 : vector<8x128xf32>
    %351 = vector.extract_strided_slice %336 {offsets = [0, 384], sizes = [8, 128], strides = [1, 1]} : vector<8x512xf32> to vector<8x128xf32>
    %352 = arith.negf %351 : vector<8x128xf32>
    %353 = math.exp %352 : vector<8x128xf32>
    %cst_70 = arith.constant 1.000000e+00 : f32
    %354 = vector.broadcast %cst_70 : f32 to vector<8x128xf32>
    %355 = arith.addf %354, %353 : vector<8x128xf32>
    %356 = arith.divf %354, %355 : vector<8x128xf32>
    %357 = arith.mulf %348, %301 : vector<8x128xf32>
    %358 = arith.mulf %342, %350 : vector<8x128xf32>
    %359 = arith.addf %357, %358 : vector<8x128xf32>
    %360 = math.tanh %359 : vector<8x128xf32>
    %361 = arith.mulf %356, %360 : vector<8x128xf32>
    %362 = vector.extract_strided_slice %9 {offsets = [48, 0], sizes = [8, 512], strides = [1, 1]} : vector<64x512xf32> to vector<8x512xf32>
    %cst_71 = arith.constant dense<0.000000e+00> : vector<8x512xf32>
    %363 = tpu.matmul %331, %1, %cst_71 {dimension_numbers = #tpu.dot_dimension_numbers<[1], [0], [0], [1], [0, 0, 1, 1], [], []>} : vector<8x128xf32>, vector<128x512xf32>, vector<8x512xf32> -> vector<8x512xf32>
    %364 = arith.addf %362, %363 : vector<8x512xf32>
    %365 = vector.extract_strided_slice %364 {offsets = [0, 0], sizes = [8, 128], strides = [1, 1]} : vector<8x512xf32> to vector<8x128xf32>
    %366 = arith.negf %365 : vector<8x128xf32>
    %367 = math.exp %366 : vector<8x128xf32>
    %cst_72 = arith.constant 1.000000e+00 : f32
    %368 = vector.broadcast %cst_72 : f32 to vector<8x128xf32>
    %369 = arith.addf %368, %367 : vector<8x128xf32>
    %370 = arith.divf %368, %369 : vector<8x128xf32>
    %371 = vector.extract_strided_slice %364 {offsets = [0, 128], sizes = [8, 128], strides = [1, 1]} : vector<8x512xf32> to vector<8x128xf32>
    %372 = arith.negf %371 : vector<8x128xf32>
    %373 = math.exp %372 : vector<8x128xf32>
    %cst_73 = arith.constant 1.000000e+00 : f32
    %374 = vector.broadcast %cst_73 : f32 to vector<8x128xf32>
    %375 = arith.addf %374, %373 : vector<8x128xf32>
    %376 = arith.divf %374, %375 : vector<8x128xf32>
    %377 = vector.extract_strided_slice %364 {offsets = [0, 256], sizes = [8, 128], strides = [1, 1]} : vector<8x512xf32> to vector<8x128xf32>
    %378 = math.tanh %377 : vector<8x128xf32>
    %379 = vector.extract_strided_slice %364 {offsets = [0, 384], sizes = [8, 128], strides = [1, 1]} : vector<8x512xf32> to vector<8x128xf32>
    %380 = arith.negf %379 : vector<8x128xf32>
    %381 = math.exp %380 : vector<8x128xf32>
    %cst_74 = arith.constant 1.000000e+00 : f32
    %382 = vector.broadcast %cst_74 : f32 to vector<8x128xf32>
    %383 = arith.addf %382, %381 : vector<8x128xf32>
    %384 = arith.divf %382, %383 : vector<8x128xf32>
    %385 = arith.mulf %376, %329 : vector<8x128xf32>
    %386 = arith.mulf %370, %378 : vector<8x128xf32>
    %387 = arith.addf %385, %386 : vector<8x128xf32>
    %388 = math.tanh %387 : vector<8x128xf32>
    %389 = arith.mulf %384, %388 : vector<8x128xf32>
    %cst_75 = arith.constant dense<0.000000e+00> : vector<8x512xf32>
    %390 = tpu.matmul %389, %3, %cst_75 {dimension_numbers = #tpu.dot_dimension_numbers<[1], [0], [0], [1], [0, 0, 1, 1], [], []>} : vector<8x128xf32>, vector<128x512xf32>, vector<8x512xf32> -> vector<8x512xf32>
    %cst_76 = arith.constant dense<0.000000e+00> : vector<8x512xf32>
    %391 = tpu.matmul %361, %4, %cst_76 {dimension_numbers = #tpu.dot_dimension_numbers<[1], [0], [0], [1], [0, 0, 1, 1], [], []>} : vector<8x128xf32>, vector<128x512xf32>, vector<8x512xf32> -> vector<8x512xf32>
    %392 = arith.addf %390, %391 : vector<8x512xf32>
    %393 = vector.broadcast %5 : vector<1x512xf32> to vector<8x512xf32>
    %394 = arith.addf %392, %393 : vector<8x512xf32>
    %395 = vector.extract_strided_slice %394 {offsets = [0, 0], sizes = [8, 128], strides = [1, 1]} : vector<8x512xf32> to vector<8x128xf32>
    %396 = arith.negf %395 : vector<8x128xf32>
    %397 = math.exp %396 : vector<8x128xf32>
    %cst_77 = arith.constant 1.000000e+00 : f32
    %398 = vector.broadcast %cst_77 : f32 to vector<8x128xf32>
    %399 = arith.addf %398, %397 : vector<8x128xf32>
    %400 = arith.divf %398, %399 : vector<8x128xf32>
    %401 = vector.extract_strided_slice %394 {offsets = [0, 128], sizes = [8, 128], strides = [1, 1]} : vector<8x512xf32> to vector<8x128xf32>
    %402 = arith.negf %401 : vector<8x128xf32>
    %403 = math.exp %402 : vector<8x128xf32>
    %cst_78 = arith.constant 1.000000e+00 : f32
    %404 = vector.broadcast %cst_78 : f32 to vector<8x128xf32>
    %405 = arith.addf %404, %403 : vector<8x128xf32>
    %406 = arith.divf %404, %405 : vector<8x128xf32>
    %407 = vector.extract_strided_slice %394 {offsets = [0, 256], sizes = [8, 128], strides = [1, 1]} : vector<8x512xf32> to vector<8x128xf32>
    %408 = math.tanh %407 : vector<8x128xf32>
    %409 = vector.extract_strided_slice %394 {offsets = [0, 384], sizes = [8, 128], strides = [1, 1]} : vector<8x512xf32> to vector<8x128xf32>
    %410 = arith.negf %409 : vector<8x128xf32>
    %411 = math.exp %410 : vector<8x128xf32>
    %cst_79 = arith.constant 1.000000e+00 : f32
    %412 = vector.broadcast %cst_79 : f32 to vector<8x128xf32>
    %413 = arith.addf %412, %411 : vector<8x128xf32>
    %414 = arith.divf %412, %413 : vector<8x128xf32>
    %415 = arith.mulf %406, %359 : vector<8x128xf32>
    %416 = arith.mulf %400, %408 : vector<8x128xf32>
    %417 = arith.addf %415, %416 : vector<8x128xf32>
    %418 = math.tanh %417 : vector<8x128xf32>
    %419 = arith.mulf %414, %418 : vector<8x128xf32>
    %420 = vector.extract_strided_slice %9 {offsets = [56, 0], sizes = [8, 512], strides = [1, 1]} : vector<64x512xf32> to vector<8x512xf32>
    %cst_80 = arith.constant dense<0.000000e+00> : vector<8x512xf32>
    %421 = tpu.matmul %389, %1, %cst_80 {dimension_numbers = #tpu.dot_dimension_numbers<[1], [0], [0], [1], [0, 0, 1, 1], [], []>} : vector<8x128xf32>, vector<128x512xf32>, vector<8x512xf32> -> vector<8x512xf32>
    %422 = arith.addf %420, %421 : vector<8x512xf32>
    %423 = vector.extract_strided_slice %422 {offsets = [0, 0], sizes = [8, 128], strides = [1, 1]} : vector<8x512xf32> to vector<8x128xf32>
    %424 = arith.negf %423 : vector<8x128xf32>
    %425 = math.exp %424 : vector<8x128xf32>
    %cst_81 = arith.constant 1.000000e+00 : f32
    %426 = vector.broadcast %cst_81 : f32 to vector<8x128xf32>
    %427 = arith.addf %426, %425 : vector<8x128xf32>
    %428 = arith.divf %426, %427 : vector<8x128xf32>
    %429 = vector.extract_strided_slice %422 {offsets = [0, 128], sizes = [8, 128], strides = [1, 1]} : vector<8x512xf32> to vector<8x128xf32>
    %430 = arith.negf %429 : vector<8x128xf32>
    %431 = math.exp %430 : vector<8x128xf32>
    %cst_82 = arith.constant 1.000000e+00 : f32
    %432 = vector.broadcast %cst_82 : f32 to vector<8x128xf32>
    %433 = arith.addf %432, %431 : vector<8x128xf32>
    %434 = arith.divf %432, %433 : vector<8x128xf32>
    %435 = vector.extract_strided_slice %422 {offsets = [0, 256], sizes = [8, 128], strides = [1, 1]} : vector<8x512xf32> to vector<8x128xf32>
    %436 = math.tanh %435 : vector<8x128xf32>
    %437 = vector.extract_strided_slice %422 {offsets = [0, 384], sizes = [8, 128], strides = [1, 1]} : vector<8x512xf32> to vector<8x128xf32>
    %438 = arith.negf %437 : vector<8x128xf32>
    %439 = math.exp %438 : vector<8x128xf32>
    %cst_83 = arith.constant 1.000000e+00 : f32
    %440 = vector.broadcast %cst_83 : f32 to vector<8x128xf32>
    %441 = arith.addf %440, %439 : vector<8x128xf32>
    %442 = arith.divf %440, %441 : vector<8x128xf32>
    %443 = arith.mulf %434, %387 : vector<8x128xf32>
    %444 = arith.mulf %428, %436 : vector<8x128xf32>
    %445 = arith.addf %443, %444 : vector<8x128xf32>
    %446 = math.tanh %445 : vector<8x128xf32>
    %447 = arith.mulf %442, %446 : vector<8x128xf32>
    %cst_84 = arith.constant dense<0.000000e+00> : vector<8x512xf32>
    %448 = tpu.matmul %447, %3, %cst_84 {dimension_numbers = #tpu.dot_dimension_numbers<[1], [0], [0], [1], [0, 0, 1, 1], [], []>} : vector<8x128xf32>, vector<128x512xf32>, vector<8x512xf32> -> vector<8x512xf32>
    %cst_85 = arith.constant dense<0.000000e+00> : vector<8x512xf32>
    %449 = tpu.matmul %419, %4, %cst_85 {dimension_numbers = #tpu.dot_dimension_numbers<[1], [0], [0], [1], [0, 0, 1, 1], [], []>} : vector<8x128xf32>, vector<128x512xf32>, vector<8x512xf32> -> vector<8x512xf32>
    %450 = arith.addf %448, %449 : vector<8x512xf32>
    %451 = vector.broadcast %5 : vector<1x512xf32> to vector<8x512xf32>
    %452 = arith.addf %450, %451 : vector<8x512xf32>
    %453 = vector.extract_strided_slice %452 {offsets = [0, 0], sizes = [8, 128], strides = [1, 1]} : vector<8x512xf32> to vector<8x128xf32>
    %454 = arith.negf %453 : vector<8x128xf32>
    %455 = math.exp %454 : vector<8x128xf32>
    %cst_86 = arith.constant 1.000000e+00 : f32
    %456 = vector.broadcast %cst_86 : f32 to vector<8x128xf32>
    %457 = arith.addf %456, %455 : vector<8x128xf32>
    %458 = arith.divf %456, %457 : vector<8x128xf32>
    %459 = vector.extract_strided_slice %452 {offsets = [0, 128], sizes = [8, 128], strides = [1, 1]} : vector<8x512xf32> to vector<8x128xf32>
    %460 = arith.negf %459 : vector<8x128xf32>
    %461 = math.exp %460 : vector<8x128xf32>
    %cst_87 = arith.constant 1.000000e+00 : f32
    %462 = vector.broadcast %cst_87 : f32 to vector<8x128xf32>
    %463 = arith.addf %462, %461 : vector<8x128xf32>
    %464 = arith.divf %462, %463 : vector<8x128xf32>
    %465 = vector.extract_strided_slice %452 {offsets = [0, 256], sizes = [8, 128], strides = [1, 1]} : vector<8x512xf32> to vector<8x128xf32>
    %466 = math.tanh %465 : vector<8x128xf32>
    %467 = vector.extract_strided_slice %452 {offsets = [0, 384], sizes = [8, 128], strides = [1, 1]} : vector<8x512xf32> to vector<8x128xf32>
    %468 = arith.negf %467 : vector<8x128xf32>
    %469 = math.exp %468 : vector<8x128xf32>
    %cst_88 = arith.constant 1.000000e+00 : f32
    %470 = vector.broadcast %cst_88 : f32 to vector<8x128xf32>
    %471 = arith.addf %470, %469 : vector<8x128xf32>
    %472 = arith.divf %470, %471 : vector<8x128xf32>
    %473 = arith.mulf %464, %417 : vector<8x128xf32>
    %474 = arith.mulf %458, %466 : vector<8x128xf32>
    %475 = arith.addf %473, %474 : vector<8x128xf32>
    %476 = math.tanh %475 : vector<8x128xf32>
    %477 = arith.mulf %472, %476 : vector<8x128xf32>
    %c0_89 = arith.constant 0 : index
    %c0_90 = arith.constant 0 : index
    %c0_91 = arith.constant 0 : index
    %478 = vector.load %arg8[%c0_89, %c0_90, %c0_91] : memref<2x8x128xf32, #tpu.memory_space<vmem>>, vector<1x8x128xf32>
    %479 = vector.shape_cast %478 : vector<1x8x128xf32> to vector<8x128xf32>
    %480 = vector.shape_cast %447 : vector<8x128xf32> to vector<1x8x128xf32>
    tpu.vector_store %arg8[%c0_89, %c0_90, %c0_91], %480 {strides = array<i32>} : memref<2x8x128xf32, #tpu.memory_space<vmem>>, vector<1x8x128xf32>,
    %c0_92 = arith.constant 0 : index
    %c0_93 = arith.constant 0 : index
    %c0_94 = arith.constant 0 : index
    %481 = vector.load %arg9[%c0_92, %c0_93, %c0_94] : memref<2x8x128xf32, #tpu.memory_space<vmem>>, vector<1x8x128xf32>
    %482 = vector.shape_cast %481 : vector<1x8x128xf32> to vector<8x128xf32>
    %483 = vector.shape_cast %445 : vector<8x128xf32> to vector<1x8x128xf32>
    tpu.vector_store %arg9[%c0_92, %c0_93, %c0_94], %483 {strides = array<i32>} : memref<2x8x128xf32, #tpu.memory_space<vmem>>, vector<1x8x128xf32>,
    %c1 = arith.constant 1 : index
    %c0_95 = arith.constant 0 : index
    %c0_96 = arith.constant 0 : index
    %484 = vector.load %arg8[%c1, %c0_95, %c0_96] : memref<2x8x128xf32, #tpu.memory_space<vmem>>, vector<1x8x128xf32>
    %485 = vector.shape_cast %484 : vector<1x8x128xf32> to vector<8x128xf32>
    %486 = vector.shape_cast %477 : vector<8x128xf32> to vector<1x8x128xf32>
    tpu.vector_store %arg8[%c1, %c0_95, %c0_96], %486 {strides = array<i32>} : memref<2x8x128xf32, #tpu.memory_space<vmem>>, vector<1x8x128xf32>,
    %c1_97 = arith.constant 1 : index
    %c0_98 = arith.constant 0 : index
    %c0_99 = arith.constant 0 : index
    %487 = vector.load %arg9[%c1_97, %c0_98, %c0_99] : memref<2x8x128xf32, #tpu.memory_space<vmem>>, vector<1x8x128xf32>
    %488 = vector.shape_cast %487 : vector<1x8x128xf32> to vector<8x128xf32>
    %489 = vector.shape_cast %475 : vector<8x128xf32> to vector<1x8x128xf32>
    tpu.vector_store %arg9[%c1_97, %c0_98, %c0_99], %489 {strides = array<i32>} : memref<2x8x128xf32, #tpu.memory_space<vmem>>, vector<1x8x128xf32>,
    return
  }
  func.func @transform_0(%arg0: i32) -> (i32, i32) {
    %c0_i32 = arith.constant 0 : i32
    %c0_i32_0 = arith.constant 0 : i32
    %c0_i32_1 = arith.constant 0 : i32
    return %c0_i32, %c0_i32_0 : i32, i32
  }
  func.func @transform_1(%arg0: i32) -> (i32, i32) {
    %c0_i32 = arith.constant 0 : i32
    %c0_i32_0 = arith.constant 0 : i32
    %c0_i32_1 = arith.constant 0 : i32
    return %c0_i32, %c0_i32_0 : i32, i32
  }
  func.func @transform_2(%arg0: i32) -> (i32, i32) {
    %c0_i32 = arith.constant 0 : i32
    %c0_i32_0 = arith.constant 0 : i32
    %c0_i32_1 = arith.constant 0 : i32
    return %c0_i32, %c0_i32_0 : i32, i32
  }
  func.func @transform_3(%arg0: i32) -> (i32, i32) {
    %c0_i32 = arith.constant 0 : i32
    %c0_i32_0 = arith.constant 0 : i32
    %c0_i32_1 = arith.constant 0 : i32
    return %c0_i32, %c0_i32_0 : i32, i32
  }
  func.func @transform_4(%arg0: i32) -> (i32, i32) {
    %c0_i32 = arith.constant 0 : i32
    %c0_i32_0 = arith.constant 0 : i32
    %c0_i32_1 = arith.constant 0 : i32
    return %c0_i32, %c0_i32_0 : i32, i32
  }
  func.func @transform_5(%arg0: i32) -> (i32, i32) {
    %c0_i32 = arith.constant 0 : i32
    %c0_i32_0 = arith.constant 0 : i32
    %c0_i32_1 = arith.constant 0 : i32
    return %c0_i32, %c0_i32_0 : i32, i32
  }
  func.func @transform_6(%arg0: i32) -> (i32, i32) {
    %c0_i32 = arith.constant 0 : i32
    %c0_i32_0 = arith.constant 0 : i32
    %c0_i32_1 = arith.constant 0 : i32
    return %c0_i32, %c0_i32_0 : i32, i32
  }
  func.func @transform_7(%arg0: i32) -> (i32, i32, i32) {
    %c0_i32 = arith.constant 0 : i32
    %c0_i32_0 = arith.constant 0 : i32
    %c0_i32_1 = arith.constant 0 : i32
    %c0_i32_2 = arith.constant 0 : i32
    return %c0_i32, %c0_i32_0, %c0_i32_1 : i32, i32, i32
  }
  func.func @transform_8(%arg0: i32) -> (i32, i32, i32) {
    %c0_i32 = arith.constant 0 : i32
    %c0_i32_0 = arith.constant 0 : i32
    %c0_i32_1 = arith.constant 0 : i32
    %c0_i32_2 = arith.constant 0 : i32
    return %c0_i32, %c0_i32_0, %c0_i32_1 : i32, i32, i32
  }
}

module attributes {stable_mosaic.version = 11 : i64} {
  func.func @kernel(%arg0: i32, %arg1: memref<7xi32, #tpu.memory_space<smem>>, %arg2: memref<7x8x128xf32, #tpu.memory_space<vmem>>, %arg3: memref<128x128xf32, #tpu.memory_space<vmem>>, %arg4: memref<128x512xf32, #tpu.memory_space<vmem>>, %arg5: memref<128x512xf32, #tpu.memory_space<vmem>>, %arg6: memref<1x512xf32, #tpu.memory_space<vmem>>, %arg7: memref<128x512xf32, #tpu.memory_space<vmem>>, %arg8: memref<128x512xf32, #tpu.memory_space<vmem>>, %arg9: memref<1x512xf32, #tpu.memory_space<vmem>>, %arg10: memref<128x128xf32, #tpu.memory_space<vmem>>, %arg11: memref<1x128xf32, #tpu.memory_space<vmem>>, %arg12: memref<2x8x128xf32, #tpu.memory_space<vmem>>, %arg13: memref<2x8x128xf32, #tpu.memory_space<vmem>>, %arg14: memref<8x8x128xf32, #tpu.memory_space<vmem>>) attributes {dimension_semantics = [#tpu.dimension_semantics<arbitrary>], iteration_bounds = array<i64: 1>, scalar_prefetch = 1 : i64, scratch_operands = 0 : i64, tpu.core_type = #tpu.core_type<tc>, window_params = [{pipeline_mode = #tpu.pipeline_mode<synchronous>, transform_indices = @transform_0, window_bounds = array<i64: 7, 8, 128>}, {pipeline_mode = #tpu.pipeline_mode<synchronous>, transform_indices = @transform_1, window_bounds = array<i64: 128, 128>}, {pipeline_mode = #tpu.pipeline_mode<synchronous>, transform_indices = @transform_2, window_bounds = array<i64: 128, 512>}, {pipeline_mode = #tpu.pipeline_mode<synchronous>, transform_indices = @transform_3, window_bounds = array<i64: 128, 512>}, {pipeline_mode = #tpu.pipeline_mode<synchronous>, transform_indices = @transform_4, window_bounds = array<i64: 1, 512>}, {pipeline_mode = #tpu.pipeline_mode<synchronous>, transform_indices = @transform_5, window_bounds = array<i64: 128, 512>}, {pipeline_mode = #tpu.pipeline_mode<synchronous>, transform_indices = @transform_6, window_bounds = array<i64: 128, 512>}, {pipeline_mode = #tpu.pipeline_mode<synchronous>, transform_indices = @transform_7, window_bounds = array<i64: 1, 512>}, {pipeline_mode = #tpu.pipeline_mode<synchronous>, transform_indices = @transform_8, window_bounds = array<i64: 128, 128>}, {pipeline_mode = #tpu.pipeline_mode<synchronous>, transform_indices = @transform_9, window_bounds = array<i64: 1, 128>}, {pipeline_mode = #tpu.pipeline_mode<synchronous>, transform_indices = @transform_10, window_bounds = array<i64: 2, 8, 128>}, {pipeline_mode = #tpu.pipeline_mode<synchronous>, transform_indices = @transform_11, window_bounds = array<i64: 2, 8, 128>}, {pipeline_mode = #tpu.pipeline_mode<synchronous>, transform_indices = @transform_12, window_bounds = array<i64: 8, 8, 128>}]} {
    %c0 = arith.constant 0 : index
    %c0_0 = arith.constant 0 : index
    %0 = vector.load %arg4[%c0, %c0_0] : memref<128x512xf32, #tpu.memory_space<vmem>>, vector<128x512xf32>
    %c0_1 = arith.constant 0 : index
    %c0_2 = arith.constant 0 : index
    %1 = vector.load %arg5[%c0_1, %c0_2] : memref<128x512xf32, #tpu.memory_space<vmem>>, vector<128x512xf32>
    %c0_3 = arith.constant 0 : index
    %c0_4 = arith.constant 0 : index
    %2 = vector.load %arg6[%c0_3, %c0_4] : memref<1x512xf32, #tpu.memory_space<vmem>>, vector<1x512xf32>
    %c0_5 = arith.constant 0 : index
    %c0_6 = arith.constant 0 : index
    %3 = vector.load %arg7[%c0_5, %c0_6] : memref<128x512xf32, #tpu.memory_space<vmem>>, vector<128x512xf32>
    %c0_7 = arith.constant 0 : index
    %c0_8 = arith.constant 0 : index
    %4 = vector.load %arg8[%c0_7, %c0_8] : memref<128x512xf32, #tpu.memory_space<vmem>>, vector<128x512xf32>
    %c0_9 = arith.constant 0 : index
    %c0_10 = arith.constant 0 : index
    %5 = vector.load %arg9[%c0_9, %c0_10] : memref<1x512xf32, #tpu.memory_space<vmem>>, vector<1x512xf32>
    %c0_11 = arith.constant 0 : index
    %c0_12 = arith.constant 0 : index
    %6 = vector.load %arg10[%c0_11, %c0_12] : memref<128x128xf32, #tpu.memory_space<vmem>>, vector<128x128xf32>
    %c0_13 = arith.constant 0 : index
    %c0_14 = arith.constant 0 : index
    %7 = vector.load %arg11[%c0_13, %c0_14] : memref<1x128xf32, #tpu.memory_space<vmem>>, vector<1x128xf32>
    %c0_15 = arith.constant 0 : index
    %c0_16 = arith.constant 0 : index
    %8 = vector.load %arg3[%c0_15, %c0_16] : memref<128x128xf32, #tpu.memory_space<vmem>>, vector<128x128xf32>
    %c0_17 = arith.constant 0 : index
    %c0_18 = arith.constant 0 : index
    %c0_19 = arith.constant 0 : index
    %9 = vector.load %arg12[%c0_17, %c0_18, %c0_19] : memref<2x8x128xf32, #tpu.memory_space<vmem>>, vector<1x8x128xf32>
    %10 = vector.shape_cast %9 : vector<1x8x128xf32> to vector<8x128xf32>
    %c1 = arith.constant 1 : index
    %c0_20 = arith.constant 0 : index
    %c0_21 = arith.constant 0 : index
    %11 = vector.load %arg12[%c1, %c0_20, %c0_21] : memref<2x8x128xf32, #tpu.memory_space<vmem>>, vector<1x8x128xf32>
    %12 = vector.shape_cast %11 : vector<1x8x128xf32> to vector<8x128xf32>
    %c0_22 = arith.constant 0 : index
    %c0_23 = arith.constant 0 : index
    %c0_24 = arith.constant 0 : index
    %13 = vector.load %arg13[%c0_22, %c0_23, %c0_24] : memref<2x8x128xf32, #tpu.memory_space<vmem>>, vector<1x8x128xf32>
    %14 = vector.shape_cast %13 : vector<1x8x128xf32> to vector<8x128xf32>
    %c1_25 = arith.constant 1 : index
    %c0_26 = arith.constant 0 : index
    %c0_27 = arith.constant 0 : index
    %15 = vector.load %arg13[%c1_25, %c0_26, %c0_27] : memref<2x8x128xf32, #tpu.memory_space<vmem>>, vector<1x8x128xf32>
    %16 = vector.shape_cast %15 : vector<1x8x128xf32> to vector<8x128xf32>
    %cst = arith.constant 0.000000e+00 : f32
    %17 = vector.broadcast %cst : f32 to vector<8x128xf32>
    %c0_28 = arith.constant 0 : index
    %c0_29 = arith.constant 0 : index
    %c0_30 = arith.constant 0 : index
    %18 = vector.load %arg14[%c0_28, %c0_29, %c0_30] : memref<8x8x128xf32, #tpu.memory_space<vmem>>, vector<1x8x128xf32>
    %19 = vector.shape_cast %18 : vector<1x8x128xf32> to vector<8x128xf32>
    %20 = vector.shape_cast %17 : vector<8x128xf32> to vector<1x8x128xf32>
    tpu.vector_store %arg14[%c0_28, %c0_29, %c0_30], %20 {strides = array<i32>} : memref<8x8x128xf32, #tpu.memory_space<vmem>>, vector<1x8x128xf32>,
    %21 = tpu.iota {dimensions = array<i32: 1>} : vector<8x128xi32>
    %22 = arith.sitofp %21 : vector<8x128xi32> to vector<8x128xf32>
    %c0_31 = arith.constant 0 : index
    %c0_32 = arith.constant 0 : index
    %c0_33 = arith.constant 0 : index
    %23 = vector.load %arg2[%c0_31, %c0_32, %c0_33] : memref<7x8x128xf32, #tpu.memory_space<vmem>>, vector<1x8x128xf32>
    %24 = vector.shape_cast %23 : vector<1x8x128xf32> to vector<8x128xf32>
    %cst_34 = arith.constant dense<0.000000e+00> : vector<8x512xf32>
    %25 = tpu.matmul %24, %0, %cst_34 {dimension_numbers = #tpu.dot_dimension_numbers<[1], [0], [0], [1], [0, 0, 1, 1], [], []>} : vector<8x128xf32>, vector<128x512xf32>, vector<8x512xf32> -> vector<8x512xf32>
    %cst_35 = arith.constant dense<0.000000e+00> : vector<8x512xf32>
    %26 = tpu.matmul %10, %1, %cst_35 {dimension_numbers = #tpu.dot_dimension_numbers<[1], [0], [0], [1], [0, 0, 1, 1], [], []>} : vector<8x128xf32>, vector<128x512xf32>, vector<8x512xf32> -> vector<8x512xf32>
    %27 = arith.addf %25, %26 : vector<8x512xf32>
    %28 = vector.broadcast %2 : vector<1x512xf32> to vector<8x512xf32>
    %29 = arith.addf %27, %28 : vector<8x512xf32>
    %30 = vector.extract_strided_slice %29 {offsets = [0, 0], sizes = [8, 128], strides = [1, 1]} : vector<8x512xf32> to vector<8x128xf32>
    %31 = arith.negf %30 : vector<8x128xf32>
    %32 = math.exp %31 : vector<8x128xf32>
    %cst_36 = arith.constant 1.000000e+00 : f32
    %33 = vector.broadcast %cst_36 : f32 to vector<8x128xf32>
    %34 = arith.addf %33, %32 : vector<8x128xf32>
    %35 = arith.divf %33, %34 : vector<8x128xf32>
    %36 = vector.extract_strided_slice %29 {offsets = [0, 128], sizes = [8, 128], strides = [1, 1]} : vector<8x512xf32> to vector<8x128xf32>
    %37 = arith.negf %36 : vector<8x128xf32>
    %38 = math.exp %37 : vector<8x128xf32>
    %cst_37 = arith.constant 1.000000e+00 : f32
    %39 = vector.broadcast %cst_37 : f32 to vector<8x128xf32>
    %40 = arith.addf %39, %38 : vector<8x128xf32>
    %41 = arith.divf %39, %40 : vector<8x128xf32>
    %42 = vector.extract_strided_slice %29 {offsets = [0, 256], sizes = [8, 128], strides = [1, 1]} : vector<8x512xf32> to vector<8x128xf32>
    %43 = math.tanh %42 : vector<8x128xf32>
    %44 = vector.extract_strided_slice %29 {offsets = [0, 384], sizes = [8, 128], strides = [1, 1]} : vector<8x512xf32> to vector<8x128xf32>
    %45 = arith.negf %44 : vector<8x128xf32>
    %46 = math.exp %45 : vector<8x128xf32>
    %cst_38 = arith.constant 1.000000e+00 : f32
    %47 = vector.broadcast %cst_38 : f32 to vector<8x128xf32>
    %48 = arith.addf %47, %46 : vector<8x128xf32>
    %49 = arith.divf %47, %48 : vector<8x128xf32>
    %50 = arith.mulf %41, %14 : vector<8x128xf32>
    %51 = arith.mulf %35, %43 : vector<8x128xf32>
    %52 = arith.addf %50, %51 : vector<8x128xf32>
    %53 = math.tanh %52 : vector<8x128xf32>
    %54 = arith.mulf %49, %53 : vector<8x128xf32>
    %cst_39 = arith.constant dense<0.000000e+00> : vector<8x512xf32>
    %55 = tpu.matmul %54, %3, %cst_39 {dimension_numbers = #tpu.dot_dimension_numbers<[1], [0], [0], [1], [0, 0, 1, 1], [], []>} : vector<8x128xf32>, vector<128x512xf32>, vector<8x512xf32> -> vector<8x512xf32>
    %cst_40 = arith.constant dense<0.000000e+00> : vector<8x512xf32>
    %56 = tpu.matmul %12, %4, %cst_40 {dimension_numbers = #tpu.dot_dimension_numbers<[1], [0], [0], [1], [0, 0, 1, 1], [], []>} : vector<8x128xf32>, vector<128x512xf32>, vector<8x512xf32> -> vector<8x512xf32>
    %57 = arith.addf %55, %56 : vector<8x512xf32>
    %58 = vector.broadcast %5 : vector<1x512xf32> to vector<8x512xf32>
    %59 = arith.addf %57, %58 : vector<8x512xf32>
    %60 = vector.extract_strided_slice %59 {offsets = [0, 0], sizes = [8, 128], strides = [1, 1]} : vector<8x512xf32> to vector<8x128xf32>
    %61 = arith.negf %60 : vector<8x128xf32>
    %62 = math.exp %61 : vector<8x128xf32>
    %cst_41 = arith.constant 1.000000e+00 : f32
    %63 = vector.broadcast %cst_41 : f32 to vector<8x128xf32>
    %64 = arith.addf %63, %62 : vector<8x128xf32>
    %65 = arith.divf %63, %64 : vector<8x128xf32>
    %66 = vector.extract_strided_slice %59 {offsets = [0, 128], sizes = [8, 128], strides = [1, 1]} : vector<8x512xf32> to vector<8x128xf32>
    %67 = arith.negf %66 : vector<8x128xf32>
    %68 = math.exp %67 : vector<8x128xf32>
    %cst_42 = arith.constant 1.000000e+00 : f32
    %69 = vector.broadcast %cst_42 : f32 to vector<8x128xf32>
    %70 = arith.addf %69, %68 : vector<8x128xf32>
    %71 = arith.divf %69, %70 : vector<8x128xf32>
    %72 = vector.extract_strided_slice %59 {offsets = [0, 256], sizes = [8, 128], strides = [1, 1]} : vector<8x512xf32> to vector<8x128xf32>
    %73 = math.tanh %72 : vector<8x128xf32>
    %74 = vector.extract_strided_slice %59 {offsets = [0, 384], sizes = [8, 128], strides = [1, 1]} : vector<8x512xf32> to vector<8x128xf32>
    %75 = arith.negf %74 : vector<8x128xf32>
    %76 = math.exp %75 : vector<8x128xf32>
    %cst_43 = arith.constant 1.000000e+00 : f32
    %77 = vector.broadcast %cst_43 : f32 to vector<8x128xf32>
    %78 = arith.addf %77, %76 : vector<8x128xf32>
    %79 = arith.divf %77, %78 : vector<8x128xf32>
    %80 = arith.mulf %71, %16 : vector<8x128xf32>
    %81 = arith.mulf %65, %73 : vector<8x128xf32>
    %82 = arith.addf %80, %81 : vector<8x128xf32>
    %83 = math.tanh %82 : vector<8x128xf32>
    %84 = arith.mulf %79, %83 : vector<8x128xf32>
    %cst_44 = arith.constant dense<0.000000e+00> : vector<8x128xf32>
    %85 = tpu.matmul %84, %6, %cst_44 {dimension_numbers = #tpu.dot_dimension_numbers<[1], [0], [0], [1], [0, 0, 1, 1], [], []>} : vector<8x128xf32>, vector<128x128xf32>, vector<8x128xf32> -> vector<8x128xf32>
    %86 = vector.broadcast %7 : vector<1x128xf32> to vector<8x128xf32>
    %87 = arith.addf %85, %86 : vector<8x128xf32>
    %c1_45 = arith.constant 1 : index
    %c0_46 = arith.constant 0 : index
    %c0_47 = arith.constant 0 : index
    %88 = vector.load %arg14[%c1_45, %c0_46, %c0_47] : memref<8x8x128xf32, #tpu.memory_space<vmem>>, vector<1x8x128xf32>
    %89 = vector.shape_cast %88 : vector<1x8x128xf32> to vector<8x128xf32>
    %90 = vector.shape_cast %87 : vector<8x128xf32> to vector<1x8x128xf32>
    tpu.vector_store %arg14[%c1_45, %c0_46, %c0_47], %90 {strides = array<i32>} : memref<8x8x128xf32, #tpu.memory_space<vmem>>, vector<1x8x128xf32>,
    %cst_48 = arith.constant dense<0xFF800000> : vector<8xf32>
    %91 = vector.multi_reduction <maximumf>, %87, %cst_48 [1] : vector<8x128xf32> to vector<8xf32>
    %92 = vector.shape_cast %91 : vector<8xf32> to vector<8x1xf32>
    %93 = vector.broadcast %92 : vector<8x1xf32> to vector<8x128xf32>
    %94 = arith.cmpf oeq, %87, %93 : vector<8x128xf32>
    %cst_49 = arith.constant 1.280000e+02 : f32
    %95 = vector.broadcast %cst_49 : f32 to vector<8x128xf32>
    %96 = arith.select %94, %22, %95 : vector<8x128xi1>, vector<8x128xf32>
    %cst_50 = arith.constant dense<0x7F800000> : vector<8xf32>
    %97 = vector.multi_reduction <minimumf>, %96, %cst_50 [1] : vector<8x128xf32> to vector<8xf32>
    %98 = vector.shape_cast %97 : vector<8xf32> to vector<8x1xf32>
    %99 = vector.broadcast %98 : vector<8x1xf32> to vector<8x128xf32>
    %100 = arith.cmpf oeq, %22, %99 : vector<8x128xf32>
    %101 = arith.extui %100 : vector<8x128xi1> to vector<8x128xi32>
    %102 = arith.sitofp %101 : vector<8x128xi32> to vector<8x128xf32>
    %cst_51 = arith.constant dense<0.000000e+00> : vector<8x128xf32>
    %103 = tpu.matmul %102, %8, %cst_51 {dimension_numbers = #tpu.dot_dimension_numbers<[1], [0], [0], [1], [0, 0, 1, 1], [], []>} : vector<8x128xf32>, vector<128x128xf32>, vector<8x128xf32> -> vector<8x128xf32>
    %c1_52 = arith.constant 1 : index
    %c0_53 = arith.constant 0 : index
    %c0_54 = arith.constant 0 : index
    %104 = vector.load %arg2[%c1_52, %c0_53, %c0_54] : memref<7x8x128xf32, #tpu.memory_space<vmem>>, vector<1x8x128xf32>
    %105 = vector.shape_cast %104 : vector<1x8x128xf32> to vector<8x128xf32>
    %c1_55 = arith.constant 1 : index
    %106 = memref.load %arg1[%c1_55] : memref<7xi32, #tpu.memory_space<smem>>
    %107 = arith.sitofp %106 : i32 to f32
    %108 = vector.broadcast %107 : f32 to vector<8x128xf32>
    %109 = arith.mulf %108, %105 : vector<8x128xf32>
    %cst_56 = arith.constant 1.000000e+00 : f32
    %110 = arith.subf %cst_56, %107 : f32
    %111 = vector.broadcast %110 : f32 to vector<8x128xf32>
    %112 = arith.mulf %111, %103 : vector<8x128xf32>
    %113 = arith.addf %109, %112 : vector<8x128xf32>
    %cst_57 = arith.constant dense<0.000000e+00> : vector<8x512xf32>
    %114 = tpu.matmul %113, %0, %cst_57 {dimension_numbers = #tpu.dot_dimension_numbers<[1], [0], [0], [1], [0, 0, 1, 1], [], []>} : vector<8x128xf32>, vector<128x512xf32>, vector<8x512xf32> -> vector<8x512xf32>
    %cst_58 = arith.constant dense<0.000000e+00> : vector<8x512xf32>
    %115 = tpu.matmul %54, %1, %cst_58 {dimension_numbers = #tpu.dot_dimension_numbers<[1], [0], [0], [1], [0, 0, 1, 1], [], []>} : vector<8x128xf32>, vector<128x512xf32>, vector<8x512xf32> -> vector<8x512xf32>
    %116 = arith.addf %114, %115 : vector<8x512xf32>
    %117 = vector.broadcast %2 : vector<1x512xf32> to vector<8x512xf32>
    %118 = arith.addf %116, %117 : vector<8x512xf32>
    %119 = vector.extract_strided_slice %118 {offsets = [0, 0], sizes = [8, 128], strides = [1, 1]} : vector<8x512xf32> to vector<8x128xf32>
    %120 = arith.negf %119 : vector<8x128xf32>
    %121 = math.exp %120 : vector<8x128xf32>
    %cst_59 = arith.constant 1.000000e+00 : f32
    %122 = vector.broadcast %cst_59 : f32 to vector<8x128xf32>
    %123 = arith.addf %122, %121 : vector<8x128xf32>
    %124 = arith.divf %122, %123 : vector<8x128xf32>
    %125 = vector.extract_strided_slice %118 {offsets = [0, 128], sizes = [8, 128], strides = [1, 1]} : vector<8x512xf32> to vector<8x128xf32>
    %126 = arith.negf %125 : vector<8x128xf32>
    %127 = math.exp %126 : vector<8x128xf32>
    %cst_60 = arith.constant 1.000000e+00 : f32
    %128 = vector.broadcast %cst_60 : f32 to vector<8x128xf32>
    %129 = arith.addf %128, %127 : vector<8x128xf32>
    %130 = arith.divf %128, %129 : vector<8x128xf32>
    %131 = vector.extract_strided_slice %118 {offsets = [0, 256], sizes = [8, 128], strides = [1, 1]} : vector<8x512xf32> to vector<8x128xf32>
    %132 = math.tanh %131 : vector<8x128xf32>
    %133 = vector.extract_strided_slice %118 {offsets = [0, 384], sizes = [8, 128], strides = [1, 1]} : vector<8x512xf32> to vector<8x128xf32>
    %134 = arith.negf %133 : vector<8x128xf32>
    %135 = math.exp %134 : vector<8x128xf32>
    %cst_61 = arith.constant 1.000000e+00 : f32
    %136 = vector.broadcast %cst_61 : f32 to vector<8x128xf32>
    %137 = arith.addf %136, %135 : vector<8x128xf32>
    %138 = arith.divf %136, %137 : vector<8x128xf32>
    %139 = arith.mulf %130, %52 : vector<8x128xf32>
    %140 = arith.mulf %124, %132 : vector<8x128xf32>
    %141 = arith.addf %139, %140 : vector<8x128xf32>
    %142 = math.tanh %141 : vector<8x128xf32>
    %143 = arith.mulf %138, %142 : vector<8x128xf32>
    %cst_62 = arith.constant dense<0.000000e+00> : vector<8x512xf32>
    %144 = tpu.matmul %143, %3, %cst_62 {dimension_numbers = #tpu.dot_dimension_numbers<[1], [0], [0], [1], [0, 0, 1, 1], [], []>} : vector<8x128xf32>, vector<128x512xf32>, vector<8x512xf32> -> vector<8x512xf32>
    %cst_63 = arith.constant dense<0.000000e+00> : vector<8x512xf32>
    %145 = tpu.matmul %84, %4, %cst_63 {dimension_numbers = #tpu.dot_dimension_numbers<[1], [0], [0], [1], [0, 0, 1, 1], [], []>} : vector<8x128xf32>, vector<128x512xf32>, vector<8x512xf32> -> vector<8x512xf32>
    %146 = arith.addf %144, %145 : vector<8x512xf32>
    %147 = vector.broadcast %5 : vector<1x512xf32> to vector<8x512xf32>
    %148 = arith.addf %146, %147 : vector<8x512xf32>
    %149 = vector.extract_strided_slice %148 {offsets = [0, 0], sizes = [8, 128], strides = [1, 1]} : vector<8x512xf32> to vector<8x128xf32>
    %150 = arith.negf %149 : vector<8x128xf32>
    %151 = math.exp %150 : vector<8x128xf32>
    %cst_64 = arith.constant 1.000000e+00 : f32
    %152 = vector.broadcast %cst_64 : f32 to vector<8x128xf32>
    %153 = arith.addf %152, %151 : vector<8x128xf32>
    %154 = arith.divf %152, %153 : vector<8x128xf32>
    %155 = vector.extract_strided_slice %148 {offsets = [0, 128], sizes = [8, 128], strides = [1, 1]} : vector<8x512xf32> to vector<8x128xf32>
    %156 = arith.negf %155 : vector<8x128xf32>
    %157 = math.exp %156 : vector<8x128xf32>
    %cst_65 = arith.constant 1.000000e+00 : f32
    %158 = vector.broadcast %cst_65 : f32 to vector<8x128xf32>
    %159 = arith.addf %158, %157 : vector<8x128xf32>
    %160 = arith.divf %158, %159 : vector<8x128xf32>
    %161 = vector.extract_strided_slice %148 {offsets = [0, 256], sizes = [8, 128], strides = [1, 1]} : vector<8x512xf32> to vector<8x128xf32>
    %162 = math.tanh %161 : vector<8x128xf32>
    %163 = vector.extract_strided_slice %148 {offsets = [0, 384], sizes = [8, 128], strides = [1, 1]} : vector<8x512xf32> to vector<8x128xf32>
    %164 = arith.negf %163 : vector<8x128xf32>
    %165 = math.exp %164 : vector<8x128xf32>
    %cst_66 = arith.constant 1.000000e+00 : f32
    %166 = vector.broadcast %cst_66 : f32 to vector<8x128xf32>
    %167 = arith.addf %166, %165 : vector<8x128xf32>
    %168 = arith.divf %166, %167 : vector<8x128xf32>
    %169 = arith.mulf %160, %82 : vector<8x128xf32>
    %170 = arith.mulf %154, %162 : vector<8x128xf32>
    %171 = arith.addf %169, %170 : vector<8x128xf32>
    %172 = math.tanh %171 : vector<8x128xf32>
    %173 = arith.mulf %168, %172 : vector<8x128xf32>
    %cst_67 = arith.constant dense<0.000000e+00> : vector<8x128xf32>
    %174 = tpu.matmul %173, %6, %cst_67 {dimension_numbers = #tpu.dot_dimension_numbers<[1], [0], [0], [1], [0, 0, 1, 1], [], []>} : vector<8x128xf32>, vector<128x128xf32>, vector<8x128xf32> -> vector<8x128xf32>
    %175 = vector.broadcast %7 : vector<1x128xf32> to vector<8x128xf32>
    %176 = arith.addf %174, %175 : vector<8x128xf32>
    %c2 = arith.constant 2 : index
    %c0_68 = arith.constant 0 : index
    %c0_69 = arith.constant 0 : index
    %177 = vector.load %arg14[%c2, %c0_68, %c0_69] : memref<8x8x128xf32, #tpu.memory_space<vmem>>, vector<1x8x128xf32>
    %178 = vector.shape_cast %177 : vector<1x8x128xf32> to vector<8x128xf32>
    %179 = vector.shape_cast %176 : vector<8x128xf32> to vector<1x8x128xf32>
    tpu.vector_store %arg14[%c2, %c0_68, %c0_69], %179 {strides = array<i32>} : memref<8x8x128xf32, #tpu.memory_space<vmem>>, vector<1x8x128xf32>,
    %cst_70 = arith.constant dense<0xFF800000> : vector<8xf32>
    %180 = vector.multi_reduction <maximumf>, %176, %cst_70 [1] : vector<8x128xf32> to vector<8xf32>
    %181 = vector.shape_cast %180 : vector<8xf32> to vector<8x1xf32>
    %182 = vector.broadcast %181 : vector<8x1xf32> to vector<8x128xf32>
    %183 = arith.cmpf oeq, %176, %182 : vector<8x128xf32>
    %cst_71 = arith.constant 1.280000e+02 : f32
    %184 = vector.broadcast %cst_71 : f32 to vector<8x128xf32>
    %185 = arith.select %183, %22, %184 : vector<8x128xi1>, vector<8x128xf32>
    %cst_72 = arith.constant dense<0x7F800000> : vector<8xf32>
    %186 = vector.multi_reduction <minimumf>, %185, %cst_72 [1] : vector<8x128xf32> to vector<8xf32>
    %187 = vector.shape_cast %186 : vector<8xf32> to vector<8x1xf32>
    %188 = vector.broadcast %187 : vector<8x1xf32> to vector<8x128xf32>
    %189 = arith.cmpf oeq, %22, %188 : vector<8x128xf32>
    %190 = arith.extui %189 : vector<8x128xi1> to vector<8x128xi32>
    %191 = arith.sitofp %190 : vector<8x128xi32> to vector<8x128xf32>
    %cst_73 = arith.constant dense<0.000000e+00> : vector<8x128xf32>
    %192 = tpu.matmul %191, %8, %cst_73 {dimension_numbers = #tpu.dot_dimension_numbers<[1], [0], [0], [1], [0, 0, 1, 1], [], []>} : vector<8x128xf32>, vector<128x128xf32>, vector<8x128xf32> -> vector<8x128xf32>
    %c2_74 = arith.constant 2 : index
    %c0_75 = arith.constant 0 : index
    %c0_76 = arith.constant 0 : index
    %193 = vector.load %arg2[%c2_74, %c0_75, %c0_76] : memref<7x8x128xf32, #tpu.memory_space<vmem>>, vector<1x8x128xf32>
    %194 = vector.shape_cast %193 : vector<1x8x128xf32> to vector<8x128xf32>
    %c2_77 = arith.constant 2 : index
    %195 = memref.load %arg1[%c2_77] : memref<7xi32, #tpu.memory_space<smem>>
    %196 = arith.sitofp %195 : i32 to f32
    %197 = vector.broadcast %196 : f32 to vector<8x128xf32>
    %198 = arith.mulf %197, %194 : vector<8x128xf32>
    %cst_78 = arith.constant 1.000000e+00 : f32
    %199 = arith.subf %cst_78, %196 : f32
    %200 = vector.broadcast %199 : f32 to vector<8x128xf32>
    %201 = arith.mulf %200, %192 : vector<8x128xf32>
    %202 = arith.addf %198, %201 : vector<8x128xf32>
    %cst_79 = arith.constant dense<0.000000e+00> : vector<8x512xf32>
    %203 = tpu.matmul %202, %0, %cst_79 {dimension_numbers = #tpu.dot_dimension_numbers<[1], [0], [0], [1], [0, 0, 1, 1], [], []>} : vector<8x128xf32>, vector<128x512xf32>, vector<8x512xf32> -> vector<8x512xf32>
    %cst_80 = arith.constant dense<0.000000e+00> : vector<8x512xf32>
    %204 = tpu.matmul %143, %1, %cst_80 {dimension_numbers = #tpu.dot_dimension_numbers<[1], [0], [0], [1], [0, 0, 1, 1], [], []>} : vector<8x128xf32>, vector<128x512xf32>, vector<8x512xf32> -> vector<8x512xf32>
    %205 = arith.addf %203, %204 : vector<8x512xf32>
    %206 = vector.broadcast %2 : vector<1x512xf32> to vector<8x512xf32>
    %207 = arith.addf %205, %206 : vector<8x512xf32>
    %208 = vector.extract_strided_slice %207 {offsets = [0, 0], sizes = [8, 128], strides = [1, 1]} : vector<8x512xf32> to vector<8x128xf32>
    %209 = arith.negf %208 : vector<8x128xf32>
    %210 = math.exp %209 : vector<8x128xf32>
    %cst_81 = arith.constant 1.000000e+00 : f32
    %211 = vector.broadcast %cst_81 : f32 to vector<8x128xf32>
    %212 = arith.addf %211, %210 : vector<8x128xf32>
    %213 = arith.divf %211, %212 : vector<8x128xf32>
    %214 = vector.extract_strided_slice %207 {offsets = [0, 128], sizes = [8, 128], strides = [1, 1]} : vector<8x512xf32> to vector<8x128xf32>
    %215 = arith.negf %214 : vector<8x128xf32>
    %216 = math.exp %215 : vector<8x128xf32>
    %cst_82 = arith.constant 1.000000e+00 : f32
    %217 = vector.broadcast %cst_82 : f32 to vector<8x128xf32>
    %218 = arith.addf %217, %216 : vector<8x128xf32>
    %219 = arith.divf %217, %218 : vector<8x128xf32>
    %220 = vector.extract_strided_slice %207 {offsets = [0, 256], sizes = [8, 128], strides = [1, 1]} : vector<8x512xf32> to vector<8x128xf32>
    %221 = math.tanh %220 : vector<8x128xf32>
    %222 = vector.extract_strided_slice %207 {offsets = [0, 384], sizes = [8, 128], strides = [1, 1]} : vector<8x512xf32> to vector<8x128xf32>
    %223 = arith.negf %222 : vector<8x128xf32>
    %224 = math.exp %223 : vector<8x128xf32>
    %cst_83 = arith.constant 1.000000e+00 : f32
    %225 = vector.broadcast %cst_83 : f32 to vector<8x128xf32>
    %226 = arith.addf %225, %224 : vector<8x128xf32>
    %227 = arith.divf %225, %226 : vector<8x128xf32>
    %228 = arith.mulf %219, %141 : vector<8x128xf32>
    %229 = arith.mulf %213, %221 : vector<8x128xf32>
    %230 = arith.addf %228, %229 : vector<8x128xf32>
    %231 = math.tanh %230 : vector<8x128xf32>
    %232 = arith.mulf %227, %231 : vector<8x128xf32>
    %cst_84 = arith.constant dense<0.000000e+00> : vector<8x512xf32>
    %233 = tpu.matmul %232, %3, %cst_84 {dimension_numbers = #tpu.dot_dimension_numbers<[1], [0], [0], [1], [0, 0, 1, 1], [], []>} : vector<8x128xf32>, vector<128x512xf32>, vector<8x512xf32> -> vector<8x512xf32>
    %cst_85 = arith.constant dense<0.000000e+00> : vector<8x512xf32>
    %234 = tpu.matmul %173, %4, %cst_85 {dimension_numbers = #tpu.dot_dimension_numbers<[1], [0], [0], [1], [0, 0, 1, 1], [], []>} : vector<8x128xf32>, vector<128x512xf32>, vector<8x512xf32> -> vector<8x512xf32>
    %235 = arith.addf %233, %234 : vector<8x512xf32>
    %236 = vector.broadcast %5 : vector<1x512xf32> to vector<8x512xf32>
    %237 = arith.addf %235, %236 : vector<8x512xf32>
    %238 = vector.extract_strided_slice %237 {offsets = [0, 0], sizes = [8, 128], strides = [1, 1]} : vector<8x512xf32> to vector<8x128xf32>
    %239 = arith.negf %238 : vector<8x128xf32>
    %240 = math.exp %239 : vector<8x128xf32>
    %cst_86 = arith.constant 1.000000e+00 : f32
    %241 = vector.broadcast %cst_86 : f32 to vector<8x128xf32>
    %242 = arith.addf %241, %240 : vector<8x128xf32>
    %243 = arith.divf %241, %242 : vector<8x128xf32>
    %244 = vector.extract_strided_slice %237 {offsets = [0, 128], sizes = [8, 128], strides = [1, 1]} : vector<8x512xf32> to vector<8x128xf32>
    %245 = arith.negf %244 : vector<8x128xf32>
    %246 = math.exp %245 : vector<8x128xf32>
    %cst_87 = arith.constant 1.000000e+00 : f32
    %247 = vector.broadcast %cst_87 : f32 to vector<8x128xf32>
    %248 = arith.addf %247, %246 : vector<8x128xf32>
    %249 = arith.divf %247, %248 : vector<8x128xf32>
    %250 = vector.extract_strided_slice %237 {offsets = [0, 256], sizes = [8, 128], strides = [1, 1]} : vector<8x512xf32> to vector<8x128xf32>
    %251 = math.tanh %250 : vector<8x128xf32>
    %252 = vector.extract_strided_slice %237 {offsets = [0, 384], sizes = [8, 128], strides = [1, 1]} : vector<8x512xf32> to vector<8x128xf32>
    %253 = arith.negf %252 : vector<8x128xf32>
    %254 = math.exp %253 : vector<8x128xf32>
    %cst_88 = arith.constant 1.000000e+00 : f32
    %255 = vector.broadcast %cst_88 : f32 to vector<8x128xf32>
    %256 = arith.addf %255, %254 : vector<8x128xf32>
    %257 = arith.divf %255, %256 : vector<8x128xf32>
    %258 = arith.mulf %249, %171 : vector<8x128xf32>
    %259 = arith.mulf %243, %251 : vector<8x128xf32>
    %260 = arith.addf %258, %259 : vector<8x128xf32>
    %261 = math.tanh %260 : vector<8x128xf32>
    %262 = arith.mulf %257, %261 : vector<8x128xf32>
    %cst_89 = arith.constant dense<0.000000e+00> : vector<8x128xf32>
    %263 = tpu.matmul %262, %6, %cst_89 {dimension_numbers = #tpu.dot_dimension_numbers<[1], [0], [0], [1], [0, 0, 1, 1], [], []>} : vector<8x128xf32>, vector<128x128xf32>, vector<8x128xf32> -> vector<8x128xf32>
    %264 = vector.broadcast %7 : vector<1x128xf32> to vector<8x128xf32>
    %265 = arith.addf %263, %264 : vector<8x128xf32>
    %c3 = arith.constant 3 : index
    %c0_90 = arith.constant 0 : index
    %c0_91 = arith.constant 0 : index
    %266 = vector.load %arg14[%c3, %c0_90, %c0_91] : memref<8x8x128xf32, #tpu.memory_space<vmem>>, vector<1x8x128xf32>
    %267 = vector.shape_cast %266 : vector<1x8x128xf32> to vector<8x128xf32>
    %268 = vector.shape_cast %265 : vector<8x128xf32> to vector<1x8x128xf32>
    tpu.vector_store %arg14[%c3, %c0_90, %c0_91], %268 {strides = array<i32>} : memref<8x8x128xf32, #tpu.memory_space<vmem>>, vector<1x8x128xf32>,
    %cst_92 = arith.constant dense<0xFF800000> : vector<8xf32>
    %269 = vector.multi_reduction <maximumf>, %265, %cst_92 [1] : vector<8x128xf32> to vector<8xf32>
    %270 = vector.shape_cast %269 : vector<8xf32> to vector<8x1xf32>
    %271 = vector.broadcast %270 : vector<8x1xf32> to vector<8x128xf32>
    %272 = arith.cmpf oeq, %265, %271 : vector<8x128xf32>
    %cst_93 = arith.constant 1.280000e+02 : f32
    %273 = vector.broadcast %cst_93 : f32 to vector<8x128xf32>
    %274 = arith.select %272, %22, %273 : vector<8x128xi1>, vector<8x128xf32>
    %cst_94 = arith.constant dense<0x7F800000> : vector<8xf32>
    %275 = vector.multi_reduction <minimumf>, %274, %cst_94 [1] : vector<8x128xf32> to vector<8xf32>
    %276 = vector.shape_cast %275 : vector<8xf32> to vector<8x1xf32>
    %277 = vector.broadcast %276 : vector<8x1xf32> to vector<8x128xf32>
    %278 = arith.cmpf oeq, %22, %277 : vector<8x128xf32>
    %279 = arith.extui %278 : vector<8x128xi1> to vector<8x128xi32>
    %280 = arith.sitofp %279 : vector<8x128xi32> to vector<8x128xf32>
    %cst_95 = arith.constant dense<0.000000e+00> : vector<8x128xf32>
    %281 = tpu.matmul %280, %8, %cst_95 {dimension_numbers = #tpu.dot_dimension_numbers<[1], [0], [0], [1], [0, 0, 1, 1], [], []>} : vector<8x128xf32>, vector<128x128xf32>, vector<8x128xf32> -> vector<8x128xf32>
    %c3_96 = arith.constant 3 : index
    %c0_97 = arith.constant 0 : index
    %c0_98 = arith.constant 0 : index
    %282 = vector.load %arg2[%c3_96, %c0_97, %c0_98] : memref<7x8x128xf32, #tpu.memory_space<vmem>>, vector<1x8x128xf32>
    %283 = vector.shape_cast %282 : vector<1x8x128xf32> to vector<8x128xf32>
    %c3_99 = arith.constant 3 : index
    %284 = memref.load %arg1[%c3_99] : memref<7xi32, #tpu.memory_space<smem>>
    %285 = arith.sitofp %284 : i32 to f32
    %286 = vector.broadcast %285 : f32 to vector<8x128xf32>
    %287 = arith.mulf %286, %283 : vector<8x128xf32>
    %cst_100 = arith.constant 1.000000e+00 : f32
    %288 = arith.subf %cst_100, %285 : f32
    %289 = vector.broadcast %288 : f32 to vector<8x128xf32>
    %290 = arith.mulf %289, %281 : vector<8x128xf32>
    %291 = arith.addf %287, %290 : vector<8x128xf32>
    %cst_101 = arith.constant dense<0.000000e+00> : vector<8x512xf32>
    %292 = tpu.matmul %291, %0, %cst_101 {dimension_numbers = #tpu.dot_dimension_numbers<[1], [0], [0], [1], [0, 0, 1, 1], [], []>} : vector<8x128xf32>, vector<128x512xf32>, vector<8x512xf32> -> vector<8x512xf32>
    %cst_102 = arith.constant dense<0.000000e+00> : vector<8x512xf32>
    %293 = tpu.matmul %232, %1, %cst_102 {dimension_numbers = #tpu.dot_dimension_numbers<[1], [0], [0], [1], [0, 0, 1, 1], [], []>} : vector<8x128xf32>, vector<128x512xf32>, vector<8x512xf32> -> vector<8x512xf32>
    %294 = arith.addf %292, %293 : vector<8x512xf32>
    %295 = vector.broadcast %2 : vector<1x512xf32> to vector<8x512xf32>
    %296 = arith.addf %294, %295 : vector<8x512xf32>
    %297 = vector.extract_strided_slice %296 {offsets = [0, 0], sizes = [8, 128], strides = [1, 1]} : vector<8x512xf32> to vector<8x128xf32>
    %298 = arith.negf %297 : vector<8x128xf32>
    %299 = math.exp %298 : vector<8x128xf32>
    %cst_103 = arith.constant 1.000000e+00 : f32
    %300 = vector.broadcast %cst_103 : f32 to vector<8x128xf32>
    %301 = arith.addf %300, %299 : vector<8x128xf32>
    %302 = arith.divf %300, %301 : vector<8x128xf32>
    %303 = vector.extract_strided_slice %296 {offsets = [0, 128], sizes = [8, 128], strides = [1, 1]} : vector<8x512xf32> to vector<8x128xf32>
    %304 = arith.negf %303 : vector<8x128xf32>
    %305 = math.exp %304 : vector<8x128xf32>
    %cst_104 = arith.constant 1.000000e+00 : f32
    %306 = vector.broadcast %cst_104 : f32 to vector<8x128xf32>
    %307 = arith.addf %306, %305 : vector<8x128xf32>
    %308 = arith.divf %306, %307 : vector<8x128xf32>
    %309 = vector.extract_strided_slice %296 {offsets = [0, 256], sizes = [8, 128], strides = [1, 1]} : vector<8x512xf32> to vector<8x128xf32>
    %310 = math.tanh %309 : vector<8x128xf32>
    %311 = vector.extract_strided_slice %296 {offsets = [0, 384], sizes = [8, 128], strides = [1, 1]} : vector<8x512xf32> to vector<8x128xf32>
    %312 = arith.negf %311 : vector<8x128xf32>
    %313 = math.exp %312 : vector<8x128xf32>
    %cst_105 = arith.constant 1.000000e+00 : f32
    %314 = vector.broadcast %cst_105 : f32 to vector<8x128xf32>
    %315 = arith.addf %314, %313 : vector<8x128xf32>
    %316 = arith.divf %314, %315 : vector<8x128xf32>
    %317 = arith.mulf %308, %230 : vector<8x128xf32>
    %318 = arith.mulf %302, %310 : vector<8x128xf32>
    %319 = arith.addf %317, %318 : vector<8x128xf32>
    %320 = math.tanh %319 : vector<8x128xf32>
    %321 = arith.mulf %316, %320 : vector<8x128xf32>
    %cst_106 = arith.constant dense<0.000000e+00> : vector<8x512xf32>
    %322 = tpu.matmul %321, %3, %cst_106 {dimension_numbers = #tpu.dot_dimension_numbers<[1], [0], [0], [1], [0, 0, 1, 1], [], []>} : vector<8x128xf32>, vector<128x512xf32>, vector<8x512xf32> -> vector<8x512xf32>
    %cst_107 = arith.constant dense<0.000000e+00> : vector<8x512xf32>
    %323 = tpu.matmul %262, %4, %cst_107 {dimension_numbers = #tpu.dot_dimension_numbers<[1], [0], [0], [1], [0, 0, 1, 1], [], []>} : vector<8x128xf32>, vector<128x512xf32>, vector<8x512xf32> -> vector<8x512xf32>
    %324 = arith.addf %322, %323 : vector<8x512xf32>
    %325 = vector.broadcast %5 : vector<1x512xf32> to vector<8x512xf32>
    %326 = arith.addf %324, %325 : vector<8x512xf32>
    %327 = vector.extract_strided_slice %326 {offsets = [0, 0], sizes = [8, 128], strides = [1, 1]} : vector<8x512xf32> to vector<8x128xf32>
    %328 = arith.negf %327 : vector<8x128xf32>
    %329 = math.exp %328 : vector<8x128xf32>
    %cst_108 = arith.constant 1.000000e+00 : f32
    %330 = vector.broadcast %cst_108 : f32 to vector<8x128xf32>
    %331 = arith.addf %330, %329 : vector<8x128xf32>
    %332 = arith.divf %330, %331 : vector<8x128xf32>
    %333 = vector.extract_strided_slice %326 {offsets = [0, 128], sizes = [8, 128], strides = [1, 1]} : vector<8x512xf32> to vector<8x128xf32>
    %334 = arith.negf %333 : vector<8x128xf32>
    %335 = math.exp %334 : vector<8x128xf32>
    %cst_109 = arith.constant 1.000000e+00 : f32
    %336 = vector.broadcast %cst_109 : f32 to vector<8x128xf32>
    %337 = arith.addf %336, %335 : vector<8x128xf32>
    %338 = arith.divf %336, %337 : vector<8x128xf32>
    %339 = vector.extract_strided_slice %326 {offsets = [0, 256], sizes = [8, 128], strides = [1, 1]} : vector<8x512xf32> to vector<8x128xf32>
    %340 = math.tanh %339 : vector<8x128xf32>
    %341 = vector.extract_strided_slice %326 {offsets = [0, 384], sizes = [8, 128], strides = [1, 1]} : vector<8x512xf32> to vector<8x128xf32>
    %342 = arith.negf %341 : vector<8x128xf32>
    %343 = math.exp %342 : vector<8x128xf32>
    %cst_110 = arith.constant 1.000000e+00 : f32
    %344 = vector.broadcast %cst_110 : f32 to vector<8x128xf32>
    %345 = arith.addf %344, %343 : vector<8x128xf32>
    %346 = arith.divf %344, %345 : vector<8x128xf32>
    %347 = arith.mulf %338, %260 : vector<8x128xf32>
    %348 = arith.mulf %332, %340 : vector<8x128xf32>
    %349 = arith.addf %347, %348 : vector<8x128xf32>
    %350 = math.tanh %349 : vector<8x128xf32>
    %351 = arith.mulf %346, %350 : vector<8x128xf32>
    %cst_111 = arith.constant dense<0.000000e+00> : vector<8x128xf32>
    %352 = tpu.matmul %351, %6, %cst_111 {dimension_numbers = #tpu.dot_dimension_numbers<[1], [0], [0], [1], [0, 0, 1, 1], [], []>} : vector<8x128xf32>, vector<128x128xf32>, vector<8x128xf32> -> vector<8x128xf32>
    %353 = vector.broadcast %7 : vector<1x128xf32> to vector<8x128xf32>
    %354 = arith.addf %352, %353 : vector<8x128xf32>
    %c4 = arith.constant 4 : index
    %c0_112 = arith.constant 0 : index
    %c0_113 = arith.constant 0 : index
    %355 = vector.load %arg14[%c4, %c0_112, %c0_113] : memref<8x8x128xf32, #tpu.memory_space<vmem>>, vector<1x8x128xf32>
    %356 = vector.shape_cast %355 : vector<1x8x128xf32> to vector<8x128xf32>
    %357 = vector.shape_cast %354 : vector<8x128xf32> to vector<1x8x128xf32>
    tpu.vector_store %arg14[%c4, %c0_112, %c0_113], %357 {strides = array<i32>} : memref<8x8x128xf32, #tpu.memory_space<vmem>>, vector<1x8x128xf32>,
    %cst_114 = arith.constant dense<0xFF800000> : vector<8xf32>
    %358 = vector.multi_reduction <maximumf>, %354, %cst_114 [1] : vector<8x128xf32> to vector<8xf32>
    %359 = vector.shape_cast %358 : vector<8xf32> to vector<8x1xf32>
    %360 = vector.broadcast %359 : vector<8x1xf32> to vector<8x128xf32>
    %361 = arith.cmpf oeq, %354, %360 : vector<8x128xf32>
    %cst_115 = arith.constant 1.280000e+02 : f32
    %362 = vector.broadcast %cst_115 : f32 to vector<8x128xf32>
    %363 = arith.select %361, %22, %362 : vector<8x128xi1>, vector<8x128xf32>
    %cst_116 = arith.constant dense<0x7F800000> : vector<8xf32>
    %364 = vector.multi_reduction <minimumf>, %363, %cst_116 [1] : vector<8x128xf32> to vector<8xf32>
    %365 = vector.shape_cast %364 : vector<8xf32> to vector<8x1xf32>
    %366 = vector.broadcast %365 : vector<8x1xf32> to vector<8x128xf32>
    %367 = arith.cmpf oeq, %22, %366 : vector<8x128xf32>
    %368 = arith.extui %367 : vector<8x128xi1> to vector<8x128xi32>
    %369 = arith.sitofp %368 : vector<8x128xi32> to vector<8x128xf32>
    %cst_117 = arith.constant dense<0.000000e+00> : vector<8x128xf32>
    %370 = tpu.matmul %369, %8, %cst_117 {dimension_numbers = #tpu.dot_dimension_numbers<[1], [0], [0], [1], [0, 0, 1, 1], [], []>} : vector<8x128xf32>, vector<128x128xf32>, vector<8x128xf32> -> vector<8x128xf32>
    %c4_118 = arith.constant 4 : index
    %c0_119 = arith.constant 0 : index
    %c0_120 = arith.constant 0 : index
    %371 = vector.load %arg2[%c4_118, %c0_119, %c0_120] : memref<7x8x128xf32, #tpu.memory_space<vmem>>, vector<1x8x128xf32>
    %372 = vector.shape_cast %371 : vector<1x8x128xf32> to vector<8x128xf32>
    %c4_121 = arith.constant 4 : index
    %373 = memref.load %arg1[%c4_121] : memref<7xi32, #tpu.memory_space<smem>>
    %374 = arith.sitofp %373 : i32 to f32
    %375 = vector.broadcast %374 : f32 to vector<8x128xf32>
    %376 = arith.mulf %375, %372 : vector<8x128xf32>
    %cst_122 = arith.constant 1.000000e+00 : f32
    %377 = arith.subf %cst_122, %374 : f32
    %378 = vector.broadcast %377 : f32 to vector<8x128xf32>
    %379 = arith.mulf %378, %370 : vector<8x128xf32>
    %380 = arith.addf %376, %379 : vector<8x128xf32>
    %cst_123 = arith.constant dense<0.000000e+00> : vector<8x512xf32>
    %381 = tpu.matmul %380, %0, %cst_123 {dimension_numbers = #tpu.dot_dimension_numbers<[1], [0], [0], [1], [0, 0, 1, 1], [], []>} : vector<8x128xf32>, vector<128x512xf32>, vector<8x512xf32> -> vector<8x512xf32>
    %cst_124 = arith.constant dense<0.000000e+00> : vector<8x512xf32>
    %382 = tpu.matmul %321, %1, %cst_124 {dimension_numbers = #tpu.dot_dimension_numbers<[1], [0], [0], [1], [0, 0, 1, 1], [], []>} : vector<8x128xf32>, vector<128x512xf32>, vector<8x512xf32> -> vector<8x512xf32>
    %383 = arith.addf %381, %382 : vector<8x512xf32>
    %384 = vector.broadcast %2 : vector<1x512xf32> to vector<8x512xf32>
    %385 = arith.addf %383, %384 : vector<8x512xf32>
    %386 = vector.extract_strided_slice %385 {offsets = [0, 0], sizes = [8, 128], strides = [1, 1]} : vector<8x512xf32> to vector<8x128xf32>
    %387 = arith.negf %386 : vector<8x128xf32>
    %388 = math.exp %387 : vector<8x128xf32>
    %cst_125 = arith.constant 1.000000e+00 : f32
    %389 = vector.broadcast %cst_125 : f32 to vector<8x128xf32>
    %390 = arith.addf %389, %388 : vector<8x128xf32>
    %391 = arith.divf %389, %390 : vector<8x128xf32>
    %392 = vector.extract_strided_slice %385 {offsets = [0, 128], sizes = [8, 128], strides = [1, 1]} : vector<8x512xf32> to vector<8x128xf32>
    %393 = arith.negf %392 : vector<8x128xf32>
    %394 = math.exp %393 : vector<8x128xf32>
    %cst_126 = arith.constant 1.000000e+00 : f32
    %395 = vector.broadcast %cst_126 : f32 to vector<8x128xf32>
    %396 = arith.addf %395, %394 : vector<8x128xf32>
    %397 = arith.divf %395, %396 : vector<8x128xf32>
    %398 = vector.extract_strided_slice %385 {offsets = [0, 256], sizes = [8, 128], strides = [1, 1]} : vector<8x512xf32> to vector<8x128xf32>
    %399 = math.tanh %398 : vector<8x128xf32>
    %400 = vector.extract_strided_slice %385 {offsets = [0, 384], sizes = [8, 128], strides = [1, 1]} : vector<8x512xf32> to vector<8x128xf32>
    %401 = arith.negf %400 : vector<8x128xf32>
    %402 = math.exp %401 : vector<8x128xf32>
    %cst_127 = arith.constant 1.000000e+00 : f32
    %403 = vector.broadcast %cst_127 : f32 to vector<8x128xf32>
    %404 = arith.addf %403, %402 : vector<8x128xf32>
    %405 = arith.divf %403, %404 : vector<8x128xf32>
    %406 = arith.mulf %397, %319 : vector<8x128xf32>
    %407 = arith.mulf %391, %399 : vector<8x128xf32>
    %408 = arith.addf %406, %407 : vector<8x128xf32>
    %409 = math.tanh %408 : vector<8x128xf32>
    %410 = arith.mulf %405, %409 : vector<8x128xf32>
    %cst_128 = arith.constant dense<0.000000e+00> : vector<8x512xf32>
    %411 = tpu.matmul %410, %3, %cst_128 {dimension_numbers = #tpu.dot_dimension_numbers<[1], [0], [0], [1], [0, 0, 1, 1], [], []>} : vector<8x128xf32>, vector<128x512xf32>, vector<8x512xf32> -> vector<8x512xf32>
    %cst_129 = arith.constant dense<0.000000e+00> : vector<8x512xf32>
    %412 = tpu.matmul %351, %4, %cst_129 {dimension_numbers = #tpu.dot_dimension_numbers<[1], [0], [0], [1], [0, 0, 1, 1], [], []>} : vector<8x128xf32>, vector<128x512xf32>, vector<8x512xf32> -> vector<8x512xf32>
    %413 = arith.addf %411, %412 : vector<8x512xf32>
    %414 = vector.broadcast %5 : vector<1x512xf32> to vector<8x512xf32>
    %415 = arith.addf %413, %414 : vector<8x512xf32>
    %416 = vector.extract_strided_slice %415 {offsets = [0, 0], sizes = [8, 128], strides = [1, 1]} : vector<8x512xf32> to vector<8x128xf32>
    %417 = arith.negf %416 : vector<8x128xf32>
    %418 = math.exp %417 : vector<8x128xf32>
    %cst_130 = arith.constant 1.000000e+00 : f32
    %419 = vector.broadcast %cst_130 : f32 to vector<8x128xf32>
    %420 = arith.addf %419, %418 : vector<8x128xf32>
    %421 = arith.divf %419, %420 : vector<8x128xf32>
    %422 = vector.extract_strided_slice %415 {offsets = [0, 128], sizes = [8, 128], strides = [1, 1]} : vector<8x512xf32> to vector<8x128xf32>
    %423 = arith.negf %422 : vector<8x128xf32>
    %424 = math.exp %423 : vector<8x128xf32>
    %cst_131 = arith.constant 1.000000e+00 : f32
    %425 = vector.broadcast %cst_131 : f32 to vector<8x128xf32>
    %426 = arith.addf %425, %424 : vector<8x128xf32>
    %427 = arith.divf %425, %426 : vector<8x128xf32>
    %428 = vector.extract_strided_slice %415 {offsets = [0, 256], sizes = [8, 128], strides = [1, 1]} : vector<8x512xf32> to vector<8x128xf32>
    %429 = math.tanh %428 : vector<8x128xf32>
    %430 = vector.extract_strided_slice %415 {offsets = [0, 384], sizes = [8, 128], strides = [1, 1]} : vector<8x512xf32> to vector<8x128xf32>
    %431 = arith.negf %430 : vector<8x128xf32>
    %432 = math.exp %431 : vector<8x128xf32>
    %cst_132 = arith.constant 1.000000e+00 : f32
    %433 = vector.broadcast %cst_132 : f32 to vector<8x128xf32>
    %434 = arith.addf %433, %432 : vector<8x128xf32>
    %435 = arith.divf %433, %434 : vector<8x128xf32>
    %436 = arith.mulf %427, %349 : vector<8x128xf32>
    %437 = arith.mulf %421, %429 : vector<8x128xf32>
    %438 = arith.addf %436, %437 : vector<8x128xf32>
    %439 = math.tanh %438 : vector<8x128xf32>
    %440 = arith.mulf %435, %439 : vector<8x128xf32>
    %cst_133 = arith.constant dense<0.000000e+00> : vector<8x128xf32>
    %441 = tpu.matmul %440, %6, %cst_133 {dimension_numbers = #tpu.dot_dimension_numbers<[1], [0], [0], [1], [0, 0, 1, 1], [], []>} : vector<8x128xf32>, vector<128x128xf32>, vector<8x128xf32> -> vector<8x128xf32>
    %442 = vector.broadcast %7 : vector<1x128xf32> to vector<8x128xf32>
    %443 = arith.addf %441, %442 : vector<8x128xf32>
    %c5 = arith.constant 5 : index
    %c0_134 = arith.constant 0 : index
    %c0_135 = arith.constant 0 : index
    %444 = vector.load %arg14[%c5, %c0_134, %c0_135] : memref<8x8x128xf32, #tpu.memory_space<vmem>>, vector<1x8x128xf32>
    %445 = vector.shape_cast %444 : vector<1x8x128xf32> to vector<8x128xf32>
    %446 = vector.shape_cast %443 : vector<8x128xf32> to vector<1x8x128xf32>
    tpu.vector_store %arg14[%c5, %c0_134, %c0_135], %446 {strides = array<i32>} : memref<8x8x128xf32, #tpu.memory_space<vmem>>, vector<1x8x128xf32>,
    %cst_136 = arith.constant dense<0xFF800000> : vector<8xf32>
    %447 = vector.multi_reduction <maximumf>, %443, %cst_136 [1] : vector<8x128xf32> to vector<8xf32>
    %448 = vector.shape_cast %447 : vector<8xf32> to vector<8x1xf32>
    %449 = vector.broadcast %448 : vector<8x1xf32> to vector<8x128xf32>
    %450 = arith.cmpf oeq, %443, %449 : vector<8x128xf32>
    %cst_137 = arith.constant 1.280000e+02 : f32
    %451 = vector.broadcast %cst_137 : f32 to vector<8x128xf32>
    %452 = arith.select %450, %22, %451 : vector<8x128xi1>, vector<8x128xf32>
    %cst_138 = arith.constant dense<0x7F800000> : vector<8xf32>
    %453 = vector.multi_reduction <minimumf>, %452, %cst_138 [1] : vector<8x128xf32> to vector<8xf32>
    %454 = vector.shape_cast %453 : vector<8xf32> to vector<8x1xf32>
    %455 = vector.broadcast %454 : vector<8x1xf32> to vector<8x128xf32>
    %456 = arith.cmpf oeq, %22, %455 : vector<8x128xf32>
    %457 = arith.extui %456 : vector<8x128xi1> to vector<8x128xi32>
    %458 = arith.sitofp %457 : vector<8x128xi32> to vector<8x128xf32>
    %cst_139 = arith.constant dense<0.000000e+00> : vector<8x128xf32>
    %459 = tpu.matmul %458, %8, %cst_139 {dimension_numbers = #tpu.dot_dimension_numbers<[1], [0], [0], [1], [0, 0, 1, 1], [], []>} : vector<8x128xf32>, vector<128x128xf32>, vector<8x128xf32> -> vector<8x128xf32>
    %c5_140 = arith.constant 5 : index
    %c0_141 = arith.constant 0 : index
    %c0_142 = arith.constant 0 : index
    %460 = vector.load %arg2[%c5_140, %c0_141, %c0_142] : memref<7x8x128xf32, #tpu.memory_space<vmem>>, vector<1x8x128xf32>
    %461 = vector.shape_cast %460 : vector<1x8x128xf32> to vector<8x128xf32>
    %c5_143 = arith.constant 5 : index
    %462 = memref.load %arg1[%c5_143] : memref<7xi32, #tpu.memory_space<smem>>
    %463 = arith.sitofp %462 : i32 to f32
    %464 = vector.broadcast %463 : f32 to vector<8x128xf32>
    %465 = arith.mulf %464, %461 : vector<8x128xf32>
    %cst_144 = arith.constant 1.000000e+00 : f32
    %466 = arith.subf %cst_144, %463 : f32
    %467 = vector.broadcast %466 : f32 to vector<8x128xf32>
    %468 = arith.mulf %467, %459 : vector<8x128xf32>
    %469 = arith.addf %465, %468 : vector<8x128xf32>
    %cst_145 = arith.constant dense<0.000000e+00> : vector<8x512xf32>
    %470 = tpu.matmul %469, %0, %cst_145 {dimension_numbers = #tpu.dot_dimension_numbers<[1], [0], [0], [1], [0, 0, 1, 1], [], []>} : vector<8x128xf32>, vector<128x512xf32>, vector<8x512xf32> -> vector<8x512xf32>
    %cst_146 = arith.constant dense<0.000000e+00> : vector<8x512xf32>
    %471 = tpu.matmul %410, %1, %cst_146 {dimension_numbers = #tpu.dot_dimension_numbers<[1], [0], [0], [1], [0, 0, 1, 1], [], []>} : vector<8x128xf32>, vector<128x512xf32>, vector<8x512xf32> -> vector<8x512xf32>
    %472 = arith.addf %470, %471 : vector<8x512xf32>
    %473 = vector.broadcast %2 : vector<1x512xf32> to vector<8x512xf32>
    %474 = arith.addf %472, %473 : vector<8x512xf32>
    %475 = vector.extract_strided_slice %474 {offsets = [0, 0], sizes = [8, 128], strides = [1, 1]} : vector<8x512xf32> to vector<8x128xf32>
    %476 = arith.negf %475 : vector<8x128xf32>
    %477 = math.exp %476 : vector<8x128xf32>
    %cst_147 = arith.constant 1.000000e+00 : f32
    %478 = vector.broadcast %cst_147 : f32 to vector<8x128xf32>
    %479 = arith.addf %478, %477 : vector<8x128xf32>
    %480 = arith.divf %478, %479 : vector<8x128xf32>
    %481 = vector.extract_strided_slice %474 {offsets = [0, 128], sizes = [8, 128], strides = [1, 1]} : vector<8x512xf32> to vector<8x128xf32>
    %482 = arith.negf %481 : vector<8x128xf32>
    %483 = math.exp %482 : vector<8x128xf32>
    %cst_148 = arith.constant 1.000000e+00 : f32
    %484 = vector.broadcast %cst_148 : f32 to vector<8x128xf32>
    %485 = arith.addf %484, %483 : vector<8x128xf32>
    %486 = arith.divf %484, %485 : vector<8x128xf32>
    %487 = vector.extract_strided_slice %474 {offsets = [0, 256], sizes = [8, 128], strides = [1, 1]} : vector<8x512xf32> to vector<8x128xf32>
    %488 = math.tanh %487 : vector<8x128xf32>
    %489 = vector.extract_strided_slice %474 {offsets = [0, 384], sizes = [8, 128], strides = [1, 1]} : vector<8x512xf32> to vector<8x128xf32>
    %490 = arith.negf %489 : vector<8x128xf32>
    %491 = math.exp %490 : vector<8x128xf32>
    %cst_149 = arith.constant 1.000000e+00 : f32
    %492 = vector.broadcast %cst_149 : f32 to vector<8x128xf32>
    %493 = arith.addf %492, %491 : vector<8x128xf32>
    %494 = arith.divf %492, %493 : vector<8x128xf32>
    %495 = arith.mulf %486, %408 : vector<8x128xf32>
    %496 = arith.mulf %480, %488 : vector<8x128xf32>
    %497 = arith.addf %495, %496 : vector<8x128xf32>
    %498 = math.tanh %497 : vector<8x128xf32>
    %499 = arith.mulf %494, %498 : vector<8x128xf32>
    %cst_150 = arith.constant dense<0.000000e+00> : vector<8x512xf32>
    %500 = tpu.matmul %499, %3, %cst_150 {dimension_numbers = #tpu.dot_dimension_numbers<[1], [0], [0], [1], [0, 0, 1, 1], [], []>} : vector<8x128xf32>, vector<128x512xf32>, vector<8x512xf32> -> vector<8x512xf32>
    %cst_151 = arith.constant dense<0.000000e+00> : vector<8x512xf32>
    %501 = tpu.matmul %440, %4, %cst_151 {dimension_numbers = #tpu.dot_dimension_numbers<[1], [0], [0], [1], [0, 0, 1, 1], [], []>} : vector<8x128xf32>, vector<128x512xf32>, vector<8x512xf32> -> vector<8x512xf32>
    %502 = arith.addf %500, %501 : vector<8x512xf32>
    %503 = vector.broadcast %5 : vector<1x512xf32> to vector<8x512xf32>
    %504 = arith.addf %502, %503 : vector<8x512xf32>
    %505 = vector.extract_strided_slice %504 {offsets = [0, 0], sizes = [8, 128], strides = [1, 1]} : vector<8x512xf32> to vector<8x128xf32>
    %506 = arith.negf %505 : vector<8x128xf32>
    %507 = math.exp %506 : vector<8x128xf32>
    %cst_152 = arith.constant 1.000000e+00 : f32
    %508 = vector.broadcast %cst_152 : f32 to vector<8x128xf32>
    %509 = arith.addf %508, %507 : vector<8x128xf32>
    %510 = arith.divf %508, %509 : vector<8x128xf32>
    %511 = vector.extract_strided_slice %504 {offsets = [0, 128], sizes = [8, 128], strides = [1, 1]} : vector<8x512xf32> to vector<8x128xf32>
    %512 = arith.negf %511 : vector<8x128xf32>
    %513 = math.exp %512 : vector<8x128xf32>
    %cst_153 = arith.constant 1.000000e+00 : f32
    %514 = vector.broadcast %cst_153 : f32 to vector<8x128xf32>
    %515 = arith.addf %514, %513 : vector<8x128xf32>
    %516 = arith.divf %514, %515 : vector<8x128xf32>
    %517 = vector.extract_strided_slice %504 {offsets = [0, 256], sizes = [8, 128], strides = [1, 1]} : vector<8x512xf32> to vector<8x128xf32>
    %518 = math.tanh %517 : vector<8x128xf32>
    %519 = vector.extract_strided_slice %504 {offsets = [0, 384], sizes = [8, 128], strides = [1, 1]} : vector<8x512xf32> to vector<8x128xf32>
    %520 = arith.negf %519 : vector<8x128xf32>
    %521 = math.exp %520 : vector<8x128xf32>
    %cst_154 = arith.constant 1.000000e+00 : f32
    %522 = vector.broadcast %cst_154 : f32 to vector<8x128xf32>
    %523 = arith.addf %522, %521 : vector<8x128xf32>
    %524 = arith.divf %522, %523 : vector<8x128xf32>
    %525 = arith.mulf %516, %438 : vector<8x128xf32>
    %526 = arith.mulf %510, %518 : vector<8x128xf32>
    %527 = arith.addf %525, %526 : vector<8x128xf32>
    %528 = math.tanh %527 : vector<8x128xf32>
    %529 = arith.mulf %524, %528 : vector<8x128xf32>
    %cst_155 = arith.constant dense<0.000000e+00> : vector<8x128xf32>
    %530 = tpu.matmul %529, %6, %cst_155 {dimension_numbers = #tpu.dot_dimension_numbers<[1], [0], [0], [1], [0, 0, 1, 1], [], []>} : vector<8x128xf32>, vector<128x128xf32>, vector<8x128xf32> -> vector<8x128xf32>
    %531 = vector.broadcast %7 : vector<1x128xf32> to vector<8x128xf32>
    %532 = arith.addf %530, %531 : vector<8x128xf32>
    %c6 = arith.constant 6 : index
    %c0_156 = arith.constant 0 : index
    %c0_157 = arith.constant 0 : index
    %533 = vector.load %arg14[%c6, %c0_156, %c0_157] : memref<8x8x128xf32, #tpu.memory_space<vmem>>, vector<1x8x128xf32>
    %534 = vector.shape_cast %533 : vector<1x8x128xf32> to vector<8x128xf32>
    %535 = vector.shape_cast %532 : vector<8x128xf32> to vector<1x8x128xf32>
    tpu.vector_store %arg14[%c6, %c0_156, %c0_157], %535 {strides = array<i32>} : memref<8x8x128xf32, #tpu.memory_space<vmem>>, vector<1x8x128xf32>,
    %cst_158 = arith.constant dense<0xFF800000> : vector<8xf32>
    %536 = vector.multi_reduction <maximumf>, %532, %cst_158 [1] : vector<8x128xf32> to vector<8xf32>
    %537 = vector.shape_cast %536 : vector<8xf32> to vector<8x1xf32>
    %538 = vector.broadcast %537 : vector<8x1xf32> to vector<8x128xf32>
    %539 = arith.cmpf oeq, %532, %538 : vector<8x128xf32>
    %cst_159 = arith.constant 1.280000e+02 : f32
    %540 = vector.broadcast %cst_159 : f32 to vector<8x128xf32>
    %541 = arith.select %539, %22, %540 : vector<8x128xi1>, vector<8x128xf32>
    %cst_160 = arith.constant dense<0x7F800000> : vector<8xf32>
    %542 = vector.multi_reduction <minimumf>, %541, %cst_160 [1] : vector<8x128xf32> to vector<8xf32>
    %543 = vector.shape_cast %542 : vector<8xf32> to vector<8x1xf32>
    %544 = vector.broadcast %543 : vector<8x1xf32> to vector<8x128xf32>
    %545 = arith.cmpf oeq, %22, %544 : vector<8x128xf32>
    %546 = arith.extui %545 : vector<8x128xi1> to vector<8x128xi32>
    %547 = arith.sitofp %546 : vector<8x128xi32> to vector<8x128xf32>
    %cst_161 = arith.constant dense<0.000000e+00> : vector<8x128xf32>
    %548 = tpu.matmul %547, %8, %cst_161 {dimension_numbers = #tpu.dot_dimension_numbers<[1], [0], [0], [1], [0, 0, 1, 1], [], []>} : vector<8x128xf32>, vector<128x128xf32>, vector<8x128xf32> -> vector<8x128xf32>
    %c6_162 = arith.constant 6 : index
    %c0_163 = arith.constant 0 : index
    %c0_164 = arith.constant 0 : index
    %549 = vector.load %arg2[%c6_162, %c0_163, %c0_164] : memref<7x8x128xf32, #tpu.memory_space<vmem>>, vector<1x8x128xf32>
    %550 = vector.shape_cast %549 : vector<1x8x128xf32> to vector<8x128xf32>
    %c6_165 = arith.constant 6 : index
    %551 = memref.load %arg1[%c6_165] : memref<7xi32, #tpu.memory_space<smem>>
    %552 = arith.sitofp %551 : i32 to f32
    %553 = vector.broadcast %552 : f32 to vector<8x128xf32>
    %554 = arith.mulf %553, %550 : vector<8x128xf32>
    %cst_166 = arith.constant 1.000000e+00 : f32
    %555 = arith.subf %cst_166, %552 : f32
    %556 = vector.broadcast %555 : f32 to vector<8x128xf32>
    %557 = arith.mulf %556, %548 : vector<8x128xf32>
    %558 = arith.addf %554, %557 : vector<8x128xf32>
    %cst_167 = arith.constant dense<0.000000e+00> : vector<8x512xf32>
    %559 = tpu.matmul %558, %0, %cst_167 {dimension_numbers = #tpu.dot_dimension_numbers<[1], [0], [0], [1], [0, 0, 1, 1], [], []>} : vector<8x128xf32>, vector<128x512xf32>, vector<8x512xf32> -> vector<8x512xf32>
    %cst_168 = arith.constant dense<0.000000e+00> : vector<8x512xf32>
    %560 = tpu.matmul %499, %1, %cst_168 {dimension_numbers = #tpu.dot_dimension_numbers<[1], [0], [0], [1], [0, 0, 1, 1], [], []>} : vector<8x128xf32>, vector<128x512xf32>, vector<8x512xf32> -> vector<8x512xf32>
    %561 = arith.addf %559, %560 : vector<8x512xf32>
    %562 = vector.broadcast %2 : vector<1x512xf32> to vector<8x512xf32>
    %563 = arith.addf %561, %562 : vector<8x512xf32>
    %564 = vector.extract_strided_slice %563 {offsets = [0, 0], sizes = [8, 128], strides = [1, 1]} : vector<8x512xf32> to vector<8x128xf32>
    %565 = arith.negf %564 : vector<8x128xf32>
    %566 = math.exp %565 : vector<8x128xf32>
    %cst_169 = arith.constant 1.000000e+00 : f32
    %567 = vector.broadcast %cst_169 : f32 to vector<8x128xf32>
    %568 = arith.addf %567, %566 : vector<8x128xf32>
    %569 = arith.divf %567, %568 : vector<8x128xf32>
    %570 = vector.extract_strided_slice %563 {offsets = [0, 128], sizes = [8, 128], strides = [1, 1]} : vector<8x512xf32> to vector<8x128xf32>
    %571 = arith.negf %570 : vector<8x128xf32>
    %572 = math.exp %571 : vector<8x128xf32>
    %cst_170 = arith.constant 1.000000e+00 : f32
    %573 = vector.broadcast %cst_170 : f32 to vector<8x128xf32>
    %574 = arith.addf %573, %572 : vector<8x128xf32>
    %575 = arith.divf %573, %574 : vector<8x128xf32>
    %576 = vector.extract_strided_slice %563 {offsets = [0, 256], sizes = [8, 128], strides = [1, 1]} : vector<8x512xf32> to vector<8x128xf32>
    %577 = math.tanh %576 : vector<8x128xf32>
    %578 = vector.extract_strided_slice %563 {offsets = [0, 384], sizes = [8, 128], strides = [1, 1]} : vector<8x512xf32> to vector<8x128xf32>
    %579 = arith.negf %578 : vector<8x128xf32>
    %580 = math.exp %579 : vector<8x128xf32>
    %cst_171 = arith.constant 1.000000e+00 : f32
    %581 = vector.broadcast %cst_171 : f32 to vector<8x128xf32>
    %582 = arith.addf %581, %580 : vector<8x128xf32>
    %583 = arith.divf %581, %582 : vector<8x128xf32>
    %584 = arith.mulf %575, %497 : vector<8x128xf32>
    %585 = arith.mulf %569, %577 : vector<8x128xf32>
    %586 = arith.addf %584, %585 : vector<8x128xf32>
    %587 = math.tanh %586 : vector<8x128xf32>
    %588 = arith.mulf %583, %587 : vector<8x128xf32>
    %cst_172 = arith.constant dense<0.000000e+00> : vector<8x512xf32>
    %589 = tpu.matmul %588, %3, %cst_172 {dimension_numbers = #tpu.dot_dimension_numbers<[1], [0], [0], [1], [0, 0, 1, 1], [], []>} : vector<8x128xf32>, vector<128x512xf32>, vector<8x512xf32> -> vector<8x512xf32>
    %cst_173 = arith.constant dense<0.000000e+00> : vector<8x512xf32>
    %590 = tpu.matmul %529, %4, %cst_173 {dimension_numbers = #tpu.dot_dimension_numbers<[1], [0], [0], [1], [0, 0, 1, 1], [], []>} : vector<8x128xf32>, vector<128x512xf32>, vector<8x512xf32> -> vector<8x512xf32>
    %591 = arith.addf %589, %590 : vector<8x512xf32>
    %592 = vector.broadcast %5 : vector<1x512xf32> to vector<8x512xf32>
    %593 = arith.addf %591, %592 : vector<8x512xf32>
    %594 = vector.extract_strided_slice %593 {offsets = [0, 0], sizes = [8, 128], strides = [1, 1]} : vector<8x512xf32> to vector<8x128xf32>
    %595 = arith.negf %594 : vector<8x128xf32>
    %596 = math.exp %595 : vector<8x128xf32>
    %cst_174 = arith.constant 1.000000e+00 : f32
    %597 = vector.broadcast %cst_174 : f32 to vector<8x128xf32>
    %598 = arith.addf %597, %596 : vector<8x128xf32>
    %599 = arith.divf %597, %598 : vector<8x128xf32>
    %600 = vector.extract_strided_slice %593 {offsets = [0, 128], sizes = [8, 128], strides = [1, 1]} : vector<8x512xf32> to vector<8x128xf32>
    %601 = arith.negf %600 : vector<8x128xf32>
    %602 = math.exp %601 : vector<8x128xf32>
    %cst_175 = arith.constant 1.000000e+00 : f32
    %603 = vector.broadcast %cst_175 : f32 to vector<8x128xf32>
    %604 = arith.addf %603, %602 : vector<8x128xf32>
    %605 = arith.divf %603, %604 : vector<8x128xf32>
    %606 = vector.extract_strided_slice %593 {offsets = [0, 256], sizes = [8, 128], strides = [1, 1]} : vector<8x512xf32> to vector<8x128xf32>
    %607 = math.tanh %606 : vector<8x128xf32>
    %608 = vector.extract_strided_slice %593 {offsets = [0, 384], sizes = [8, 128], strides = [1, 1]} : vector<8x512xf32> to vector<8x128xf32>
    %609 = arith.negf %608 : vector<8x128xf32>
    %610 = math.exp %609 : vector<8x128xf32>
    %cst_176 = arith.constant 1.000000e+00 : f32
    %611 = vector.broadcast %cst_176 : f32 to vector<8x128xf32>
    %612 = arith.addf %611, %610 : vector<8x128xf32>
    %613 = arith.divf %611, %612 : vector<8x128xf32>
    %614 = arith.mulf %605, %527 : vector<8x128xf32>
    %615 = arith.mulf %599, %607 : vector<8x128xf32>
    %616 = arith.addf %614, %615 : vector<8x128xf32>
    %617 = math.tanh %616 : vector<8x128xf32>
    %618 = arith.mulf %613, %617 : vector<8x128xf32>
    %cst_177 = arith.constant dense<0.000000e+00> : vector<8x128xf32>
    %619 = tpu.matmul %618, %6, %cst_177 {dimension_numbers = #tpu.dot_dimension_numbers<[1], [0], [0], [1], [0, 0, 1, 1], [], []>} : vector<8x128xf32>, vector<128x128xf32>, vector<8x128xf32> -> vector<8x128xf32>
    %620 = vector.broadcast %7 : vector<1x128xf32> to vector<8x128xf32>
    %621 = arith.addf %619, %620 : vector<8x128xf32>
    %c7 = arith.constant 7 : index
    %c0_178 = arith.constant 0 : index
    %c0_179 = arith.constant 0 : index
    %622 = vector.load %arg14[%c7, %c0_178, %c0_179] : memref<8x8x128xf32, #tpu.memory_space<vmem>>, vector<1x8x128xf32>
    %623 = vector.shape_cast %622 : vector<1x8x128xf32> to vector<8x128xf32>
    %624 = vector.shape_cast %621 : vector<8x128xf32> to vector<1x8x128xf32>
    tpu.vector_store %arg14[%c7, %c0_178, %c0_179], %624 {strides = array<i32>} : memref<8x8x128xf32, #tpu.memory_space<vmem>>, vector<1x8x128xf32>,
    return
  }
  func.func @transform_0(%arg0: i32, %arg1: memref<7xi32, #tpu.memory_space<smem>>) -> (i32, i32, i32) {
    %c0_i32 = arith.constant 0 : i32
    %c0_i32_0 = arith.constant 0 : i32
    %c0_i32_1 = arith.constant 0 : i32
    %c0_i32_2 = arith.constant 0 : i32
    return %c0_i32, %c0_i32_0, %c0_i32_1 : i32, i32, i32
  }
  func.func @transform_1(%arg0: i32, %arg1: memref<7xi32, #tpu.memory_space<smem>>) -> (i32, i32) {
    %c0_i32 = arith.constant 0 : i32
    %c0_i32_0 = arith.constant 0 : i32
    %c0_i32_1 = arith.constant 0 : i32
    return %c0_i32, %c0_i32_0 : i32, i32
  }
  func.func @transform_2(%arg0: i32, %arg1: memref<7xi32, #tpu.memory_space<smem>>) -> (i32, i32) {
    %c0_i32 = arith.constant 0 : i32
    %c0_i32_0 = arith.constant 0 : i32
    %c0_i32_1 = arith.constant 0 : i32
    return %c0_i32, %c0_i32_0 : i32, i32
  }
  func.func @transform_3(%arg0: i32, %arg1: memref<7xi32, #tpu.memory_space<smem>>) -> (i32, i32) {
    %c0_i32 = arith.constant 0 : i32
    %c0_i32_0 = arith.constant 0 : i32
    %c0_i32_1 = arith.constant 0 : i32
    return %c0_i32, %c0_i32_0 : i32, i32
  }
  func.func @transform_4(%arg0: i32, %arg1: memref<7xi32, #tpu.memory_space<smem>>) -> (i32, i32) {
    %c0_i32 = arith.constant 0 : i32
    %c0_i32_0 = arith.constant 0 : i32
    %c0_i32_1 = arith.constant 0 : i32
    return %c0_i32, %c0_i32_0 : i32, i32
  }
  func.func @transform_5(%arg0: i32, %arg1: memref<7xi32, #tpu.memory_space<smem>>) -> (i32, i32) {
    %c0_i32 = arith.constant 0 : i32
    %c0_i32_0 = arith.constant 0 : i32
    %c0_i32_1 = arith.constant 0 : i32
    return %c0_i32, %c0_i32_0 : i32, i32
  }
  func.func @transform_6(%arg0: i32, %arg1: memref<7xi32, #tpu.memory_space<smem>>) -> (i32, i32) {
    %c0_i32 = arith.constant 0 : i32
    %c0_i32_0 = arith.constant 0 : i32
    %c0_i32_1 = arith.constant 0 : i32
    return %c0_i32, %c0_i32_0 : i32, i32
  }
  func.func @transform_7(%arg0: i32, %arg1: memref<7xi32, #tpu.memory_space<smem>>) -> (i32, i32) {
    %c0_i32 = arith.constant 0 : i32
    %c0_i32_0 = arith.constant 0 : i32
    %c0_i32_1 = arith.constant 0 : i32
    return %c0_i32, %c0_i32_0 : i32, i32
  }
  func.func @transform_8(%arg0: i32, %arg1: memref<7xi32, #tpu.memory_space<smem>>) -> (i32, i32) {
    %c0_i32 = arith.constant 0 : i32
    %c0_i32_0 = arith.constant 0 : i32
    %c0_i32_1 = arith.constant 0 : i32
    return %c0_i32, %c0_i32_0 : i32, i32
  }
  func.func @transform_9(%arg0: i32, %arg1: memref<7xi32, #tpu.memory_space<smem>>) -> (i32, i32) {
    %c0_i32 = arith.constant 0 : i32
    %c0_i32_0 = arith.constant 0 : i32
    %c0_i32_1 = arith.constant 0 : i32
    return %c0_i32, %c0_i32_0 : i32, i32
  }
  func.func @transform_10(%arg0: i32, %arg1: memref<7xi32, #tpu.memory_space<smem>>) -> (i32, i32, i32) {
    %c0_i32 = arith.constant 0 : i32
    %c0_i32_0 = arith.constant 0 : i32
    %c0_i32_1 = arith.constant 0 : i32
    %c0_i32_2 = arith.constant 0 : i32
    return %c0_i32, %c0_i32_0, %c0_i32_1 : i32, i32, i32
  }
  func.func @transform_11(%arg0: i32, %arg1: memref<7xi32, #tpu.memory_space<smem>>) -> (i32, i32, i32) {
    %c0_i32 = arith.constant 0 : i32
    %c0_i32_0 = arith.constant 0 : i32
    %c0_i32_1 = arith.constant 0 : i32
    %c0_i32_2 = arith.constant 0 : i32
    return %c0_i32, %c0_i32_0, %c0_i32_1 : i32, i32, i32
  }
  func.func @transform_12(%arg0: i32, %arg1: memref<7xi32, #tpu.memory_space<smem>>) -> (i32, i32, i32) {
    %c0_i32 = arith.constant 0 : i32
    %c0_i32_0 = arith.constant 0 : i32
    %c0_i32_1 = arith.constant 0 : i32
    %c0_i32_2 = arith.constant 0 : i32
    return %c0_i32, %c0_i32_0, %c0_i32_1 : i32, i32, i32
  }
}

</mosaic_0001>

<bundles_post_ra>
// kernel: seq2seq_forward.2
= control target key start
LH: loop header
LB: loop body
LE: loop exit
PB: predicated region body
PF: predicated region fallthrough
CT: control target
= control target key end

     0   :  { %14 = vsyncpa [#allocation3], 0  ;;  %s8076_s0 = inlined_call_operand.vmem [shape: f32[64,128], index: 0, kind: input, shape index: {}]   ;;  %s8077_s1 = inlined_call_operand.vmem [shape: f32[128,512], index: 1, kind: input, shape index: {}]   ;;  %s8078_s2 = inlined_call_operand.hbm [shape: f32[128,512], index: 2, kind: input, shape index: {}]   ;;  %s8079_s3 = inlined_call_operand.vmem [shape: f32[1,512], index: 3, kind: input, shape index: {}]   ;;  %s8080_s4 = inlined_call_operand.hbm [shape: f32[128,512], index: 4, kind: input, shape index: {}]   ;;  %s8081_s5 = inlined_call_operand.hbm [shape: f32[128,512], index: 5, kind: input, shape index: {}]   ;;  %s8082_s6 = inlined_call_operand.vmem [shape: f32[1,512], index: 6, kind: input, shape index: {}]   ;;  %s8083_s7 = inlined_call_operand.vmem [shape: f32[2,8,128], index: 7, kind: output, shape index: {0}]   ;;  %s8084_s8 = inlined_call_operand.vmem [shape: f32[2,8,128], index: 8, kind: output, shape index: {1}]  }
   0x1   :  { %15 = vsyncpa [#allocation5], 0  ;;  %s6553_s27 = smov [#allocation4]   ;;  %s6554_s29 = smov [#allocation2]  }
   0x2   :  { %s39_s28 = sshll.u32 %s6553_s27, 4  ;;  %s25_s30 = sshll.u32 %s6554_s29, 4  ;;  %s40_s28 = int_to_ptr.vmem [resolvable:$true] %s39_s28  ;;  %s6604_s30 = int_to_ptr.vmem [resolvable:$true] %s25_s30 }
   0x3   :  { %s6483_s11 = scalar_lea.hbm %s8080_s4, 8192 }
   0x4   :  { %p6484_p0 = scmp.ne.s32.totalorder %s8080_s4, %s6483_s11  ;;  %p6487_p1 = scmp.lt.u32.totalorder %s6483_s11, %s8080_s4 }
   0x6   :  { %p6489_p2 = pnand %p6487_p1, %p6484_p0 }
   0x8   :  { %6492 = shalt.err (!%p6489_p2)
}
   0x9   :  { %s6493_s16 = scalar_lea.vmem %s40_s28, 8192  ;;  %p6498_p4 = scmp.lt.s32.totalorder %s40_s28, %s40_s28 }
   0xa   :  { %p6494_p3 = scmp.ne.s32.totalorder %s40_s28, %s6493_s16  ;;  %p6499_p5 = scmp.lt.s32.totalorder %s6493_s16, %s6493_s16 }
   0xc   :  { %p6500_p6 = por %p6499_p5, %p6498_p4 }
   0xe   :  { %p6501_p7 = pnand %p6500_p6, %p6494_p3 }
  0x10   :  { %6504 = shalt.err (!%p6501_p7)
}
  0x11   :  { %s6555_s17 = smov 512   ;;  %s6556_s18 = smov 32  }
  0x12   :  { %45 = dma.hbm_to_vmem [thread:$0]  %s8080_s4, 8192, %s40_s28, [#allocation5], %s6555_s17, %s6555_s17, %s6556_s18  }
  0x13   :  { %s6505_s23 = scalar_lea.hbm %s8078_s2, 8192 }
  0x14   :  { %p6506_p8 = scmp.ne.s32.totalorder %s8078_s2, %s6505_s23  ;;  %p6509_p9 = scmp.lt.u32.totalorder %s6505_s23, %s8078_s2 }
  0x16   :  { %p6511_p10 = pnand %p6509_p9, %p6506_p8 }
  0x18   :  { %6514 = shalt.err (!%p6511_p10)
}
  0x19   :  { %s6515_s29 = scalar_lea.vmem %s6604_s30, 8192  ;;  %p6520_p12 = scmp.lt.s32.totalorder %s6604_s30, %s6604_s30 }
  0x1a   :  { %p6516_p11 = scmp.ne.s32.totalorder %s6604_s30, %s6515_s29  ;;  %p6521_p13 = scmp.lt.s32.totalorder %s6515_s29, %s6515_s29 }
  0x1c   :  { %p6522_p0 = por %p6521_p13, %p6520_p12 }
  0x1e   :  { %p6523_p1 = pnand %p6522_p0, %p6516_p11 }
  0x20   :  { %6526 = shalt.err (!%p6523_p1)
}
  0x21   :  { %31 = dma.hbm_to_vmem [thread:$0]  %s8078_s2, 8192, %s6604_s30, [#allocation3], %s6555_s17, %s6555_s17, %s6556_s18  }
  0x22   :  { %s6557_s9 = smov [#allocation6]   ;;  %s6527_s13 = scalar_lea.hbm %s8081_s5, 8192 }
  0x23   :  { %s51_s10 = sshll.u32 %s6557_s9, 4  ;;  %p6528_p2 = scmp.ne.s32.totalorder %s8081_s5, %s6527_s13  ;;  %s52_s10 = int_to_ptr.vmem [resolvable:$true] %s51_s10 }
  0x24   :  { %p6531_p3 = scmp.lt.u32.totalorder %s6527_s13, %s8081_s5 }
  0x26   :  { %p6533_p4 = pnand %p6531_p3, %p6528_p2 }
  0x28   :  { %6536 = shalt.err (!%p6533_p4)
}
  0x29   :  { %s6537_s20 = scalar_lea.vmem %s52_s10, 8192  ;;  %p6542_p6 = scmp.lt.s32.totalorder %s52_s10, %s52_s10 }
  0x2a   :  { %p6538_p5 = scmp.ne.s32.totalorder %s52_s10, %s6537_s20  ;;  %p6543_p7 = scmp.lt.s32.totalorder %s6537_s20, %s6537_s20 }
  0x2c   :  { %p6544_p8 = por %p6543_p7, %p6542_p6 }
  0x2e   :  { %p6545_p9 = pnand %p6544_p8, %p6538_p5 }
  0x30   :  { %6548 = shalt.err (!%p6545_p9)
}
  0x31   :  { %57 = dma.hbm_to_vmem [thread:$0]  %s8081_s5, 8192, %s52_s10, [#allocation5], %s6555_s17, %s6555_s17, %s6556_s18  }
  0x32   :  { %6549 = dma.done.wait [#allocation3], 8192  }
  0x33   :  { %6550 = vsyncadd [#allocation3], 4294959104 }
  0x34   :  { %6551 = dma.done.wait [#allocation5], 16384  }
  0x35   :  { %6552 = vsyncadd [#allocation5], 4294950912  ;;  %v8085_v0 = vmov 0.0   ;;  %v70_v1 = vld [vmem:[%s8077_s1 + $0x8] sm:$0xff]  ;;  %v72_v3 = vld [vmem:[%s8077_s1 + $0x18] sm:$0xff] }
  0x36   :  { %420 = vmatprep.mubr.f32.mxu0 %v8085_v0  ;;  %533 = vmatprep.mubr.f32.mxu1 %v8085_v0  ;;  %v74_v2 = vld [vmem:[%s8077_s1 + $0x28] sm:$0xff]  ;;  %v76_v5 = vld [vmem:[%s8077_s1 + $0x38] sm:$0xff]  ;;  %v69_v6 = vld [vmem:[%s8077_s1] sm:$0xff] }
  0x37   :  { %v4525_v4 = vpack.c.bf16 %v74_v2, %v70_v1  ;;  %v73_v7 = vld [vmem:[%s8077_s1 + $0x20] sm:$0xff]  ;;  %v4557_v8 = vpack.c.bf16 %v76_v5, %v72_v3  ;;  %v71_v10 = vld [vmem:[%s8077_s1 + $0x10] sm:$0xff]  ;;  %v78_v12 = vld [vmem:[%s8077_s1 + $0x48] sm:$0xff] }
  0x38   :  { %v4527_v9 = vpack.c.bf16 %v73_v7, %v69_v6  ;;  %v75_v11 = vld [vmem:[%s8077_s1 + $0x30] sm:$0xff]  ;;  %v82_v14 = vld [vmem:[%s8077_s1 + $0x68] sm:$0xff]  ;;  %v80_v15 = vld [vmem:[%s8077_s1 + $0x58] sm:$0xff] }
  0x39   :  { %4526 = vmatprep.subr.bf16.mxu0 %v4525_v4  ;;  %v4559_v13 = vpack.c.bf16 %v75_v11, %v71_v10  ;;  %v84_v16 = vld [vmem:[%s8077_s1 + $0x78] sm:$0xff]  ;;  %4558 = vmatprep.subr.bf16.mxu1 %v4557_v8  ;;  %v4529_v17 = vpack.c.bf16 %v82_v14, %v78_v12  ;;  %v77_v19 = vld [vmem:[%s8077_s1 + $0x40] sm:$0xff]  ;;  %v79_v21 = vld [vmem:[%s8077_s1 + $0x50] sm:$0xff] }
  0x3a   :  { %4528 = vmatpush1.bf16.msra.mxu0 %v4527_v9  ;;  %v4561_v18 = vpack.c.bf16 %v84_v16, %v80_v15  ;;  %v81_v20 = vld [vmem:[%s8077_s1 + $0x60] sm:$0xff]  ;;  %v83_v23 = vld [vmem:[%s8077_s1 + $0x70] sm:$0xff]  ;;  %v86_v24 = vld [vmem:[%s8077_s1 + $0x88] sm:$0xff] }
  0x3b   :  { %4560 = vmatpush1.bf16.msra.mxu1 %v4559_v13  ;;  %v4531_v22 = vpack.c.bf16 %v81_v20, %v77_v19  ;;  %v90_v25 = vld [vmem:[%s8077_s1 + $0xa8] sm:$0xff]  ;;  %4530 = vmatprep.subr.bf16.mxu0 %v4529_v17  ;;  %v4563_v26 = vpack.c.bf16 %v83_v23, %v79_v21  ;;  %v88_v28 = vld [vmem:[%s8077_s1 + $0x98] sm:$0xff]  ;;  %v85_v30 = vld [vmem:[%s8077_s1 + $0x80] sm:$0xff] }
  0x3c   :  { %4562 = vmatprep.subr.bf16.mxu1 %v4561_v18  ;;  %v4533_v27 = vpack.c.bf16 %v90_v25, %v86_v24  ;;  %v92_v29 = vld [vmem:[%s8077_s1 + $0xb8] sm:$0xff]  ;;  %v89_v32 = vld [vmem:[%s8077_s1 + $0xa0] sm:$0xff]  ;;  %v87_v33 = vld [vmem:[%s8077_s1 + $0x90] sm:$0xff] }
  0x3d   :  { %v4565_v31 = vpack.c.bf16 %v92_v29, %v88_v28  ;;  %v91_v34 = vld [vmem:[%s8077_s1 + $0xb0] sm:$0xff]  ;;  %v4535_v35 = vpack.c.bf16 %v89_v32, %v85_v30  ;;  %v94_v36 = vld [vmem:[%s8077_s1 + $0xc8] sm:$0xff]  ;;  %v96_v38 = vld [vmem:[%s8077_s1 + $0xd8] sm:$0xff] }
  0x3e   :  { %4532 = vmatpush1.bf16.msra.mxu0 %v4531_v22  ;;  %v98_v37 = vld [vmem:[%s8077_s1 + $0xe8] sm:$0xff]  ;;  %v4567_v39 = vpack.c.bf16 %v91_v34, %v87_v33  ;;  %v100_v41 = vld [vmem:[%s8077_s1 + $0xf8] sm:$0xff]  ;;  %v93_v42 = vld [vmem:[%s8077_s1 + $0xc0] sm:$0xff] }
  0x3f   :  { %4564 = vmatpush1.bf16.msra.mxu1 %v4563_v26  ;;  %4534 = vmatprep.subr.bf16.mxu0 %v4533_v27  ;;  %v4537_v40 = vpack.c.bf16 %v98_v37, %v94_v36  ;;  %v97_v43 = vld [vmem:[%s8077_s1 + $0xe0] sm:$0xff]  ;;  %v4569_v44 = vpack.c.bf16 %v100_v41, %v96_v38  ;;  %v95_v45 = vld [vmem:[%s8077_s1 + $0xd0] sm:$0xff]  ;;  %v102_v47 = vld [vmem:[%s8077_s1 + $0x108] sm:$0xff] }
  0x40   :  { %4566 = vmatprep.subr.bf16.mxu1 %v4565_v31  ;;  %v99_v46 = vld [vmem:[%s8077_s1 + $0xf0] sm:$0xff]  ;;  %v106_v48 = vld [vmem:[%s8077_s1 + $0x128] sm:$0xff]  ;;  %v104_v49 = vld [vmem:[%s8077_s1 + $0x118] sm:$0xff]  ;;  %v4539_v51 = vpack.c.bf16 %v97_v43, %v93_v42 }
  0x41   :  { %v108_v50 = vld [vmem:[%s8077_s1 + $0x138] sm:$0xff]  ;;  %v4571_v52 = vpack.c.bf16 %v99_v46, %v95_v45  ;;  %v4541_v53 = vpack.c.bf16 %v106_v48, %v102_v47  ;;  %v101_v54 = vld [vmem:[%s8077_s1 + $0x100] sm:$0xff]  ;;  %v103_v56 = vld [vmem:[%s8077_s1 + $0x110] sm:$0xff] }
  0x42   :  { %4536 = vmatpush1.bf16.msra.mxu0 %v4535_v35  ;;  %v105_v55 = vld [vmem:[%s8077_s1 + $0x120] sm:$0xff]  ;;  %v4573_v57 = vpack.c.bf16 %v108_v50, %v104_v49  ;;  %v107_v58 = vld [vmem:[%s8077_s1 + $0x130] sm:$0xff]  ;;  %v110_v59 = vld [vmem:[%s8077_s1 + $0x148] sm:$0xff] }
  0x43   :  { %4568 = vmatpush1.bf16.msra.mxu1 %v4567_v39  ;;  %4538 = vmatprep.subr.bf16.mxu0 %v4537_v40  ;;  %v114_v60 = vld [vmem:[%s8077_s1 + $0x168] sm:$0xff]  ;;  %v112_v61 = vld [vmem:[%s8077_s1 + $0x158] sm:$0xff]  ;;  %v4543_v63 = vpack.c.bf16 %v105_v55, %v101_v54  ;;  %v4575_v1 = vpack.c.bf16 %v107_v58, %v103_v56  ;;  %v109_v3 = vld [vmem:[%s8077_s1 + $0x140] sm:$0xff] }
  0x44   :  { %4570 = vmatprep.subr.bf16.mxu1 %v4569_v44  ;;  %v116_v62 = vld [vmem:[%s8077_s1 + $0x178] sm:$0xff]  ;;  %v4545_v2 = vpack.c.bf16 %v114_v60, %v110_v59  ;;  %v113_v4 = vld [vmem:[%s8077_s1 + $0x160] sm:$0xff]  ;;  %v111_v5 = vld [vmem:[%s8077_s1 + $0x150] sm:$0xff] }
  0x45   :  { %v4577_v6 = vpack.c.bf16 %v116_v62, %v112_v61  ;;  %v115_v7 = vld [vmem:[%s8077_s1 + $0x170] sm:$0xff]  ;;  %v118_v8 = vld [vmem:[%s8077_s1 + $0x188] sm:$0xff]  ;;  %v120_v10 = vld [vmem:[%s8077_s1 + $0x198] sm:$0xff]  ;;  %v4547_v12 = vpack.c.bf16 %v113_v4, %v109_v3 }
  0x46   :  { %4540 = vmatpush1.bf16.msra.mxu0 %v4539_v51  ;;  %v122_v9 = vld [vmem:[%s8077_s1 + $0x1a8] sm:$0xff]  ;;  %v124_v11 = vld [vmem:[%s8077_s1 + $0x1b8] sm:$0xff]  ;;  %v4579_v13 = vpack.c.bf16 %v115_v7, %v111_v5  ;;  %v117_v15 = vld [vmem:[%s8077_s1 + $0x180] sm:$0xff] }
  0x47   :  { %4572 = vmatpush1.bf16.msra.mxu1 %v4571_v52  ;;  %4542 = vmatprep.subr.bf16.mxu0 %v4541_v53  ;;  %v4549_v14 = vpack.c.bf16 %v122_v9, %v118_v8  ;;  %v121_v16 = vld [vmem:[%s8077_s1 + $0x1a0] sm:$0xff]  ;;  %v119_v17 = vld [vmem:[%s8077_s1 + $0x190] sm:$0xff]  ;;  %v4581_v18 = vpack.c.bf16 %v124_v11, %v120_v10  ;;  %v126_v20 = vld [vmem:[%s8077_s1 + $0x1c8] sm:$0xff] }
  0x48   :  { %4574 = vmatprep.subr.bf16.mxu1 %v4573_v57  ;;  %v123_v19 = vld [vmem:[%s8077_s1 + $0x1b0] sm:$0xff]  ;;  %v130_v21 = vld [vmem:[%s8077_s1 + $0x1e8] sm:$0xff]  ;;  %v128_v22 = vld [vmem:[%s8077_s1 + $0x1d8] sm:$0xff]  ;;  %v4551_v24 = vpack.c.bf16 %v121_v16, %v117_v15 }
  0x49   :  { %v132_v23 = vld [vmem:[%s8077_s1 + $0x1f8] sm:$0xff]  ;;  %v4583_v25 = vpack.c.bf16 %v123_v19, %v119_v17  ;;  %v4553_v26 = vpack.c.bf16 %v130_v21, %v126_v20  ;;  %v125_v27 = vld [vmem:[%s8077_s1 + $0x1c0] sm:$0xff]  ;;  %v127_v29 = vld [vmem:[%s8077_s1 + $0x1d0] sm:$0xff] }
  0x4a   :  { %4544 = vmatpush1.bf16.msra.mxu0 %v4543_v63  ;;  %v129_v28 = vld [vmem:[%s8077_s1 + $0x1e0] sm:$0xff]  ;;  %v4585_v30 = vpack.c.bf16 %v132_v23, %v128_v22  ;;  %v131_v31 = vld [vmem:[%s8077_s1 + $0x1f0] sm:$0xff]  ;;  %v134_v32 = vld [vmem:[#allocation2 + $0x8] sm:$0xff] }
  0x4b   :  { %4576 = vmatpush1.bf16.msra.mxu1 %v4575_v1  ;;  %4546 = vmatprep.subr.bf16.mxu0 %v4545_v2  ;;  %v138_v33 = vld [vmem:[#allocation2 + $0x28] sm:$0xff]  ;;  %v136_v34 = vld [vmem:[#allocation2 + $0x18] sm:$0xff]  ;;  %v4555_v36 = vpack.c.bf16 %v129_v28, %v125_v27  ;;  %v4587_v37 = vpack.c.bf16 %v131_v31, %v127_v29  ;;  %v133_v39 = vld [vmem:[#allocation2] sm:$0xff] }
  0x4c   :  { %4578 = vmatprep.subr.bf16.mxu1 %v4577_v6  ;;  %v140_v35 = vld [vmem:[#allocation2 + $0x38] sm:$0xff]  ;;  %v6850_v38 = vpack.c.bf16 %v138_v33, %v134_v32  ;;  %v137_v40 = vld [vmem:[#allocation2 + $0x20] sm:$0xff]  ;;  %v135_v42 = vld [vmem:[#allocation2 + $0x10] sm:$0xff] }
  0x4d   :  { %v6852_v41 = vpack.c.bf16 %v140_v35, %v136_v34  ;;  %v139_v43 = vld [vmem:[#allocation2 + $0x30] sm:$0xff]  ;;  %v142_v44 = vld [vmem:[#allocation2 + $0x48] sm:$0xff]  ;;  %v327_v46 = vld [vmem:[%s8076_s0] sm:$0xff]  ;;  %v6857_v47 = vpack.c.bf16 %v137_v40, %v133_v39 }
  0x4e   :  { %4548 = vmatpush1.bf16.msra.mxu0 %v4547_v12  ;;  %8286 = vst [vmem:[#allocation9_spill] sm:$0xff] %v6850_v38  ;;  %v146_v45 = vld [vmem:[#allocation2 + $0x68] sm:$0xff]  ;;  %v144_v48 = vld [vmem:[#allocation2 + $0x58] sm:$0xff]  ;;  %v6860_v50 = vpack.c.bf16 %v139_v43, %v135_v42  ;;  %v141_v51 = vld [vmem:[#allocation2 + $0x40] sm:$0xff] }
  0x4f   :  { %4580 = vmatpush1.bf16.msra.mxu1 %v4579_v13  ;;  %4550 = vmatprep.subr.bf16.mxu0 %v4549_v14  ;;  %8287 = vst [vmem:[#allocation10_spill] sm:$0xff] %v6852_v41  ;;  %v148_v49 = vld [vmem:[#allocation2 + $0x78] sm:$0xff]  ;;  %v145_v52 = vld [vmem:[#allocation2 + $0x60] sm:$0xff]  ;;  %v6863_v53 = vpack.c.bf16 %v146_v45, %v142_v44  ;;  %v143_v54 = vld [vmem:[#allocation2 + $0x50] sm:$0xff] }
  0x50   :  { %4582 = vmatprep.subr.bf16.mxu1 %v4581_v18  ;;  %v147_v55 = vld [vmem:[#allocation2 + $0x70] sm:$0xff]  ;;  %v6865_v56 = vpack.c.bf16 %v148_v49, %v144_v48  ;;  %v150_v57 = vld [vmem:[#allocation2 + $0x88] sm:$0xff]  ;;  %v6871_v60 = vpack.c.bf16 %v145_v52, %v141_v51  ;;  %v152_v61 = vld [vmem:[#allocation2 + $0x98] sm:$0xff] }
  0x51   :  { %v154_v58 = vld [vmem:[#allocation2 + $0xa8] sm:$0xff]  ;;  %v156_v62 = vld [vmem:[#allocation2 + $0xb8] sm:$0xff]  ;;  %v6875_v63 = vpack.c.bf16 %v147_v55, %v143_v54  ;;  %v149_v1 = vld [vmem:[#allocation2 + $0x80] sm:$0xff] }
  0x52   :  { %4552 = vmatpush1.bf16.msra.mxu0 %v4551_v24  ;;  %v328_v59 = vld [vmem:[%s8076_s0 + $0x8] sm:$0xff]  ;;  %v153_v2 = vld [vmem:[#allocation2 + $0xa0] sm:$0xff]  ;;  %v6879_v3 = vpack.c.bf16 %v154_v58, %v150_v57  ;;  %v151_v4 = vld [vmem:[#allocation2 + $0x90] sm:$0xff]  ;;  %v6882_v6 = vpack.c.bf16 %v156_v62, %v152_v61 }
  0x53   :  { %4584 = vmatpush1.bf16.msra.mxu1 %v4583_v25  ;;  %4554 = vmatprep.subr.bf16.mxu0 %v4553_v26  ;;  %v155_v5 = vld [vmem:[#allocation2 + $0xb0] sm:$0xff]  ;;  %v158_v7 = vld [vmem:[#allocation2 + $0xc8] sm:$0xff]  ;;  %v6888_v10 = vpack.c.bf16 %v153_v2, %v149_v1  ;;  %v160_v11 = vld [vmem:[#allocation2 + $0xd8] sm:$0xff] }
  0x54   :  { %4586 = vmatprep.subr.bf16.mxu1 %v4585_v30  ;;  %8288 = vst [vmem:[#allocation11_spill] sm:$0xff] %v6879_v3  ;;  %8289 = vst [vmem:[#allocation12_spill] sm:$0xff] %v6882_v6  ;;  %v162_v8 = vld [vmem:[#allocation2 + $0xe8] sm:$0xff]  ;;  %v329_v9 = vld [vmem:[%s8076_s0 + $0x10] sm:$0xff]  ;;  %v6892_v13 = vpack.c.bf16 %v155_v5, %v151_v4 }
  0x55   :  { %8290 = vst [vmem:[#allocation13_spill] sm:$0xff] %v6888_v10  ;;  %v164_v12 = vld [vmem:[#allocation2 + $0xf8] sm:$0xff]  ;;  %v157_v14 = vld [vmem:[#allocation2 + $0xc0] sm:$0xff]  ;;  %v6896_v16 = vpack.c.bf16 %v162_v8, %v158_v7  ;;  %v159_v17 = vld [vmem:[#allocation2 + $0xd0] sm:$0xff] }
  0x56   :  { %4556 = vmatpush1.bf16.msra.mxu0 %v4555_v36  ;;  %8291 = vst [vmem:[#allocation14_spill] sm:$0xff] %v6892_v13  ;;  %v161_v15 = vld [vmem:[#allocation2 + $0xe0] sm:$0xff]  ;;  %v163_v18 = vld [vmem:[#allocation2 + $0xf0] sm:$0xff]  ;;  %v6899_v19 = vpack.c.bf16 %v164_v12, %v160_v11  ;;  %v166_v20 = vld [vmem:[#allocation2 + $0x108] sm:$0xff] }
  0x57   :  { %4588 = vmatpush1.bf16.msra.mxu1 %v4587_v37  ;;  %4590 = vmatprep.subr.bf16.mxu0 %v6850_v38  ;;  %8292 = vst [vmem:[#allocation15_spill] sm:$0xff] %v6896_v16  ;;  %v170_v21 = vld [vmem:[#allocation2 + $0x128] sm:$0xff]  ;;  %v330_v22 = vld [vmem:[%s8076_s0 + $0x18] sm:$0xff]  ;;  %v6905_v23 = vpack.c.bf16 %v161_v15, %v157_v14  ;;  %v6909_v26 = vpack.c.bf16 %v163_v18, %v159_v17  ;;  %v165_v27 = vld [vmem:[#allocation2 + $0x100] sm:$0xff] }
  0x58   :  { %4622 = vmatprep.subr.bf16.mxu1 %v6852_v41  ;;  %8293 = vst [vmem:[#allocation16_spill] sm:$0xff] %v6899_v19  ;;  %v168_v24 = vld [vmem:[#allocation2 + $0x118] sm:$0xff]  ;;  %v169_v28 = vld [vmem:[#allocation2 + $0x120] sm:$0xff]  ;;  %v6913_v29 = vpack.c.bf16 %v170_v21, %v166_v20  ;;  %v167_v30 = vld [vmem:[#allocation2 + $0x110] sm:$0xff] }
  0x59   :  { %421 = vmatmul.mubr.f32.vlgmr.msra.gmra.mrb[0].mxu0 %v327_v46  ;;  %8294 = vst [vmem:[#allocation17_spill] sm:$0xff] %v6905_v23  ;;  %v172_v25 = vld [vmem:[#allocation2 + $0x138] sm:$0xff]  ;;  %8295 = vst [vmem:[#allocation18_spill] sm:$0xff] %v6909_v26  ;;  %v171_v31 = vld [vmem:[#allocation2 + $0x130] sm:$0xff]  ;;  %v6922_v36 = vpack.c.bf16 %v169_v28, %v165_v27 }
  0x5a   :  { %534 = vmatmul.mubr.f32.vlgmr.msra.gmra.mrb[0].mxu1 %v327_v46  ;;  %4592 = vmatpush1.bf16.msra.mxu0 %v6857_v47  ;;  %8296 = vst [vmem:[#allocation19_spill] sm:$0xff] %v6913_v29  ;;  %v6916_v32 = vpack.c.bf16 %v172_v25, %v168_v24  ;;  %v174_v33 = vld [vmem:[#allocation2 + $0x148] sm:$0xff]  ;;  %v331_v35 = vld [vmem:[%s8076_s0 + $0x20] sm:$0xff]  ;;  %v176_v37 = vld [vmem:[#allocation2 + $0x158] sm:$0xff]  ;;  %v6926_v40 = vpack.c.bf16 %v171_v31, %v167_v30 }
  0x5b   :  { %4624 = vmatpush1.bf16.msra.mxu1 %v6860_v50  ;;  %426 = vmatprep.mubr.f32.mxu0 %v8085_v0  ;;  %v178_v34 = vld [vmem:[#allocation2 + $0x168] sm:$0xff]  ;;  %8298 = vst [vmem:[#allocation21_spill] sm:$0xff] %v6922_v36  ;;  %v180_v39 = vld [vmem:[#allocation2 + $0x178] sm:$0xff]  ;;  %v173_v42 = vld [vmem:[#allocation2 + $0x140] sm:$0xff] }
  0x5c   :  { %539 = vmatprep.mubr.f32.mxu1 %v8085_v0  ;;  %4594 = vmatprep.subr.bf16.mxu0 %v6863_v53  ;;  %8297 = vst [vmem:[#allocation20_spill] sm:$0xff] %v6916_v32  ;;  %8299 = vst [vmem:[#allocation22_spill] sm:$0xff] %v6926_v40  ;;  %v177_v43 = vld [vmem:[#allocation2 + $0x160] sm:$0xff]  ;;  %v6930_v44 = vpack.c.bf16 %v178_v34, %v174_v33  ;;  %v175_v45 = vld [vmem:[#allocation2 + $0x150] sm:$0xff]  ;;  %v6933_v48 = vpack.c.bf16 %v180_v39, %v176_v37 }
  0x5d   :  { %427 = vmatmul.mubr.f32.gmra.mrb[2].mxu0 %v328_v59  ;;  %4626 = vmatprep.subr.bf16.mxu1 %v6865_v56  ;;  %v179_v46 = vld [vmem:[#allocation2 + $0x170] sm:$0xff]  ;;  %v182_v49 = vld [vmem:[#allocation2 + $0x188] sm:$0xff]  ;;  %v6939_v54 = vpack.c.bf16 %v177_v43, %v173_v42  ;;  %v184_v55 = vld [vmem:[#allocation2 + $0x198] sm:$0xff] }
  0x5e   :  { %540 = vmatmul.mubr.f32.gmra.mrb[2].mxu1 %v328_v59  ;;  %4596 = vmatpush1.bf16.msra.mxu0 %v6871_v60  ;;  %8300 = vst [vmem:[#allocation23_spill] sm:$0xff] %v6930_v44  ;;  %8301 = vst [vmem:[#allocation24_spill] sm:$0xff] %v6933_v48  ;;  %v186_v51 = vld [vmem:[#allocation2 + $0x1a8] sm:$0xff]  ;;  %v188_v57 = vld [vmem:[#allocation2 + $0x1b8] sm:$0xff]  ;;  %v6943_v58 = vpack.c.bf16 %v179_v46, %v175_v45 }
  0x5f   :  { %4628 = vmatpush1.bf16.msra.mxu1 %v6875_v63  ;;  %432 = vmatprep.mubr.f32.mxu0 %v8085_v0  ;;  %v332_v52 = vld [vmem:[%s8076_s0 + $0x28] sm:$0xff]  ;;  %8302 = vst [vmem:[#allocation25_spill] sm:$0xff] %v6939_v54  ;;  %v181_v59 = vld [vmem:[#allocation2 + $0x180] sm:$0xff]  ;;  %v6947_v62 = vpack.c.bf16 %v186_v51, %v182_v49  ;;  %v183_v1 = vld [vmem:[#allocation2 + $0x190] sm:$0xff]  ;;  %v6950_v4 = vpack.c.bf16 %v188_v57, %v184_v55 }
  0x60   :  { %545 = vmatprep.mubr.f32.mxu1 %v8085_v0  ;;  %4598 = vmatprep.subr.bf16.mxu0 %v6879_v3  ;;  %8303 = vst [vmem:[#allocation26_spill] sm:$0xff] %v6943_v58  ;;  %v185_v61 = vld [vmem:[#allocation2 + $0x1a0] sm:$0xff]  ;;  %v187_v2 = vld [vmem:[#allocation2 + $0x1b0] sm:$0xff]  ;;  %v190_v5 = vld [vmem:[#allocation2 + $0x1c8] sm:$0xff] }
  0x61   :  { %433 = vmatmul.mubr.f32.gmra.mrb[4].mxu0 %v329_v9  ;;  %4630 = vmatprep.subr.bf16.mxu1 %v6882_v6  ;;  %8304 = vst [vmem:[#allocation27_spill] sm:$0xff] %v6947_v62  ;;  %8305 = vst [vmem:[#allocation28_spill] sm:$0xff] %v6950_v4  ;;  %v194_v7 = vld [vmem:[#allocation2 + $0x1e8] sm:$0xff]  ;;  %v333_v8 = vld [vmem:[%s8076_s0 + $0x30] sm:$0xff]  ;;  %v6960_v14 = vpack.c.bf16 %v187_v2, %v183_v1 }
  0x62   :  { %546 = vmatmul.mubr.f32.gmra.mrb[4].mxu1 %v329_v9  ;;  %4600 = vmatpush1.bf16.msra.mxu0 %v6888_v10  ;;  %v6956_v9 = vpack.c.bf16 %v185_v61, %v181_v59  ;;  %v192_v11 = vld [vmem:[#allocation2 + $0x1d8] sm:$0xff]  ;;  %v189_v15 = vld [vmem:[#allocation2 + $0x1c0] sm:$0xff]  ;;  %v6964_v18 = vpack.c.bf16 %v194_v7, %v190_v5  ;;  %v191_v20 = vld [vmem:[#allocation2 + $0x1d0] sm:$0xff] }
  0x63   :  { %4632 = vmatpush1.bf16.msra.mxu1 %v6892_v13  ;;  %438 = vmatprep.mubr.f32.mxu0 %v8085_v0  ;;  %v196_v12 = vld [vmem:[#allocation2 + $0x1f8] sm:$0xff]  ;;  %8307 = vst [vmem:[#allocation30_spill] sm:$0xff] %v6960_v14  ;;  %v193_v17 = vld [vmem:[#allocation2 + $0x1e0] sm:$0xff]  ;;  %v195_v21 = vld [vmem:[#allocation2 + $0x1f0] sm:$0xff] }
  0x64   :  { %551 = vmatprep.mubr.f32.mxu1 %v8085_v0  ;;  %4602 = vmatprep.subr.bf16.mxu0 %v6896_v16  ;;  %8306 = vst [vmem:[#allocation29_spill] sm:$0xff] %v6956_v9  ;;  %8308 = vst [vmem:[#allocation31_spill] sm:$0xff] %v6964_v18  ;;  %v263_v24 = vld [vmem:[#allocation6 + $0x8] sm:$0xff]  ;;  %v334_v27 = vld [vmem:[%s8076_s0 + $0x38] sm:$0xff]  ;;  %v6973_v28 = vpack.c.bf16 %v193_v17, %v189_v15  ;;  %v6977_v33 = vpack.c.bf16 %v195_v21, %v191_v20 }
  0x65   :  { %439 = vmatmul.mubr.f32.gmra.mrb[6].mxu0 %v330_v22  ;;  %4634 = vmatprep.subr.bf16.mxu1 %v6899_v19  ;;  %v267_v25 = vld [vmem:[#allocation6 + $0x28] sm:$0xff]  ;;  %v265_v30 = vld [vmem:[#allocation6 + $0x18] sm:$0xff]  ;;  %v262_v34 = vld [vmem:[#allocation6] sm:$0xff] }
  0x66   :  { %552 = vmatmul.mubr.f32.gmra.mrb[6].mxu1 %v330_v22  ;;  %4604 = vmatpush1.bf16.msra.mxu0 %v6905_v23  ;;  %v6967_v22 = vpack.c.bf16 %v196_v12, %v192_v11  ;;  %8310 = vst [vmem:[#allocation33_spill] sm:$0xff] %v6973_v28  ;;  %v269_v31 = vld [vmem:[#allocation6 + $0x38] sm:$0xff]  ;;  %8311 = vst [vmem:[#allocation34_spill] sm:$0xff] %v6977_v33  ;;  %v264_v37 = vld [vmem:[#allocation6 + $0x10] sm:$0xff]  ;;  %v6981_v39 = vpack.c.bf16 %v267_v25, %v263_v24 }
  0x67   :  { %4636 = vmatpush1.bf16.msra.mxu1 %v6909_v26  ;;  %444 = vmatprep.mubr.f32.mxu0 %v8085_v0  ;;  %v268_v42 = vld [vmem:[#allocation6 + $0x30] sm:$0xff]  ;;  %v271_v43 = vld [vmem:[#allocation6 + $0x48] sm:$0xff]  ;;  %v6984_v46 = vpack.c.bf16 %v269_v31, %v265_v30  ;;  %v273_v49 = vld [vmem:[#allocation6 + $0x58] sm:$0xff] }
  0x68   :  { %557 = vmatprep.mubr.f32.mxu1 %v8085_v0  ;;  %4606 = vmatprep.subr.bf16.mxu0 %v6913_v29  ;;  %8309 = vst [vmem:[#allocation32_spill] sm:$0xff] %v6967_v22  ;;  %8312 = vst [vmem:[#allocation35_spill] sm:$0xff] %v6981_v39  ;;  %v275_v45 = vld [vmem:[#allocation6 + $0x68] sm:$0xff]  ;;  %v277_v51 = vld [vmem:[#allocation6 + $0x78] sm:$0xff]  ;;  %v6991_v55 = vpack.c.bf16 %v268_v42, %v264_v37 }
  0x69   :  { %445 = vmatmul.mubr.f32.gmra.mrb[8].mxu0 %v331_v35  ;;  %4638 = vmatprep.subr.bf16.mxu1 %v6916_v32  ;;  %8313 = vst [vmem:[#allocation36_spill] sm:$0xff] %v6984_v46  ;;  %v6993_v57 = vpack.c.bf16 %v275_v45, %v271_v43  ;;  %v270_v59 = vld [vmem:[#allocation6 + $0x40] sm:$0xff]  ;;  %v272_v1 = vld [vmem:[#allocation6 + $0x50] sm:$0xff]  ;;  %v6997_v2 = vpack.c.bf16 %v277_v51, %v273_v49  ;;  %v279_v7 = vld [vmem:[#allocation6 + $0x88] sm:$0xff] }
  0x6a   :  { %558 = vmatmul.mubr.f32.gmra.mrb[8].mxu1 %v331_v35  ;;  %4608 = vmatpush1.bf16.msra.mxu0 %v6922_v36  ;;  %v266_v35 = vld [vmem:[#allocation6 + $0x20] sm:$0xff]  ;;  %8315 = vst [vmem:[#allocation38_spill] sm:$0xff] %v6991_v55  ;;  %v276_v5 = vld [vmem:[#allocation6 + $0x70] sm:$0xff]  ;;  %v281_v11 = vld [vmem:[#allocation6 + $0x98] sm:$0xff] }
  0x6b   :  { %4640 = vmatpush1.bf16.msra.mxu1 %v6926_v40  ;;  %450 = vmatprep.mubr.f32.mxu0 %v8085_v0  ;;  %8316 = vst [vmem:[#allocation39_spill] sm:$0xff] %v6993_v57  ;;  %v274_v61 = vld [vmem:[#allocation6 + $0x60] sm:$0xff]  ;;  %8317 = vst [vmem:[#allocation40_spill] sm:$0xff] %v6997_v2  ;;  %v285_v12 = vld [vmem:[#allocation6 + $0xb8] sm:$0xff]  ;;  %v7007_v17 = vpack.c.bf16 %v276_v5, %v272_v1 }
  0x6c   :  { %563 = vmatprep.mubr.f32.mxu1 %v8085_v0  ;;  %4610 = vmatprep.subr.bf16.mxu0 %v6930_v44  ;;  %v7003_v15 = vpack.c.bf16 %v274_v61, %v270_v59  ;;  %v278_v21 = vld [vmem:[#allocation6 + $0x80] sm:$0xff]  ;;  %v280_v25 = vld [vmem:[#allocation6 + $0x90] sm:$0xff]  ;;  %v287_v31 = vld [vmem:[#allocation6 + $0xc8] sm:$0xff] }
  0x6d   :  { %451 = vmatmul.mubr.f32.gmra.mrb[10].mxu0 %v332_v52  ;;  %4642 = vmatprep.subr.bf16.mxu1 %v6933_v48  ;;  %8319 = vst [vmem:[#allocation42_spill] sm:$0xff] %v7007_v17  ;;  %v282_v24 = vld [vmem:[#allocation6 + $0xa0] sm:$0xff]  ;;  %v284_v30 = vld [vmem:[#allocation6 + $0xb0] sm:$0xff]  ;;  %v293_v37 = vld [vmem:[#allocation6 + $0xf8] sm:$0xff] }
  0x6e   :  { %564 = vmatmul.mubr.f32.gmra.mrb[10].mxu1 %v332_v52  ;;  %4612 = vmatpush1.bf16.msra.mxu0 %v6939_v54  ;;  %v6987_v52 = vpack.c.bf16 %v266_v35, %v262_v34  ;;  %8318 = vst [vmem:[#allocation41_spill] sm:$0xff] %v7003_v15  ;;  %v291_v34 = vld [vmem:[#allocation6 + $0xe8] sm:$0xff]  ;;  %v289_v35 = vld [vmem:[#allocation6 + $0xd8] sm:$0xff]  ;;  %v7017_v42 = vpack.c.bf16 %v282_v24, %v278_v21  ;;  %v286_v49 = vld [vmem:[#allocation6 + $0xc0] sm:$0xff] }
  0x6f   :  { %4644 = vmatpush1.bf16.msra.mxu1 %v6943_v58  ;;  %456 = vmatprep.mubr.f32.mxu0 %v8085_v0  ;;  %v7021_v43 = vpack.c.bf16 %v284_v30, %v280_v25  ;;  %v7023_v45 = vpack.c.bf16 %v291_v34, %v287_v31  ;;  %v290_v51 = vld [vmem:[#allocation6 + $0xe0] sm:$0xff]  ;;  %v288_v59 = vld [vmem:[#allocation6 + $0xd0] sm:$0xff]  ;;  %v7026_v61 = vpack.c.bf16 %v293_v37, %v289_v35  ;;  %v295_v5 = vld [vmem:[#allocation6 + $0x108] sm:$0xff] }
  0x70   :  { %569 = vmatprep.mubr.f32.mxu1 %v8085_v0  ;;  %4614 = vmatprep.subr.bf16.mxu0 %v6947_v62  ;;  %8314 = vst [vmem:[#allocation37_spill] sm:$0xff] %v6987_v52  ;;  %8322 = vst [vmem:[#allocation45_spill] sm:$0xff] %v7017_v42  ;;  %v292_v1 = vld [vmem:[#allocation6 + $0xf0] sm:$0xff]  ;;  %v294_v25 = vld [vmem:[#allocation6 + $0x100] sm:$0xff] }
  0x71   :  { %457 = vmatmul.mubr.f32.gmra.mrb[12].mxu0 %v333_v8  ;;  %4646 = vmatprep.subr.bf16.mxu1 %v6950_v4  ;;  %8323 = vst [vmem:[#allocation46_spill] sm:$0xff] %v7021_v43  ;;  %8324 = vst [vmem:[#allocation47_spill] sm:$0xff] %v7023_v45  ;;  %v7033_v21 = vpack.c.bf16 %v292_v1, %v288_v59  ;;  %v298_v30 = vld [vmem:[#allocation6 + $0x120] sm:$0xff]  ;;  %v296_v34 = vld [vmem:[#allocation6 + $0x110] sm:$0xff] }
  0x72   :  { %570 = vmatmul.mubr.f32.gmra.mrb[12].mxu1 %v333_v8  ;;  %4616 = vmatpush1.bf16.msra.mxu0 %v6956_v9  ;;  %v283_v8 = vld [vmem:[#allocation6 + $0xa8] sm:$0xff]  ;;  %8325 = vst [vmem:[#allocation48_spill] sm:$0xff] %v7026_v61  ;;  %v300_v35 = vld [vmem:[#allocation6 + $0x130] sm:$0xff]  ;;  %v7041_v37 = vpack.c.bf16 %v298_v30, %v294_v25  ;;  %v305_v1 = vld [vmem:[#allocation6 + $0x158] sm:$0xff] }
  0x73   :  { %4648 = vmatpush1.bf16.msra.mxu1 %v6960_v14  ;;  %462 = vmatprep.mubr.f32.mxu0 %v8085_v0  ;;  %v7009_v20 = vpack.c.bf16 %v283_v8, %v279_v7  ;;  %v299_v7 = vld [vmem:[#allocation6 + $0x128] sm:$0xff]  ;;  %v297_v8 = vld [vmem:[#allocation6 + $0x118] sm:$0xff]  ;;  %8327 = vst [vmem:[#allocation50_spill] sm:$0xff] %v7033_v21 }
  0x74   :  { %575 = vmatprep.mubr.f32.mxu1 %v8085_v0  ;;  %4618 = vmatprep.subr.bf16.mxu0 %v6964_v18  ;;  %v7035_v24 = vpack.c.bf16 %v299_v7, %v295_v5  ;;  %8330 = vst [vmem:[#allocation53_spill] sm:$0xff] %v7041_v37  ;;  %v307_v59 = vld [vmem:[#allocation6 + $0x168] sm:$0xff]  ;;  %v309_v7 = vld [vmem:[#allocation6 + $0x178] sm:$0xff] }
  0x75   :  { %463 = vmatmul.mubr.f32.gmra.mrb[14].mxu0 %v334_v27  ;;  %4650 = vmatprep.subr.bf16.mxu1 %v6967_v22  ;;  %8320 = vst [vmem:[#allocation43_spill] sm:$0xff] %v7009_v20  ;;  %v7052_v25 = vpack.c.bf16 %v309_v7, %v305_v1  ;;  %v317_v1 = vld [vmem:[#allocation6 + $0x1b8] sm:$0xff]  ;;  %v310_v7 = vld [vmem:[#allocation6 + $0x180] sm:$0xff] }
  0x76   :  { %576 = vmatmul.mubr.f32.gmra.mrb[14].mxu1 %v334_v27  ;;  %4620 = vmatpush1.bf16.msra.mxu0 %v6973_v28  ;;  %v7012_v27 = vpack.c.bf16 %v285_v12, %v281_v11  ;;  %v301_v11 = vld [vmem:[#allocation6 + $0x138] sm:$0xff]  ;;  %v7029_v12 = vpack.c.bf16 %v290_v51, %v286_v49  ;;  %8328 = vst [vmem:[#allocation51_spill] sm:$0xff] %v7035_v24  ;;  %v303_v51 = vld [vmem:[#allocation6 + $0x148] sm:$0xff] }
  0x77   :  { %4652 = vmatpush1.bf16.msra.mxu1 %v6977_v33  ;;  %646 = vmatprep.mubr.f32.mxu0 %v8085_v0  ;;  %v7038_v31 = vpack.c.bf16 %v301_v11, %v297_v8  ;;  %v7045_v49 = vpack.c.bf16 %v300_v35, %v296_v34  ;;  %v7050_v5 = vpack.c.bf16 %v307_v59, %v303_v51  ;;  %v302_v8 = vld [vmem:[#allocation6 + $0x140] sm:$0xff]  ;;  %v304_v34 = vld [vmem:[#allocation6 + $0x150] sm:$0xff]  ;;  %v315_v51 = vld [vmem:[#allocation6 + $0x1a8] sm:$0xff] }
  0x78   :  { %717 = vmatprep.mubr.f32.mxu1 %v8085_v0  ;;  %4654 = vmatprep.subr.bf16.mxu0 %v6981_v39  ;;  %8321 = vst [vmem:[#allocation44_spill] sm:$0xff] %v7012_v27  ;;  %8326 = vst [vmem:[#allocation49_spill] sm:$0xff] %v7029_v12  ;;  %v306_v11 = vld [vmem:[#allocation6 + $0x160] sm:$0xff]  ;;  %v308_v35 = vld [vmem:[#allocation6 + $0x170] sm:$0xff] }
  0x79   :  { %647 = vmatmul.mubr.f32.vlgmr.msra.gmra.mrb[0].mxu0 %v8085_v0  ;;  %4686 = vmatprep.subr.bf16.mxu1 %v6984_v46  ;;  %8329 = vst [vmem:[#allocation52_spill] sm:$0xff] %v7038_v31  ;;  %8331 = vst [vmem:[#allocation54_spill] sm:$0xff] %v7045_v49  ;;  %v7054_v30 = vpack.c.bf16 %v306_v11, %v302_v8  ;;  %v313_v59 = vld [vmem:[#allocation6 + $0x198] sm:$0xff]  ;;  %v314_v8 = vld [vmem:[#allocation6 + $0x1a0] sm:$0xff] }
  0x7a   :  { %718 = vmatmul.mubr.f32.vlgmr.msra.gmra.mrb[0].mxu1 %v8085_v0  ;;  %4656 = vmatpush1.bf16.msra.mxu0 %v6987_v52  ;;  %8332 = vst [vmem:[#allocation55_spill] sm:$0xff] %v7050_v5  ;;  %8333 = vst [vmem:[#allocation56_spill] sm:$0xff] %v7052_v25  ;;  %v7064_v11 = vpack.c.bf16 %v317_v1, %v313_v59  ;;  %v325_v59 = vld [vmem:[#allocation6 + $0x1f8] sm:$0xff]  ;;  %v318_v1 = vld [vmem:[#allocation6 + $0x1c0] sm:$0xff] }
  0x7b   :  { %4688 = vmatpush1.bf16.msra.mxu1 %v6991_v55  ;;  %4658 = vmatprep.subr.bf16.mxu0 %v6993_v57  ;;  %8334 = vst [vmem:[#allocation57_spill] sm:$0xff] %v7054_v30 }
  0x7c   :  { %4690 = vmatprep.subr.bf16.mxu1 %v6997_v2  ;;  %816 = vmatprep.mubr.f32.mxu0 %v8085_v0  ;;  %8337 = vst [vmem:[#allocation60_spill] sm:$0xff] %v7064_v11 }
  0x7d   :  { %887 = vmatprep.mubr.f32.mxu1 %v8085_v0  ;;  %v7057_v0 = vpack.c.bf16 %v308_v35, %v304_v34  ;;  %v312_v34 = vld [vmem:[#allocation6 + $0x190] sm:$0xff] }
  0x7e   :  { %4660 = vmatpush1.bf16.msra.mxu0 %v7003_v15  ;;  %v316_v35 = vld [vmem:[#allocation6 + $0x1b0] sm:$0xff] }
  0x7f   :  { %4692 = vmatpush1.bf16.msra.mxu1 %v7007_v17  ;;  %4662 = vmatprep.subr.bf16.mxu0 %v7009_v20  ;;  %8335 = vst [vmem:[#allocation58_spill] sm:$0xff] %v7057_v0 }
  0x80   :  { %4694 = vmatprep.subr.bf16.mxu1 %v7012_v27 }
  0x82   :  { %4664 = vmatpush1.bf16.msra.mxu0 %v7017_v42 }
  0x83   :  { %4696 = vmatpush1.bf16.msra.mxu1 %v7021_v43  ;;  %4666 = vmatprep.subr.bf16.mxu0 %v7023_v45 }
  0x84   :  { %4698 = vmatprep.subr.bf16.mxu1 %v7026_v61 }
  0x86   :  { %4668 = vmatpush1.bf16.msra.mxu0 %v7029_v12  ;;  %v253_v12 = vld [vmem:[#allocation4 + $0x1b8] sm:$0xff] }
  0x87   :  { %4700 = vmatpush1.bf16.msra.mxu1 %v7033_v21  ;;  %4670 = vmatprep.subr.bf16.mxu0 %v7035_v24  ;;  %v251_v21 = vld [vmem:[#allocation4 + $0x1a8] sm:$0xff] }
  0x88   :  { %4702 = vmatprep.subr.bf16.mxu1 %v7038_v31  ;;  %v7066_v31 = vpack.c.bf16 %v314_v8, %v310_v7  ;;  %v322_v7 = vld [vmem:[#allocation6 + $0x1e0] sm:$0xff] }
  0x8a   :  { %4672 = vmatpush1.bf16.msra.mxu0 %v7041_v37  ;;  %8338 = vst [vmem:[#allocation61_spill] sm:$0xff] %v7066_v31 }
  0x8b   :  { %4704 = vmatpush1.bf16.msra.mxu1 %v7045_v49  ;;  %4674 = vmatprep.subr.bf16.mxu0 %v7050_v5  ;;  %v311_v49 = vld [vmem:[#allocation6 + $0x188] sm:$0xff]  ;;  %v7078_v5 = vpack.c.bf16 %v322_v7, %v318_v1  ;;  %v202_v1 = vld [vmem:[#allocation4 + $0x20] sm:$0xff] }
  0x8c   :  { %4706 = vmatprep.subr.bf16.mxu1 %v7052_v25  ;;  %v7062_v37 = vpack.c.bf16 %v315_v51, %v311_v49  ;;  %v7069_v25 = vpack.c.bf16 %v316_v35, %v312_v34  ;;  %v323_v49 = vld [vmem:[#allocation6 + $0x1e8] sm:$0xff]  ;;  %v321_v51 = vld [vmem:[#allocation6 + $0x1d8] sm:$0xff]  ;;  %v320_v34 = vld [vmem:[#allocation6 + $0x1d0] sm:$0xff] }
  0x8d   :  { %v7076_v8 = vpack.c.bf16 %v325_v59, %v321_v51  ;;  %8342 = vst [vmem:[#allocation65_spill] sm:$0xff] %v7078_v5  ;;  %v324_v35 = vld [vmem:[#allocation6 + $0x1f0] sm:$0xff]  ;;  %v205_v51 = vld [vmem:[#allocation4 + $0x38] sm:$0xff]  ;;  %v198_v59 = vld [vmem:[#allocation4] sm:$0xff] }
  0x8e   :  { %4676 = vmatpush1.bf16.msra.mxu0 %v7054_v30  ;;  %8336 = vst [vmem:[#allocation59_spill] sm:$0xff] %v7062_v37  ;;  %8339 = vst [vmem:[#allocation62_spill] sm:$0xff] %v7069_v25 }
  0x8f   :  { %4708 = vmatpush1.bf16.msra.mxu1 %v7057_v0  ;;  %4678 = vmatprep.subr.bf16.mxu0 %v7062_v37  ;;  %v319_v0 = vld [vmem:[#allocation6 + $0x1c8] sm:$0xff]  ;;  %8341 = vst [vmem:[#allocation64_spill] sm:$0xff] %v7076_v8  ;;  %v7090_v37 = vpack.c.bf16 %v202_v1, %v198_v59  ;;  %v206_v59 = vld [vmem:[#allocation4 + $0x40] sm:$0xff] }
  0x90   :  { %4710 = vmatprep.subr.bf16.mxu1 %v7064_v11  ;;  %v7074_v30 = vpack.c.bf16 %v323_v49, %v319_v0  ;;  %v7081_v11 = vpack.c.bf16 %v324_v35, %v320_v34  ;;  %v203_v0 = vld [vmem:[#allocation4 + $0x28] sm:$0xff]  ;;  %v201_v49 = vld [vmem:[#allocation4 + $0x18] sm:$0xff]  ;;  %v200_v34 = vld [vmem:[#allocation4 + $0x10] sm:$0xff] }
  0x91   :  { %v7088_v7 = vpack.c.bf16 %v205_v51, %v201_v49  ;;  %8346 = vst [vmem:[#allocation69_spill] sm:$0xff] %v7090_v37  ;;  %v204_v35 = vld [vmem:[#allocation4 + $0x30] sm:$0xff]  ;;  %v213_v51 = vld [vmem:[#allocation4 + $0x78] sm:$0xff]  ;;  %v210_v1 = vld [vmem:[#allocation4 + $0x60] sm:$0xff] }
  0x92   :  { %4680 = vmatpush1.bf16.msra.mxu0 %v7066_v31  ;;  %8340 = vst [vmem:[#allocation63_spill] sm:$0xff] %v7074_v30  ;;  %8343 = vst [vmem:[#allocation66_spill] sm:$0xff] %v7081_v11 }
  0x93   :  { %4712 = vmatpush1.bf16.msra.mxu1 %v7069_v25  ;;  %4682 = vmatprep.subr.bf16.mxu0 %v7074_v30  ;;  %v199_v25 = vld [vmem:[#allocation4 + $0x8] sm:$0xff]  ;;  %8345 = vst [vmem:[#allocation68_spill] sm:$0xff] %v7088_v7 }
  0x94   :  { %4714 = vmatprep.subr.bf16.mxu1 %v7076_v8  ;;  %v7086_v31 = vpack.c.bf16 %v203_v0, %v199_v25  ;;  %v8347_v8 = vmov 0.0   ;;  %v207_v25 = vld [vmem:[#allocation4 + $0x48] sm:$0xff] }
  0x95   :  { %v211_v0 = vld [vmem:[#allocation4 + $0x68] sm:$0xff] }
  0x96   :  { %4684 = vmatpush1.bf16.msra.mxu0 %v7078_v5  ;;  %8344 = vst [vmem:[#allocation67_spill] sm:$0xff] %v7086_v31  ;;  %v7094_v5 = vpack.c.bf16 %v204_v35, %v200_v34  ;;  %v7100_v49 = vpack.c.bf16 %v211_v0, %v207_v25  ;;  %v7104_v34 = vpack.c.bf16 %v210_v1, %v206_v59  ;;  %v208_v35 = vld [vmem:[#allocation4 + $0x50] sm:$0xff]  ;;  %v215_v25 = vld [vmem:[#allocation4 + $0x88] sm:$0xff]  ;;  %v214_v59 = vld [vmem:[#allocation4 + $0x80] sm:$0xff] }
  0x97   :  { %4716 = vmatpush1.bf16.msra.mxu1 %v7081_v11  ;;  %4718 = vmatprep.subr.bf16.mxu0 %v7086_v31  ;;  %v209_v11 = vld [vmem:[#allocation4 + $0x58] sm:$0xff]  ;;  %v219_v0 = vld [vmem:[#allocation4 + $0xa8] sm:$0xff]  ;;  %v218_v1 = vld [vmem:[#allocation4 + $0xa0] sm:$0xff] }
  0x98   :  { %8348 = vst [vmem:[#allocation70_spill] sm:$0xff] %v7094_v5  ;;  %4750 = vmatprep.subr.bf16.mxu1 %v7088_v7  ;;  %8349 = vst [vmem:[#allocation71_spill] sm:$0xff] %v7100_v49  ;;  %v7102_v31 = vpack.c.bf16 %v213_v51, %v209_v11  ;;  %v212_v7 = vld [vmem:[#allocation4 + $0x70] sm:$0xff]  ;;  %v7114_v11 = vpack.c.bf16 %v219_v0, %v215_v25  ;;  %v221_v51 = vld [vmem:[#allocation4 + $0xb8] sm:$0xff]  ;;  %v7118_v24 = vpack.c.bf16 %v218_v1, %v214_v59 }
  0x99   :  { %817 = vmatmul.mubr.f32.vlgmr.msra.gmra.mrb[16].mxu0 %v8347_v8  ;;  %8351 = vst [vmem:[#allocation73_spill] sm:$0xff] %v7104_v34  ;;  %v222_v0 = vld [vmem:[#allocation4 + $0xc0] sm:$0xff] }
  0x9a   :  { %888 = vmatmul.mubr.f32.vlgmr.msra.gmra.mrb[16].mxu1 %v8347_v8  ;;  %4720 = vmatpush1.bf16.msra.mxu0 %v7090_v37  ;;  %8350 = vst [vmem:[#allocation72_spill] sm:$0xff] %v7102_v31  ;;  %v7109_v37 = vpack.c.bf16 %v212_v7, %v208_v35  ;;  %8353 = vst [vmem:[#allocation75_spill] sm:$0xff] %v7114_v11  ;;  %v216_v7 = vld [vmem:[#allocation4 + $0x90] sm:$0xff] }
  0x9b   :  { %4752 = vmatpush1.bf16.msra.mxu1 %v7094_v5  ;;  %958 = vmatprep.mubr.f32.mxu0 %v8347_v8  ;;  %v217_v5 = vld [vmem:[#allocation4 + $0x98] sm:$0xff]  ;;  %8355 = vst [vmem:[#allocation77_spill] sm:$0xff] %v7118_v24  ;;  %v220_v35 = vld [vmem:[#allocation4 + $0xb0] sm:$0xff] }
  0x9c   :  { %1029 = vmatprep.mubr.f32.mxu1 %v8347_v8  ;;  %4722 = vmatprep.subr.bf16.mxu0 %v7100_v49  ;;  %8352 = vst [vmem:[#allocation74_spill] sm:$0xff] %v7109_v37  ;;  %v7116_v30 = vpack.c.bf16 %v221_v51, %v217_v5  ;;  %v227_v49 = vld [vmem:[#allocation4 + $0xe8] sm:$0xff]  ;;  %v229_v5 = vld [vmem:[#allocation4 + $0xf8] sm:$0xff]  ;;  %v226_v51 = vld [vmem:[#allocation4 + $0xe0] sm:$0xff] }
  0x9d   :  { %4754 = vmatprep.subr.bf16.mxu1 %v7102_v31  ;;  %v7121_v31 = vpack.c.bf16 %v220_v35, %v216_v7  ;;  %v7130_v1 = vpack.c.bf16 %v226_v51, %v222_v0  ;;  %v224_v7 = vld [vmem:[#allocation4 + $0xd0] sm:$0xff] }
  0x9e   :  { %4724 = vmatpush1.bf16.msra.mxu0 %v7104_v34  ;;  %8354 = vst [vmem:[#allocation76_spill] sm:$0xff] %v7116_v30  ;;  %v223_v34 = vld [vmem:[#allocation4 + $0xc8] sm:$0xff]  ;;  %v228_v35 = vld [vmem:[#allocation4 + $0xf0] sm:$0xff] }
  0x9f   :  { %4756 = vmatpush1.bf16.msra.mxu1 %v7109_v37  ;;  %4726 = vmatprep.subr.bf16.mxu0 %v7114_v11  ;;  %8356 = vst [vmem:[#allocation78_spill] sm:$0xff] %v7121_v31  ;;  %v225_v37 = vld [vmem:[#allocation4 + $0xd8] sm:$0xff]  ;;  %v7126_v25 = vpack.c.bf16 %v227_v49, %v223_v34  ;;  %8359 = vst [vmem:[#allocation81_spill] sm:$0xff] %v7130_v1  ;;  %v235_v11 = vld [vmem:[#allocation4 + $0x128] sm:$0xff] }
  0xa0   :  { %4758 = vmatprep.subr.bf16.mxu1 %v7116_v30  ;;  %v7128_v59 = vpack.c.bf16 %v229_v5, %v225_v37  ;;  %v7133_v30 = vpack.c.bf16 %v228_v35, %v224_v7  ;;  %v237_v37 = vld [vmem:[#allocation4 + $0x138] sm:$0xff]  ;;  %v230_v34 = vld [vmem:[#allocation4 + $0x100] sm:$0xff]  ;;  %v232_v7 = vld [vmem:[#allocation4 + $0x110] sm:$0xff] }
  0xa1   :  { %8357 = vst [vmem:[#allocation79_spill] sm:$0xff] %v7126_v25  ;;  %v234_v5 = vld [vmem:[#allocation4 + $0x120] sm:$0xff]  ;;  %v236_v35 = vld [vmem:[#allocation4 + $0x130] sm:$0xff] }
  0xa2   :  { %4728 = vmatpush1.bf16.msra.mxu0 %v7118_v24  ;;  %8358 = vst [vmem:[#allocation80_spill] sm:$0xff] %v7128_v59  ;;  %8360 = vst [vmem:[#allocation82_spill] sm:$0xff] %v7133_v30  ;;  %v231_v24 = vld [vmem:[#allocation4 + $0x108] sm:$0xff]  ;;  %v7142_v51 = vpack.c.bf16 %v234_v5, %v230_v34 }
  0xa3   :  { %4760 = vmatpush1.bf16.msra.mxu1 %v7121_v31  ;;  %4730 = vmatprep.subr.bf16.mxu0 %v7126_v25  ;;  %v233_v31 = vld [vmem:[#allocation4 + $0x118] sm:$0xff]  ;;  %v7138_v49 = vpack.c.bf16 %v235_v11, %v231_v24  ;;  %v243_v25 = vld [vmem:[#allocation4 + $0x168] sm:$0xff]  ;;  %v238_v11 = vld [vmem:[#allocation4 + $0x140] sm:$0xff] }
  0xa4   :  { %4762 = vmatprep.subr.bf16.mxu1 %v7128_v59  ;;  %v7140_v0 = vpack.c.bf16 %v237_v37, %v233_v31  ;;  %8363 = vst [vmem:[#allocation85_spill] sm:$0xff] %v7142_v51  ;;  %v7145_v59 = vpack.c.bf16 %v236_v35, %v232_v7  ;;  %v245_v31 = vld [vmem:[#allocation4 + $0x178] sm:$0xff]  ;;  %v242_v37 = vld [vmem:[#allocation4 + $0x160] sm:$0xff]  ;;  %v240_v7 = vld [vmem:[#allocation4 + $0x150] sm:$0xff] }
  0xa5   :  { %8361 = vst [vmem:[#allocation83_spill] sm:$0xff] %v7138_v49  ;;  %v7154_v5 = vpack.c.bf16 %v242_v37, %v238_v11  ;;  %v244_v35 = vld [vmem:[#allocation4 + $0x170] sm:$0xff] }
  0xa6   :  { %4732 = vmatpush1.bf16.msra.mxu0 %v7130_v1  ;;  %8362 = vst [vmem:[#allocation84_spill] sm:$0xff] %v7140_v0  ;;  %8364 = vst [vmem:[#allocation86_spill] sm:$0xff] %v7145_v59  ;;  %v239_v1 = vld [vmem:[#allocation4 + $0x148] sm:$0xff]  ;;  %v248_v11 = vld [vmem:[#allocation4 + $0x190] sm:$0xff] }
  0xa7   :  { %4764 = vmatpush1.bf16.msra.mxu1 %v7133_v30  ;;  %4734 = vmatprep.subr.bf16.mxu0 %v7138_v49  ;;  %v241_v30 = vld [vmem:[#allocation4 + $0x158] sm:$0xff]  ;;  %v7150_v24 = vpack.c.bf16 %v243_v25, %v239_v1  ;;  %8367 = vst [vmem:[#allocation89_spill] sm:$0xff] %v7154_v5  ;;  %v247_v49 = vld [vmem:[#allocation4 + $0x188] sm:$0xff] }
  0xa8   :  { %4766 = vmatprep.subr.bf16.mxu1 %v7140_v0  ;;  %v7152_v34 = vpack.c.bf16 %v245_v31, %v241_v30  ;;  %v7157_v0 = vpack.c.bf16 %v244_v35, %v240_v7  ;;  %v7160_v25 = vpack.c.bf16 %v251_v21, %v247_v49  ;;  %v246_v30 = vld [vmem:[#allocation4 + $0x180] sm:$0xff]  ;;  %v252_v7 = vld [vmem:[#allocation4 + $0x1b0] sm:$0xff]  ;;  %v255_v35 = vld [vmem:[#allocation4 + $0x1c8] sm:$0xff] }
  0xa9   :  { %8365 = vst [vmem:[#allocation87_spill] sm:$0xff] %v7150_v24  ;;  %v250_v31 = vld [vmem:[#allocation4 + $0x1a0] sm:$0xff]  ;;  %v7170_v21 = vpack.c.bf16 %v252_v7, %v248_v11  ;;  %v257_v49 = vld [vmem:[#allocation4 + $0x1d8] sm:$0xff] }
  0xaa   :  { %4736 = vmatpush1.bf16.msra.mxu0 %v7142_v51  ;;  %8366 = vst [vmem:[#allocation88_spill] sm:$0xff] %v7152_v34  ;;  %8368 = vst [vmem:[#allocation90_spill] sm:$0xff] %v7157_v0  ;;  %v249_v51 = vld [vmem:[#allocation4 + $0x198] sm:$0xff]  ;;  %v7166_v37 = vpack.c.bf16 %v250_v31, %v246_v30  ;;  %v260_v30 = vld [vmem:[#allocation4 + $0x1f0] sm:$0xff] }
  0xab   :  { %4768 = vmatpush1.bf16.msra.mxu1 %v7145_v59  ;;  %4738 = vmatprep.subr.bf16.mxu0 %v7150_v24  ;;  %8369 = vst [vmem:[#allocation91_spill] sm:$0xff] %v7160_v25  ;;  %v7162_v1 = vpack.c.bf16 %v253_v12, %v249_v51  ;;  %v259_v24 = vld [vmem:[#allocation4 + $0x1e8] sm:$0xff]  ;;  %8372 = vst [vmem:[#allocation94_spill] sm:$0xff] %v7170_v21  ;;  %v261_v51 = vld [vmem:[#allocation4 + $0x1f8] sm:$0xff] }
  0xac   :  { %4770 = vmatprep.subr.bf16.mxu1 %v7152_v34  ;;  %8371 = vst [vmem:[#allocation93_spill] sm:$0xff] %v7166_v37  ;;  %v7172_v12 = vpack.c.bf16 %v259_v24, %v255_v35  ;;  %v254_v34 = vld [vmem:[#allocation4 + $0x1c0] sm:$0xff]  ;;  %v7174_v59 = vpack.c.bf16 %v261_v51, %v257_v49  ;;  %v336_v24 = vlaneseq }
  0xad   :  { %8370 = vst [vmem:[#allocation92_spill] sm:$0xff] %v7162_v1 }
  0xae   :  { %4740 = vmatpush1.bf16.msra.mxu0 %v7154_v5  ;;  %8373 = vst [vmem:[#allocation95_spill] sm:$0xff] %v7172_v12  ;;  %8374 = vst [vmem:[#allocation96_spill] sm:$0xff] %v7174_v59  ;;  %v258_v5 = vld [vmem:[#allocation4 + $0x1e0] sm:$0xff]  ;;  %v7188_v11 = vshrl.u32 %v336_v24, 7 }
  0xaf   :  { %4772 = vmatpush1.bf16.msra.mxu1 %v7157_v0  ;;  %4742 = vmatprep.subr.bf16.mxu0 %v7160_v25  ;;  %v256_v0 = vld [vmem:[#allocation4 + $0x1d0] sm:$0xff]  ;;  %v7178_v31 = vpack.c.bf16 %v258_v5, %v254_v34 }
  0xb0   :  { %4774 = vmatprep.subr.bf16.mxu1 %v7162_v1  ;;  %v7180_v25 = vpack.c.bf16 %v260_v30, %v256_v0  ;;  %v8183_v34 = vsub.s32 0, %v7188_v11  ;;  %v197_v0 = vld [vmem:[%s8079_s3] sm:$0xf]  ;;  %v8184_v5 = vsub.s32 1, %v7188_v11  ;;  %v8191_v51 = vsub.s32 3, %v7188_v11 }
  0xb1   :  { %8375 = vst [vmem:[#allocation97_spill] sm:$0xff] %v7178_v31 }
  0xb2   :  { %4744 = vmatpush1.bf16.msra.mxu0 %v7166_v37  ;;  %8376 = vst [vmem:[#allocation98_spill] sm:$0xff] %v7180_v25  ;;  %v7197_v7 = vrot.slane %v197_v0, %v8183_v34  ;;  %v7201_v35 = vrot.slane %v197_v0, %v8184_v5  ;;  %v7208_v34 = vrot.slane %v197_v0, %v8191_v51  ;;  %v8200_v5 = vsub.s32 2, %v7188_v11 }
  0xb3   :  { %4776 = vmatpush1.bf16.msra.mxu1 %v7170_v21  ;;  %4746 = vmatprep.subr.bf16.mxu0 %v7172_v12 }
  0xb4   :  { %4778 = vmatprep.subr.bf16.mxu1 %v7174_v59  ;;  %8377 = vst [vmem:[#allocation99_spill] sm:$0xff] %v7197_v7  ;;  %8378 = vst [vmem:[#allocation100_spill] sm:$0xff] %v7201_v35 }
  0xb5   :  { %8379 = vst [vmem:[#allocation101_spill] sm:$0xff] %v7208_v34 }
  0xb6   :  { %4748 = vmatpush1.bf16.msra.mxu0 %v7178_v31 }
  0xb7   :  { %4780 = vmatpush1.bf16.msra.mxu1 %v7180_v25  ;;  %4782 = vmatprep.subr.bf16.mxu0 %v6850_v38 }
  0xb8   :  { %4814 = vmatprep.subr.bf16.mxu1 %v6852_v41 }
 0x14c   :  { %v648_v49 = vpop.f32.mrb[0].mxu0 }
 0x14d   :  { %v6125_v30 = vadd.f32 %v648_v49, %v7197_v7  ;;  %v719_v24 = vpop.f32.mrb[0].mxu1  ;;  %v650_v41 = vpop.f32.mrb[1].mxu0  ;;  %v7214_v49 = vrot.slane %v197_v0, %v8200_v5  ;;  %v8395_v5 = vld [vmem:[#allocation64_spill] sm:$0xff] }
 0x14e   :  { %v6126_v38 = vadd.f32 %v650_v41, %v7201_v35  ;;  %v721_v25 = vpop.f32.mrb[1].mxu1 }
 0x14f   :  { %v4475_v31 = vmul.f32 -1.442695, %v6125_v30  ;;  %v6142_v12 = vadd.f32 %v721_v25, %v7208_v34  ;;  %v6141_v41 = vadd.f32 %v719_v24, %v7214_v49 }
 0x150   :  { %v4476_v59 = vmul.f32 -1.442695, %v6126_v38 }
 0x151   :  { %6227 = vpow2.f32 %v4475_v31  ;;  %v4477_v21 = vmul.f32 -1.442695, %v6142_v12 }
 0x152   :  { %6229 = vpow2.f32 %v4476_v59 }
 0x153   :  { %6231 = vpow2.f32 %v4477_v21  ;;  %v8381_v21 = vld [vmem:[#allocation50_spill] sm:$0xff] }
 0x154   :  { %6233 = vtanh.f32 %v6141_v41  ;;  %v8386_v41 = vld [vmem:[#allocation55_spill] sm:$0xff] }
 0x15b   :  { %v6228_v37 = vpop.eup %6227 }
 0x15c   :  { %v6230_v30 = vpop.eup %6229  ;;  %v731_v38 = vadd.f32 1.0, %v6228_v37 }
 0x15d   :  { %v737_v51 = vadd.f32 1.0, %v6230_v30  ;;  %v6232_v31 = vpop.eup %6231  ;;  %v8387_v30 = vld [vmem:[#allocation56_spill] sm:$0xff] }
 0x15e   :  { %6235 = vrcp.f32 %v731_v38  ;;  %v6234_v1 = vpop.eup %6233  ;;  %v744_v34 = vadd.f32 1.0, %v6232_v31  ;;  %v8388_v38 = vld [vmem:[#allocation57_spill] sm:$0xff]  ;;  %v8389_v31 = vld [vmem:[#allocation58_spill] sm:$0xff] }
 0x15f   :  { %6237 = vrcp.f32 %v737_v51  ;;  %v8385_v51 = vld [vmem:[#allocation54_spill] sm:$0xff] }
 0x160   :  { %6239 = vrcp.f32 %v744_v34  ;;  %v8382_v34 = vld [vmem:[#allocation51_spill] sm:$0xff] }
 0x168   :  { %v6236_v59 = vpop.eup %6235 }
 0x169   :  { %v6238_v35 = vpop.eup %6237  ;;  %v748_v25 = vmul.f32 %v6236_v59, %v6234_v1  ;;  %v8380_v1 = vld [vmem:[#allocation49_spill] sm:$0xff]  ;;  %v8390_v59 = vld [vmem:[#allocation59_spill] sm:$0xff] }
 0x16a   :  { %v747_v7 = vmul.f32 0.0, %v6238_v35  ;;  %v6240_v12 = vpop.eup %6239  ;;  %v8384_v35 = vld [vmem:[#allocation53_spill] sm:$0xff] }
 0x16c   :  { %v7217_v0 = vadd.f32 %v748_v25, %v747_v7  ;;  %v8383_v7 = vld [vmem:[#allocation52_spill] sm:$0xff] }
 0x16d   :  { %v8391_v25 = vld [vmem:[#allocation60_spill] sm:$0xff] }
 0x16e   :  { %6241 = vtanh.f32 %v7217_v0 }
 0x178   :  { %v6242_v24 = vpop.eup %6241 }
 0x179   :  { %v751_v37 = vmul.f32 %v6242_v24, %v6240_v12  ;;  %v8392_v12 = vld [vmem:[#allocation61_spill] sm:$0xff]  ;;  %v8393_v24 = vld [vmem:[#allocation62_spill] sm:$0xff] }
 0x17b   :  { %959 = vmatmul.mubr.f32.vlgmr.msra.gmra.mrb[16].mxu0 %v751_v37  ;;  %1030 = vmatmul.mubr.f32.vlgmr.msra.gmra.mrb[16].mxu1 %v751_v37 }
 0x17c   :  { %4784 = vmatpush1.bf16.msra.mxu0 %v6857_v47  ;;  %4816 = vmatpush1.bf16.msra.mxu1 %v6860_v50 }
 0x17d   :  { %4786 = vmatprep.subr.bf16.mxu0 %v6863_v53  ;;  %4818 = vmatprep.subr.bf16.mxu1 %v6865_v56 }
 0x17e   :  { %1149 = vmatprep.mubr.f32.mxu0 %v8347_v8  ;;  %1220 = vmatprep.mubr.f32.mxu1 %v8347_v8 }
 0x180   :  { %4788 = vmatpush1.bf16.msra.mxu0 %v6871_v60  ;;  %4820 = vmatpush1.bf16.msra.mxu1 %v6875_v63 }
 0x181   :  { %4790 = vmatprep.subr.bf16.mxu0 %v6879_v3  ;;  %4822 = vmatprep.subr.bf16.mxu1 %v6882_v6 }
 0x184   :  { %4792 = vmatpush1.bf16.msra.mxu0 %v6888_v10  ;;  %4824 = vmatpush1.bf16.msra.mxu1 %v6892_v13 }
 0x185   :  { %4794 = vmatprep.subr.bf16.mxu0 %v6896_v16  ;;  %4826 = vmatprep.subr.bf16.mxu1 %v6899_v19 }
 0x188   :  { %4796 = vmatpush1.bf16.msra.mxu0 %v6905_v23  ;;  %4828 = vmatpush1.bf16.msra.mxu1 %v6909_v26 }
 0x189   :  { %4798 = vmatprep.subr.bf16.mxu0 %v6913_v29  ;;  %4830 = vmatprep.subr.bf16.mxu1 %v6916_v32 }
 0x18c   :  { %4800 = vmatpush1.bf16.msra.mxu0 %v6922_v36  ;;  %4832 = vmatpush1.bf16.msra.mxu1 %v6926_v40 }
 0x18d   :  { %4802 = vmatprep.subr.bf16.mxu0 %v6930_v44  ;;  %4834 = vmatprep.subr.bf16.mxu1 %v6933_v48 }
 0x190   :  { %4804 = vmatpush1.bf16.msra.mxu0 %v6939_v54  ;;  %4836 = vmatpush1.bf16.msra.mxu1 %v6943_v58 }
 0x191   :  { %4806 = vmatprep.subr.bf16.mxu0 %v6947_v62  ;;  %4838 = vmatprep.subr.bf16.mxu1 %v6950_v4 }
 0x194   :  { %4808 = vmatpush1.bf16.msra.mxu0 %v6956_v9  ;;  %4840 = vmatpush1.bf16.msra.mxu1 %v6960_v14 }
 0x195   :  { %4810 = vmatprep.subr.bf16.mxu0 %v6964_v18  ;;  %4842 = vmatprep.subr.bf16.mxu1 %v6967_v22 }
 0x198   :  { %4812 = vmatpush1.bf16.msra.mxu0 %v6973_v28  ;;  %4844 = vmatpush1.bf16.msra.mxu1 %v6977_v33 }
 0x199   :  { %4846 = vmatprep.subr.bf16.mxu0 %v6981_v39  ;;  %4878 = vmatprep.subr.bf16.mxu1 %v6984_v46 }
 0x19b   :  { %1150 = vmatmul.mubr.f32.vlgmr.msra.gmra.mrb[2].mxu0 %v751_v37  ;;  %1221 = vmatmul.mubr.f32.vlgmr.msra.gmra.mrb[2].mxu1 %v751_v37  ;;  %v8394_v37 = vld [vmem:[#allocation63_spill] sm:$0xff] }
 0x19c   :  { %4848 = vmatpush1.bf16.msra.mxu0 %v6987_v52  ;;  %4880 = vmatpush1.bf16.msra.mxu1 %v6991_v55 }
 0x19d   :  { %4850 = vmatprep.subr.bf16.mxu0 %v6993_v57  ;;  %4882 = vmatprep.subr.bf16.mxu1 %v6997_v2 }
 0x19e   :  { %1319 = vmatprep.mubr.f32.mxu0 %v8347_v8  ;;  %1390 = vmatprep.mubr.f32.mxu1 %v8347_v8 }
 0x1a0   :  { %4852 = vmatpush1.bf16.msra.mxu0 %v7003_v15  ;;  %4884 = vmatpush1.bf16.msra.mxu1 %v7007_v17 }
 0x1a1   :  { %4854 = vmatprep.subr.bf16.mxu0 %v7009_v20  ;;  %4886 = vmatprep.subr.bf16.mxu1 %v7012_v27 }
 0x1a4   :  { %4856 = vmatpush1.bf16.msra.mxu0 %v7017_v42  ;;  %4888 = vmatpush1.bf16.msra.mxu1 %v7021_v43 }
 0x1a5   :  { %4858 = vmatprep.subr.bf16.mxu0 %v7023_v45  ;;  %4890 = vmatprep.subr.bf16.mxu1 %v7026_v61 }
 0x1a8   :  { %4860 = vmatpush1.bf16.msra.mxu0 %v8380_v1  ;;  %4892 = vmatpush1.bf16.msra.mxu1 %v8381_v21 }
 0x1a9   :  { %4862 = vmatprep.subr.bf16.mxu0 %v8382_v34  ;;  %4894 = vmatprep.subr.bf16.mxu1 %v8383_v7  ;;  %v8404_v34 = vsub.s32 3, %v7188_v11 }
 0x1ac   :  { %4864 = vmatpush1.bf16.msra.mxu0 %v8384_v35  ;;  %4896 = vmatpush1.bf16.msra.mxu1 %v8385_v51  ;;  %v8396_v51 = vld [vmem:[#allocation65_spill] sm:$0xff] }
 0x1ad   :  { %4866 = vmatprep.subr.bf16.mxu0 %v8386_v41  ;;  %4898 = vmatprep.subr.bf16.mxu1 %v8387_v30  ;;  %v8397_v41 = vld [vmem:[#allocation66_spill] sm:$0xff]  ;;  %v8398_v30 = vld [vmem:[#allocation67_spill] sm:$0xff] }
 0x1b0   :  { %4868 = vmatpush1.bf16.msra.mxu0 %v8388_v38  ;;  %4900 = vmatpush1.bf16.msra.mxu1 %v8389_v31  ;;  %v8399_v38 = vld [vmem:[#allocation68_spill] sm:$0xff] }
 0x1b1   :  { %4870 = vmatprep.subr.bf16.mxu0 %v8390_v59  ;;  %4902 = vmatprep.subr.bf16.mxu1 %v8391_v25  ;;  %v326_v25 = vld [vmem:[%s8082_s6] sm:$0xf] }
 0x1b2   :  { %v7303_v21 = vrot.slane %v326_v25, %v8404_v34 }
 0x1b4   :  { %4872 = vmatpush1.bf16.msra.mxu0 %v8392_v12  ;;  %4904 = vmatpush1.bf16.msra.mxu1 %v8393_v24  ;;  %v8400_v12 = vsub.s32 0, %v7188_v11  ;;  %8405 = vst [vmem:[#allocation104_spill] sm:$0xff] %v7303_v21 }
 0x1b5   :  { %4874 = vmatprep.subr.bf16.mxu0 %v8394_v37  ;;  %4906 = vmatprep.subr.bf16.mxu1 %v8395_v5  ;;  %v8402_v37 = vsub.s32 1, %v7188_v11 }
 0x1b6   :  { %v7293_v59 = vrot.slane %v326_v25, %v8400_v12 }
 0x1b7   :  { %v7297_v24 = vrot.slane %v326_v25, %v8402_v37  ;;  %v8406_v37 = vsub.s32 2, %v7188_v11 }
 0x1b8   :  { %4876 = vmatpush1.bf16.msra.mxu0 %v8396_v51  ;;  %4908 = vmatpush1.bf16.msra.mxu1 %v8397_v41  ;;  %8401 = vst [vmem:[#allocation102_spill] sm:$0xff] %v7293_v59 }
 0x1b9   :  { %4910 = vmatprep.subr.bf16.mxu0 %v8398_v30  ;;  %4942 = vmatprep.subr.bf16.mxu1 %v8399_v38  ;;  %8403 = vst [vmem:[#allocation103_spill] sm:$0xff] %v7297_v24  ;;  %v7308_v1 = vrot.slane %v326_v25, %v8406_v37 }
 0x1bb   :  { %8407 = vst [vmem:[#allocation105_spill] sm:$0xff] %v7308_v1 }
 0x24e   :  { %v960_v5 = vpop.f32.mrb[16].mxu0  ;;  %v1031_v51 = vpop.f32.mrb[16].mxu1 }
 0x24f   :  { %v1057_v41 = vadd.f32 %v7293_v59, %v960_v5  ;;  %v962_v31 = vpop.f32.mrb[17].mxu0  ;;  %v1033_v30 = vpop.f32.mrb[17].mxu1  ;;  %v1059_v5 = vadd.f32 %v7308_v1, %v1031_v51  ;;  %v8409_v51 = vld [vmem:[#allocation99_spill] sm:$0xff] }
 0x250   :  { %v1058_v38 = vadd.f32 %v7297_v24, %v962_v31  ;;  %v1060_v12 = vadd.f32 %v7303_v21, %v1033_v30 }
 0x251   :  { %v4478_v35 = vmul.f32 -1.442695, %v1057_v41 }
 0x252   :  { %v4479_v7 = vmul.f32 -1.442695, %v1058_v38  ;;  %v4480_v61 = vmul.f32 -1.442695, %v1060_v12 }
 0x253   :  { %6243 = vpow2.f32 %v4478_v35 }
 0x254   :  { %6245 = vpow2.f32 %v4479_v7 }
 0x255   :  { %6247 = vpow2.f32 %v4480_v61 }
 0x256   :  { %6249 = vtanh.f32 %v1059_v5 }
 0x25d   :  { %v6244_v59 = vpop.eup %6243 }
 0x25e   :  { %v6246_v45 = vpop.eup %6245  ;;  %v1064_v31 = vadd.f32 1.0, %v6244_v59 }
 0x25f   :  { %v1070_v41 = vadd.f32 1.0, %v6246_v45  ;;  %v6248_v34 = vpop.eup %6247  ;;  %v8410_v45 = vld [vmem:[#allocation100_spill] sm:$0xff] }
 0x260   :  { %6251 = vrcp.f32 %v1064_v31  ;;  %v6250_v35 = vpop.eup %6249  ;;  %v1077_v21 = vadd.f32 1.0, %v6248_v34 }
 0x261   :  { %6253 = vrcp.f32 %v1070_v41 }
 0x262   :  { %6255 = vrcp.f32 %v1077_v21 }
 0x26a   :  { %v6252_v7 = vpop.eup %6251 }
 0x26b   :  { %v6254_v38 = vpop.eup %6253  ;;  %v1081_v30 = vmul.f32 %v6252_v7, %v6250_v35  ;;  %v8411_v35 = vld [vmem:[#allocation101_spill] sm:$0xff] }
 0x26c   :  { %v1080_v11 = vmul.f32 0.0, %v6254_v38  ;;  %v6256_v7 = vpop.eup %6255 }
 0x26e   :  { %v7311_v25 = vadd.f32 %v1081_v30, %v1080_v11  ;;  %v1151_v12 = vpop.f32.mrb[2].mxu0  ;;  %v1222_v37 = vpop.f32.mrb[2].mxu1 }
 0x26f   :  { %v6127_v1 = vadd.f32 %v1151_v12, %v8409_v51  ;;  %v1153_v59 = vpop.f32.mrb[3].mxu0  ;;  %v1224_v61 = vpop.f32.mrb[3].mxu1  ;;  %v6143_v11 = vadd.f32 %v1222_v37, %v7214_v49  ;;  %v8416_v37 = vld [vmem:[#allocation73_spill] sm:$0xff] }
 0x270   :  { %8408 = vst [vmem:[#allocation106_spill] sm:$0xff] %v7311_v25  ;;  %6257 = vtanh.f32 %v7311_v25  ;;  %v6128_v5 = vadd.f32 %v1153_v59, %v8410_v45  ;;  %v6144_v34 = vadd.f32 %v1224_v61, %v8411_v35  ;;  %v8412_v25 = vld [vmem:[#allocation69_spill] sm:$0xff]  ;;  %v8415_v61 = vld [vmem:[#allocation72_spill] sm:$0xff] }
 0x271   :  { %v4481_v31 = vmul.f32 -1.442695, %v6127_v1  ;;  %v8413_v1 = vld [vmem:[#allocation70_spill] sm:$0xff] }
 0x272   :  { %v4482_v41 = vmul.f32 -1.442695, %v6128_v5  ;;  %v4483_v30 = vmul.f32 -1.442695, %v6144_v34  ;;  %v8414_v5 = vld [vmem:[#allocation71_spill] sm:$0xff]  ;;  %v8420_v34 = vld [vmem:[#allocation77_spill] sm:$0xff] }
 0x273   :  { %6259 = vpow2.f32 %v4481_v31  ;;  %v8418_v31 = vld [vmem:[#allocation75_spill] sm:$0xff] }
 0x274   :  { %6261 = vpow2.f32 %v4482_v41  ;;  %v8419_v41 = vld [vmem:[#allocation76_spill] sm:$0xff] }
 0x275   :  { %6263 = vpow2.f32 %v4483_v30 }
 0x276   :  { %6265 = vtanh.f32 %v6143_v11 }
 0x27a   :  { %v6258_v38 = vpop.eup %6257 }
 0x27b   :  { %v1084_v21 = vmul.f32 %v6258_v38, %v6256_v7  ;;  %v8421_v7 = vld [vmem:[#allocation78_spill] sm:$0xff]  ;;  %v8422_v38 = vld [vmem:[#allocation79_spill] sm:$0xff] }
 0x27d   :  { %v6260_v24 = vpop.eup %6259  ;;  %1320 = vmatmul.mubr.f32.vlgmr.msra.gmra.mrb[18].mxu0 %v1084_v21  ;;  %1391 = vmatmul.mubr.f32.vlgmr.msra.gmra.mrb[18].mxu1 %v1084_v21 }
 0x27e   :  { %v6262_v12 = vpop.eup %6261  ;;  %v1234_v51 = vadd.f32 1.0, %v6260_v24  ;;  %4912 = vmatpush1.bf16.msra.mxu0 %v8412_v25  ;;  %4944 = vmatpush1.bf16.msra.mxu1 %v8413_v1  ;;  %v8417_v24 = vld [vmem:[#allocation74_spill] sm:$0xff] }
 0x27f   :  { %v1240_v59 = vadd.f32 1.0, %v6262_v12  ;;  %4914 = vmatprep.subr.bf16.mxu0 %v8414_v5  ;;  %4946 = vmatprep.subr.bf16.mxu1 %v8415_v61  ;;  %v6264_v30 = vpop.eup %6263  ;;  %v8424_v12 = vld [vmem:[#allocation81_spill] sm:$0xff]  ;;  %v8426_v61 = vld [vmem:[#allocation83_spill] sm:$0xff] }
 0x280   :  { %6267 = vrcp.f32 %v1234_v51  ;;  %1461 = vmatprep.mubr.f32.mxu0 %v8347_v8  ;;  %1532 = vmatprep.mubr.f32.mxu1 %v8347_v8  ;;  %v8423_v51 = vld [vmem:[#allocation80_spill] sm:$0xff]  ;;  %v6266_v11 = vpop.eup %6265  ;;  %v8430_v5 = vld [vmem:[#allocation87_spill] sm:$0xff] }
 0x281   :  { %6269 = vrcp.f32 %v1240_v59  ;;  %v8425_v59 = vld [vmem:[#allocation82_spill] sm:$0xff] }
 0x282   :  { %4916 = vmatpush1.bf16.msra.mxu0 %v8416_v37  ;;  %4948 = vmatpush1.bf16.msra.mxu1 %v8417_v24 }
 0x283   :  { %4918 = vmatprep.subr.bf16.mxu0 %v8418_v31  ;;  %4950 = vmatprep.subr.bf16.mxu1 %v8419_v41  ;;  %v1247_v31 = vadd.f32 1.0, %v6264_v30  ;;  %v8427_v41 = vld [vmem:[#allocation84_spill] sm:$0xff]  ;;  %v8432_v30 = vld [vmem:[#allocation89_spill] sm:$0xff] }
 0x285   :  { %6271 = vrcp.f32 %v1247_v31  ;;  %v8439_v31 = vld [vmem:[#allocation96_spill] sm:$0xff] }
 0x286   :  { %4920 = vmatpush1.bf16.msra.mxu0 %v8420_v34  ;;  %4952 = vmatpush1.bf16.msra.mxu1 %v8421_v7 }
 0x287   :  { %4922 = vmatprep.subr.bf16.mxu0 %v8422_v38  ;;  %4954 = vmatprep.subr.bf16.mxu1 %v8423_v51  ;;  %v8428_v38 = vld [vmem:[#allocation85_spill] sm:$0xff]  ;;  %v8429_v51 = vld [vmem:[#allocation86_spill] sm:$0xff] }
 0x28a   :  { %v6268_v21 = vpop.eup %6267  ;;  %4924 = vmatpush1.bf16.msra.mxu0 %v8424_v12  ;;  %4956 = vmatpush1.bf16.msra.mxu1 %v8425_v59  ;;  %v8431_v12 = vld [vmem:[#allocation88_spill] sm:$0xff] }
 0x28b   :  { %v6270_v24 = vpop.eup %6269  ;;  %v1251_v37 = vmul.f32 %v6268_v21, %v6266_v11  ;;  %4926 = vmatprep.subr.bf16.mxu0 %v8426_v61  ;;  %4958 = vmatprep.subr.bf16.mxu1 %v8427_v41  ;;  %v8433_v11 = vld [vmem:[#allocation90_spill] sm:$0xff]  ;;  %v8434_v21 = vld [vmem:[#allocation91_spill] sm:$0xff] }
 0x28c   :  { %v1250_v7 = vmul.f32 %v6270_v24, %v7217_v0  ;;  %v8435_v0 = vld [vmem:[#allocation92_spill] sm:$0xff]  ;;  %v8437_v24 = vld [vmem:[#allocation94_spill] sm:$0xff] }
 0x28e   :  { %v7337_v34 = vadd.f32 %v1251_v37, %v1250_v7  ;;  %4928 = vmatpush1.bf16.msra.mxu0 %v8428_v38  ;;  %4960 = vmatpush1.bf16.msra.mxu1 %v8429_v51  ;;  %v8436_v37 = vld [vmem:[#allocation93_spill] sm:$0xff]  ;;  %v8438_v7 = vld [vmem:[#allocation95_spill] sm:$0xff]  ;;  %v8441_v38 = vld [vmem:[#allocation98_spill] sm:$0xff] }
 0x28f   :  { %4930 = vmatprep.subr.bf16.mxu0 %v8430_v5  ;;  %4962 = vmatprep.subr.bf16.mxu1 %v8431_v12  ;;  %v6272_v5 = vpop.eup %6271  ;;  %v8440_v51 = vld [vmem:[#allocation97_spill] sm:$0xff] }
 0x290   :  { %6273 = vtanh.f32 %v7337_v34 }
 0x292   :  { %4932 = vmatpush1.bf16.msra.mxu0 %v8432_v30  ;;  %4964 = vmatpush1.bf16.msra.mxu1 %v8433_v11  ;;  %v8442_v11 = vld [vmem:[#allocation9_spill] sm:$0xff] }
 0x293   :  { %4934 = vmatprep.subr.bf16.mxu0 %v8434_v21  ;;  %4966 = vmatprep.subr.bf16.mxu1 %v8435_v0  ;;  %v8443_v21 = vld [vmem:[#allocation10_spill] sm:$0xff] }
 0x296   :  { %4936 = vmatpush1.bf16.msra.mxu0 %v8436_v37  ;;  %4968 = vmatpush1.bf16.msra.mxu1 %v8437_v24 }
 0x297   :  { %4938 = vmatprep.subr.bf16.mxu0 %v8438_v7  ;;  %4970 = vmatprep.subr.bf16.mxu1 %v8439_v31 }
 0x29a   :  { %v6274_v12 = vpop.eup %6273  ;;  %4940 = vmatpush1.bf16.msra.mxu0 %v8440_v51  ;;  %4972 = vmatpush1.bf16.msra.mxu1 %v8441_v38 }
 0x29b   :  { %v1254_v30 = vmul.f32 %v6274_v12, %v6272_v5  ;;  %4974 = vmatprep.subr.bf16.mxu0 %v8442_v11  ;;  %5006 = vmatprep.subr.bf16.mxu1 %v8443_v21  ;;  %v8444_v5 = vld [vmem:[#allocation47_spill] sm:$0xff]  ;;  %v8445_v12 = vld [vmem:[#allocation48_spill] sm:$0xff] }
 0x29d   :  { %1462 = vmatmul.mubr.f32.vlgmr.msra.gmra.mrb[18].mxu0 %v1254_v30  ;;  %1533 = vmatmul.mubr.f32.vlgmr.msra.gmra.mrb[18].mxu1 %v1254_v30 }
 0x29e   :  { %4976 = vmatpush1.bf16.msra.mxu0 %v6857_v47  ;;  %5008 = vmatpush1.bf16.msra.mxu1 %v6860_v50 }
 0x29f   :  { %4978 = vmatprep.subr.bf16.mxu0 %v6863_v53  ;;  %5010 = vmatprep.subr.bf16.mxu1 %v6865_v56 }
 0x2a0   :  { %1631 = vmatprep.mubr.f32.mxu0 %v8347_v8  ;;  %1702 = vmatprep.mubr.f32.mxu1 %v8347_v8 }
 0x2a2   :  { %4980 = vmatpush1.bf16.msra.mxu0 %v6871_v60  ;;  %5012 = vmatpush1.bf16.msra.mxu1 %v6875_v63 }
 0x2a3   :  { %4982 = vmatprep.subr.bf16.mxu0 %v6879_v3  ;;  %5014 = vmatprep.subr.bf16.mxu1 %v6882_v6 }
 0x2a6   :  { %4984 = vmatpush1.bf16.msra.mxu0 %v6888_v10  ;;  %5016 = vmatpush1.bf16.msra.mxu1 %v6892_v13 }
 0x2a7   :  { %4986 = vmatprep.subr.bf16.mxu0 %v6896_v16  ;;  %5018 = vmatprep.subr.bf16.mxu1 %v6899_v19 }
 0x2aa   :  { %4988 = vmatpush1.bf16.msra.mxu0 %v6905_v23  ;;  %5020 = vmatpush1.bf16.msra.mxu1 %v6909_v26 }
 0x2ab   :  { %4990 = vmatprep.subr.bf16.mxu0 %v6913_v29  ;;  %5022 = vmatprep.subr.bf16.mxu1 %v6916_v32 }
 0x2ae   :  { %4992 = vmatpush1.bf16.msra.mxu0 %v6922_v36  ;;  %5024 = vmatpush1.bf16.msra.mxu1 %v6926_v40 }
 0x2af   :  { %4994 = vmatprep.subr.bf16.mxu0 %v6930_v44  ;;  %5026 = vmatprep.subr.bf16.mxu1 %v6933_v48 }
 0x2b2   :  { %4996 = vmatpush1.bf16.msra.mxu0 %v6939_v54  ;;  %5028 = vmatpush1.bf16.msra.mxu1 %v6943_v58 }
 0x2b3   :  { %4998 = vmatprep.subr.bf16.mxu0 %v6947_v62  ;;  %5030 = vmatprep.subr.bf16.mxu1 %v6950_v4 }
 0x2b6   :  { %5000 = vmatpush1.bf16.msra.mxu0 %v6956_v9  ;;  %5032 = vmatpush1.bf16.msra.mxu1 %v6960_v14 }
 0x2b7   :  { %5002 = vmatprep.subr.bf16.mxu0 %v6964_v18  ;;  %5034 = vmatprep.subr.bf16.mxu1 %v6967_v22 }
 0x2ba   :  { %5004 = vmatpush1.bf16.msra.mxu0 %v6973_v28  ;;  %5036 = vmatpush1.bf16.msra.mxu1 %v6977_v33 }
 0x2bb   :  { %5038 = vmatprep.subr.bf16.mxu0 %v6981_v39  ;;  %5070 = vmatprep.subr.bf16.mxu1 %v6984_v46  ;;  %v8467_v46 = vld [vmem:[#allocation103_spill] sm:$0xff] }
 0x2bd   :  { %1632 = vmatmul.mubr.f32.vlgmr.msra.gmra.mrb[4].mxu0 %v1254_v30  ;;  %1703 = vmatmul.mubr.f32.vlgmr.msra.gmra.mrb[4].mxu1 %v1254_v30  ;;  %v8446_v30 = vld [vmem:[#allocation49_spill] sm:$0xff] }
 0x2be   :  { %5040 = vmatpush1.bf16.msra.mxu0 %v6987_v52  ;;  %5072 = vmatpush1.bf16.msra.mxu1 %v6991_v55  ;;  %v8466_v55 = vld [vmem:[#allocation102_spill] sm:$0xff] }
 0x2bf   :  { %5042 = vmatprep.subr.bf16.mxu0 %v6993_v57  ;;  %5074 = vmatprep.subr.bf16.mxu1 %v6997_v2  ;;  %v8447_v2 = vld [vmem:[#allocation50_spill] sm:$0xff]  ;;  %v8448_v57 = vld [vmem:[#allocation51_spill] sm:$0xff] }
 0x2c0   :  { %1801 = vmatprep.mubr.f32.mxu0 %v8347_v8  ;;  %1872 = vmatprep.mubr.f32.mxu1 %v8347_v8 }
 0x2c2   :  { %5044 = vmatpush1.bf16.msra.mxu0 %v7003_v15  ;;  %5076 = vmatpush1.bf16.msra.mxu1 %v7007_v17  ;;  %v8449_v15 = vld [vmem:[#allocation52_spill] sm:$0xff]  ;;  %v8450_v17 = vld [vmem:[#allocation53_spill] sm:$0xff] }
 0x2c3   :  { %5046 = vmatprep.subr.bf16.mxu0 %v7009_v20  ;;  %5078 = vmatprep.subr.bf16.mxu1 %v7012_v27  ;;  %v8451_v20 = vld [vmem:[#allocation54_spill] sm:$0xff]  ;;  %v8452_v27 = vld [vmem:[#allocation55_spill] sm:$0xff] }
 0x2c6   :  { %5048 = vmatpush1.bf16.msra.mxu0 %v7017_v42  ;;  %5080 = vmatpush1.bf16.msra.mxu1 %v7021_v43  ;;  %v8453_v42 = vld [vmem:[#allocation56_spill] sm:$0xff]  ;;  %v8454_v43 = vld [vmem:[#allocation57_spill] sm:$0xff] }
 0x2c7   :  { %5050 = vmatprep.subr.bf16.mxu0 %v8444_v5  ;;  %5082 = vmatprep.subr.bf16.mxu1 %v8445_v12  ;;  %v8455_v5 = vld [vmem:[#allocation58_spill] sm:$0xff]  ;;  %v8456_v12 = vld [vmem:[#allocation59_spill] sm:$0xff] }
 0x2ca   :  { %5052 = vmatpush1.bf16.msra.mxu0 %v8446_v30  ;;  %5084 = vmatpush1.bf16.msra.mxu1 %v8447_v2  ;;  %v8457_v30 = vld [vmem:[#allocation60_spill] sm:$0xff]  ;;  %v8458_v2 = vld [vmem:[#allocation61_spill] sm:$0xff] }
 0x2cb   :  { %5054 = vmatprep.subr.bf16.mxu0 %v8448_v57  ;;  %5086 = vmatprep.subr.bf16.mxu1 %v8449_v15  ;;  %v8459_v57 = vld [vmem:[#allocation62_spill] sm:$0xff]  ;;  %v8460_v15 = vld [vmem:[#allocation63_spill] sm:$0xff] }
 0x2ce   :  { %5056 = vmatpush1.bf16.msra.mxu0 %v8450_v17  ;;  %5088 = vmatpush1.bf16.msra.mxu1 %v8451_v20  ;;  %v8461_v17 = vld [vmem:[#allocation64_spill] sm:$0xff]  ;;  %v8462_v20 = vld [vmem:[#allocation65_spill] sm:$0xff] }
 0x2cf   :  { %5058 = vmatprep.subr.bf16.mxu0 %v8452_v27  ;;  %5090 = vmatprep.subr.bf16.mxu1 %v8453_v42  ;;  %v8463_v27 = vld [vmem:[#allocation66_spill] sm:$0xff]  ;;  %v8464_v42 = vld [vmem:[#allocation67_spill] sm:$0xff] }
 0x2d2   :  { %5060 = vmatpush1.bf16.msra.mxu0 %v8454_v43  ;;  %5092 = vmatpush1.bf16.msra.mxu1 %v8455_v5  ;;  %v8465_v43 = vld [vmem:[#allocation68_spill] sm:$0xff] }
 0x2d3   :  { %5062 = vmatprep.subr.bf16.mxu0 %v8456_v12  ;;  %5094 = vmatprep.subr.bf16.mxu1 %v8457_v30 }
 0x2d6   :  { %5064 = vmatpush1.bf16.msra.mxu0 %v8458_v2  ;;  %5096 = vmatpush1.bf16.msra.mxu1 %v8459_v57 }
 0x2d7   :  { %5066 = vmatprep.subr.bf16.mxu0 %v8460_v15  ;;  %5098 = vmatprep.subr.bf16.mxu1 %v8461_v17  ;;  %v8468_v17 = vld [vmem:[#allocation104_spill] sm:$0xff] }
 0x2da   :  { %5068 = vmatpush1.bf16.msra.mxu0 %v8462_v20  ;;  %5100 = vmatpush1.bf16.msra.mxu1 %v8463_v27  ;;  %v8469_v27 = vld [vmem:[#allocation105_spill] sm:$0xff] }
 0x2db   :  { %5102 = vmatprep.subr.bf16.mxu0 %v8464_v42  ;;  %5134 = vmatprep.subr.bf16.mxu1 %v8465_v43 }
 0x370   :  { %v1463_v5 = vpop.f32.mrb[18].mxu0  ;;  %v1534_v12 = vpop.f32.mrb[18].mxu1 }
 0x371   :  { %v1539_v30 = vadd.f32 %v1463_v5, %v8466_v55  ;;  %v1465_v52 = vpop.f32.mrb[19].mxu0  ;;  %v1536_v2 = vpop.f32.mrb[19].mxu1  ;;  %v1541_v28 = vadd.f32 %v1534_v12, %v8469_v27  ;;  %v8471_v27 = vld [vmem:[#allocation99_spill] sm:$0xff] }
 0x372   :  { %v1540_v57 = vadd.f32 %v1465_v52, %v8467_v46  ;;  %v1542_v20 = vadd.f32 %v1536_v2, %v8468_v17 }
 0x373   :  { %v4484_v39 = vmul.f32 -1.442695, %v1539_v30 }
 0x374   :  { %v4485_v15 = vmul.f32 -1.442695, %v1540_v57  ;;  %v4486_v33 = vmul.f32 -1.442695, %v1542_v20 }
 0x375   :  { %6275 = vpow2.f32 %v4484_v39 }
 0x376   :  { %6277 = vpow2.f32 %v4485_v15  ;;  %v8470_v15 = vld [vmem:[#allocation106_spill] sm:$0xff] }
 0x377   :  { %6279 = vpow2.f32 %v4486_v33 }
 0x378   :  { %6281 = vtanh.f32 %v1541_v28 }
 0x37f   :  { %v6276_v42 = vpop.eup %6275 }
 0x380   :  { %v6278_v22 = vpop.eup %6277  ;;  %v1546_v43 = vadd.f32 1.0, %v6276_v42 }
 0x381   :  { %v1552_v18 = vadd.f32 1.0, %v6278_v22  ;;  %v6280_v5 = vpop.eup %6279 }
 0x382   :  { %6283 = vrcp.f32 %v1546_v43  ;;  %v6282_v55 = vpop.eup %6281  ;;  %v1559_v39 = vadd.f32 1.0, %v6280_v5 }
 0x383   :  { %6285 = vrcp.f32 %v1552_v18 }
 0x384   :  { %6287 = vrcp.f32 %v1559_v39 }
 0x38c   :  { %v6284_v52 = vpop.eup %6283 }
 0x38d   :  { %v6286_v30 = vpop.eup %6285  ;;  %v1563_v57 = vmul.f32 %v6284_v52, %v6282_v55 }
 0x38e   :  { %v1562_v46 = vmul.f32 %v6286_v30, %v8470_v15  ;;  %v6288_v5 = vpop.eup %6287 }
 0x390   :  { %v7429_v2 = vadd.f32 %v1563_v57, %v1562_v46  ;;  %v1633_v20 = vpop.f32.mrb[4].mxu0  ;;  %v1704_v12 = vpop.f32.mrb[4].mxu1 }
 0x391   :  { %v6129_v42 = vadd.f32 %v1633_v20, %v8471_v27  ;;  %v1635_v33 = vpop.f32.mrb[5].mxu0  ;;  %v1706_v28 = vpop.f32.mrb[5].mxu1  ;;  %v6145_v30 = vadd.f32 %v1704_v12, %v7214_v49  ;;  %v8474_v12 = vld [vmem:[#allocation73_spill] sm:$0xff] }
 0x392   :  { %v6130_v22 = vadd.f32 %v1635_v33, %v8410_v45  ;;  %6289 = vtanh.f32 %v7429_v2  ;;  %v6146_v55 = vadd.f32 %v1706_v28, %v8411_v35  ;;  %v8472_v33 = vld [vmem:[#allocation71_spill] sm:$0xff]  ;;  %v8473_v28 = vld [vmem:[#allocation72_spill] sm:$0xff] }
 0x393   :  { %v4487_v18 = vmul.f32 -1.442695, %v6129_v42 }
 0x394   :  { %v4488_v43 = vmul.f32 -1.442695, %v6130_v22  ;;  %v4489_v52 = vmul.f32 -1.442695, %v6146_v55  ;;  %v8475_v22 = vld [vmem:[#allocation74_spill] sm:$0xff]  ;;  %v8478_v55 = vld [vmem:[#allocation77_spill] sm:$0xff] }
 0x395   :  { %6291 = vpow2.f32 %v4487_v18  ;;  %v8476_v18 = vld [vmem:[#allocation75_spill] sm:$0xff] }
 0x396   :  { %6293 = vpow2.f32 %v4488_v43  ;;  %v8477_v43 = vld [vmem:[#allocation76_spill] sm:$0xff] }
 0x397   :  { %6295 = vpow2.f32 %v4489_v52  ;;  %v8481_v52 = vld [vmem:[#allocation80_spill] sm:$0xff] }
 0x398   :  { %6297 = vtanh.f32 %v6145_v30 }
 0x39c   :  { %v6290_v46 = vpop.eup %6289 }
 0x39d   :  { %v1566_v57 = vmul.f32 %v6290_v46, %v6288_v5  ;;  %v8479_v5 = vld [vmem:[#allocation78_spill] sm:$0xff]  ;;  %v8480_v46 = vld [vmem:[#allocation79_spill] sm:$0xff] }
 0x39f   :  { %v6292_v39 = vpop.eup %6291  ;;  %1802 = vmatmul.mubr.f32.vlgmr.msra.gmra.mrb[20].mxu0 %v1566_v57  ;;  %1873 = vmatmul.mubr.f32.vlgmr.msra.gmra.mrb[20].mxu1 %v1566_v57 }
 0x3a0   :  { %v6294_v15 = vpop.eup %6293  ;;  %v1716_v20 = vadd.f32 1.0, %v6292_v39  ;;  %5104 = vmatpush1.bf16.msra.mxu0 %v8412_v25  ;;  %5136 = vmatpush1.bf16.msra.mxu1 %v8413_v1 }
 0x3a1   :  { %v1722_v42 = vadd.f32 1.0, %v6294_v15  ;;  %5106 = vmatprep.subr.bf16.mxu0 %v8472_v33  ;;  %5138 = vmatprep.subr.bf16.mxu1 %v8473_v28  ;;  %v6296_v30 = vpop.eup %6295  ;;  %v8482_v15 = vld [vmem:[#allocation81_spill] sm:$0xff] }
 0x3a2   :  { %6299 = vrcp.f32 %v1716_v20  ;;  %1943 = vmatprep.mubr.f32.mxu0 %v8347_v8  ;;  %2014 = vmatprep.mubr.f32.mxu1 %v8347_v8  ;;  %v6298_v57 = vpop.eup %6297 }
 0x3a3   :  { %6301 = vrcp.f32 %v1722_v42 }
 0x3a4   :  { %5108 = vmatpush1.bf16.msra.mxu0 %v8474_v12  ;;  %5140 = vmatpush1.bf16.msra.mxu1 %v8475_v22 }
 0x3a5   :  { %5110 = vmatprep.subr.bf16.mxu0 %v8476_v18  ;;  %5142 = vmatprep.subr.bf16.mxu1 %v8477_v43  ;;  %v1729_v18 = vadd.f32 1.0, %v6296_v30  ;;  %v8485_v43 = vld [vmem:[#allocation87_spill] sm:$0xff]  ;;  %v8487_v30 = vld [vmem:[#allocation89_spill] sm:$0xff] }
 0x3a7   :  { %6303 = vrcp.f32 %v1729_v18 }
 0x3a8   :  { %5112 = vmatpush1.bf16.msra.mxu0 %v8478_v55  ;;  %5144 = vmatpush1.bf16.msra.mxu1 %v8479_v5 }
 0x3a9   :  { %5114 = vmatprep.subr.bf16.mxu0 %v8480_v46  ;;  %5146 = vmatprep.subr.bf16.mxu1 %v8481_v52  ;;  %v8483_v46 = vld [vmem:[#allocation85_spill] sm:$0xff]  ;;  %v8484_v52 = vld [vmem:[#allocation86_spill] sm:$0xff] }
 0x3ac   :  { %v6300_v39 = vpop.eup %6299  ;;  %5116 = vmatpush1.bf16.msra.mxu0 %v8482_v15  ;;  %5148 = vmatpush1.bf16.msra.mxu1 %v8425_v59  ;;  %v8486_v15 = vld [vmem:[#allocation88_spill] sm:$0xff] }
 0x3ad   :  { %v6302_v20 = vpop.eup %6301  ;;  %v1733_v42 = vmul.f32 %v6300_v39, %v6298_v57  ;;  %5118 = vmatprep.subr.bf16.mxu0 %v8426_v61  ;;  %5150 = vmatprep.subr.bf16.mxu1 %v8427_v41  ;;  %v8488_v57 = vld [vmem:[#allocation90_spill] sm:$0xff]  ;;  %v8489_v39 = vld [vmem:[#allocation91_spill] sm:$0xff] }
 0x3ae   :  { %v1732_v5 = vmul.f32 %v6302_v20, %v7337_v34  ;;  %v8490_v20 = vld [vmem:[#allocation31_spill] sm:$0xff] }
 0x3b0   :  { %v7455_v55 = vadd.f32 %v1733_v42, %v1732_v5  ;;  %5120 = vmatpush1.bf16.msra.mxu0 %v8483_v46  ;;  %5152 = vmatpush1.bf16.msra.mxu1 %v8484_v52  ;;  %v8491_v42 = vld [vmem:[#allocation32_spill] sm:$0xff] }
 0x3b1   :  { %5122 = vmatprep.subr.bf16.mxu0 %v8485_v43  ;;  %5154 = vmatprep.subr.bf16.mxu1 %v8486_v15  ;;  %v6304_v34 = vpop.eup %6303 }
 0x3b2   :  { %6305 = vtanh.f32 %v7455_v55 }
 0x3b4   :  { %5124 = vmatpush1.bf16.msra.mxu0 %v8487_v30  ;;  %5156 = vmatpush1.bf16.msra.mxu1 %v8488_v57 }
 0x3b5   :  { %5126 = vmatprep.subr.bf16.mxu0 %v8489_v39  ;;  %5158 = vmatprep.subr.bf16.mxu1 %v8435_v0 }
 0x3b8   :  { %5128 = vmatpush1.bf16.msra.mxu0 %v8436_v37  ;;  %5160 = vmatpush1.bf16.msra.mxu1 %v8437_v24 }
 0x3b9   :  { %5130 = vmatprep.subr.bf16.mxu0 %v8438_v7  ;;  %5162 = vmatprep.subr.bf16.mxu1 %v8439_v31 }
 0x3bc   :  { %v6306_v18 = vpop.eup %6305  ;;  %5132 = vmatpush1.bf16.msra.mxu0 %v8440_v51  ;;  %5164 = vmatpush1.bf16.msra.mxu1 %v8441_v38 }
 0x3bd   :  { %5166 = vmatprep.subr.bf16.mxu0 %v8442_v11  ;;  %5198 = vmatprep.subr.bf16.mxu1 %v8443_v21  ;;  %v1736_v5 = vmul.f32 %v6306_v18, %v6304_v34  ;;  %v8492_v34 = vld [vmem:[#allocation33_spill] sm:$0xff]  ;;  %v8493_v18 = vld [vmem:[#allocation34_spill] sm:$0xff] }
 0x3bf   :  { %1944 = vmatmul.mubr.f32.vlgmr.msra.gmra.mrb[20].mxu0 %v1736_v5  ;;  %2015 = vmatmul.mubr.f32.vlgmr.msra.gmra.mrb[20].mxu1 %v1736_v5 }
 0x3c0   :  { %5168 = vmatpush1.bf16.msra.mxu0 %v6857_v47  ;;  %5200 = vmatpush1.bf16.msra.mxu1 %v6860_v50 }
 0x3c1   :  { %5170 = vmatprep.subr.bf16.mxu0 %v6863_v53  ;;  %5202 = vmatprep.subr.bf16.mxu1 %v6865_v56 }
 0x3c2   :  { %2113 = vmatprep.mubr.f32.mxu0 %v8347_v8  ;;  %2184 = vmatprep.mubr.f32.mxu1 %v8347_v8 }
 0x3c4   :  { %5172 = vmatpush1.bf16.msra.mxu0 %v6871_v60  ;;  %5204 = vmatpush1.bf16.msra.mxu1 %v6875_v63 }
 0x3c5   :  { %5174 = vmatprep.subr.bf16.mxu0 %v6879_v3  ;;  %5206 = vmatprep.subr.bf16.mxu1 %v6882_v6 }
 0x3c8   :  { %5176 = vmatpush1.bf16.msra.mxu0 %v6888_v10  ;;  %5208 = vmatpush1.bf16.msra.mxu1 %v6892_v13 }
 0x3c9   :  { %5178 = vmatprep.subr.bf16.mxu0 %v6896_v16  ;;  %5210 = vmatprep.subr.bf16.mxu1 %v6899_v19 }
 0x3cc   :  { %5180 = vmatpush1.bf16.msra.mxu0 %v6905_v23  ;;  %5212 = vmatpush1.bf16.msra.mxu1 %v6909_v26 }
 0x3cd   :  { %5182 = vmatprep.subr.bf16.mxu0 %v6913_v29  ;;  %5214 = vmatprep.subr.bf16.mxu1 %v6916_v32 }
 0x3d0   :  { %5184 = vmatpush1.bf16.msra.mxu0 %v6922_v36  ;;  %5216 = vmatpush1.bf16.msra.mxu1 %v6926_v40  ;;  %v8529_v40 = vld [vmem:[#allocation103_spill] sm:$0xff] }
 0x3d1   :  { %5186 = vmatprep.subr.bf16.mxu0 %v6930_v44  ;;  %5218 = vmatprep.subr.bf16.mxu1 %v6933_v48  ;;  %v8494_v48 = vld [vmem:[#allocation35_spill] sm:$0xff] }
 0x3d4   :  { %5188 = vmatpush1.bf16.msra.mxu0 %v6939_v54  ;;  %5220 = vmatpush1.bf16.msra.mxu1 %v6943_v58  ;;  %v8495_v54 = vld [vmem:[#allocation36_spill] sm:$0xff]  ;;  %v8528_v58 = vld [vmem:[#allocation102_spill] sm:$0xff] }
 0x3d5   :  { %5190 = vmatprep.subr.bf16.mxu0 %v6947_v62  ;;  %5222 = vmatprep.subr.bf16.mxu1 %v6950_v4  ;;  %v8496_v62 = vld [vmem:[#allocation37_spill] sm:$0xff]  ;;  %v8497_v4 = vld [vmem:[#allocation38_spill] sm:$0xff] }
 0x3d8   :  { %5192 = vmatpush1.bf16.msra.mxu0 %v6956_v9  ;;  %5224 = vmatpush1.bf16.msra.mxu1 %v6960_v14  ;;  %v8498_v9 = vld [vmem:[#allocation39_spill] sm:$0xff]  ;;  %v8499_v14 = vld [vmem:[#allocation40_spill] sm:$0xff] }
 0x3d9   :  { %5194 = vmatprep.subr.bf16.mxu0 %v8490_v20  ;;  %5226 = vmatprep.subr.bf16.mxu1 %v8491_v42  ;;  %v8509_v42 = vld [vmem:[#allocation50_spill] sm:$0xff]  ;;  %v8510_v20 = vld [vmem:[#allocation51_spill] sm:$0xff] }
 0x3dc   :  { %5196 = vmatpush1.bf16.msra.mxu0 %v8492_v34  ;;  %5228 = vmatpush1.bf16.msra.mxu1 %v8493_v18  ;;  %v8500_v34 = vld [vmem:[#allocation41_spill] sm:$0xff]  ;;  %v8501_v18 = vld [vmem:[#allocation42_spill] sm:$0xff] }
 0x3dd   :  { %5230 = vmatprep.subr.bf16.mxu0 %v8494_v48  ;;  %5262 = vmatprep.subr.bf16.mxu1 %v8495_v54  ;;  %v8502_v48 = vld [vmem:[#allocation43_spill] sm:$0xff]  ;;  %v8503_v54 = vld [vmem:[#allocation44_spill] sm:$0xff] }
 0x3df   :  { %2114 = vmatmul.mubr.f32.vlgmr.msra.gmra.mrb[6].mxu0 %v1736_v5  ;;  %2185 = vmatmul.mubr.f32.vlgmr.msra.gmra.mrb[6].mxu1 %v1736_v5  ;;  %v8504_v5 = vld [vmem:[#allocation45_spill] sm:$0xff] }
 0x3e0   :  { %5232 = vmatpush1.bf16.msra.mxu0 %v8496_v62  ;;  %5264 = vmatpush1.bf16.msra.mxu1 %v8497_v4  ;;  %v8505_v62 = vld [vmem:[#allocation46_spill] sm:$0xff]  ;;  %v8506_v4 = vld [vmem:[#allocation47_spill] sm:$0xff] }
 0x3e1   :  { %5234 = vmatprep.subr.bf16.mxu0 %v8498_v9  ;;  %5266 = vmatprep.subr.bf16.mxu1 %v8499_v14  ;;  %v8507_v9 = vld [vmem:[#allocation48_spill] sm:$0xff]  ;;  %v8508_v14 = vld [vmem:[#allocation49_spill] sm:$0xff] }
 0x3e2   :  { %2283 = vmatprep.mubr.f32.mxu0 %v8347_v8  ;;  %2354 = vmatprep.mubr.f32.mxu1 %v8347_v8 }
 0x3e4   :  { %5236 = vmatpush1.bf16.msra.mxu0 %v8500_v34  ;;  %5268 = vmatpush1.bf16.msra.mxu1 %v8501_v18  ;;  %v8511_v34 = vld [vmem:[#allocation52_spill] sm:$0xff]  ;;  %v8512_v18 = vld [vmem:[#allocation53_spill] sm:$0xff] }
 0x3e5   :  { %5238 = vmatprep.subr.bf16.mxu0 %v8502_v48  ;;  %5270 = vmatprep.subr.bf16.mxu1 %v8503_v54  ;;  %v8513_v48 = vld [vmem:[#allocation54_spill] sm:$0xff]  ;;  %v8514_v54 = vld [vmem:[#allocation55_spill] sm:$0xff] }
 0x3e8   :  { %5240 = vmatpush1.bf16.msra.mxu0 %v8504_v5  ;;  %5272 = vmatpush1.bf16.msra.mxu1 %v8505_v62  ;;  %v8515_v5 = vld [vmem:[#allocation56_spill] sm:$0xff]  ;;  %v8516_v62 = vld [vmem:[#allocation57_spill] sm:$0xff] }
 0x3e9   :  { %5242 = vmatprep.subr.bf16.mxu0 %v8506_v4  ;;  %5274 = vmatprep.subr.bf16.mxu1 %v8507_v9  ;;  %v8517_v4 = vld [vmem:[#allocation58_spill] sm:$0xff]  ;;  %v8518_v9 = vld [vmem:[#allocation59_spill] sm:$0xff] }
 0x3ec   :  { %5244 = vmatpush1.bf16.msra.mxu0 %v8508_v14  ;;  %5276 = vmatpush1.bf16.msra.mxu1 %v8509_v42  ;;  %v8519_v14 = vld [vmem:[#allocation60_spill] sm:$0xff]  ;;  %v8520_v42 = vld [vmem:[#allocation61_spill] sm:$0xff] }
 0x3ed   :  { %5246 = vmatprep.subr.bf16.mxu0 %v8510_v20  ;;  %5278 = vmatprep.subr.bf16.mxu1 %v8511_v34  ;;  %v8521_v20 = vld [vmem:[#allocation62_spill] sm:$0xff]  ;;  %v8522_v34 = vld [vmem:[#allocation63_spill] sm:$0xff] }
 0x3f0   :  { %5248 = vmatpush1.bf16.msra.mxu0 %v8512_v18  ;;  %5280 = vmatpush1.bf16.msra.mxu1 %v8513_v48  ;;  %v8523_v18 = vld [vmem:[#allocation64_spill] sm:$0xff]  ;;  %v8524_v48 = vld [vmem:[#allocation65_spill] sm:$0xff] }
 0x3f1   :  { %5250 = vmatprep.subr.bf16.mxu0 %v8514_v54  ;;  %5282 = vmatprep.subr.bf16.mxu1 %v8515_v5  ;;  %v8525_v54 = vld [vmem:[#allocation66_spill] sm:$0xff]  ;;  %v8526_v5 = vld [vmem:[#allocation67_spill] sm:$0xff] }
 0x3f4   :  { %5252 = vmatpush1.bf16.msra.mxu0 %v8516_v62  ;;  %5284 = vmatpush1.bf16.msra.mxu1 %v8517_v4  ;;  %v8527_v62 = vld [vmem:[#allocation68_spill] sm:$0xff] }
 0x3f5   :  { %5254 = vmatprep.subr.bf16.mxu0 %v8518_v9  ;;  %5286 = vmatprep.subr.bf16.mxu1 %v8519_v14 }
 0x3f8   :  { %5256 = vmatpush1.bf16.msra.mxu0 %v8520_v42  ;;  %5288 = vmatpush1.bf16.msra.mxu1 %v8521_v20 }
 0x3f9   :  { %5258 = vmatprep.subr.bf16.mxu0 %v8522_v34  ;;  %5290 = vmatprep.subr.bf16.mxu1 %v8523_v18 }
 0x3fc   :  { %5260 = vmatpush1.bf16.msra.mxu0 %v8524_v48  ;;  %5292 = vmatpush1.bf16.msra.mxu1 %v8525_v54  ;;  %v8530_v54 = vld [vmem:[#allocation105_spill] sm:$0xff] }
 0x3fd   :  { %5294 = vmatprep.subr.bf16.mxu0 %v8526_v5  ;;  %5326 = vmatprep.subr.bf16.mxu1 %v8527_v62 }
 0x492   :  { %v1945_v4 = vpop.f32.mrb[20].mxu0  ;;  %v2016_v9 = vpop.f32.mrb[20].mxu1 }
 0x493   :  { %v2021_v14 = vadd.f32 %v1945_v4, %v8528_v58  ;;  %v1947_v44 = vpop.f32.mrb[21].mxu0  ;;  %v2018_v42 = vpop.f32.mrb[21].mxu1  ;;  %v2023_v32 = vadd.f32 %v2016_v9, %v8530_v54 }
 0x494   :  { %v2022_v20 = vadd.f32 %v1947_v44, %v8529_v40  ;;  %v2024_v48 = vadd.f32 %v2018_v42, %v8468_v17 }
 0x495   :  { %v4490_v36 = vmul.f32 -1.442695, %v2021_v14 }
 0x496   :  { %v4491_v34 = vmul.f32 -1.442695, %v2022_v20  ;;  %v4492_v18 = vmul.f32 -1.442695, %v2024_v48 }
 0x497   :  { %6307 = vpow2.f32 %v4490_v36 }
 0x498   :  { %6309 = vpow2.f32 %v4491_v34 }
 0x499   :  { %6311 = vpow2.f32 %v4492_v18 }
 0x49a   :  { %6313 = vtanh.f32 %v2023_v32 }
 0x4a1   :  { %v6308_v5 = vpop.eup %6307 }
 0x4a2   :  { %v6310_v29 = vpop.eup %6309  ;;  %v2028_v62 = vadd.f32 1.0, %v6308_v5 }
 0x4a3   :  { %v2034_v26 = vadd.f32 1.0, %v6310_v29  ;;  %v6312_v4 = vpop.eup %6311 }
 0x4a4   :  { %6315 = vrcp.f32 %v2028_v62  ;;  %v6314_v58 = vpop.eup %6313  ;;  %v2041_v36 = vadd.f32 1.0, %v6312_v4 }
 0x4a5   :  { %6317 = vrcp.f32 %v2034_v26 }
 0x4a6   :  { %6319 = vrcp.f32 %v2041_v36 }
 0x4ae   :  { %v6316_v44 = vpop.eup %6315 }
 0x4af   :  { %v6318_v14 = vpop.eup %6317  ;;  %v2045_v20 = vmul.f32 %v6316_v44, %v6314_v58 }
 0x4b0   :  { %v2044_v34 = vmul.f32 %v6318_v14, %v7429_v2  ;;  %v6320_v2 = vpop.eup %6319 }
 0x4b2   :  { %v7547_v42 = vadd.f32 %v2045_v20, %v2044_v34  ;;  %v2115_v48 = vpop.f32.mrb[6].mxu0  ;;  %v2186_v9 = vpop.f32.mrb[6].mxu1 }
 0x4b3   :  { %v6131_v5 = vadd.f32 %v2115_v48, %v8471_v27  ;;  %v2117_v18 = vpop.f32.mrb[7].mxu0  ;;  %v2188_v32 = vpop.f32.mrb[7].mxu1  ;;  %v6147_v14 = vadd.f32 %v2186_v9, %v7214_v49  ;;  %v8531_v9 = vld [vmem:[#allocation75_spill] sm:$0xff] }
 0x4b4   :  { %v6132_v29 = vadd.f32 %v2117_v18, %v8410_v45  ;;  %6321 = vtanh.f32 %v7547_v42  ;;  %v6148_v58 = vadd.f32 %v2188_v32, %v8411_v35  ;;  %v8532_v18 = vld [vmem:[#allocation76_spill] sm:$0xff]  ;;  %v8533_v32 = vld [vmem:[#allocation77_spill] sm:$0xff] }
 0x4b5   :  { %v4493_v26 = vmul.f32 -1.442695, %v6131_v5 }
 0x4b6   :  { %v4494_v62 = vmul.f32 -1.442695, %v6132_v29  ;;  %v4495_v44 = vmul.f32 -1.442695, %v6148_v58  ;;  %v8534_v29 = vld [vmem:[#allocation78_spill] sm:$0xff] }
 0x4b7   :  { %6323 = vpow2.f32 %v4493_v26  ;;  %v8535_v26 = vld [vmem:[#allocation79_spill] sm:$0xff] }
 0x4b8   :  { %6325 = vpow2.f32 %v4494_v62  ;;  %v8536_v62 = vld [vmem:[#allocation80_spill] sm:$0xff] }
 0x4b9   :  { %6327 = vpow2.f32 %v4495_v44  ;;  %v8537_v44 = vld [vmem:[#allocation81_spill] sm:$0xff] }
 0x4ba   :  { %6329 = vtanh.f32 %v6147_v14 }
 0x4be   :  { %v6322_v4 = vpop.eup %6321 }
 0x4bf   :  { %v2048_v20 = vmul.f32 %v6322_v4, %v6320_v2 }
 0x4c1   :  { %v6324_v36 = vpop.eup %6323  ;;  %2284 = vmatmul.mubr.f32.vlgmr.msra.gmra.mrb[22].mxu0 %v2048_v20  ;;  %2355 = vmatmul.mubr.f32.vlgmr.msra.gmra.mrb[22].mxu1 %v2048_v20 }
 0x4c2   :  { %v6326_v34 = vpop.eup %6325  ;;  %v2198_v48 = vadd.f32 1.0, %v6324_v36  ;;  %5296 = vmatpush1.bf16.msra.mxu0 %v8412_v25  ;;  %5328 = vmatpush1.bf16.msra.mxu1 %v8413_v1 }
 0x4c3   :  { %v2204_v5 = vadd.f32 1.0, %v6326_v34  ;;  %5298 = vmatprep.subr.bf16.mxu0 %v8472_v33  ;;  %5330 = vmatprep.subr.bf16.mxu1 %v8473_v28  ;;  %v6328_v58 = vpop.eup %6327 }
 0x4c4   :  { %6331 = vrcp.f32 %v2198_v48  ;;  %2425 = vmatprep.mubr.f32.mxu0 %v8347_v8  ;;  %2496 = vmatprep.mubr.f32.mxu1 %v8347_v8  ;;  %v6330_v2 = vpop.eup %6329  ;;  %v2211_v36 = vadd.f32 1.0, %v6328_v58 }
 0x4c5   :  { %6333 = vrcp.f32 %v2204_v5 }
 0x4c6   :  { %5300 = vmatpush1.bf16.msra.mxu0 %v8474_v12  ;;  %5332 = vmatpush1.bf16.msra.mxu1 %v8475_v22  ;;  %6335 = vrcp.f32 %v2211_v36  ;;  %v8542_v36 = vld [vmem:[#allocation22_spill] sm:$0xff] }
 0x4c7   :  { %5302 = vmatprep.subr.bf16.mxu0 %v8531_v9  ;;  %5334 = vmatprep.subr.bf16.mxu1 %v8532_v18 }
 0x4ca   :  { %5304 = vmatpush1.bf16.msra.mxu0 %v8533_v32  ;;  %5336 = vmatpush1.bf16.msra.mxu1 %v8534_v29 }
 0x4cb   :  { %5306 = vmatprep.subr.bf16.mxu0 %v8535_v26  ;;  %5338 = vmatprep.subr.bf16.mxu1 %v8536_v62 }
 0x4ce   :  { %v6332_v4 = vpop.eup %6331  ;;  %5308 = vmatpush1.bf16.msra.mxu0 %v8537_v44  ;;  %5340 = vmatpush1.bf16.msra.mxu1 %v8425_v59 }
 0x4cf   :  { %v6334_v14 = vpop.eup %6333  ;;  %v2215_v20 = vmul.f32 %v6332_v4, %v6330_v2  ;;  %5310 = vmatprep.subr.bf16.mxu0 %v8426_v61  ;;  %5342 = vmatprep.subr.bf16.mxu1 %v8427_v41  ;;  %v8538_v2 = vld [vmem:[#allocation18_spill] sm:$0xff]  ;;  %v8539_v4 = vld [vmem:[#allocation19_spill] sm:$0xff] }
 0x4d0   :  { %v2214_v34 = vmul.f32 %v6334_v14, %v7455_v55  ;;  %v6336_v55 = vpop.eup %6335  ;;  %v8540_v14 = vld [vmem:[#allocation20_spill] sm:$0xff] }
 0x4d2   :  { %v7573_v48 = vadd.f32 %v2215_v20, %v2214_v34  ;;  %5312 = vmatpush1.bf16.msra.mxu0 %v8483_v46  ;;  %5344 = vmatpush1.bf16.msra.mxu1 %v8484_v52  ;;  %v8541_v20 = vld [vmem:[#allocation21_spill] sm:$0xff]  ;;  %v8543_v34 = vld [vmem:[#allocation23_spill] sm:$0xff] }
 0x4d3   :  { %5314 = vmatprep.subr.bf16.mxu0 %v8485_v43  ;;  %5346 = vmatprep.subr.bf16.mxu1 %v8486_v15 }
 0x4d4   :  { %6337 = vtanh.f32 %v7573_v48 }
 0x4d6   :  { %5316 = vmatpush1.bf16.msra.mxu0 %v8487_v30  ;;  %5348 = vmatpush1.bf16.msra.mxu1 %v8488_v57 }
 0x4d7   :  { %5318 = vmatprep.subr.bf16.mxu0 %v8489_v39  ;;  %5350 = vmatprep.subr.bf16.mxu1 %v8435_v0 }
 0x4da   :  { %5320 = vmatpush1.bf16.msra.mxu0 %v8436_v37  ;;  %5352 = vmatpush1.bf16.msra.mxu1 %v8437_v24 }
 0x4db   :  { %5322 = vmatprep.subr.bf16.mxu0 %v8438_v7  ;;  %5354 = vmatprep.subr.bf16.mxu1 %v8439_v31 }
 0x4de   :  { %v6338_v5 = vpop.eup %6337  ;;  %5324 = vmatpush1.bf16.msra.mxu0 %v8440_v51  ;;  %5356 = vmatpush1.bf16.msra.mxu1 %v8441_v38 }
 0x4df   :  { %v2218_v58 = vmul.f32 %v6338_v5, %v6336_v55  ;;  %5358 = vmatprep.subr.bf16.mxu0 %v8442_v11  ;;  %5390 = vmatprep.subr.bf16.mxu1 %v8443_v21  ;;  %v8544_v55 = vld [vmem:[#allocation24_spill] sm:$0xff]  ;;  %v8545_v5 = vld [vmem:[#allocation25_spill] sm:$0xff] }
 0x4e1   :  { %2426 = vmatmul.mubr.f32.vlgmr.msra.gmra.mrb[22].mxu0 %v2218_v58  ;;  %2497 = vmatmul.mubr.f32.vlgmr.msra.gmra.mrb[22].mxu1 %v2218_v58 }
 0x4e2   :  { %5360 = vmatpush1.bf16.msra.mxu0 %v6857_v47  ;;  %5392 = vmatpush1.bf16.msra.mxu1 %v6860_v50 }
 0x4e3   :  { %5362 = vmatprep.subr.bf16.mxu0 %v6863_v53  ;;  %5394 = vmatprep.subr.bf16.mxu1 %v6865_v56 }
 0x4e4   :  { %2595 = vmatprep.mubr.f32.mxu0 %v8347_v8  ;;  %2666 = vmatprep.mubr.f32.mxu1 %v8347_v8 }
 0x4e6   :  { %5364 = vmatpush1.bf16.msra.mxu0 %v6871_v60  ;;  %5396 = vmatpush1.bf16.msra.mxu1 %v6875_v63 }
 0x4e7   :  { %5366 = vmatprep.subr.bf16.mxu0 %v6879_v3  ;;  %5398 = vmatprep.subr.bf16.mxu1 %v6882_v6 }
 0x4ea   :  { %5368 = vmatpush1.bf16.msra.mxu0 %v6888_v10  ;;  %5400 = vmatpush1.bf16.msra.mxu1 %v6892_v13 }
 0x4eb   :  { %5370 = vmatprep.subr.bf16.mxu0 %v6896_v16  ;;  %5402 = vmatprep.subr.bf16.mxu1 %v6899_v19  ;;  %v8546_v16 = vld [vmem:[#allocation26_spill] sm:$0xff]  ;;  %v8547_v19 = vld [vmem:[#allocation27_spill] sm:$0xff] }
 0x4ee   :  { %5372 = vmatpush1.bf16.msra.mxu0 %v6905_v23  ;;  %5404 = vmatpush1.bf16.msra.mxu1 %v8538_v2  ;;  %v8548_v23 = vld [vmem:[#allocation28_spill] sm:$0xff]  ;;  %v8549_v2 = vld [vmem:[#allocation29_spill] sm:$0xff] }
 0x4ef   :  { %5374 = vmatprep.subr.bf16.mxu0 %v8539_v4  ;;  %5406 = vmatprep.subr.bf16.mxu1 %v8540_v14  ;;  %v8550_v4 = vld [vmem:[#allocation30_spill] sm:$0xff]  ;;  %v8551_v14 = vld [vmem:[#allocation31_spill] sm:$0xff] }
 0x4f2   :  { %5376 = vmatpush1.bf16.msra.mxu0 %v8541_v20  ;;  %5408 = vmatpush1.bf16.msra.mxu1 %v8542_v36  ;;  %v8552_v20 = vld [vmem:[#allocation32_spill] sm:$0xff]  ;;  %v8553_v36 = vld [vmem:[#allocation33_spill] sm:$0xff] }
 0x4f3   :  { %5378 = vmatprep.subr.bf16.mxu0 %v8543_v34  ;;  %5410 = vmatprep.subr.bf16.mxu1 %v8544_v55  ;;  %v8554_v34 = vld [vmem:[#allocation34_spill] sm:$0xff]  ;;  %v8555_v55 = vld [vmem:[#allocation35_spill] sm:$0xff] }
 0x4f6   :  { %5380 = vmatpush1.bf16.msra.mxu0 %v8545_v5  ;;  %5412 = vmatpush1.bf16.msra.mxu1 %v8546_v16  ;;  %v8556_v5 = vld [vmem:[#allocation36_spill] sm:$0xff]  ;;  %v8589_v16 = vld [vmem:[#allocation102_spill] sm:$0xff] }
 0x4f7   :  { %5382 = vmatprep.subr.bf16.mxu0 %v8547_v19  ;;  %5414 = vmatprep.subr.bf16.mxu1 %v8548_v23  ;;  %v8557_v19 = vld [vmem:[#allocation37_spill] sm:$0xff]  ;;  %v8558_v23 = vld [vmem:[#allocation38_spill] sm:$0xff] }
 0x4fa   :  { %5384 = vmatpush1.bf16.msra.mxu0 %v8549_v2  ;;  %5416 = vmatpush1.bf16.msra.mxu1 %v8550_v4  ;;  %v8559_v2 = vld [vmem:[#allocation39_spill] sm:$0xff]  ;;  %v8560_v4 = vld [vmem:[#allocation40_spill] sm:$0xff] }
 0x4fb   :  { %5386 = vmatprep.subr.bf16.mxu0 %v8551_v14  ;;  %5418 = vmatprep.subr.bf16.mxu1 %v8552_v20  ;;  %v8570_v20 = vld [vmem:[#allocation50_spill] sm:$0xff]  ;;  %v8571_v14 = vld [vmem:[#allocation51_spill] sm:$0xff] }
 0x4fe   :  { %5388 = vmatpush1.bf16.msra.mxu0 %v8553_v36  ;;  %5420 = vmatpush1.bf16.msra.mxu1 %v8554_v34  ;;  %v8561_v36 = vld [vmem:[#allocation41_spill] sm:$0xff]  ;;  %v8562_v34 = vld [vmem:[#allocation42_spill] sm:$0xff] }
 0x4ff   :  { %5422 = vmatprep.subr.bf16.mxu0 %v8555_v55  ;;  %5454 = vmatprep.subr.bf16.mxu1 %v8556_v5  ;;  %v8563_v55 = vld [vmem:[#allocation43_spill] sm:$0xff]  ;;  %v8564_v5 = vld [vmem:[#allocation44_spill] sm:$0xff] }
 0x501   :  { %2596 = vmatmul.mubr.f32.vlgmr.msra.gmra.mrb[8].mxu0 %v2218_v58  ;;  %2667 = vmatmul.mubr.f32.vlgmr.msra.gmra.mrb[8].mxu1 %v2218_v58  ;;  %v8565_v58 = vld [vmem:[#allocation45_spill] sm:$0xff] }
 0x502   :  { %5424 = vmatpush1.bf16.msra.mxu0 %v8557_v19  ;;  %5456 = vmatpush1.bf16.msra.mxu1 %v8558_v23  ;;  %v8566_v19 = vld [vmem:[#allocation46_spill] sm:$0xff]  ;;  %v8567_v23 = vld [vmem:[#allocation47_spill] sm:$0xff] }
 0x503   :  { %5426 = vmatprep.subr.bf16.mxu0 %v8559_v2  ;;  %5458 = vmatprep.subr.bf16.mxu1 %v8560_v4  ;;  %v8568_v2 = vld [vmem:[#allocation48_spill] sm:$0xff]  ;;  %v8569_v4 = vld [vmem:[#allocation49_spill] sm:$0xff] }
 0x504   :  { %2765 = vmatprep.mubr.f32.mxu0 %v8347_v8  ;;  %2836 = vmatprep.mubr.f32.mxu1 %v8347_v8 }
 0x506   :  { %5428 = vmatpush1.bf16.msra.mxu0 %v8561_v36  ;;  %5460 = vmatpush1.bf16.msra.mxu1 %v8562_v34  ;;  %v8572_v36 = vld [vmem:[#allocation52_spill] sm:$0xff]  ;;  %v8573_v34 = vld [vmem:[#allocation53_spill] sm:$0xff] }
 0x507   :  { %5430 = vmatprep.subr.bf16.mxu0 %v8563_v55  ;;  %5462 = vmatprep.subr.bf16.mxu1 %v8564_v5  ;;  %v8574_v55 = vld [vmem:[#allocation54_spill] sm:$0xff]  ;;  %v8575_v5 = vld [vmem:[#allocation55_spill] sm:$0xff] }
 0x50a   :  { %5432 = vmatpush1.bf16.msra.mxu0 %v8565_v58  ;;  %5464 = vmatpush1.bf16.msra.mxu1 %v8566_v19  ;;  %v8576_v58 = vld [vmem:[#allocation56_spill] sm:$0xff]  ;;  %v8577_v19 = vld [vmem:[#allocation57_spill] sm:$0xff] }
 0x50b   :  { %5434 = vmatprep.subr.bf16.mxu0 %v8567_v23  ;;  %5466 = vmatprep.subr.bf16.mxu1 %v8568_v2  ;;  %v8578_v23 = vld [vmem:[#allocation58_spill] sm:$0xff]  ;;  %v8579_v2 = vld [vmem:[#allocation59_spill] sm:$0xff] }
 0x50e   :  { %5436 = vmatpush1.bf16.msra.mxu0 %v8569_v4  ;;  %5468 = vmatpush1.bf16.msra.mxu1 %v8570_v20  ;;  %v8580_v4 = vld [vmem:[#allocation60_spill] sm:$0xff]  ;;  %v8581_v20 = vld [vmem:[#allocation61_spill] sm:$0xff] }
 0x50f   :  { %5438 = vmatprep.subr.bf16.mxu0 %v8571_v14  ;;  %5470 = vmatprep.subr.bf16.mxu1 %v8572_v36  ;;  %v8582_v14 = vld [vmem:[#allocation62_spill] sm:$0xff]  ;;  %v8583_v36 = vld [vmem:[#allocation63_spill] sm:$0xff] }
 0x512   :  { %5440 = vmatpush1.bf16.msra.mxu0 %v8573_v34  ;;  %5472 = vmatpush1.bf16.msra.mxu1 %v8574_v55  ;;  %v8584_v34 = vld [vmem:[#allocation64_spill] sm:$0xff]  ;;  %v8585_v55 = vld [vmem:[#allocation65_spill] sm:$0xff] }
 0x513   :  { %5442 = vmatprep.subr.bf16.mxu0 %v8575_v5  ;;  %5474 = vmatprep.subr.bf16.mxu1 %v8576_v58  ;;  %v8586_v5 = vld [vmem:[#allocation66_spill] sm:$0xff]  ;;  %v8587_v58 = vld [vmem:[#allocation67_spill] sm:$0xff] }
 0x516   :  { %5444 = vmatpush1.bf16.msra.mxu0 %v8577_v19  ;;  %5476 = vmatpush1.bf16.msra.mxu1 %v8578_v23  ;;  %v8588_v19 = vld [vmem:[#allocation68_spill] sm:$0xff] }
 0x517   :  { %5446 = vmatprep.subr.bf16.mxu0 %v8579_v2  ;;  %5478 = vmatprep.subr.bf16.mxu1 %v8580_v4 }
 0x51a   :  { %5448 = vmatpush1.bf16.msra.mxu0 %v8581_v20  ;;  %5480 = vmatpush1.bf16.msra.mxu1 %v8582_v14 }
 0x51b   :  { %5450 = vmatprep.subr.bf16.mxu0 %v8583_v36  ;;  %5482 = vmatprep.subr.bf16.mxu1 %v8584_v34 }
 0x51e   :  { %5452 = vmatpush1.bf16.msra.mxu0 %v8585_v55  ;;  %5484 = vmatpush1.bf16.msra.mxu1 %v8586_v5 }
 0x51f   :  { %5486 = vmatprep.subr.bf16.mxu0 %v8587_v58  ;;  %5518 = vmatprep.subr.bf16.mxu1 %v8588_v19 }
 0x5b4   :  { %v2427_v23 = vpop.f32.mrb[22].mxu0  ;;  %v2498_v2 = vpop.f32.mrb[22].mxu1 }
 0x5b5   :  { %v2503_v4 = vadd.f32 %v2427_v23, %v8589_v16  ;;  %v2429_v13 = vpop.f32.mrb[23].mxu0  ;;  %v2500_v20 = vpop.f32.mrb[23].mxu1  ;;  %v2505_v5 = vadd.f32 %v2498_v2, %v8530_v54 }
 0x5b6   :  { %v2504_v14 = vadd.f32 %v2429_v13, %v8529_v40  ;;  %v2506_v55 = vadd.f32 %v2500_v20, %v8468_v17 }
 0x5b7   :  { %v4496_v10 = vmul.f32 -1.442695, %v2503_v4 }
 0x5b8   :  { %v4497_v36 = vmul.f32 -1.442695, %v2504_v14  ;;  %v4498_v34 = vmul.f32 -1.442695, %v2506_v55 }
 0x5b9   :  { %6339 = vpow2.f32 %v4496_v10 }
 0x5ba   :  { %6341 = vpow2.f32 %v4497_v36 }
 0x5bb   :  { %6343 = vpow2.f32 %v4498_v34 }
 0x5bc   :  { %6345 = vtanh.f32 %v2505_v5 }
 0x5c3   :  { %v6340_v58 = vpop.eup %6339 }
 0x5c4   :  { %v6342_v6 = vpop.eup %6341  ;;  %v2510_v19 = vadd.f32 1.0, %v6340_v58 }
 0x5c5   :  { %v2516_v3 = vadd.f32 1.0, %v6342_v6  ;;  %v6344_v23 = vpop.eup %6343 }
 0x5c6   :  { %6347 = vrcp.f32 %v2510_v19  ;;  %v6346_v16 = vpop.eup %6345  ;;  %v2523_v10 = vadd.f32 1.0, %v6344_v23 }
 0x5c7   :  { %6349 = vrcp.f32 %v2516_v3 }
 0x5c8   :  { %6351 = vrcp.f32 %v2523_v10 }
 0x5d0   :  { %v6348_v13 = vpop.eup %6347 }
 0x5d1   :  { %v6350_v4 = vpop.eup %6349  ;;  %v2527_v14 = vmul.f32 %v6348_v13, %v6346_v16 }
 0x5d2   :  { %v2526_v36 = vmul.f32 %v6350_v4, %v7547_v42  ;;  %v6352_v42 = vpop.eup %6351 }
 0x5d4   :  { %v7665_v20 = vadd.f32 %v2527_v14, %v2526_v36  ;;  %v2597_v55 = vpop.f32.mrb[8].mxu0  ;;  %v2668_v2 = vpop.f32.mrb[8].mxu1 }
 0x5d5   :  { %v6133_v58 = vadd.f32 %v2597_v55, %v8471_v27  ;;  %v2599_v34 = vpop.f32.mrb[9].mxu0  ;;  %v2670_v5 = vpop.f32.mrb[9].mxu1  ;;  %v6149_v4 = vadd.f32 %v2668_v2, %v7214_v49 }
 0x5d6   :  { %v6134_v6 = vadd.f32 %v2599_v34, %v8410_v45  ;;  %6353 = vtanh.f32 %v7665_v20  ;;  %v6150_v16 = vadd.f32 %v2670_v5, %v8411_v35 }
 0x5d7   :  { %v4499_v3 = vmul.f32 -1.442695, %v6133_v58 }
 0x5d8   :  { %v4500_v19 = vmul.f32 -1.442695, %v6134_v6  ;;  %v4501_v13 = vmul.f32 -1.442695, %v6150_v16 }
 0x5d9   :  { %6355 = vpow2.f32 %v4499_v3 }
 0x5da   :  { %6357 = vpow2.f32 %v4500_v19 }
 0x5db   :  { %6359 = vpow2.f32 %v4501_v13 }
 0x5dc   :  { %6361 = vtanh.f32 %v6149_v4  ;;  %v8590_v4 = vld [vmem:[#allocation11_spill] sm:$0xff] }
 0x5e0   :  { %v6354_v23 = vpop.eup %6353 }
 0x5e1   :  { %v2530_v14 = vmul.f32 %v6354_v23, %v6352_v42 }
 0x5e3   :  { %v6356_v10 = vpop.eup %6355  ;;  %2766 = vmatmul.mubr.f32.vlgmr.msra.gmra.mrb[24].mxu0 %v2530_v14  ;;  %2837 = vmatmul.mubr.f32.vlgmr.msra.gmra.mrb[24].mxu1 %v2530_v14  ;;  %v8591_v14 = vld [vmem:[#allocation12_spill] sm:$0xff] }
 0x5e4   :  { %v6358_v36 = vpop.eup %6357  ;;  %v2680_v55 = vadd.f32 1.0, %v6356_v10  ;;  %5488 = vmatpush1.bf16.msra.mxu0 %v8412_v25  ;;  %5520 = vmatpush1.bf16.msra.mxu1 %v8413_v1  ;;  %v8592_v10 = vld [vmem:[#allocation13_spill] sm:$0xff] }
 0x5e5   :  { %v2686_v58 = vadd.f32 1.0, %v6358_v36  ;;  %5490 = vmatprep.subr.bf16.mxu0 %v8472_v33  ;;  %5522 = vmatprep.subr.bf16.mxu1 %v8473_v28  ;;  %v6360_v2 = vpop.eup %6359  ;;  %v8593_v36 = vld [vmem:[#allocation14_spill] sm:$0xff] }
 0x5e6   :  { %6363 = vrcp.f32 %v2680_v55  ;;  %2907 = vmatprep.mubr.f32.mxu0 %v8347_v8  ;;  %2978 = vmatprep.mubr.f32.mxu1 %v8347_v8  ;;  %v6362_v34 = vpop.eup %6361  ;;  %v2693_v19 = vadd.f32 1.0, %v6360_v2  ;;  %v8594_v55 = vld [vmem:[#allocation15_spill] sm:$0xff]  ;;  %v8596_v2 = vld [vmem:[#allocation17_spill] sm:$0xff] }
 0x5e7   :  { %6365 = vrcp.f32 %v2686_v58  ;;  %v8595_v58 = vld [vmem:[#allocation16_spill] sm:$0xff] }
 0x5e8   :  { %5492 = vmatpush1.bf16.msra.mxu0 %v8474_v12  ;;  %5524 = vmatpush1.bf16.msra.mxu1 %v8475_v22  ;;  %6367 = vrcp.f32 %v2693_v19  ;;  %v8601_v19 = vld [vmem:[#allocation22_spill] sm:$0xff] }
 0x5e9   :  { %5494 = vmatprep.subr.bf16.mxu0 %v8531_v9  ;;  %5526 = vmatprep.subr.bf16.mxu1 %v8532_v18 }
 0x5ec   :  { %5496 = vmatpush1.bf16.msra.mxu0 %v8533_v32  ;;  %5528 = vmatpush1.bf16.msra.mxu1 %v8534_v29 }
 0x5ed   :  { %5498 = vmatprep.subr.bf16.mxu0 %v8535_v26  ;;  %5530 = vmatprep.subr.bf16.mxu1 %v8536_v62 }
 0x5f0   :  { %v6364_v5 = vpop.eup %6363  ;;  %5500 = vmatpush1.bf16.msra.mxu0 %v8537_v44  ;;  %5532 = vmatpush1.bf16.msra.mxu1 %v8425_v59 }
 0x5f1   :  { %v6366_v6 = vpop.eup %6365  ;;  %v2697_v3 = vmul.f32 %v6364_v5, %v6362_v34  ;;  %5502 = vmatprep.subr.bf16.mxu0 %v8426_v61  ;;  %5534 = vmatprep.subr.bf16.mxu1 %v8427_v41  ;;  %v8597_v34 = vld [vmem:[#allocation18_spill] sm:$0xff]  ;;  %v8598_v5 = vld [vmem:[#allocation19_spill] sm:$0xff] }
 0x5f2   :  { %v2696_v16 = vmul.f32 %v6366_v6, %v7573_v48  ;;  %v6368_v48 = vpop.eup %6367  ;;  %v8599_v6 = vld [vmem:[#allocation20_spill] sm:$0xff] }
 0x5f4   :  { %v7691_v42 = vadd.f32 %v2697_v3, %v2696_v16  ;;  %5504 = vmatpush1.bf16.msra.mxu0 %v8483_v46  ;;  %5536 = vmatpush1.bf16.msra.mxu1 %v8484_v52  ;;  %v8600_v3 = vld [vmem:[#allocation21_spill] sm:$0xff]  ;;  %v8602_v16 = vld [vmem:[#allocation23_spill] sm:$0xff] }
 0x5f5   :  { %5506 = vmatprep.subr.bf16.mxu0 %v8485_v43  ;;  %5538 = vmatprep.subr.bf16.mxu1 %v8486_v15 }
 0x5f6   :  { %6369 = vtanh.f32 %v7691_v42 }
 0x5f8   :  { %5508 = vmatpush1.bf16.msra.mxu0 %v8487_v30  ;;  %5540 = vmatpush1.bf16.msra.mxu1 %v8488_v57 }
 0x5f9   :  { %5510 = vmatprep.subr.bf16.mxu0 %v8489_v39  ;;  %5542 = vmatprep.subr.bf16.mxu1 %v8435_v0 }
 0x5fc   :  { %5512 = vmatpush1.bf16.msra.mxu0 %v8436_v37  ;;  %5544 = vmatpush1.bf16.msra.mxu1 %v8437_v24 }
 0x5fd   :  { %5514 = vmatprep.subr.bf16.mxu0 %v8438_v7  ;;  %5546 = vmatprep.subr.bf16.mxu1 %v8439_v31 }
 0x600   :  { %v6370_v23 = vpop.eup %6369  ;;  %5516 = vmatpush1.bf16.msra.mxu0 %v8440_v51  ;;  %5548 = vmatpush1.bf16.msra.mxu1 %v8441_v38 }
 0x601   :  { %5550 = vmatprep.subr.bf16.mxu0 %v8442_v11  ;;  %5582 = vmatprep.subr.bf16.mxu1 %v8443_v21  ;;  %v2700_v13 = vmul.f32 %v6370_v23, %v6368_v48  ;;  %v8603_v48 = vld [vmem:[#allocation24_spill] sm:$0xff]  ;;  %v8604_v23 = vld [vmem:[#allocation25_spill] sm:$0xff] }
 0x603   :  { %2908 = vmatmul.mubr.f32.vlgmr.msra.gmra.mrb[24].mxu0 %v2700_v13  ;;  %2979 = vmatmul.mubr.f32.vlgmr.msra.gmra.mrb[24].mxu1 %v2700_v13 }
 0x604   :  { %5552 = vmatpush1.bf16.msra.mxu0 %v6857_v47  ;;  %5584 = vmatpush1.bf16.msra.mxu1 %v6860_v50 }
 0x605   :  { %5554 = vmatprep.subr.bf16.mxu0 %v6863_v53  ;;  %5586 = vmatprep.subr.bf16.mxu1 %v6865_v56 }
 0x606   :  { %3077 = vmatprep.mubr.f32.mxu0 %v8347_v8  ;;  %3148 = vmatprep.mubr.f32.mxu1 %v8347_v8 }
 0x608   :  { %5556 = vmatpush1.bf16.msra.mxu0 %v6871_v60  ;;  %5588 = vmatpush1.bf16.msra.mxu1 %v6875_v63 }
 0x609   :  { %5558 = vmatprep.subr.bf16.mxu0 %v8590_v4  ;;  %5590 = vmatprep.subr.bf16.mxu1 %v8591_v14 }
 0x60c   :  { %5560 = vmatpush1.bf16.msra.mxu0 %v8592_v10  ;;  %5592 = vmatpush1.bf16.msra.mxu1 %v8593_v36 }
 0x60d   :  { %5562 = vmatprep.subr.bf16.mxu0 %v8594_v55  ;;  %5594 = vmatprep.subr.bf16.mxu1 %v8595_v58  ;;  %v8605_v55 = vld [vmem:[#allocation26_spill] sm:$0xff]  ;;  %v8606_v58 = vld [vmem:[#allocation27_spill] sm:$0xff] }
 0x610   :  { %5564 = vmatpush1.bf16.msra.mxu0 %v8596_v2  ;;  %5596 = vmatpush1.bf16.msra.mxu1 %v8597_v34  ;;  %v8607_v2 = vld [vmem:[#allocation28_spill] sm:$0xff]  ;;  %v8608_v34 = vld [vmem:[#allocation29_spill] sm:$0xff] }
 0x611   :  { %5566 = vmatprep.subr.bf16.mxu0 %v8598_v5  ;;  %5598 = vmatprep.subr.bf16.mxu1 %v8599_v6  ;;  %v8609_v5 = vld [vmem:[#allocation30_spill] sm:$0xff]  ;;  %v8610_v6 = vld [vmem:[#allocation31_spill] sm:$0xff] }
 0x614   :  { %5568 = vmatpush1.bf16.msra.mxu0 %v8600_v3  ;;  %5600 = vmatpush1.bf16.msra.mxu1 %v8601_v19  ;;  %v8611_v3 = vld [vmem:[#allocation32_spill] sm:$0xff]  ;;  %v8612_v19 = vld [vmem:[#allocation33_spill] sm:$0xff] }
 0x615   :  { %5570 = vmatprep.subr.bf16.mxu0 %v8602_v16  ;;  %5602 = vmatprep.subr.bf16.mxu1 %v8603_v48  ;;  %v8613_v16 = vld [vmem:[#allocation34_spill] sm:$0xff]  ;;  %v8614_v48 = vld [vmem:[#allocation35_spill] sm:$0xff] }
 0x618   :  { %5572 = vmatpush1.bf16.msra.mxu0 %v8604_v23  ;;  %5604 = vmatpush1.bf16.msra.mxu1 %v8605_v55  ;;  %v8615_v23 = vld [vmem:[#allocation36_spill] sm:$0xff]  ;;  %v8648_v55 = vld [vmem:[#allocation102_spill] sm:$0xff] }
 0x619   :  { %5574 = vmatprep.subr.bf16.mxu0 %v8606_v58  ;;  %5606 = vmatprep.subr.bf16.mxu1 %v8607_v2  ;;  %v8616_v58 = vld [vmem:[#allocation37_spill] sm:$0xff]  ;;  %v8617_v2 = vld [vmem:[#allocation38_spill] sm:$0xff] }
 0x61c   :  { %5576 = vmatpush1.bf16.msra.mxu0 %v8608_v34  ;;  %5608 = vmatpush1.bf16.msra.mxu1 %v8609_v5  ;;  %v8618_v34 = vld [vmem:[#allocation39_spill] sm:$0xff]  ;;  %v8619_v5 = vld [vmem:[#allocation40_spill] sm:$0xff] }
 0x61d   :  { %5578 = vmatprep.subr.bf16.mxu0 %v8610_v6  ;;  %5610 = vmatprep.subr.bf16.mxu1 %v8611_v3  ;;  %v8629_v3 = vld [vmem:[#allocation50_spill] sm:$0xff]  ;;  %v8630_v6 = vld [vmem:[#allocation51_spill] sm:$0xff] }
 0x620   :  { %5580 = vmatpush1.bf16.msra.mxu0 %v8612_v19  ;;  %5612 = vmatpush1.bf16.msra.mxu1 %v8613_v16  ;;  %v8620_v19 = vld [vmem:[#allocation41_spill] sm:$0xff]  ;;  %v8621_v16 = vld [vmem:[#allocation42_spill] sm:$0xff] }
 0x621   :  { %5614 = vmatprep.subr.bf16.mxu0 %v8614_v48  ;;  %5646 = vmatprep.subr.bf16.mxu1 %v8615_v23  ;;  %v8622_v48 = vld [vmem:[#allocation43_spill] sm:$0xff]  ;;  %v8623_v23 = vld [vmem:[#allocation44_spill] sm:$0xff] }
 0x623   :  { %3078 = vmatmul.mubr.f32.vlgmr.msra.gmra.mrb[10].mxu0 %v2700_v13  ;;  %3149 = vmatmul.mubr.f32.vlgmr.msra.gmra.mrb[10].mxu1 %v2700_v13  ;;  %v8624_v13 = vld [vmem:[#allocation45_spill] sm:$0xff] }
 0x624   :  { %5616 = vmatpush1.bf16.msra.mxu0 %v8616_v58  ;;  %5648 = vmatpush1.bf16.msra.mxu1 %v8617_v2  ;;  %v8625_v58 = vld [vmem:[#allocation46_spill] sm:$0xff]  ;;  %v8626_v2 = vld [vmem:[#allocation47_spill] sm:$0xff] }
 0x625   :  { %5618 = vmatprep.subr.bf16.mxu0 %v8618_v34  ;;  %5650 = vmatprep.subr.bf16.mxu1 %v8619_v5  ;;  %v8627_v34 = vld [vmem:[#allocation48_spill] sm:$0xff]  ;;  %v8628_v5 = vld [vmem:[#allocation49_spill] sm:$0xff] }
 0x626   :  { %3247 = vmatprep.mubr.f32.mxu0 %v8347_v8  ;;  %3318 = vmatprep.mubr.f32.mxu1 %v8347_v8 }
 0x628   :  { %5620 = vmatpush1.bf16.msra.mxu0 %v8620_v19  ;;  %5652 = vmatpush1.bf16.msra.mxu1 %v8621_v16  ;;  %v8631_v19 = vld [vmem:[#allocation52_spill] sm:$0xff]  ;;  %v8632_v16 = vld [vmem:[#allocation53_spill] sm:$0xff] }
 0x629   :  { %5622 = vmatprep.subr.bf16.mxu0 %v8622_v48  ;;  %5654 = vmatprep.subr.bf16.mxu1 %v8623_v23  ;;  %v8633_v48 = vld [vmem:[#allocation54_spill] sm:$0xff]  ;;  %v8634_v23 = vld [vmem:[#allocation55_spill] sm:$0xff] }
 0x62c   :  { %5624 = vmatpush1.bf16.msra.mxu0 %v8624_v13  ;;  %5656 = vmatpush1.bf16.msra.mxu1 %v8625_v58  ;;  %v8635_v13 = vld [vmem:[#allocation56_spill] sm:$0xff]  ;;  %v8636_v58 = vld [vmem:[#allocation57_spill] sm:$0xff] }
 0x62d   :  { %5626 = vmatprep.subr.bf16.mxu0 %v8626_v2  ;;  %5658 = vmatprep.subr.bf16.mxu1 %v8627_v34  ;;  %v8637_v2 = vld [vmem:[#allocation58_spill] sm:$0xff]  ;;  %v8638_v34 = vld [vmem:[#allocation59_spill] sm:$0xff] }
 0x630   :  { %5628 = vmatpush1.bf16.msra.mxu0 %v8628_v5  ;;  %5660 = vmatpush1.bf16.msra.mxu1 %v8629_v3  ;;  %v8639_v5 = vld [vmem:[#allocation60_spill] sm:$0xff]  ;;  %v8640_v3 = vld [vmem:[#allocation61_spill] sm:$0xff] }
 0x631   :  { %5630 = vmatprep.subr.bf16.mxu0 %v8630_v6  ;;  %5662 = vmatprep.subr.bf16.mxu1 %v8631_v19  ;;  %v8641_v6 = vld [vmem:[#allocation62_spill] sm:$0xff]  ;;  %v8642_v19 = vld [vmem:[#allocation63_spill] sm:$0xff] }
 0x634   :  { %5632 = vmatpush1.bf16.msra.mxu0 %v8632_v16  ;;  %5664 = vmatpush1.bf16.msra.mxu1 %v8633_v48  ;;  %v8643_v16 = vld [vmem:[#allocation64_spill] sm:$0xff]  ;;  %v8644_v48 = vld [vmem:[#allocation65_spill] sm:$0xff] }
 0x635   :  { %5634 = vmatprep.subr.bf16.mxu0 %v8634_v23  ;;  %5666 = vmatprep.subr.bf16.mxu1 %v8635_v13  ;;  %v8645_v23 = vld [vmem:[#allocation66_spill] sm:$0xff]  ;;  %v8646_v13 = vld [vmem:[#allocation67_spill] sm:$0xff] }
 0x638   :  { %5636 = vmatpush1.bf16.msra.mxu0 %v8636_v58  ;;  %5668 = vmatpush1.bf16.msra.mxu1 %v8637_v2  ;;  %v8647_v58 = vld [vmem:[#allocation68_spill] sm:$0xff] }
 0x639   :  { %5638 = vmatprep.subr.bf16.mxu0 %v8638_v34  ;;  %5670 = vmatprep.subr.bf16.mxu1 %v8639_v5 }
 0x63c   :  { %5640 = vmatpush1.bf16.msra.mxu0 %v8640_v3  ;;  %5672 = vmatpush1.bf16.msra.mxu1 %v8641_v6 }
 0x63d   :  { %5642 = vmatprep.subr.bf16.mxu0 %v8642_v19  ;;  %5674 = vmatprep.subr.bf16.mxu1 %v8643_v16 }
 0x640   :  { %5644 = vmatpush1.bf16.msra.mxu0 %v8644_v48  ;;  %5676 = vmatpush1.bf16.msra.mxu1 %v8645_v23 }
 0x641   :  { %5678 = vmatprep.subr.bf16.mxu0 %v8646_v13  ;;  %5710 = vmatprep.subr.bf16.mxu1 %v8647_v58 }
 0x6d6   :  { %v2909_v2 = vpop.f32.mrb[24].mxu0  ;;  %v2980_v34 = vpop.f32.mrb[24].mxu1 }
 0x6d7   :  { %v2985_v5 = vadd.f32 %v2909_v2, %v8648_v55  ;;  %v2911_v36 = vpop.f32.mrb[25].mxu0  ;;  %v2982_v3 = vpop.f32.mrb[25].mxu1  ;;  %v2987_v23 = vadd.f32 %v2980_v34, %v8530_v54 }
 0x6d8   :  { %v2986_v6 = vadd.f32 %v2911_v36, %v8529_v40  ;;  %v2988_v48 = vadd.f32 %v2982_v3, %v8468_v17 }
 0x6d9   :  { %v4502_v10 = vmul.f32 -1.442695, %v2985_v5 }
 0x6da   :  { %v4503_v19 = vmul.f32 -1.442695, %v2986_v6  ;;  %v4504_v16 = vmul.f32 -1.442695, %v2988_v48 }
 0x6db   :  { %6371 = vpow2.f32 %v4502_v10 }
 0x6dc   :  { %6373 = vpow2.f32 %v4503_v19 }
 0x6dd   :  { %6375 = vpow2.f32 %v4504_v16 }
 0x6de   :  { %6377 = vtanh.f32 %v2987_v23 }
 0x6e5   :  { %v6372_v13 = vpop.eup %6371 }
 0x6e6   :  { %v6374_v14 = vpop.eup %6373  ;;  %v2992_v58 = vadd.f32 1.0, %v6372_v13 }
 0x6e7   :  { %v2998_v4 = vadd.f32 1.0, %v6374_v14  ;;  %v6376_v2 = vpop.eup %6375 }
 0x6e8   :  { %6379 = vrcp.f32 %v2992_v58  ;;  %v6378_v55 = vpop.eup %6377  ;;  %v3005_v10 = vadd.f32 1.0, %v6376_v2 }
 0x6e9   :  { %6381 = vrcp.f32 %v2998_v4 }
 0x6ea   :  { %6383 = vrcp.f32 %v3005_v10 }
 0x6f2   :  { %v6380_v36 = vpop.eup %6379 }
 0x6f3   :  { %v6382_v5 = vpop.eup %6381  ;;  %v3009_v6 = vmul.f32 %v6380_v36, %v6378_v55 }
 0x6f4   :  { %v3008_v19 = vmul.f32 %v6382_v5, %v7665_v20  ;;  %v6384_v20 = vpop.eup %6383 }
 0x6f6   :  { %v7783_v3 = vadd.f32 %v3009_v6, %v3008_v19  ;;  %v3079_v48 = vpop.f32.mrb[10].mxu0  ;;  %v3150_v34 = vpop.f32.mrb[10].mxu1 }
 0x6f7   :  { %v6135_v13 = vadd.f32 %v3079_v48, %v8471_v27  ;;  %v3081_v16 = vpop.f32.mrb[11].mxu0  ;;  %v3152_v23 = vpop.f32.mrb[11].mxu1  ;;  %v6151_v5 = vadd.f32 %v3150_v34, %v7214_v49 }
 0x6f8   :  { %v6136_v14 = vadd.f32 %v3081_v16, %v8410_v45  ;;  %6385 = vtanh.f32 %v7783_v3  ;;  %v6152_v55 = vadd.f32 %v3152_v23, %v8411_v35 }
 0x6f9   :  { %v4505_v4 = vmul.f32 -1.442695, %v6135_v13 }
 0x6fa   :  { %v4506_v58 = vmul.f32 -1.442695, %v6136_v14  ;;  %v4507_v36 = vmul.f32 -1.442695, %v6152_v55 }
 0x6fb   :  { %6387 = vpow2.f32 %v4505_v4 }
 0x6fc   :  { %6389 = vpow2.f32 %v4506_v58 }
 0x6fd   :  { %6391 = vpow2.f32 %v4507_v36 }
 0x6fe   :  { %6393 = vtanh.f32 %v6151_v5  ;;  %v8649_v5 = vld [vmem:[#allocation11_spill] sm:$0xff] }
 0x702   :  { %v6386_v2 = vpop.eup %6385 }
 0x703   :  { %v3012_v6 = vmul.f32 %v6386_v2, %v6384_v20 }
 0x705   :  { %v6388_v10 = vpop.eup %6387  ;;  %3248 = vmatmul.mubr.f32.vlgmr.msra.gmra.mrb[26].mxu0 %v3012_v6  ;;  %3319 = vmatmul.mubr.f32.vlgmr.msra.gmra.mrb[26].mxu1 %v3012_v6  ;;  %v8650_v6 = vld [vmem:[#allocation12_spill] sm:$0xff] }
 0x706   :  { %v6390_v19 = vpop.eup %6389  ;;  %v3162_v48 = vadd.f32 1.0, %v6388_v10  ;;  %5680 = vmatpush1.bf16.msra.mxu0 %v8412_v25  ;;  %5712 = vmatpush1.bf16.msra.mxu1 %v8413_v1  ;;  %v8651_v10 = vld [vmem:[#allocation13_spill] sm:$0xff] }
 0x707   :  { %v3168_v13 = vadd.f32 1.0, %v6390_v19  ;;  %5682 = vmatprep.subr.bf16.mxu0 %v8472_v33  ;;  %5714 = vmatprep.subr.bf16.mxu1 %v8473_v28  ;;  %v6392_v34 = vpop.eup %6391  ;;  %v8652_v19 = vld [vmem:[#allocation14_spill] sm:$0xff] }
 0x708   :  { %6395 = vrcp.f32 %v3162_v48  ;;  %3389 = vmatprep.mubr.f32.mxu0 %v8347_v8  ;;  %3460 = vmatprep.mubr.f32.mxu1 %v8347_v8  ;;  %v6394_v16 = vpop.eup %6393  ;;  %v3175_v58 = vadd.f32 1.0, %v6392_v34  ;;  %v8653_v48 = vld [vmem:[#allocation15_spill] sm:$0xff]  ;;  %v8655_v34 = vld [vmem:[#allocation17_spill] sm:$0xff] }
 0x709   :  { %6397 = vrcp.f32 %v3168_v13  ;;  %v8654_v13 = vld [vmem:[#allocation16_spill] sm:$0xff] }
 0x70a   :  { %5684 = vmatpush1.bf16.msra.mxu0 %v8474_v12  ;;  %5716 = vmatpush1.bf16.msra.mxu1 %v8475_v22  ;;  %6399 = vrcp.f32 %v3175_v58  ;;  %v8660_v58 = vld [vmem:[#allocation22_spill] sm:$0xff] }
 0x70b   :  { %5686 = vmatprep.subr.bf16.mxu0 %v8531_v9  ;;  %5718 = vmatprep.subr.bf16.mxu1 %v8532_v18 }
 0x70e   :  { %5688 = vmatpush1.bf16.msra.mxu0 %v8533_v32  ;;  %5720 = vmatpush1.bf16.msra.mxu1 %v8534_v29 }
 0x70f   :  { %5690 = vmatprep.subr.bf16.mxu0 %v8535_v26  ;;  %5722 = vmatprep.subr.bf16.mxu1 %v8536_v62 }
 0x712   :  { %v6396_v23 = vpop.eup %6395  ;;  %5692 = vmatpush1.bf16.msra.mxu0 %v8537_v44  ;;  %5724 = vmatpush1.bf16.msra.mxu1 %v8425_v59 }
 0x713   :  { %v6398_v14 = vpop.eup %6397  ;;  %v3179_v4 = vmul.f32 %v6396_v23, %v6394_v16  ;;  %5694 = vmatprep.subr.bf16.mxu0 %v8426_v61  ;;  %5726 = vmatprep.subr.bf16.mxu1 %v8427_v41  ;;  %v8656_v16 = vld [vmem:[#allocation18_spill] sm:$0xff]  ;;  %v8657_v23 = vld [vmem:[#allocation19_spill] sm:$0xff] }
 0x714   :  { %v3178_v55 = vmul.f32 %v6398_v14, %v7691_v42  ;;  %v6400_v42 = vpop.eup %6399  ;;  %v8658_v14 = vld [vmem:[#allocation20_spill] sm:$0xff] }
 0x716   :  { %v7809_v20 = vadd.f32 %v3179_v4, %v3178_v55  ;;  %5696 = vmatpush1.bf16.msra.mxu0 %v8483_v46  ;;  %5728 = vmatpush1.bf16.msra.mxu1 %v8484_v52  ;;  %v8659_v4 = vld [vmem:[#allocation21_spill] sm:$0xff]  ;;  %v8661_v55 = vld [vmem:[#allocation23_spill] sm:$0xff] }
 0x717   :  { %5698 = vmatprep.subr.bf16.mxu0 %v8485_v43  ;;  %5730 = vmatprep.subr.bf16.mxu1 %v8486_v15 }
 0x718   :  { %6401 = vtanh.f32 %v7809_v20 }
 0x71a   :  { %5700 = vmatpush1.bf16.msra.mxu0 %v8487_v30  ;;  %5732 = vmatpush1.bf16.msra.mxu1 %v8488_v57 }
 0x71b   :  { %5702 = vmatprep.subr.bf16.mxu0 %v8489_v39  ;;  %5734 = vmatprep.subr.bf16.mxu1 %v8435_v0 }
 0x71e   :  { %5704 = vmatpush1.bf16.msra.mxu0 %v8436_v37  ;;  %5736 = vmatpush1.bf16.msra.mxu1 %v8437_v24 }
 0x71f   :  { %5706 = vmatprep.subr.bf16.mxu0 %v8438_v7  ;;  %5738 = vmatprep.subr.bf16.mxu1 %v8439_v31 }
 0x722   :  { %v6402_v2 = vpop.eup %6401  ;;  %5708 = vmatpush1.bf16.msra.mxu0 %v8440_v51  ;;  %5740 = vmatpush1.bf16.msra.mxu1 %v8441_v38 }
 0x723   :  { %v3182_v36 = vmul.f32 %v6402_v2, %v6400_v42  ;;  %5742 = vmatprep.subr.bf16.mxu0 %v8442_v11  ;;  %5774 = vmatprep.subr.bf16.mxu1 %v8443_v21  ;;  %v8662_v42 = vld [vmem:[#allocation24_spill] sm:$0xff]  ;;  %v8663_v2 = vld [vmem:[#allocation25_spill] sm:$0xff] }
 0x725   :  { %3390 = vmatmul.mubr.f32.vlgmr.msra.gmra.mrb[26].mxu0 %v3182_v36  ;;  %3461 = vmatmul.mubr.f32.vlgmr.msra.gmra.mrb[26].mxu1 %v3182_v36 }
 0x726   :  { %5744 = vmatpush1.bf16.msra.mxu0 %v6857_v47  ;;  %5776 = vmatpush1.bf16.msra.mxu1 %v6860_v50 }
 0x727   :  { %5746 = vmatprep.subr.bf16.mxu0 %v6863_v53  ;;  %5778 = vmatprep.subr.bf16.mxu1 %v6865_v56 }
 0x728   :  { %3559 = vmatprep.mubr.f32.mxu0 %v8347_v8  ;;  %3630 = vmatprep.mubr.f32.mxu1 %v8347_v8 }
 0x72a   :  { %5748 = vmatpush1.bf16.msra.mxu0 %v6871_v60  ;;  %5780 = vmatpush1.bf16.msra.mxu1 %v6875_v63 }
 0x72b   :  { %5750 = vmatprep.subr.bf16.mxu0 %v8649_v5  ;;  %5782 = vmatprep.subr.bf16.mxu1 %v8650_v6 }
 0x72e   :  { %5752 = vmatpush1.bf16.msra.mxu0 %v8651_v10  ;;  %5784 = vmatpush1.bf16.msra.mxu1 %v8652_v19 }
 0x72f   :  { %5754 = vmatprep.subr.bf16.mxu0 %v8653_v48  ;;  %5786 = vmatprep.subr.bf16.mxu1 %v8654_v13  ;;  %v8664_v48 = vld [vmem:[#allocation26_spill] sm:$0xff]  ;;  %v8665_v13 = vld [vmem:[#allocation27_spill] sm:$0xff] }
 0x732   :  { %5756 = vmatpush1.bf16.msra.mxu0 %v8655_v34  ;;  %5788 = vmatpush1.bf16.msra.mxu1 %v8656_v16  ;;  %v8666_v34 = vld [vmem:[#allocation28_spill] sm:$0xff]  ;;  %v8667_v16 = vld [vmem:[#allocation29_spill] sm:$0xff] }
 0x733   :  { %5758 = vmatprep.subr.bf16.mxu0 %v8657_v23  ;;  %5790 = vmatprep.subr.bf16.mxu1 %v8658_v14  ;;  %v8668_v23 = vld [vmem:[#allocation30_spill] sm:$0xff]  ;;  %v8669_v14 = vld [vmem:[#allocation31_spill] sm:$0xff] }
 0x736   :  { %5760 = vmatpush1.bf16.msra.mxu0 %v8659_v4  ;;  %5792 = vmatpush1.bf16.msra.mxu1 %v8660_v58  ;;  %v8670_v4 = vld [vmem:[#allocation32_spill] sm:$0xff]  ;;  %v8671_v58 = vld [vmem:[#allocation33_spill] sm:$0xff] }
 0x737   :  { %5762 = vmatprep.subr.bf16.mxu0 %v8661_v55  ;;  %5794 = vmatprep.subr.bf16.mxu1 %v8662_v42  ;;  %v8672_v55 = vld [vmem:[#allocation34_spill] sm:$0xff]  ;;  %v8673_v42 = vld [vmem:[#allocation35_spill] sm:$0xff] }
 0x73a   :  { %5764 = vmatpush1.bf16.msra.mxu0 %v8663_v2  ;;  %5796 = vmatpush1.bf16.msra.mxu1 %v8664_v48  ;;  %v8674_v2 = vld [vmem:[#allocation36_spill] sm:$0xff]  ;;  %v8707_v48 = vld [vmem:[#allocation102_spill] sm:$0xff] }
 0x73b   :  { %5766 = vmatprep.subr.bf16.mxu0 %v8665_v13  ;;  %5798 = vmatprep.subr.bf16.mxu1 %v8666_v34  ;;  %v8675_v13 = vld [vmem:[#allocation37_spill] sm:$0xff]  ;;  %v8676_v34 = vld [vmem:[#allocation38_spill] sm:$0xff] }
 0x73e   :  { %5768 = vmatpush1.bf16.msra.mxu0 %v8667_v16  ;;  %5800 = vmatpush1.bf16.msra.mxu1 %v8668_v23  ;;  %v8677_v16 = vld [vmem:[#allocation39_spill] sm:$0xff]  ;;  %v8678_v23 = vld [vmem:[#allocation40_spill] sm:$0xff] }
 0x73f   :  { %5770 = vmatprep.subr.bf16.mxu0 %v8669_v14  ;;  %5802 = vmatprep.subr.bf16.mxu1 %v8670_v4  ;;  %v8688_v4 = vld [vmem:[#allocation50_spill] sm:$0xff]  ;;  %v8689_v14 = vld [vmem:[#allocation51_spill] sm:$0xff] }
 0x742   :  { %5772 = vmatpush1.bf16.msra.mxu0 %v8671_v58  ;;  %5804 = vmatpush1.bf16.msra.mxu1 %v8672_v55  ;;  %v8679_v58 = vld [vmem:[#allocation41_spill] sm:$0xff]  ;;  %v8680_v55 = vld [vmem:[#allocation42_spill] sm:$0xff] }
 0x743   :  { %5806 = vmatprep.subr.bf16.mxu0 %v8673_v42  ;;  %5838 = vmatprep.subr.bf16.mxu1 %v8674_v2  ;;  %v8681_v42 = vld [vmem:[#allocation43_spill] sm:$0xff]  ;;  %v8682_v2 = vld [vmem:[#allocation44_spill] sm:$0xff] }
 0x745   :  { %3560 = vmatmul.mubr.f32.vlgmr.msra.gmra.mrb[12].mxu0 %v3182_v36  ;;  %3631 = vmatmul.mubr.f32.vlgmr.msra.gmra.mrb[12].mxu1 %v3182_v36  ;;  %v8683_v36 = vld [vmem:[#allocation45_spill] sm:$0xff] }
 0x746   :  { %5808 = vmatpush1.bf16.msra.mxu0 %v8675_v13  ;;  %5840 = vmatpush1.bf16.msra.mxu1 %v8676_v34  ;;  %v8684_v13 = vld [vmem:[#allocation46_spill] sm:$0xff]  ;;  %v8685_v34 = vld [vmem:[#allocation47_spill] sm:$0xff] }
 0x747   :  { %5810 = vmatprep.subr.bf16.mxu0 %v8677_v16  ;;  %5842 = vmatprep.subr.bf16.mxu1 %v8678_v23  ;;  %v8686_v16 = vld [vmem:[#allocation48_spill] sm:$0xff]  ;;  %v8687_v23 = vld [vmem:[#allocation49_spill] sm:$0xff] }
 0x748   :  { %3729 = vmatprep.mubr.f32.mxu0 %v8347_v8  ;;  %3800 = vmatprep.mubr.f32.mxu1 %v8347_v8 }
 0x74a   :  { %5812 = vmatpush1.bf16.msra.mxu0 %v8679_v58  ;;  %5844 = vmatpush1.bf16.msra.mxu1 %v8680_v55  ;;  %v8690_v58 = vld [vmem:[#allocation52_spill] sm:$0xff]  ;;  %v8691_v55 = vld [vmem:[#allocation53_spill] sm:$0xff] }
 0x74b   :  { %5814 = vmatprep.subr.bf16.mxu0 %v8681_v42  ;;  %5846 = vmatprep.subr.bf16.mxu1 %v8682_v2  ;;  %v8692_v42 = vld [vmem:[#allocation54_spill] sm:$0xff]  ;;  %v8693_v2 = vld [vmem:[#allocation55_spill] sm:$0xff] }
 0x74e   :  { %5816 = vmatpush1.bf16.msra.mxu0 %v8683_v36  ;;  %5848 = vmatpush1.bf16.msra.mxu1 %v8684_v13  ;;  %v8694_v36 = vld [vmem:[#allocation56_spill] sm:$0xff]  ;;  %v8695_v13 = vld [vmem:[#allocation57_spill] sm:$0xff] }
 0x74f   :  { %5818 = vmatprep.subr.bf16.mxu0 %v8685_v34  ;;  %5850 = vmatprep.subr.bf16.mxu1 %v8686_v16  ;;  %v8696_v34 = vld [vmem:[#allocation58_spill] sm:$0xff]  ;;  %v8697_v16 = vld [vmem:[#allocation59_spill] sm:$0xff] }
 0x752   :  { %5820 = vmatpush1.bf16.msra.mxu0 %v8687_v23  ;;  %5852 = vmatpush1.bf16.msra.mxu1 %v8688_v4  ;;  %v8698_v23 = vld [vmem:[#allocation60_spill] sm:$0xff]  ;;  %v8699_v4 = vld [vmem:[#allocation61_spill] sm:$0xff] }
 0x753   :  { %5822 = vmatprep.subr.bf16.mxu0 %v8689_v14  ;;  %5854 = vmatprep.subr.bf16.mxu1 %v8690_v58  ;;  %v8700_v14 = vld [vmem:[#allocation62_spill] sm:$0xff]  ;;  %v8701_v58 = vld [vmem:[#allocation63_spill] sm:$0xff] }
 0x756   :  { %5824 = vmatpush1.bf16.msra.mxu0 %v8691_v55  ;;  %5856 = vmatpush1.bf16.msra.mxu1 %v8692_v42  ;;  %v8702_v55 = vld [vmem:[#allocation64_spill] sm:$0xff]  ;;  %v8703_v42 = vld [vmem:[#allocation65_spill] sm:$0xff] }
 0x757   :  { %5826 = vmatprep.subr.bf16.mxu0 %v8693_v2  ;;  %5858 = vmatprep.subr.bf16.mxu1 %v8694_v36  ;;  %v8704_v2 = vld [vmem:[#allocation66_spill] sm:$0xff]  ;;  %v8705_v36 = vld [vmem:[#allocation67_spill] sm:$0xff] }
 0x75a   :  { %5828 = vmatpush1.bf16.msra.mxu0 %v8695_v13  ;;  %5860 = vmatpush1.bf16.msra.mxu1 %v8696_v34  ;;  %v8706_v13 = vld [vmem:[#allocation68_spill] sm:$0xff] }
 0x75b   :  { %5830 = vmatprep.subr.bf16.mxu0 %v8697_v16  ;;  %5862 = vmatprep.subr.bf16.mxu1 %v8698_v23 }
 0x75e   :  { %5832 = vmatpush1.bf16.msra.mxu0 %v8699_v4  ;;  %5864 = vmatpush1.bf16.msra.mxu1 %v8700_v14 }
 0x75f   :  { %5834 = vmatprep.subr.bf16.mxu0 %v8701_v58  ;;  %5866 = vmatprep.subr.bf16.mxu1 %v8702_v55 }
 0x762   :  { %5836 = vmatpush1.bf16.msra.mxu0 %v8703_v42  ;;  %5868 = vmatpush1.bf16.msra.mxu1 %v8704_v2 }
 0x763   :  { %5870 = vmatprep.subr.bf16.mxu0 %v8705_v36  ;;  %5902 = vmatprep.subr.bf16.mxu1 %v8706_v13 }
 0x7f8   :  { %v3391_v34 = vpop.f32.mrb[26].mxu0  ;;  %v3462_v16 = vpop.f32.mrb[26].mxu1 }
 0x7f9   :  { %v3467_v23 = vadd.f32 %v3391_v34, %v8707_v48  ;;  %v3393_v19 = vpop.f32.mrb[27].mxu0  ;;  %v3464_v4 = vpop.f32.mrb[27].mxu1  ;;  %v3469_v2 = vadd.f32 %v3462_v16, %v8530_v54 }
 0x7fa   :  { %v3468_v14 = vadd.f32 %v3393_v19, %v8529_v40  ;;  %v3470_v42 = vadd.f32 %v3464_v4, %v8468_v17 }
 0x7fb   :  { %v4508_v10 = vmul.f32 -1.442695, %v3467_v23 }
 0x7fc   :  { %v4509_v58 = vmul.f32 -1.442695, %v3468_v14  ;;  %v4510_v55 = vmul.f32 -1.442695, %v3470_v42 }
 0x7fd   :  { %6403 = vpow2.f32 %v4508_v10 }
 0x7fe   :  { %6405 = vpow2.f32 %v4509_v58 }
 0x7ff   :  { %6407 = vpow2.f32 %v4510_v55 }
 0x800   :  { %6409 = vtanh.f32 %v3469_v2 }
 0x807   :  { %v6404_v36 = vpop.eup %6403 }
 0x808   :  { %v6406_v6 = vpop.eup %6405  ;;  %v3474_v13 = vadd.f32 1.0, %v6404_v36 }
 0x809   :  { %v3480_v5 = vadd.f32 1.0, %v6406_v6  ;;  %v6408_v34 = vpop.eup %6407 }
 0x80a   :  { %6411 = vrcp.f32 %v3474_v13  ;;  %v6410_v48 = vpop.eup %6409  ;;  %v3487_v10 = vadd.f32 1.0, %v6408_v34 }
 0x80b   :  { %6413 = vrcp.f32 %v3480_v5 }
 0x80c   :  { %6415 = vrcp.f32 %v3487_v10 }
 0x814   :  { %v6412_v19 = vpop.eup %6411 }
 0x815   :  { %v6414_v23 = vpop.eup %6413  ;;  %v3491_v14 = vmul.f32 %v6412_v19, %v6410_v48 }
 0x816   :  { %v3490_v58 = vmul.f32 %v6414_v23, %v7783_v3  ;;  %v6416_v3 = vpop.eup %6415 }
 0x818   :  { %v7901_v4 = vadd.f32 %v3491_v14, %v3490_v58  ;;  %v3561_v42 = vpop.f32.mrb[12].mxu0  ;;  %v3632_v16 = vpop.f32.mrb[12].mxu1 }
 0x819   :  { %v6137_v36 = vadd.f32 %v3561_v42, %v8471_v27  ;;  %v3563_v55 = vpop.f32.mrb[13].mxu0  ;;  %v3634_v2 = vpop.f32.mrb[13].mxu1  ;;  %v6153_v23 = vadd.f32 %v3632_v16, %v7214_v49 }
 0x81a   :  { %v6138_v6 = vadd.f32 %v3563_v55, %v8410_v45  ;;  %6417 = vtanh.f32 %v7901_v4  ;;  %v6154_v48 = vadd.f32 %v3634_v2, %v8411_v35 }
 0x81b   :  { %v4511_v5 = vmul.f32 -1.442695, %v6137_v36 }
 0x81c   :  { %v4512_v13 = vmul.f32 -1.442695, %v6138_v6  ;;  %v4513_v19 = vmul.f32 -1.442695, %v6154_v48 }
 0x81d   :  { %6419 = vpow2.f32 %v4511_v5 }
 0x81e   :  { %6421 = vpow2.f32 %v4512_v13 }
 0x81f   :  { %6423 = vpow2.f32 %v4513_v19 }
 0x820   :  { %6425 = vtanh.f32 %v6153_v23  ;;  %v8710_v23 = vld [vmem:[#allocation13_spill] sm:$0xff] }
 0x824   :  { %v6418_v34 = vpop.eup %6417 }
 0x825   :  { %v3494_v14 = vmul.f32 %v6418_v34, %v6416_v3 }
 0x827   :  { %v6420_v10 = vpop.eup %6419  ;;  %3730 = vmatmul.mubr.f32.vlgmr.msra.gmra.mrb[28].mxu0 %v3494_v14  ;;  %3801 = vmatmul.mubr.f32.vlgmr.msra.gmra.mrb[28].mxu1 %v3494_v14  ;;  %v8715_v14 = vld [vmem:[#allocation18_spill] sm:$0xff] }
 0x828   :  { %v6422_v58 = vpop.eup %6421  ;;  %v3644_v42 = vadd.f32 1.0, %v6420_v10  ;;  %5872 = vmatpush1.bf16.msra.mxu0 %v8412_v25  ;;  %5904 = vmatpush1.bf16.msra.mxu1 %v8413_v1  ;;  %v8716_v10 = vld [vmem:[#allocation19_spill] sm:$0xff] }
 0x829   :  { %v3650_v36 = vadd.f32 1.0, %v6422_v58  ;;  %5874 = vmatprep.subr.bf16.mxu0 %v8472_v33  ;;  %5906 = vmatprep.subr.bf16.mxu1 %v8473_v28  ;;  %v6424_v16 = vpop.eup %6423  ;;  %v8719_v58 = vld [vmem:[#allocation22_spill] sm:$0xff] }
 0x82a   :  { %6427 = vrcp.f32 %v3644_v42  ;;  %3871 = vmatprep.mubr.f32.mxu0 %v8347_v8  ;;  %3942 = vmatprep.mubr.f32.mxu1 %v8347_v8  ;;  %v6426_v55 = vpop.eup %6425  ;;  %v3657_v13 = vadd.f32 1.0, %v6424_v16  ;;  %v8720_v42 = vld [vmem:[#allocation23_spill] sm:$0xff]  ;;  %v8722_v16 = vld [vmem:[#allocation25_spill] sm:$0xff] }
 0x82b   :  { %6429 = vrcp.f32 %v3650_v36  ;;  %v8721_v36 = vld [vmem:[#allocation24_spill] sm:$0xff] }
 0x82c   :  { %5876 = vmatpush1.bf16.msra.mxu0 %v8474_v12  ;;  %5908 = vmatpush1.bf16.msra.mxu1 %v8475_v22  ;;  %6431 = vrcp.f32 %v3657_v13  ;;  %v8727_v13 = vld [vmem:[#allocation30_spill] sm:$0xff] }
 0x82d   :  { %5878 = vmatprep.subr.bf16.mxu0 %v8531_v9  ;;  %5910 = vmatprep.subr.bf16.mxu1 %v8532_v18 }
 0x830   :  { %5880 = vmatpush1.bf16.msra.mxu0 %v8533_v32  ;;  %5912 = vmatpush1.bf16.msra.mxu1 %v8534_v29 }
 0x831   :  { %5882 = vmatprep.subr.bf16.mxu0 %v8535_v26  ;;  %5914 = vmatprep.subr.bf16.mxu1 %v8536_v62 }
 0x834   :  { %v6428_v2 = vpop.eup %6427  ;;  %5884 = vmatpush1.bf16.msra.mxu0 %v8537_v44  ;;  %5916 = vmatpush1.bf16.msra.mxu1 %v8425_v59 }
 0x835   :  { %v6430_v6 = vpop.eup %6429  ;;  %v3661_v5 = vmul.f32 %v6428_v2, %v6426_v55  ;;  %5886 = vmatprep.subr.bf16.mxu0 %v8426_v61  ;;  %5918 = vmatprep.subr.bf16.mxu1 %v8427_v41  ;;  %v8723_v55 = vld [vmem:[#allocation26_spill] sm:$0xff]  ;;  %v8724_v2 = vld [vmem:[#allocation27_spill] sm:$0xff] }
 0x836   :  { %v3660_v48 = vmul.f32 %v6430_v6, %v7809_v20  ;;  %v6432_v20 = vpop.eup %6431  ;;  %v8725_v6 = vld [vmem:[#allocation28_spill] sm:$0xff] }
 0x838   :  { %v7927_v3 = vadd.f32 %v3661_v5, %v3660_v48  ;;  %5888 = vmatpush1.bf16.msra.mxu0 %v8483_v46  ;;  %5920 = vmatpush1.bf16.msra.mxu1 %v8484_v52  ;;  %v8726_v5 = vld [vmem:[#allocation29_spill] sm:$0xff]  ;;  %v8728_v48 = vld [vmem:[#allocation31_spill] sm:$0xff] }
 0x839   :  { %5890 = vmatprep.subr.bf16.mxu0 %v8485_v43  ;;  %5922 = vmatprep.subr.bf16.mxu1 %v8486_v15 }
 0x83a   :  { %6433 = vtanh.f32 %v7927_v3 }
 0x83c   :  { %5892 = vmatpush1.bf16.msra.mxu0 %v8487_v30  ;;  %5924 = vmatpush1.bf16.msra.mxu1 %v8488_v57 }
 0x83d   :  { %5894 = vmatprep.subr.bf16.mxu0 %v8489_v39  ;;  %5926 = vmatprep.subr.bf16.mxu1 %v8435_v0 }
 0x840   :  { %5896 = vmatpush1.bf16.msra.mxu0 %v8436_v37  ;;  %5928 = vmatpush1.bf16.msra.mxu1 %v8437_v24 }
 0x841   :  { %5898 = vmatprep.subr.bf16.mxu0 %v8438_v7  ;;  %5930 = vmatprep.subr.bf16.mxu1 %v8439_v31 }
 0x844   :  { %v6434_v34 = vpop.eup %6433  ;;  %5900 = vmatpush1.bf16.msra.mxu0 %v8440_v51  ;;  %5932 = vmatpush1.bf16.msra.mxu1 %v8441_v38 }
 0x845   :  { %5934 = vmatprep.subr.bf16.mxu0 %v8442_v11  ;;  %5966 = vmatprep.subr.bf16.mxu1 %v8443_v21  ;;  %v3664_v19 = vmul.f32 %v6434_v34, %v6432_v20  ;;  %v8708_v11 = vld [vmem:[#allocation11_spill] sm:$0xff]  ;;  %v8709_v21 = vld [vmem:[#allocation12_spill] sm:$0xff]  ;;  %v8730_v34 = vld [vmem:[#allocation33_spill] sm:$0xff] }
 0x846   :  { %v8729_v20 = vld [vmem:[#allocation32_spill] sm:$0xff] }
 0x847   :  { %3872 = vmatmul.mubr.f32.vlgmr.msra.gmra.mrb[28].mxu0 %v3664_v19  ;;  %3943 = vmatmul.mubr.f32.vlgmr.msra.gmra.mrb[28].mxu1 %v3664_v19 }
 0x848   :  { %5936 = vmatpush1.bf16.msra.mxu0 %v6857_v47  ;;  %5968 = vmatpush1.bf16.msra.mxu1 %v6860_v50  ;;  %v8711_v47 = vld [vmem:[#allocation14_spill] sm:$0xff]  ;;  %v8712_v50 = vld [vmem:[#allocation15_spill] sm:$0xff] }
 0x849   :  { %5938 = vmatprep.subr.bf16.mxu0 %v6863_v53  ;;  %5970 = vmatprep.subr.bf16.mxu1 %v6865_v56  ;;  %v8713_v53 = vld [vmem:[#allocation16_spill] sm:$0xff]  ;;  %v8714_v56 = vld [vmem:[#allocation17_spill] sm:$0xff] }
 0x84a   :  { %4041 = vmatprep.mubr.f32.mxu0 %v8347_v8  ;;  %4112 = vmatprep.mubr.f32.mxu1 %v8347_v8 }
 0x84c   :  { %5940 = vmatpush1.bf16.msra.mxu0 %v6871_v60  ;;  %5972 = vmatpush1.bf16.msra.mxu1 %v6875_v63  ;;  %v8717_v60 = vld [vmem:[#allocation20_spill] sm:$0xff]  ;;  %v8718_v63 = vld [vmem:[#allocation21_spill] sm:$0xff] }
 0x84d   :  { %5942 = vmatprep.subr.bf16.mxu0 %v8708_v11  ;;  %5974 = vmatprep.subr.bf16.mxu1 %v8709_v21  ;;  %v8731_v11 = vld [vmem:[#allocation34_spill] sm:$0xff]  ;;  %v8732_v21 = vld [vmem:[#allocation35_spill] sm:$0xff] }
 0x850   :  { %5944 = vmatpush1.bf16.msra.mxu0 %v8710_v23  ;;  %5976 = vmatpush1.bf16.msra.mxu1 %v8711_v47  ;;  %v8733_v23 = vld [vmem:[#allocation36_spill] sm:$0xff]  ;;  %v8734_v47 = vld [vmem:[#allocation37_spill] sm:$0xff] }
 0x851   :  { %5946 = vmatprep.subr.bf16.mxu0 %v8712_v50  ;;  %5978 = vmatprep.subr.bf16.mxu1 %v8713_v53  ;;  %v8735_v50 = vld [vmem:[#allocation38_spill] sm:$0xff]  ;;  %v8736_v53 = vld [vmem:[#allocation39_spill] sm:$0xff] }
 0x854   :  { %5948 = vmatpush1.bf16.msra.mxu0 %v8714_v56  ;;  %5980 = vmatpush1.bf16.msra.mxu1 %v8715_v14  ;;  %v8737_v56 = vld [vmem:[#allocation40_spill] sm:$0xff]  ;;  %v8738_v14 = vld [vmem:[#allocation41_spill] sm:$0xff] }
 0x855   :  { %5950 = vmatprep.subr.bf16.mxu0 %v8716_v10  ;;  %5982 = vmatprep.subr.bf16.mxu1 %v8717_v60  ;;  %v8739_v10 = vld [vmem:[#allocation42_spill] sm:$0xff]  ;;  %v8740_v60 = vld [vmem:[#allocation43_spill] sm:$0xff] }
 0x858   :  { %5952 = vmatpush1.bf16.msra.mxu0 %v8718_v63  ;;  %5984 = vmatpush1.bf16.msra.mxu1 %v8719_v58  ;;  %v8741_v63 = vld [vmem:[#allocation44_spill] sm:$0xff]  ;;  %v8743_v58 = vld [vmem:[#allocation46_spill] sm:$0xff] }
 0x859   :  { %5954 = vmatprep.subr.bf16.mxu0 %v8720_v42  ;;  %5986 = vmatprep.subr.bf16.mxu1 %v8721_v36  ;;  %v8744_v42 = vld [vmem:[#allocation47_spill] sm:$0xff]  ;;  %v8745_v36 = vld [vmem:[#allocation48_spill] sm:$0xff] }
 0x85c   :  { %5956 = vmatpush1.bf16.msra.mxu0 %v8722_v16  ;;  %5988 = vmatpush1.bf16.msra.mxu1 %v8723_v55  ;;  %v8746_v16 = vld [vmem:[#allocation49_spill] sm:$0xff]  ;;  %v8747_v55 = vld [vmem:[#allocation50_spill] sm:$0xff] }
 0x85d   :  { %5958 = vmatprep.subr.bf16.mxu0 %v8724_v2  ;;  %5990 = vmatprep.subr.bf16.mxu1 %v8725_v6  ;;  %v8748_v2 = vld [vmem:[#allocation51_spill] sm:$0xff]  ;;  %v8749_v6 = vld [vmem:[#allocation52_spill] sm:$0xff] }
 0x860   :  { %5960 = vmatpush1.bf16.msra.mxu0 %v8726_v5  ;;  %5992 = vmatpush1.bf16.msra.mxu1 %v8727_v13  ;;  %v8750_v5 = vld [vmem:[#allocation53_spill] sm:$0xff]  ;;  %v8751_v13 = vld [vmem:[#allocation54_spill] sm:$0xff] }
 0x861   :  { %5962 = vmatprep.subr.bf16.mxu0 %v8728_v48  ;;  %5994 = vmatprep.subr.bf16.mxu1 %v8729_v20  ;;  %v8752_v48 = vld [vmem:[#allocation55_spill] sm:$0xff]  ;;  %v8753_v20 = vld [vmem:[#allocation56_spill] sm:$0xff] }
 0x864   :  { %5964 = vmatpush1.bf16.msra.mxu0 %v8730_v34  ;;  %5996 = vmatpush1.bf16.msra.mxu1 %v8731_v11  ;;  %v8754_v34 = vld [vmem:[#allocation57_spill] sm:$0xff]  ;;  %v8755_v11 = vld [vmem:[#allocation58_spill] sm:$0xff] }
 0x865   :  { %5998 = vmatprep.subr.bf16.mxu0 %v8732_v21  ;;  %6030 = vmatprep.subr.bf16.mxu1 %v8733_v23  ;;  %v8756_v21 = vld [vmem:[#allocation59_spill] sm:$0xff]  ;;  %v8757_v23 = vld [vmem:[#allocation60_spill] sm:$0xff] }
 0x867   :  { %4042 = vmatmul.mubr.f32.vlgmr.msra.gmra.mrb[14].mxu0 %v3664_v19  ;;  %4113 = vmatmul.mubr.f32.vlgmr.msra.gmra.mrb[14].mxu1 %v3664_v19  ;;  %v8742_v19 = vld [vmem:[#allocation45_spill] sm:$0xff] }
 0x868   :  { %6000 = vmatpush1.bf16.msra.mxu0 %v8734_v47  ;;  %6032 = vmatpush1.bf16.msra.mxu1 %v8735_v50  ;;  %v8758_v47 = vld [vmem:[#allocation61_spill] sm:$0xff]  ;;  %v8759_v50 = vld [vmem:[#allocation62_spill] sm:$0xff] }
 0x869   :  { %6002 = vmatprep.subr.bf16.mxu0 %v8736_v53  ;;  %6034 = vmatprep.subr.bf16.mxu1 %v8737_v56  ;;  %v8760_v53 = vld [vmem:[#allocation63_spill] sm:$0xff]  ;;  %v8761_v56 = vld [vmem:[#allocation64_spill] sm:$0xff] }
 0x86a   :  { %4211 = vmatprep.mubr.f32.mxu0 %v8347_v8  ;;  %4282 = vmatprep.mubr.f32.mxu1 %v8347_v8 }
 0x86c   :  { %6004 = vmatpush1.bf16.msra.mxu0 %v8738_v14  ;;  %6036 = vmatpush1.bf16.msra.mxu1 %v8739_v10  ;;  %v8762_v14 = vld [vmem:[#allocation65_spill] sm:$0xff]  ;;  %v8763_v10 = vld [vmem:[#allocation66_spill] sm:$0xff] }
 0x86d   :  { %6006 = vmatprep.subr.bf16.mxu0 %v8740_v60  ;;  %6038 = vmatprep.subr.bf16.mxu1 %v8741_v63  ;;  %v8764_v60 = vld [vmem:[#allocation67_spill] sm:$0xff]  ;;  %v8765_v63 = vld [vmem:[#allocation68_spill] sm:$0xff] }
 0x870   :  { %6008 = vmatpush1.bf16.msra.mxu0 %v8742_v19  ;;  %6040 = vmatpush1.bf16.msra.mxu1 %v8743_v58 }
 0x871   :  { %6010 = vmatprep.subr.bf16.mxu0 %v8744_v42  ;;  %6042 = vmatprep.subr.bf16.mxu1 %v8745_v36  ;;  %v8766_v42 = vld [vmem:[#allocation102_spill] sm:$0xff] }
 0x874   :  { %6012 = vmatpush1.bf16.msra.mxu0 %v8746_v16  ;;  %6044 = vmatpush1.bf16.msra.mxu1 %v8747_v55 }
 0x875   :  { %6014 = vmatprep.subr.bf16.mxu0 %v8748_v2  ;;  %6046 = vmatprep.subr.bf16.mxu1 %v8749_v6 }
 0x878   :  { %6016 = vmatpush1.bf16.msra.mxu0 %v8750_v5  ;;  %6048 = vmatpush1.bf16.msra.mxu1 %v8751_v13 }
 0x879   :  { %6018 = vmatprep.subr.bf16.mxu0 %v8752_v48  ;;  %6050 = vmatprep.subr.bf16.mxu1 %v8753_v20 }
 0x87c   :  { %6020 = vmatpush1.bf16.msra.mxu0 %v8754_v34  ;;  %6052 = vmatpush1.bf16.msra.mxu1 %v8755_v11 }
 0x87d   :  { %6022 = vmatprep.subr.bf16.mxu0 %v8756_v21  ;;  %6054 = vmatprep.subr.bf16.mxu1 %v8757_v23 }
 0x880   :  { %6024 = vmatpush1.bf16.msra.mxu0 %v8758_v47  ;;  %6056 = vmatpush1.bf16.msra.mxu1 %v8759_v50 }
 0x881   :  { %6026 = vmatprep.subr.bf16.mxu0 %v8760_v53  ;;  %6058 = vmatprep.subr.bf16.mxu1 %v8761_v56 }
 0x884   :  { %6028 = vmatpush1.bf16.msra.mxu0 %v8762_v14  ;;  %6060 = vmatpush1.bf16.msra.mxu1 %v8763_v10 }
 0x885   :  { %6062 = vmatprep.subr.bf16.mxu0 %v8764_v60  ;;  %6094 = vmatprep.subr.bf16.mxu1 %v8765_v63 }
 0x91a   :  { %v3873_v19 = vpop.f32.mrb[28].mxu0  ;;  %v3944_v58 = vpop.f32.mrb[28].mxu1 }
 0x91b   :  { %v3949_v36 = vadd.f32 %v3873_v19, %v8766_v42  ;;  %v3875_v16 = vpop.f32.mrb[29].mxu0  ;;  %v3946_v55 = vpop.f32.mrb[29].mxu1  ;;  %v3951_v20 = vadd.f32 %v3944_v58, %v8530_v54 }
 0x91c   :  { %v3950_v2 = vadd.f32 %v3875_v16, %v8529_v40  ;;  %v3952_v13 = vadd.f32 %v3946_v55, %v8468_v17 }
 0x91d   :  { %v4514_v6 = vmul.f32 -1.442695, %v3949_v36 }
 0x91e   :  { %v4515_v5 = vmul.f32 -1.442695, %v3950_v2  ;;  %v4516_v48 = vmul.f32 -1.442695, %v3952_v13 }
 0x91f   :  { %6435 = vpow2.f32 %v4514_v6 }
 0x920   :  { %6437 = vpow2.f32 %v4515_v5 }
 0x921   :  { %6439 = vpow2.f32 %v4516_v48 }
 0x922   :  { %6441 = vtanh.f32 %v3951_v20 }
 0x929   :  { %v6436_v34 = vpop.eup %6435 }
 0x92a   :  { %v6438_v11 = vpop.eup %6437  ;;  %v3956_v21 = vadd.f32 1.0, %v6436_v34 }
 0x92b   :  { %v3962_v23 = vadd.f32 1.0, %v6438_v11  ;;  %v6440_v47 = vpop.eup %6439 }
 0x92c   :  { %6443 = vrcp.f32 %v3956_v21  ;;  %v6442_v50 = vpop.eup %6441  ;;  %v3969_v10 = vadd.f32 1.0, %v6440_v47 }
 0x92d   :  { %6445 = vrcp.f32 %v3962_v23 }
 0x92e   :  { %6447 = vrcp.f32 %v3969_v10 }
 0x936   :  { %v6444_v53 = vpop.eup %6443 }
 0x937   :  { %v6446_v56 = vpop.eup %6445  ;;  %v3973_v14 = vmul.f32 %v6444_v53, %v6442_v50 }
 0x938   :  { %v3972_v60 = vmul.f32 %v6446_v56, %v7901_v4  ;;  %v6448_v4 = vpop.eup %6447 }
 0x93a   :  { %v8019_v63 = vadd.f32 %v3973_v14, %v3972_v60  ;;  %v4043_v19 = vpop.f32.mrb[14].mxu0  ;;  %v4114_v58 = vpop.f32.mrb[14].mxu1 }
 0x93b   :  { %v6139_v36 = vadd.f32 %v4043_v19, %v8471_v27  ;;  %v4045_v16 = vpop.f32.mrb[15].mxu0  ;;  %v4116_v55 = vpop.f32.mrb[15].mxu1  ;;  %v6155_v34 = vadd.f32 %v4114_v58, %v7214_v49 }
 0x93c   :  { %v6140_v2 = vadd.f32 %v4045_v16, %v8410_v45  ;;  %6449 = vtanh.f32 %v8019_v63  ;;  %v6156_v13 = vadd.f32 %v4116_v55, %v8411_v35 }
 0x93d   :  { %v4517_v6 = vmul.f32 -1.442695, %v6139_v36 }
 0x93e   :  { %v4518_v5 = vmul.f32 -1.442695, %v6140_v2  ;;  %v4519_v20 = vmul.f32 -1.442695, %v6156_v13 }
 0x93f   :  { %6451 = vpow2.f32 %v4517_v6 }
 0x940   :  { %6453 = vpow2.f32 %v4518_v5 }
 0x941   :  { %6455 = vpow2.f32 %v4519_v20 }
 0x942   :  { %6457 = vtanh.f32 %v6155_v34 }
 0x946   :  { %v6450_v48 = vpop.eup %6449 }
 0x947   :  { %v3976_v11 = vmul.f32 %v6450_v48, %v6448_v4 }
 0x949   :  { %v6452_v21 = vpop.eup %6451  ;;  %4212 = vmatmul.mubr.f32.vlgmr.msra.gmra.mrb[30].mxu0 %v3976_v11  ;;  %4283 = vmatmul.mubr.f32.vlgmr.msra.gmra.mrb[30].mxu1 %v3976_v11 }
 0x94a   :  { %v6454_v27 = vpop.eup %6453  ;;  %v4126_v23 = vadd.f32 1.0, %v6452_v21  ;;  %6064 = vmatpush1.bf16.msra.mxu0 %v8412_v25  ;;  %6096 = vmatpush1.bf16.msra.mxu1 %v8413_v1 }
 0x94b   :  { %v4132_v45 = vadd.f32 1.0, %v6454_v27  ;;  %6066 = vmatprep.subr.bf16.mxu0 %v8472_v33  ;;  %6098 = vmatprep.subr.bf16.mxu1 %v8473_v28  ;;  %v6456_v49 = vpop.eup %6455 }
 0x94c   :  { %6459 = vrcp.f32 %v4126_v23  ;;  %4353 = vmatprep.mubr.f32.mxu0 %v8347_v8  ;;  %4424 = vmatprep.mubr.f32.mxu1 %v8347_v8  ;;  %v6458_v25 = vpop.eup %6457  ;;  %v4139_v33 = vadd.f32 1.0, %v6456_v49 }
 0x94d   :  { %6461 = vrcp.f32 %v4132_v45 }
 0x94e   :  { %6068 = vmatpush1.bf16.msra.mxu0 %v8474_v12  ;;  %6100 = vmatpush1.bf16.msra.mxu1 %v8475_v22  ;;  %6463 = vrcp.f32 %v4139_v33 }
 0x94f   :  { %6070 = vmatprep.subr.bf16.mxu0 %v8531_v9  ;;  %6102 = vmatprep.subr.bf16.mxu1 %v8532_v18 }
 0x952   :  { %6072 = vmatpush1.bf16.msra.mxu0 %v8533_v32  ;;  %6104 = vmatpush1.bf16.msra.mxu1 %v8534_v29 }
 0x953   :  { %6074 = vmatprep.subr.bf16.mxu0 %v8535_v26  ;;  %6106 = vmatprep.subr.bf16.mxu1 %v8536_v62 }
 0x956   :  { %v6460_v8 = vpop.eup %6459  ;;  %6076 = vmatpush1.bf16.msra.mxu0 %v8537_v44  ;;  %6108 = vmatpush1.bf16.msra.mxu1 %v8425_v59 }
 0x957   :  { %v6462_v35 = vpop.eup %6461  ;;  %v4143_v1 = vmul.f32 %v6460_v8, %v6458_v25  ;;  %6078 = vmatprep.subr.bf16.mxu0 %v8426_v61  ;;  %6110 = vmatprep.subr.bf16.mxu1 %v8427_v41 }
 0x958   :  { %v4142_v28 = vmul.f32 %v6462_v35, %v7927_v3  ;;  %v6464_v61 = vpop.eup %6463 }
 0x95a   :  { %v4144_v12 = vadd.f32 %v4143_v1, %v4142_v28  ;;  %6080 = vmatpush1.bf16.msra.mxu0 %v8483_v46  ;;  %6112 = vmatpush1.bf16.msra.mxu1 %v8484_v52 }
 0x95b   :  { %6082 = vmatprep.subr.bf16.mxu0 %v8485_v43  ;;  %6114 = vmatprep.subr.bf16.mxu1 %v8486_v15 }
 0x95c   :  { %4460 = vst [vmem:[%s8084_s8] sm:$0xff] %v4144_v12  ;;  %6465 = vtanh.f32 %v4144_v12 }
 0x95e   :  { %6084 = vmatpush1.bf16.msra.mxu0 %v8487_v30  ;;  %6116 = vmatpush1.bf16.msra.mxu1 %v8488_v57 }
 0x95f   :  { %6086 = vmatprep.subr.bf16.mxu0 %v8489_v39  ;;  %6118 = vmatprep.subr.bf16.mxu1 %v8435_v0 }
 0x962   :  { %6088 = vmatpush1.bf16.msra.mxu0 %v8436_v37  ;;  %6120 = vmatpush1.bf16.msra.mxu1 %v8437_v24 }
 0x963   :  { %6090 = vmatprep.subr.bf16.mxu0 %v8438_v7  ;;  %6122 = vmatprep.subr.bf16.mxu1 %v8439_v31 }
 0x966   :  { %v6466_v41 = vpop.eup %6465  ;;  %6092 = vmatpush1.bf16.msra.mxu0 %v8440_v51  ;;  %6124 = vmatpush1.bf16.msra.mxu1 %v8441_v38 }
 0x967   :  { %v4146_v59 = vmul.f32 %v6466_v41, %v6464_v61 }
 0x969   :  { %4354 = vmatmul.mubr.f32.vlgmr.msra.gmra.mrb[30].mxu0 %v4146_v59  ;;  %4459 = vst [vmem:[%s8083_s7] sm:$0xff] %v4146_v59  ;;  %4425 = vmatmul.mubr.f32.vlgmr.msra.gmra.mrb[30].mxu1 %v4146_v59 }
 0xa3c   :  { %v4355_v0 = vpop.f32.mrb[30].mxu0  ;;  %v4426_v37 = vpop.f32.mrb[30].mxu1 }
 0xa3d   :  { %v4431_v24 = vadd.f32 %v4355_v0, %v8766_v42  ;;  %v4357_v7 = vpop.f32.mrb[31].mxu0  ;;  %v4428_v22 = vpop.f32.mrb[31].mxu1  ;;  %v4433_v52 = vadd.f32 %v4426_v37, %v8530_v54 }
 0xa3e   :  { %v4432_v31 = vadd.f32 %v4357_v7, %v8529_v40  ;;  %v4434_v38 = vadd.f32 %v4428_v22, %v8468_v17 }
 0xa3f   :  { %v4520_v43 = vmul.f32 -1.442695, %v4431_v24 }
 0xa40   :  { %v4521_v46 = vmul.f32 -1.442695, %v4432_v31  ;;  %v4522_v51 = vmul.f32 -1.442695, %v4434_v38 }
 0xa41   :  { %6467 = vpow2.f32 %v4520_v43 }
 0xa42   :  { %6469 = vpow2.f32 %v4521_v46 }
 0xa43   :  { %6471 = vpow2.f32 %v4522_v51 }
 0xa44   :  { %6473 = vtanh.f32 %v4433_v52 }
 0xa4b   :  { %v6468_v15 = vpop.eup %6467 }
 0xa4c   :  { %v6470_v30 = vpop.eup %6469  ;;  %v4438_v57 = vadd.f32 1.0, %v6468_v15 }
 0xa4d   :  { %v4444_v39 = vadd.f32 1.0, %v6470_v30  ;;  %v6472_v9 = vpop.eup %6471 }
 0xa4e   :  { %6475 = vrcp.f32 %v4438_v57  ;;  %v6474_v18 = vpop.eup %6473  ;;  %v4451_v26 = vadd.f32 1.0, %v6472_v9 }
 0xa4f   :  { %6477 = vrcp.f32 %v4444_v39 }
 0xa50   :  { %6479 = vrcp.f32 %v4451_v26 }
 0xa58   :  { %v6476_v40 = vpop.eup %6475 }
 0xa59   :  { %v6478_v32 = vpop.eup %6477  ;;  %v4455_v29 = vmul.f32 %v6476_v40, %v6474_v18 }
 0xa5a   :  { %v4454_v62 = vmul.f32 %v6478_v32, %v8019_v63  ;;  %v6480_v54 = vpop.eup %6479 }
 0xa5c   :  { %v4456_v17 = vadd.f32 %v4455_v29, %v4454_v62 }
 0xa5e   :  { %6481 = vtanh.f32 %v4456_v17  ;;  %4524 = vst [vmem:[%s8084_s8 + $0x8] sm:$0xff] %v4456_v17 }
 0xa68   :  { %v6482_v44 = vpop.eup %6481 }
 0xa69   :  { %v4458_v3 = vmul.f32 %v6482_v44, %v6480_v54 }
 0xa6b   :  { %4523 = vst [vmem:[%s8083_s7 + $0x8] sm:$0xff] %v4458_v3 }
 0xa6c   :  { %4473 = vsyncpa [#allocation3], 1 }
 0xa6d   :  { %4474 = vsyncpa [#allocation5], 1 }

// kernel: seq2seq_forward.3
= control target key start
LH: loop header
LB: loop body
LE: loop exit
PB: predicated region body
PF: predicated region fallthrough
CT: control target
= control target key end

     0   :  { %s11730_s0 = inlined_call_operand.vmem [shape: s32[7], index: 0, kind: input, shape index: {}]   ;;  %s11731_s1 = inlined_call_operand.vmem [shape: f32[7,8,128], index: 1, kind: input, shape index: {}]   ;;  %s11732_s2 = inlined_call_operand.vmem [shape: f32[128,128], index: 2, kind: input, shape index: {}]   ;;  %s11733_s3 = inlined_call_operand.vmem [shape: f32[128,512], index: 3, kind: input, shape index: {}]   ;;  %s11734_s4 = inlined_call_operand.vmem [shape: f32[128,512], index: 4, kind: input, shape index: {}]   ;;  %s11735_s5 = inlined_call_operand.vmem [shape: f32[1,512], index: 5, kind: input, shape index: {}]   ;;  %s11736_s6 = inlined_call_operand.vmem [shape: f32[128,512], index: 6, kind: input, shape index: {}]   ;;  %s11737_s7 = inlined_call_operand.vmem [shape: f32[128,512], index: 7, kind: input, shape index: {}]   ;;  %s11738_s8 = inlined_call_operand.vmem [shape: f32[1,512], index: 8, kind: input, shape index: {}]   ;;  %s11739_s9 = inlined_call_operand.vmem [shape: f32[128,128], index: 9, kind: input, shape index: {}]   ;;  %s11740_s10 = inlined_call_operand.vmem [shape: f32[1,128], index: 10, kind: input, shape index: {}]   ;;  %s11741_s11 = inlined_call_operand.vmem [shape: f32[2,8,128], index: 11, kind: input, shape index: {}]   ;;  %s11742_s12 = inlined_call_operand.vmem [shape: f32[2,8,128], index: 12, kind: input, shape index: {}]   ;;  %s11743_s13 = inlined_call_operand.hbm [shape: f32[8,8,128], index: 13, kind: output, shape index: {}]  }
   0x1   :  { %s18_s27 = sshll.u32 %s11730_s0, 4  ;;  %s19_s27 = int_to_ptr.vmem [resolvable:$true] %s18_s27 }
   0x2   :  { %s8964_s28 = scalar_lea.vmem %s19_s27, 16  ;;  %p8969_p1 = scmp.lt.s32.totalorder %s19_s27, %s19_s27 }
   0x3   :  { %p8965_p0 = scmp.ne.s32.totalorder %s19_s27, %s8964_s28  ;;  %p8970_p2 = scmp.lt.s32.totalorder %s8964_s28, %s8964_s28 }
   0x5   :  { %p8971_p3 = por %p8970_p2, %p8969_p1 }
   0x7   :  { %p8972_p4 = pnand %p8971_p3, %p8965_p0 }
   0x9   :  { %8975 = shalt.err (!%p8972_p4)  }
   0xa   :  { %s9002_s29 = smov [#allocation3]  }
   0xb   :  { %21 = dma.vmem_to_smem %s19_s27, 16, %s9002_s29, [#allocation2] }
   0xc   :  { %8998 = dma.done.wait [#allocation2], 16 }
   0xd   :  { %8999 = vsyncadd [#allocation2], 4294967280 }
   0xe   :  { %23 = sfence }
   0xf   :  { %v114_v0 = vld [vmem:[%s11734_s4 + $0x8] sm:$0xff]  ;;  %v116_v2 = vld [vmem:[%s11734_s4 + $0x18] sm:$0xff]  ;;  %v113_v5 = vld [vmem:[%s11734_s4] sm:$0xff]  ;;  %v11744_v7 = vmov 0.0  }
  0x10   :  { %v118_v1 = vld [vmem:[%s11734_s4 + $0x28] sm:$0xff]  ;;  %v120_v4 = vld [vmem:[%s11734_s4 + $0x38] sm:$0xff]  ;;  %v117_v6 = vld [vmem:[%s11734_s4 + $0x20] sm:$0xff]  ;;  %415 = vmatprep.mubr.f32.mxu0 %v11744_v7  ;;  %346 = vst [vmem:[#allocation4] sm:$0xff] %v11744_v7  ;;  %486 = vmatprep.mubr.f32.mxu1 %v11744_v7 }
  0x11   :  { %v9092_v3 = vpack.c.bf16 %v118_v1, %v114_v0  ;;  %v9106_v8 = vpack.c.bf16 %v120_v4, %v116_v2  ;;  %v9108_v9 = vpack.c.bf16 %v117_v6, %v113_v5  ;;  %v115_v10 = vld [vmem:[%s11734_s4 + $0x10] sm:$0xff]  ;;  %v122_v12 = vld [vmem:[%s11734_s4 + $0x48] sm:$0xff]  ;;  %v124_v15 = vld [vmem:[%s11734_s4 + $0x58] sm:$0xff] }
  0x12   :  { %v119_v11 = vld [vmem:[%s11734_s4 + $0x30] sm:$0xff]  ;;  %v126_v14 = vld [vmem:[%s11734_s4 + $0x68] sm:$0xff]  ;;  %v128_v16 = vld [vmem:[%s11734_s4 + $0x78] sm:$0xff] }
  0x13   :  { %12002 = vst [vmem:[#allocation8_spill] sm:$0xff] %v9092_v3  ;;  %12003 = vst [vmem:[#allocation9_spill] sm:$0xff] %v9106_v8  ;;  %6567 = vmatprep.subr.bf16.mxu0 %v9092_v3  ;;  %v9120_v13 = vpack.c.bf16 %v119_v11, %v115_v10  ;;  %6599 = vmatprep.subr.bf16.mxu1 %v9106_v8  ;;  %v9133_v17 = vpack.c.bf16 %v126_v14, %v122_v12  ;;  %v121_v19 = vld [vmem:[%s11734_s4 + $0x40] sm:$0xff]  ;;  %v123_v21 = vld [vmem:[%s11734_s4 + $0x50] sm:$0xff] }
  0x14   :  { %6569 = vmatpush1.bf16.msra.mxu0 %v9108_v9  ;;  %v9135_v18 = vpack.c.bf16 %v128_v16, %v124_v15  ;;  %v125_v20 = vld [vmem:[%s11734_s4 + $0x60] sm:$0xff]  ;;  %v127_v23 = vld [vmem:[%s11734_s4 + $0x70] sm:$0xff]  ;;  %v130_v24 = vld [vmem:[%s11734_s4 + $0x88] sm:$0xff] }
  0x15   :  { %12004 = vst [vmem:[#allocation10_spill] sm:$0xff] %v9120_v13  ;;  %6601 = vmatpush1.bf16.msra.mxu1 %v9120_v13  ;;  %v9147_v22 = vpack.c.bf16 %v125_v20, %v121_v19  ;;  %v134_v25 = vld [vmem:[%s11734_s4 + $0xa8] sm:$0xff]  ;;  %6571 = vmatprep.subr.bf16.mxu0 %v9133_v17  ;;  %v9160_v26 = vpack.c.bf16 %v127_v23, %v123_v21  ;;  %v132_v28 = vld [vmem:[%s11734_s4 + $0x98] sm:$0xff]  ;;  %v129_v30 = vld [vmem:[%s11734_s4 + $0x80] sm:$0xff] }
  0x16   :  { %12005 = vst [vmem:[#allocation11_spill] sm:$0xff] %v9135_v18  ;;  %6603 = vmatprep.subr.bf16.mxu1 %v9135_v18  ;;  %v9162_v27 = vpack.c.bf16 %v134_v25, %v130_v24  ;;  %v136_v29 = vld [vmem:[%s11734_s4 + $0xb8] sm:$0xff]  ;;  %v133_v32 = vld [vmem:[%s11734_s4 + $0xa0] sm:$0xff]  ;;  %v131_v33 = vld [vmem:[%s11734_s4 + $0x90] sm:$0xff] }
  0x17   :  { %12006 = vst [vmem:[#allocation12_spill] sm:$0xff] %v9160_v26  ;;  %v9173_v31 = vpack.c.bf16 %v136_v29, %v132_v28  ;;  %v135_v34 = vld [vmem:[%s11734_s4 + $0xb0] sm:$0xff]  ;;  %v9185_v35 = vpack.c.bf16 %v133_v32, %v129_v30  ;;  %v138_v36 = vld [vmem:[%s11734_s4 + $0xc8] sm:$0xff]  ;;  %v140_v38 = vld [vmem:[%s11734_s4 + $0xd8] sm:$0xff] }
  0x18   :  { %6573 = vmatpush1.bf16.msra.mxu0 %v9147_v22  ;;  %v142_v37 = vld [vmem:[%s11734_s4 + $0xe8] sm:$0xff]  ;;  %v9198_v39 = vpack.c.bf16 %v135_v34, %v131_v33  ;;  %v144_v41 = vld [vmem:[%s11734_s4 + $0xf8] sm:$0xff]  ;;  %v137_v42 = vld [vmem:[%s11734_s4 + $0xc0] sm:$0xff] }
  0x19   :  { %12007 = vst [vmem:[#allocation13_spill] sm:$0xff] %v9173_v31  ;;  %6605 = vmatpush1.bf16.msra.mxu1 %v9160_v26  ;;  %6575 = vmatprep.subr.bf16.mxu0 %v9162_v27  ;;  %v9200_v40 = vpack.c.bf16 %v142_v37, %v138_v36  ;;  %v141_v43 = vld [vmem:[%s11734_s4 + $0xe0] sm:$0xff]  ;;  %v9212_v44 = vpack.c.bf16 %v144_v41, %v140_v38  ;;  %v139_v45 = vld [vmem:[%s11734_s4 + $0xd0] sm:$0xff]  ;;  %v146_v47 = vld [vmem:[%s11734_s4 + $0x108] sm:$0xff] }
  0x1a   :  { %12008 = vst [vmem:[#allocation14_spill] sm:$0xff] %v9198_v39  ;;  %6607 = vmatprep.subr.bf16.mxu1 %v9173_v31  ;;  %v143_v46 = vld [vmem:[%s11734_s4 + $0xf0] sm:$0xff]  ;;  %v150_v48 = vld [vmem:[%s11734_s4 + $0x128] sm:$0xff]  ;;  %v148_v49 = vld [vmem:[%s11734_s4 + $0x118] sm:$0xff]  ;;  %v9233_v51 = vpack.c.bf16 %v141_v43, %v137_v42 }
  0x1b   :  { %12009 = vst [vmem:[#allocation15_spill] sm:$0xff] %v9212_v44  ;;  %v152_v50 = vld [vmem:[%s11734_s4 + $0x138] sm:$0xff]  ;;  %v9237_v52 = vpack.c.bf16 %v143_v46, %v139_v45  ;;  %v9239_v53 = vpack.c.bf16 %v150_v48, %v146_v47  ;;  %v145_v54 = vld [vmem:[%s11734_s4 + $0x100] sm:$0xff]  ;;  %v147_v56 = vld [vmem:[%s11734_s4 + $0x110] sm:$0xff] }
  0x1c   :  { %6577 = vmatpush1.bf16.msra.mxu0 %v9185_v35  ;;  %v149_v55 = vld [vmem:[%s11734_s4 + $0x120] sm:$0xff]  ;;  %v9251_v57 = vpack.c.bf16 %v152_v50, %v148_v49  ;;  %v151_v58 = vld [vmem:[%s11734_s4 + $0x130] sm:$0xff]  ;;  %v154_v59 = vld [vmem:[%s11734_s4 + $0x148] sm:$0xff] }
  0x1d   :  { %6609 = vmatpush1.bf16.msra.mxu1 %v9198_v39  ;;  %6579 = vmatprep.subr.bf16.mxu0 %v9200_v40  ;;  %12010 = vst [vmem:[#allocation16_spill] sm:$0xff] %v9237_v52  ;;  %v158_v60 = vld [vmem:[%s11734_s4 + $0x168] sm:$0xff]  ;;  %v156_v61 = vld [vmem:[%s11734_s4 + $0x158] sm:$0xff]  ;;  %v9269_v63 = vpack.c.bf16 %v149_v55, %v145_v54  ;;  %v9273_v0 = vpack.c.bf16 %v151_v58, %v147_v56  ;;  %v153_v2 = vld [vmem:[%s11734_s4 + $0x140] sm:$0xff] }
  0x1e   :  { %6611 = vmatprep.subr.bf16.mxu1 %v9212_v44  ;;  %12011 = vst [vmem:[#allocation17_spill] sm:$0xff] %v9251_v57  ;;  %v160_v62 = vld [vmem:[%s11734_s4 + $0x178] sm:$0xff]  ;;  %v9275_v1 = vpack.c.bf16 %v158_v60, %v154_v59  ;;  %v157_v4 = vld [vmem:[%s11734_s4 + $0x160] sm:$0xff]  ;;  %v155_v5 = vld [vmem:[%s11734_s4 + $0x150] sm:$0xff] }
  0x1f   :  { %12012 = vst [vmem:[#allocation18_spill] sm:$0xff] %v9273_v0  ;;  %v9287_v6 = vpack.c.bf16 %v160_v62, %v156_v61  ;;  %v159_v10 = vld [vmem:[%s11734_s4 + $0x170] sm:$0xff]  ;;  %v162_v11 = vld [vmem:[%s11734_s4 + $0x188] sm:$0xff]  ;;  %v164_v14 = vld [vmem:[%s11734_s4 + $0x198] sm:$0xff]  ;;  %v9305_v16 = vpack.c.bf16 %v157_v4, %v153_v2 }
  0x20   :  { %6581 = vmatpush1.bf16.msra.mxu0 %v9233_v51  ;;  %v166_v12 = vld [vmem:[%s11734_s4 + $0x1a8] sm:$0xff]  ;;  %v168_v15 = vld [vmem:[%s11734_s4 + $0x1b8] sm:$0xff]  ;;  %v9309_v19 = vpack.c.bf16 %v159_v10, %v155_v5  ;;  %v161_v21 = vld [vmem:[%s11734_s4 + $0x180] sm:$0xff] }
  0x21   :  { %6613 = vmatpush1.bf16.msra.mxu1 %v9237_v52  ;;  %6583 = vmatprep.subr.bf16.mxu0 %v9239_v53  ;;  %12013 = vst [vmem:[#allocation19_spill] sm:$0xff] %v9287_v6  ;;  %v9311_v20 = vpack.c.bf16 %v166_v12, %v162_v11  ;;  %v165_v23 = vld [vmem:[%s11734_s4 + $0x1a0] sm:$0xff]  ;;  %v163_v24 = vld [vmem:[%s11734_s4 + $0x190] sm:$0xff]  ;;  %v9323_v25 = vpack.c.bf16 %v168_v15, %v164_v14  ;;  %v170_v29 = vld [vmem:[%s11734_s4 + $0x1c8] sm:$0xff] }
  0x22   :  { %6615 = vmatprep.subr.bf16.mxu1 %v9251_v57  ;;  %12014 = vst [vmem:[#allocation20_spill] sm:$0xff] %v9309_v19  ;;  %v167_v28 = vld [vmem:[%s11734_s4 + $0x1b0] sm:$0xff]  ;;  %v174_v30 = vld [vmem:[%s11734_s4 + $0x1e8] sm:$0xff]  ;;  %v172_v32 = vld [vmem:[%s11734_s4 + $0x1d8] sm:$0xff]  ;;  %v9341_v34 = vpack.c.bf16 %v165_v23, %v161_v21 }
  0x23   :  { %12015 = vst [vmem:[#allocation21_spill] sm:$0xff] %v9323_v25  ;;  %v176_v33 = vld [vmem:[%s11734_s4 + $0x1f8] sm:$0xff]  ;;  %v9345_v36 = vpack.c.bf16 %v167_v28, %v163_v24  ;;  %v9347_v37 = vpack.c.bf16 %v174_v30, %v170_v29  ;;  %v169_v38 = vld [vmem:[%s11734_s4 + $0x1c0] sm:$0xff]  ;;  %v171_v42 = vld [vmem:[%s11734_s4 + $0x1d0] sm:$0xff] }
  0x24   :  { %6585 = vmatpush1.bf16.msra.mxu0 %v9269_v63  ;;  %v173_v41 = vld [vmem:[%s11734_s4 + $0x1e0] sm:$0xff]  ;;  %v9359_v43 = vpack.c.bf16 %v176_v33, %v172_v32  ;;  %v175_v45 = vld [vmem:[%s11734_s4 + $0x1f0] sm:$0xff]  ;;  %v50_v46 = vld [vmem:[%s11733_s3 + $0x8] sm:$0xff] }
  0x25   :  { %6617 = vmatpush1.bf16.msra.mxu1 %v9273_v0  ;;  %6587 = vmatprep.subr.bf16.mxu0 %v9275_v1  ;;  %12016 = vst [vmem:[#allocation22_spill] sm:$0xff] %v9345_v36  ;;  %v54_v47 = vld [vmem:[%s11733_s3 + $0x28] sm:$0xff]  ;;  %v52_v48 = vld [vmem:[%s11733_s3 + $0x18] sm:$0xff]  ;;  %v9377_v50 = vpack.c.bf16 %v173_v41, %v169_v38  ;;  %v9381_v54 = vpack.c.bf16 %v175_v45, %v171_v42  ;;  %v49_v56 = vld [vmem:[%s11733_s3] sm:$0xff] }
  0x26   :  { %6619 = vmatprep.subr.bf16.mxu1 %v9287_v6  ;;  %12017 = vst [vmem:[#allocation23_spill] sm:$0xff] %v9359_v43  ;;  %v56_v49 = vld [vmem:[%s11733_s3 + $0x38] sm:$0xff]  ;;  %v9383_v55 = vpack.c.bf16 %v54_v47, %v50_v46  ;;  %v53_v58 = vld [vmem:[%s11733_s3 + $0x20] sm:$0xff]  ;;  %v51_v59 = vld [vmem:[%s11733_s3 + $0x10] sm:$0xff] }
  0x27   :  { %12018 = vst [vmem:[#allocation24_spill] sm:$0xff] %v9381_v54  ;;  %v9395_v60 = vpack.c.bf16 %v56_v49, %v52_v48  ;;  %v55_v61 = vld [vmem:[%s11733_s3 + $0x30] sm:$0xff]  ;;  %v58_v62 = vld [vmem:[%s11733_s3 + $0x48] sm:$0xff]  ;;  %v60_v4 = vld [vmem:[%s11733_s3 + $0x58] sm:$0xff]  ;;  %v9416_v11 = vpack.c.bf16 %v53_v58, %v49_v56 }
  0x28   :  { %6589 = vmatpush1.bf16.msra.mxu0 %v9305_v16  ;;  %v62_v2 = vld [vmem:[%s11733_s3 + $0x68] sm:$0xff]  ;;  %v64_v5 = vld [vmem:[%s11733_s3 + $0x78] sm:$0xff]  ;;  %v340_v10 = vld [vmem:[%s11741_s11] sm:$0xff]  ;;  %v9420_v12 = vpack.c.bf16 %v55_v61, %v51_v59 }
  0x29   :  { %6621 = vmatpush1.bf16.msra.mxu1 %v9309_v19  ;;  %6591 = vmatprep.subr.bf16.mxu0 %v9311_v20  ;;  %12019 = vst [vmem:[#allocation25_spill] sm:$0xff] %v9395_v60  ;;  %v9422_v14 = vpack.c.bf16 %v62_v2, %v58_v62  ;;  %v57_v15 = vld [vmem:[%s11733_s3 + $0x40] sm:$0xff]  ;;  %v59_v23 = vld [vmem:[%s11733_s3 + $0x50] sm:$0xff]  ;;  %v9434_v24 = vpack.c.bf16 %v64_v5, %v60_v4  ;;  %v66_v29 = vld [vmem:[%s11733_s3 + $0x88] sm:$0xff] }
  0x2a   :  { %6623 = vmatprep.subr.bf16.mxu1 %v9323_v25  ;;  %12020 = vst [vmem:[#allocation26_spill] sm:$0xff] %v9420_v12  ;;  %v61_v21 = vld [vmem:[%s11733_s3 + $0x60] sm:$0xff]  ;;  %v63_v28 = vld [vmem:[%s11733_s3 + $0x70] sm:$0xff]  ;;  %v70_v30 = vld [vmem:[%s11733_s3 + $0xa8] sm:$0xff] }
  0x2b   :  { %12021 = vst [vmem:[#allocation27_spill] sm:$0xff] %v9434_v24  ;;  %v68_v32 = vld [vmem:[%s11733_s3 + $0x98] sm:$0xff]  ;;  %v9452_v38 = vpack.c.bf16 %v61_v21, %v57_v15  ;;  %v9456_v41 = vpack.c.bf16 %v63_v28, %v59_v23  ;;  %v9458_v42 = vpack.c.bf16 %v70_v30, %v66_v29  ;;  %v65_v45 = vld [vmem:[%s11733_s3 + $0x80] sm:$0xff]  ;;  %v67_v47 = vld [vmem:[%s11733_s3 + $0x90] sm:$0xff] }
  0x2c   :  { %6593 = vmatpush1.bf16.msra.mxu0 %v9341_v34  ;;  %v72_v33 = vld [vmem:[%s11733_s3 + $0xb8] sm:$0xff]  ;;  %v69_v46 = vld [vmem:[%s11733_s3 + $0xa0] sm:$0xff]  ;;  %v71_v49 = vld [vmem:[%s11733_s3 + $0xb0] sm:$0xff] }
  0x2d   :  { %6625 = vmatpush1.bf16.msra.mxu1 %v9345_v36  ;;  %6595 = vmatprep.subr.bf16.mxu0 %v9347_v37  ;;  %12022 = vst [vmem:[#allocation28_spill] sm:$0xff] %v9456_v41  ;;  %v9470_v48 = vpack.c.bf16 %v72_v33, %v68_v32  ;;  %v74_v56 = vld [vmem:[%s11733_s3 + $0xc8] sm:$0xff]  ;;  %v76_v59 = vld [vmem:[%s11733_s3 + $0xd8] sm:$0xff]  ;;  %v9490_v62 = vpack.c.bf16 %v69_v46, %v65_v45  ;;  %v73_v5 = vld [vmem:[%s11733_s3 + $0xc0] sm:$0xff] }
  0x2e   :  { %6627 = vmatprep.subr.bf16.mxu1 %v9359_v43  ;;  %v78_v58 = vld [vmem:[%s11733_s3 + $0xe8] sm:$0xff]  ;;  %v80_v61 = vld [vmem:[%s11733_s3 + $0xf8] sm:$0xff]  ;;  %v9494_v2 = vpack.c.bf16 %v71_v49, %v67_v47  ;;  %v75_v15 = vld [vmem:[%s11733_s3 + $0xd0] sm:$0xff] }
  0x2f   :  { %12023 = vst [vmem:[#allocation29_spill] sm:$0xff] %v9470_v48  ;;  %v9496_v4 = vpack.c.bf16 %v78_v58, %v74_v56  ;;  %v9508_v21 = vpack.c.bf16 %v80_v61, %v76_v59  ;;  %v79_v23 = vld [vmem:[%s11733_s3 + $0xf0] sm:$0xff]  ;;  %v82_v28 = vld [vmem:[%s11733_s3 + $0x108] sm:$0xff]  ;;  %v84_v30 = vld [vmem:[%s11733_s3 + $0x118] sm:$0xff] }
  0x30   :  { %6597 = vmatpush1.bf16.msra.mxu0 %v9377_v50  ;;  %12024 = vst [vmem:[#allocation30_spill] sm:$0xff] %v9494_v2  ;;  %v86_v29 = vld [vmem:[%s11733_s3 + $0x128] sm:$0xff]  ;;  %v88_v32 = vld [vmem:[%s11733_s3 + $0x138] sm:$0xff]  ;;  %v9530_v45 = vpack.c.bf16 %v79_v23, %v75_v15  ;;  %v81_v47 = vld [vmem:[%s11733_s3 + $0x100] sm:$0xff] }
  0x31   :  { %6629 = vmatpush1.bf16.msra.mxu1 %v9381_v54  ;;  %6631 = vmatprep.subr.bf16.mxu0 %v9383_v55  ;;  %12025 = vst [vmem:[#allocation31_spill] sm:$0xff] %v9508_v21  ;;  %v9532_v46 = vpack.c.bf16 %v86_v29, %v82_v28  ;;  %v85_v49 = vld [vmem:[%s11733_s3 + $0x120] sm:$0xff]  ;;  %v83_v56 = vld [vmem:[%s11733_s3 + $0x110] sm:$0xff]  ;;  %v9544_v58 = vpack.c.bf16 %v88_v32, %v84_v30  ;;  %v90_v61 = vld [vmem:[%s11733_s3 + $0x148] sm:$0xff] }
  0x32   :  { %6663 = vmatprep.subr.bf16.mxu1 %v9395_v60  ;;  %12026 = vst [vmem:[#allocation32_spill] sm:$0xff] %v9530_v45  ;;  %v87_v59 = vld [vmem:[%s11733_s3 + $0x130] sm:$0xff]  ;;  %v96_v15 = vld [vmem:[%s11733_s3 + $0x178] sm:$0xff]  ;;  %v9562_v23 = vpack.c.bf16 %v85_v49, %v81_v47  ;;  %v89_v30 = vld [vmem:[%s11733_s3 + $0x140] sm:$0xff] }
  0x33   :  { %416 = vmatmul.mubr.f32.vlgmr.msra.gmra.mrb[0].mxu0 %v340_v10  ;;  %12027 = vst [vmem:[#allocation33_spill] sm:$0xff] %v9544_v58  ;;  %v9566_v28 = vpack.c.bf16 %v87_v59, %v83_v56  ;;  %v93_v32 = vld [vmem:[%s11733_s3 + $0x160] sm:$0xff]  ;;  %v91_v47 = vld [vmem:[%s11733_s3 + $0x150] sm:$0xff]  ;;  %v98_v59 = vld [vmem:[%s11733_s3 + $0x188] sm:$0xff] }
  0x34   :  { %487 = vmatmul.mubr.f32.vlgmr.msra.gmra.mrb[0].mxu1 %v340_v10  ;;  %6633 = vmatpush1.bf16.msra.mxu0 %v9416_v11  ;;  %v77_v10 = vld [vmem:[%s11733_s3 + $0xe0] sm:$0xff]  ;;  %v95_v56 = vld [vmem:[%s11733_s3 + $0x170] sm:$0xff] }
  0x35   :  { %6665 = vmatpush1.bf16.msra.mxu1 %v9420_v12  ;;  %6635 = vmatprep.subr.bf16.mxu0 %v9422_v14  ;;  %v9526_v33 = vpack.c.bf16 %v77_v10, %v73_v5  ;;  %v94_v5 = vld [vmem:[%s11733_s3 + $0x168] sm:$0xff]  ;;  %v92_v10 = vld [vmem:[%s11733_s3 + $0x158] sm:$0xff]  ;;  %12028 = vst [vmem:[#allocation34_spill] sm:$0xff] %v9566_v28 }
  0x36   :  { %6667 = vmatprep.subr.bf16.mxu1 %v9434_v24  ;;  %557 = vmatprep.mubr.f32.mxu0 %v11744_v7  ;;  %v9568_v29 = vpack.c.bf16 %v94_v5, %v90_v61  ;;  %v9580_v49 = vpack.c.bf16 %v96_v15, %v92_v10  ;;  %v102_v61 = vld [vmem:[%s11733_s3 + $0x1a8] sm:$0xff]  ;;  %v100_v5 = vld [vmem:[%s11733_s3 + $0x198] sm:$0xff]  ;;  %v9598_v15 = vpack.c.bf16 %v93_v32, %v89_v30  ;;  %v99_v30 = vld [vmem:[%s11733_s3 + $0x190] sm:$0xff] }
  0x37   :  { %628 = vmatprep.mubr.f32.mxu1 %v11744_v7  ;;  %v104_v10 = vld [vmem:[%s11733_s3 + $0x1b8] sm:$0xff]  ;;  %v9602_v7 = vpack.c.bf16 %v95_v56, %v91_v47  ;;  %v103_v47 = vld [vmem:[%s11733_s3 + $0x1b0] sm:$0xff]  ;;  %v106_v56 = vld [vmem:[%s11733_s3 + $0x1c8] sm:$0xff] }
  0x38   :  { %6637 = vmatpush1.bf16.msra.mxu0 %v9452_v38  ;;  %12029 = vst [vmem:[#allocation35_spill] sm:$0xff] %v9580_v49  ;;  %v9616_v32 = vpack.c.bf16 %v104_v10, %v100_v5  ;;  %v112_v5 = vld [vmem:[%s11733_s3 + $0x1f8] sm:$0xff] }
  0x39   :  { %6669 = vmatpush1.bf16.msra.mxu1 %v9456_v41  ;;  %6639 = vmatprep.subr.bf16.mxu0 %v9458_v42  ;;  %12030 = vst [vmem:[#allocation36_spill] sm:$0xff] %v9602_v7 }
  0x3a   :  { %6671 = vmatprep.subr.bf16.mxu1 %v9470_v48  ;;  %12031 = vst [vmem:[#allocation37_spill] sm:$0xff] %v9616_v32 }
  0x3c   :  { %6641 = vmatpush1.bf16.msra.mxu0 %v9490_v62 }
  0x3d   :  { %6673 = vmatpush1.bf16.msra.mxu1 %v9494_v2  ;;  %6643 = vmatprep.subr.bf16.mxu0 %v9496_v4 }
  0x3e   :  { %6675 = vmatprep.subr.bf16.mxu1 %v9508_v21  ;;  %v101_v21 = vld [vmem:[%s11733_s3 + $0x1a0] sm:$0xff] }
  0x40   :  { %6645 = vmatpush1.bf16.msra.mxu0 %v9526_v33 }
  0x41   :  { %6677 = vmatpush1.bf16.msra.mxu1 %v9530_v45  ;;  %6647 = vmatprep.subr.bf16.mxu0 %v9532_v46  ;;  %v97_v45 = vld [vmem:[%s11733_s3 + $0x180] sm:$0xff] }
  0x42   :  { %6679 = vmatprep.subr.bf16.mxu1 %v9544_v58  ;;  %v9604_v58 = vpack.c.bf16 %v102_v61, %v98_v59  ;;  %v110_v59 = vld [vmem:[%s11733_s3 + $0x1e8] sm:$0xff]  ;;  %v108_v61 = vld [vmem:[%s11733_s3 + $0x1d8] sm:$0xff] }
  0x44   :  { %6649 = vmatpush1.bf16.msra.mxu0 %v9562_v23 }
  0x45   :  { %6681 = vmatpush1.bf16.msra.mxu1 %v9566_v28  ;;  %6651 = vmatprep.subr.bf16.mxu0 %v9568_v29 }
  0x46   :  { %6683 = vmatprep.subr.bf16.mxu1 %v9580_v49 }
  0x47   :  { %24 = vsyncpa [#allocation5], 0  ;;  %v9634_v10 = vpack.c.bf16 %v101_v21, %v97_v45  ;;  %v9638_v49 = vpack.c.bf16 %v103_v47, %v99_v30  ;;  %v9640_v28 = vpack.c.bf16 %v110_v59, %v106_v56  ;;  %v105_v2 = vld [vmem:[%s11733_s3 + $0x1c0] sm:$0xff]  ;;  %v107_v21 = vld [vmem:[%s11733_s3 + $0x1d0] sm:$0xff]  ;;  %v9652_v45 = vpack.c.bf16 %v112_v5, %v108_v61  ;;  %s5853_s22 = sld [smem:[#allocation3 + $0x3]]  ;;  %s5863_s26 = sld [smem:[#allocation3 + $0x4]] }
  0x48   :  { %6653 = vmatpush1.bf16.msra.mxu0 %v9598_v15  ;;  %v109_v48 = vld [vmem:[%s11733_s3 + $0x1e0] sm:$0xff]  ;;  %v111_v30 = vld [vmem:[%s11733_s3 + $0x1f0] sm:$0xff]  ;;  %v243_v47 = vld [vmem:[%s11737_s7 + $0x8] sm:$0xff]  ;;  %vm9005_vm0 = vmmov 0  }
  0x49   :  { %12032 = vst [vmem:[#allocation38_spill] sm:$0xff] %v9634_v10  ;;  %6685 = vmatpush1.bf16.msra.mxu1 %v9602_v7  ;;  %6655 = vmatprep.subr.bf16.mxu0 %v9604_v58  ;;  %12033 = vst [vmem:[#allocation39_spill] sm:$0xff] %v9638_v49  ;;  %v247_v56 = vld [vmem:[%s11737_s7 + $0x28] sm:$0xff]  ;;  %v245_v59 = vld [vmem:[%s11737_s7 + $0x18] sm:$0xff]  ;;  %v9670_v5 = vpack.c.bf16 %v109_v48, %v105_v2 }
  0x4a   :  { %12034 = vst [vmem:[#allocation40_spill] sm:$0xff] %v9640_v28  ;;  %6687 = vmatprep.subr.bf16.mxu1 %v9616_v32  ;;  %12035 = vst [vmem:[#allocation41_spill] sm:$0xff] %v9652_v45  ;;  %v249_v61 = vld [vmem:[%s11737_s7 + $0x38] sm:$0xff]  ;;  %v9674_v32 = vpack.c.bf16 %v111_v30, %v107_v21  ;;  %v9676_v7 = vpack.c.bf16 %v247_v56, %v243_v47  ;;  %v242_v41 = vld [vmem:[%s11737_s7] sm:$0xff] }
  0x4b   :  { %12036 = vst [vmem:[#allocation42_spill] sm:$0xff] %v9670_v5  ;;  %v246_v24 = vld [vmem:[%s11737_s7 + $0x20] sm:$0xff]  ;;  %v244_v48 = vld [vmem:[%s11737_s7 + $0x10] sm:$0xff]  ;;  %v9688_v2 = vpack.c.bf16 %v249_v61, %v245_v59  ;;  %v251_v30 = vld [vmem:[%s11737_s7 + $0x48] sm:$0xff] }
  0x4c   :  { %6657 = vmatpush1.bf16.msra.mxu0 %v9634_v10  ;;  %12037 = vst [vmem:[#allocation43_spill] sm:$0xff] %v9674_v32  ;;  %12038 = vst [vmem:[#allocation44_spill] sm:$0xff] %v9676_v7  ;;  %v248_v21 = vld [vmem:[%s11737_s7 + $0x30] sm:$0xff]  ;;  %v255_v47 = vld [vmem:[%s11737_s7 + $0x68] sm:$0xff] }
  0x4d   :  { %6689 = vmatpush1.bf16.msra.mxu1 %v9638_v49  ;;  %6659 = vmatprep.subr.bf16.mxu0 %v9640_v28  ;;  %12039 = vst [vmem:[#allocation45_spill] sm:$0xff] %v9688_v2  ;;  %v253_v56 = vld [vmem:[%s11737_s7 + $0x58] sm:$0xff]  ;;  %v350_v61 = vld [vmem:[%s11731_s1] sm:$0xff]  ;;  %v9713_v49 = vpack.c.bf16 %v248_v21, %v244_v48  ;;  %v9715_v12 = vpack.c.bf16 %v255_v47, %v251_v30  ;;  %v256_v48 = vld [vmem:[%s11737_s7 + $0x70] sm:$0xff]  ;;  %s2747_s23 = scvt.s32.f32 %s5853_s22  ;;  %s3532_s27 = scvt.s32.f32 %s5863_s26 }
  0x4e   :  { %6691 = vmatprep.subr.bf16.mxu1 %v9652_v45  ;;  %v257_v59 = vld [vmem:[%s11737_s7 + $0x78] sm:$0xff]  ;;  %v9709_v45 = vpack.c.bf16 %v246_v24, %v242_v41  ;;  %v250_v60 = vld [vmem:[%s11737_s7 + $0x40] sm:$0xff]  ;;  %v252_v24 = vld [vmem:[%s11737_s7 + $0x50] sm:$0xff] }
  0x4f   :  { %12041 = vst [vmem:[#allocation47_spill] sm:$0xff] %v9713_v49  ;;  %12042 = vst [vmem:[#allocation48_spill] sm:$0xff] %v9715_v12  ;;  %v254_v54 = vld [vmem:[%s11737_s7 + $0x60] sm:$0xff]  ;;  %v9727_v41 = vpack.c.bf16 %v257_v59, %v253_v56  ;;  %v259_v21 = vld [vmem:[%s11737_s7 + $0x88] sm:$0xff]  ;;  %s2750_s24 = ssub.f32 1.0, %s2747_s23 }
  0x50   :  { %6661 = vmatpush1.bf16.msra.mxu0 %v9670_v5  ;;  %12040 = vst [vmem:[#allocation46_spill] sm:$0xff] %v9709_v45  ;;  %v263_v30 = vld [vmem:[%s11737_s7 + $0xa8] sm:$0xff]  ;;  %v261_v47 = vld [vmem:[%s11737_s7 + $0x98] sm:$0xff]  ;;  %v9745_v59 = vpack.c.bf16 %v254_v54, %v250_v60  ;;  %v258_v43 = vld [vmem:[%s11737_s7 + $0x80] sm:$0xff] }
  0x51   :  { %6693 = vmatpush1.bf16.msra.mxu1 %v9674_v32  ;;  %6695 = vmatprep.subr.bf16.mxu0 %v9676_v7  ;;  %12043 = vst [vmem:[#allocation49_spill] sm:$0xff] %v9727_v41  ;;  %v265_v56 = vld [vmem:[%s11737_s7 + $0xb8] sm:$0xff]  ;;  %v9751_v32 = vpack.c.bf16 %v263_v30, %v259_v21  ;;  %v260_v54 = vld [vmem:[%s11737_s7 + $0x90] sm:$0xff]  ;;  %v271_v21 = vld [vmem:[%s11737_s7 + $0xe8] sm:$0xff]  ;;  %v12048_v30 = vmov 0.0  }
  0x52   :  { %6727 = vmatprep.subr.bf16.mxu1 %v9688_v2  ;;  %12044 = vst [vmem:[#allocation50_spill] sm:$0xff] %v9745_v59  ;;  %v9749_v2 = vpack.c.bf16 %v256_v48, %v252_v24  ;;  %v9763_v60 = vpack.c.bf16 %v265_v56, %v261_v47  ;;  %v264_v24 = vld [vmem:[%s11737_s7 + $0xb0] sm:$0xff]  ;;  %v267_v48 = vld [vmem:[%s11737_s7 + $0xc8] sm:$0xff]  ;;  %v273_v47 = vld [vmem:[%s11737_s7 + $0xf8] sm:$0xff] }
  0x53   :  { %558 = vmatmul.mubr.f32.vlgmr.msra.gmra.mrb[0].mxu0 %v350_v61  ;;  %12046 = vst [vmem:[#allocation52_spill] sm:$0xff] %v9751_v32  ;;  %v270_v36 = vld [vmem:[%s11737_s7 + $0xe0] sm:$0xff] }
  0x54   :  { %629 = vmatmul.mubr.f32.vlgmr.msra.gmra.mrb[0].mxu1 %v350_v61  ;;  %6697 = vmatpush1.bf16.msra.mxu0 %v9709_v45  ;;  %12045 = vst [vmem:[#allocation51_spill] sm:$0xff] %v9749_v2  ;;  %v262_v61 = vld [vmem:[%s11737_s7 + $0xa0] sm:$0xff]  ;;  %12047 = vst [vmem:[#allocation53_spill] sm:$0xff] %v9763_v60 }
  0x55   :  { %6729 = vmatpush1.bf16.msra.mxu1 %v9713_v49  ;;  %6699 = vmatprep.subr.bf16.mxu0 %v9715_v12  ;;  %v9783_v56 = vpack.c.bf16 %v262_v61, %v258_v43  ;;  %v9787_v12 = vpack.c.bf16 %v264_v24, %v260_v54  ;;  %v9789_v49 = vpack.c.bf16 %v271_v21, %v267_v48  ;;  %v266_v45 = vld [vmem:[%s11737_s7 + $0xc0] sm:$0xff]  ;;  %v268_v43 = vld [vmem:[%s11737_s7 + $0xd0] sm:$0xff]  ;;  %v275_v24 = vld [vmem:[%s11737_s7 + $0x108] sm:$0xff] }
  0x56   :  { %6731 = vmatprep.subr.bf16.mxu1 %v9727_v41  ;;  %748 = vmatprep.mubr.f32.mxu0 %v12048_v30  ;;  %v269_v41 = vld [vmem:[%s11737_s7 + $0xd8] sm:$0xff]  ;;  %v272_v54 = vld [vmem:[%s11737_s7 + $0xf0] sm:$0xff]  ;;  %v279_v48 = vld [vmem:[%s11737_s7 + $0x128] sm:$0xff] }
  0x57   :  { %819 = vmatprep.mubr.f32.mxu1 %v12048_v30  ;;  %12049 = vst [vmem:[#allocation54_spill] sm:$0xff] %v9783_v56  ;;  %12050 = vst [vmem:[#allocation55_spill] sm:$0xff] %v9787_v12  ;;  %v9801_v61 = vpack.c.bf16 %v273_v47, %v269_v41  ;;  %v277_v21 = vld [vmem:[%s11737_s7 + $0x118] sm:$0xff]  ;;  %v9819_v47 = vpack.c.bf16 %v270_v36, %v266_v45  ;;  %v274_v36 = vld [vmem:[%s11737_s7 + $0x100] sm:$0xff] }
  0x58   :  { %6701 = vmatpush1.bf16.msra.mxu0 %v9745_v59  ;;  %12051 = vst [vmem:[#allocation56_spill] sm:$0xff] %v9789_v49  ;;  %v281_v41 = vld [vmem:[%s11737_s7 + $0x138] sm:$0xff]  ;;  %v278_v45 = vld [vmem:[%s11737_s7 + $0x120] sm:$0xff] }
  0x59   :  { %6733 = vmatpush1.bf16.msra.mxu1 %v9749_v2  ;;  %6703 = vmatprep.subr.bf16.mxu0 %v9751_v32  ;;  %12052 = vst [vmem:[#allocation57_spill] sm:$0xff] %v9801_v61  ;;  %12053 = vst [vmem:[#allocation58_spill] sm:$0xff] %v9819_v47  ;;  %v9825_v32 = vpack.c.bf16 %v279_v48, %v275_v24  ;;  %v9828_v2 = vpack.c.bf16 %v281_v41, %v277_v21  ;;  %v280_v24 = vld [vmem:[%s11737_s7 + $0x130] sm:$0xff]  ;;  %v283_v21 = vld [vmem:[%s11737_s7 + $0x148] sm:$0xff] }
  0x5a   :  { %6735 = vmatprep.subr.bf16.mxu1 %v9763_v60  ;;  %v9823_v60 = vpack.c.bf16 %v272_v54, %v268_v43  ;;  %v276_v43 = vld [vmem:[%s11737_s7 + $0x110] sm:$0xff]  ;;  %v9843_v54 = vpack.c.bf16 %v278_v45, %v274_v36  ;;  %v287_v41 = vld [vmem:[%s11737_s7 + $0x168] sm:$0xff]  ;;  %v285_v36 = vld [vmem:[%s11737_s7 + $0x158] sm:$0xff] }
  0x5b   :  { %12055 = vst [vmem:[#allocation60_spill] sm:$0xff] %v9825_v32  ;;  %12056 = vst [vmem:[#allocation61_spill] sm:$0xff] %v9828_v2  ;;  %v9848_v48 = vpack.c.bf16 %v280_v24, %v276_v43  ;;  %v9861_v45 = vpack.c.bf16 %v287_v41, %v283_v21  ;;  %v289_v43 = vld [vmem:[%s11737_s7 + $0x178] sm:$0xff]  ;;  %v282_v24 = vld [vmem:[%s11737_s7 + $0x140] sm:$0xff] }
  0x5c   :  { %6705 = vmatpush1.bf16.msra.mxu0 %v9783_v56  ;;  %12054 = vst [vmem:[#allocation59_spill] sm:$0xff] %v9823_v60  ;;  %12057 = vst [vmem:[#allocation62_spill] sm:$0xff] %v9843_v54  ;;  %v284_v21 = vld [vmem:[%s11737_s7 + $0x150] sm:$0xff] }
  0x5d   :  { %6737 = vmatpush1.bf16.msra.mxu1 %v9787_v12  ;;  %6707 = vmatprep.subr.bf16.mxu0 %v9789_v49  ;;  %12058 = vst [vmem:[#allocation63_spill] sm:$0xff] %v9848_v48  ;;  %12059 = vst [vmem:[#allocation64_spill] sm:$0xff] %v9861_v45  ;;  %v288_v41 = vld [vmem:[%s11737_s7 + $0x170] sm:$0xff] }
  0x5e   :  { %6739 = vmatprep.subr.bf16.mxu1 %v9801_v61 }
  0x60   :  { %6709 = vmatpush1.bf16.msra.mxu0 %v9819_v47  ;;  %v241_v47 = vld [vmem:[%s11736_s6 + $0x1f8] sm:$0xff] }
  0x61   :  { %6741 = vmatpush1.bf16.msra.mxu1 %v9823_v60  ;;  %6711 = vmatprep.subr.bf16.mxu0 %v9825_v32 }
  0x62   :  { %6743 = vmatprep.subr.bf16.mxu1 %v9828_v2  ;;  %v9872_v2 = vpack.c.bf16 %v289_v43, %v285_v36  ;;  %v295_v36 = vld [vmem:[%s11737_s7 + $0x1a8] sm:$0xff]  ;;  %v293_v43 = vld [vmem:[%s11737_s7 + $0x198] sm:$0xff] }
  0x64   :  { %6713 = vmatpush1.bf16.msra.mxu0 %v9843_v54  ;;  %v286_v54 = vld [vmem:[%s11737_s7 + $0x160] sm:$0xff]  ;;  %12060 = vst [vmem:[#allocation65_spill] sm:$0xff] %v9872_v2 }
  0x65   :  { %6745 = vmatpush1.bf16.msra.mxu1 %v9848_v48  ;;  %v9874_v32 = vpack.c.bf16 %v286_v54, %v282_v24  ;;  %6715 = vmatprep.subr.bf16.mxu0 %v9861_v45  ;;  %v9883_v48 = vpack.c.bf16 %v288_v41, %v284_v21  ;;  %v291_v54 = vld [vmem:[%s11737_s7 + $0x188] sm:$0xff]  ;;  %v297_v21 = vld [vmem:[%s11737_s7 + $0x1b8] sm:$0xff]  ;;  %v290_v41 = vld [vmem:[%s11737_s7 + $0x180] sm:$0xff] }
  0x66   :  { %6747 = vmatprep.subr.bf16.mxu1 %v9872_v2  ;;  %v9897_v24 = vpack.c.bf16 %v295_v36, %v291_v54  ;;  %v9908_v2 = vpack.c.bf16 %v297_v21, %v293_v43  ;;  %v292_v54 = vld [vmem:[%s11737_s7 + $0x190] sm:$0xff]  ;;  %v303_v43 = vld [vmem:[%s11737_s7 + $0x1e8] sm:$0xff]  ;;  %v301_v21 = vld [vmem:[%s11737_s7 + $0x1d8] sm:$0xff] }
  0x67   :  { %12061 = vst [vmem:[#allocation66_spill] sm:$0xff] %v9874_v32  ;;  %12062 = vst [vmem:[#allocation67_spill] sm:$0xff] %v9883_v48  ;;  %v296_v36 = vld [vmem:[%s11737_s7 + $0x1b0] sm:$0xff] }
  0x68   :  { %6717 = vmatpush1.bf16.msra.mxu0 %v9874_v32  ;;  %12063 = vst [vmem:[#allocation68_spill] sm:$0xff] %v9897_v24  ;;  %v294_v32 = vld [vmem:[%s11737_s7 + $0x1a0] sm:$0xff]  ;;  %12064 = vst [vmem:[#allocation69_spill] sm:$0xff] %v9908_v2 }
  0x69   :  { %6749 = vmatpush1.bf16.msra.mxu1 %v9883_v48  ;;  %v9910_v45 = vpack.c.bf16 %v294_v32, %v290_v41  ;;  %6719 = vmatprep.subr.bf16.mxu0 %v9897_v24  ;;  %v9919_v48 = vpack.c.bf16 %v296_v36, %v292_v54  ;;  %v299_v32 = vld [vmem:[%s11737_s7 + $0x1c8] sm:$0xff]  ;;  %v305_v54 = vld [vmem:[%s11737_s7 + $0x1f8] sm:$0xff]  ;;  %v298_v36 = vld [vmem:[%s11737_s7 + $0x1c0] sm:$0xff] }
  0x6a   :  { %6751 = vmatprep.subr.bf16.mxu1 %v9908_v2  ;;  %v9933_v41 = vpack.c.bf16 %v303_v43, %v299_v32  ;;  %v9944_v2 = vpack.c.bf16 %v305_v54, %v301_v21  ;;  %v300_v32 = vld [vmem:[%s11737_s7 + $0x1d0] sm:$0xff]  ;;  %v183_v21 = vld [vmem:[%s11736_s6 + $0x28] sm:$0xff]  ;;  %v181_v54 = vld [vmem:[%s11736_s6 + $0x18] sm:$0xff] }
  0x6b   :  { %12065 = vst [vmem:[#allocation70_spill] sm:$0xff] %v9910_v45  ;;  %12066 = vst [vmem:[#allocation71_spill] sm:$0xff] %v9919_v48  ;;  %v304_v43 = vld [vmem:[%s11737_s7 + $0x1f0] sm:$0xff] }
  0x6c   :  { %6721 = vmatpush1.bf16.msra.mxu0 %v9910_v45  ;;  %12067 = vst [vmem:[#allocation72_spill] sm:$0xff] %v9933_v41  ;;  %v302_v45 = vld [vmem:[%s11737_s7 + $0x1e0] sm:$0xff]  ;;  %12068 = vst [vmem:[#allocation73_spill] sm:$0xff] %v9944_v2 }
  0x6d   :  { %6753 = vmatpush1.bf16.msra.mxu1 %v9919_v48  ;;  %v9946_v24 = vpack.c.bf16 %v302_v45, %v298_v36  ;;  %6723 = vmatprep.subr.bf16.mxu0 %v9933_v41  ;;  %v9955_v48 = vpack.c.bf16 %v304_v43, %v300_v32  ;;  %v179_v45 = vld [vmem:[%s11736_s6 + $0x8] sm:$0xff]  ;;  %v185_v32 = vld [vmem:[%s11736_s6 + $0x38] sm:$0xff]  ;;  %v178_v43 = vld [vmem:[%s11736_s6] sm:$0xff] }
  0x6e   :  { %6755 = vmatprep.subr.bf16.mxu1 %v9944_v2  ;;  %v9969_v36 = vpack.c.bf16 %v183_v21, %v179_v45  ;;  %v9980_v2 = vpack.c.bf16 %v185_v32, %v181_v54  ;;  %v180_v45 = vld [vmem:[%s11736_s6 + $0x10] sm:$0xff]  ;;  %v191_v54 = vld [vmem:[%s11736_s6 + $0x68] sm:$0xff]  ;;  %v189_v32 = vld [vmem:[%s11736_s6 + $0x58] sm:$0xff] }
  0x6f   :  { %12069 = vst [vmem:[#allocation74_spill] sm:$0xff] %v9946_v24  ;;  %12070 = vst [vmem:[#allocation75_spill] sm:$0xff] %v9955_v48  ;;  %v184_v21 = vld [vmem:[%s11736_s6 + $0x30] sm:$0xff] }
  0x70   :  { %6725 = vmatpush1.bf16.msra.mxu0 %v9946_v24  ;;  %12071 = vst [vmem:[#allocation76_spill] sm:$0xff] %v9969_v36  ;;  %v182_v24 = vld [vmem:[%s11736_s6 + $0x20] sm:$0xff]  ;;  %12072 = vst [vmem:[#allocation77_spill] sm:$0xff] %v9980_v2  ;;  %v9994_v60 = vpack.c.bf16 %v184_v21, %v180_v45  ;;  %v193_v45 = vld [vmem:[%s11736_s6 + $0x78] sm:$0xff] }
  0x71   :  { %6757 = vmatpush1.bf16.msra.mxu1 %v9955_v48  ;;  %v9982_v41 = vpack.c.bf16 %v182_v24, %v178_v43  ;;  %6759 = vmatprep.subr.bf16.mxu0 %v9969_v36  ;;  %v5821_v48 = vld [vmem:[%s11741_s11 + $0x8] sm:$0xff]  ;;  %v186_v21 = vld [vmem:[%s11736_s6 + $0x40] sm:$0xff]  ;;  %v10019_v36 = vpack.c.bf16 %v193_v45, %v189_v32  ;;  %v197_v45 = vld [vmem:[%s11736_s6 + $0x98] sm:$0xff] }
  0x72   :  { %12074 = vst [vmem:[#allocation79_spill] sm:$0xff] %v9994_v60  ;;  %6791 = vmatprep.subr.bf16.mxu1 %v9980_v2  ;;  %v187_v24 = vld [vmem:[%s11736_s6 + $0x48] sm:$0xff]  ;;  %v190_v2 = vld [vmem:[%s11736_s6 + $0x60] sm:$0xff] }
  0x73   :  { %12073 = vst [vmem:[#allocation78_spill] sm:$0xff] %v9982_v41  ;;  %749 = vmatmul.mubr.f32.vlgmr.msra.gmra.mrb[2].mxu0 %v5821_v48  ;;  %v10007_v43 = vpack.c.bf16 %v191_v54, %v187_v24  ;;  %12076 = vst [vmem:[#allocation81_spill] sm:$0xff] %v10019_v36  ;;  %v188_v24 = vld [vmem:[%s11736_s6 + $0x50] sm:$0xff]  ;;  %v199_v32 = vld [vmem:[%s11736_s6 + $0xa8] sm:$0xff] }
  0x74   :  { %820 = vmatmul.mubr.f32.vlgmr.msra.gmra.mrb[2].mxu1 %v5821_v48  ;;  %6761 = vmatpush1.bf16.msra.mxu0 %v9982_v41  ;;  %v10021_v48 = vpack.c.bf16 %v190_v2, %v186_v21  ;;  %v192_v54 = vld [vmem:[%s11736_s6 + $0x70] sm:$0xff]  ;;  %v195_v2 = vld [vmem:[%s11736_s6 + $0x88] sm:$0xff] }
  0x75   :  { %12075 = vst [vmem:[#allocation80_spill] sm:$0xff] %v10007_v43  ;;  %6793 = vmatpush1.bf16.msra.mxu1 %v9994_v60  ;;  %890 = vmatprep.mubr.f32.mxu0 %v12048_v30  ;;  %v10031_v41 = vpack.c.bf16 %v192_v54, %v188_v24  ;;  %v10045_v21 = vpack.c.bf16 %v199_v32, %v195_v2  ;;  %v194_v24 = vld [vmem:[%s11736_s6 + $0x80] sm:$0xff]  ;;  %v196_v2 = vld [vmem:[%s11736_s6 + $0x90] sm:$0xff] }
  0x76   :  { %12077 = vst [vmem:[#allocation82_spill] sm:$0xff] %v10021_v48  ;;  %6763 = vmatprep.subr.bf16.mxu0 %v10007_v43  ;;  %961 = vmatprep.mubr.f32.mxu1 %v12048_v30  ;;  %v201_v30 = vld [vmem:[%s11736_s6 + $0xb8] sm:$0xff]  ;;  %v198_v54 = vld [vmem:[%s11736_s6 + $0xa0] sm:$0xff]  ;;  %v200_v32 = vld [vmem:[%s11736_s6 + $0xb0] sm:$0xff] }
  0x77   :  { %12078 = vst [vmem:[#allocation83_spill] sm:$0xff] %v10031_v41  ;;  %6795 = vmatprep.subr.bf16.mxu1 %v10019_v36  ;;  %12079 = vst [vmem:[#allocation84_spill] sm:$0xff] %v10045_v21  ;;  %v10057_v36 = vpack.c.bf16 %v201_v30, %v197_v45  ;;  %v10059_v43 = vpack.c.bf16 %v198_v54, %v194_v24  ;;  %v203_v45 = vld [vmem:[%s11736_s6 + $0xc8] sm:$0xff]  ;;  %v205_v24 = vld [vmem:[%s11736_s6 + $0xd8] sm:$0xff] }
  0x78   :  { %6765 = vmatpush1.bf16.msra.mxu0 %v10021_v48  ;;  %v10068_v48 = vpack.c.bf16 %v200_v32, %v196_v2  ;;  %v207_v30 = vld [vmem:[%s11736_s6 + $0xe8] sm:$0xff]  ;;  %v209_v2 = vld [vmem:[%s11736_s6 + $0xf8] sm:$0xff]  ;;  %v202_v32 = vld [vmem:[%s11736_s6 + $0xc0] sm:$0xff] }
  0x79   :  { %6797 = vmatpush1.bf16.msra.mxu1 %v10031_v41  ;;  %12080 = vst [vmem:[#allocation85_spill] sm:$0xff] %v10057_v36  ;;  %12081 = vst [vmem:[#allocation86_spill] sm:$0xff] %v10059_v43  ;;  %6767 = vmatprep.subr.bf16.mxu0 %v10045_v21  ;;  %v10081_v54 = vpack.c.bf16 %v207_v30, %v203_v45  ;;  %v10093_v21 = vpack.c.bf16 %v209_v2, %v205_v24  ;;  %v204_v45 = vld [vmem:[%s11736_s6 + $0xd0] sm:$0xff]  ;;  %v211_v24 = vld [vmem:[%s11736_s6 + $0x108] sm:$0xff] }
  0x7a   :  { %12082 = vst [vmem:[#allocation87_spill] sm:$0xff] %v10068_v48  ;;  %6799 = vmatprep.subr.bf16.mxu1 %v10057_v36  ;;  %v206_v36 = vld [vmem:[%s11736_s6 + $0xe0] sm:$0xff]  ;;  %v208_v30 = vld [vmem:[%s11736_s6 + $0xf0] sm:$0xff] }
  0x7b   :  { %12083 = vst [vmem:[#allocation88_spill] sm:$0xff] %v10081_v54  ;;  %12084 = vst [vmem:[#allocation89_spill] sm:$0xff] %v10093_v21  ;;  %v10095_v41 = vpack.c.bf16 %v206_v36, %v202_v32  ;;  %v215_v36 = vld [vmem:[%s11736_s6 + $0x128] sm:$0xff]  ;;  %v213_v32 = vld [vmem:[%s11736_s6 + $0x118] sm:$0xff] }
  0x7c   :  { %6769 = vmatpush1.bf16.msra.mxu0 %v10059_v43  ;;  %v10104_v43 = vpack.c.bf16 %v208_v30, %v204_v45  ;;  %v10114_v2 = vpack.c.bf16 %v215_v36, %v211_v24  ;;  %v217_v45 = vld [vmem:[%s11736_s6 + $0x138] sm:$0xff]  ;;  %v210_v30 = vld [vmem:[%s11736_s6 + $0x100] sm:$0xff]  ;;  %v212_v36 = vld [vmem:[%s11736_s6 + $0x110] sm:$0xff] }
  0x7d   :  { %6801 = vmatpush1.bf16.msra.mxu1 %v10068_v48  ;;  %12085 = vst [vmem:[#allocation90_spill] sm:$0xff] %v10095_v41  ;;  %6771 = vmatprep.subr.bf16.mxu0 %v10081_v54  ;;  %v214_v24 = vld [vmem:[%s11736_s6 + $0x120] sm:$0xff] }
  0x7e   :  { %12086 = vst [vmem:[#allocation91_spill] sm:$0xff] %v10104_v43  ;;  %6803 = vmatprep.subr.bf16.mxu1 %v10093_v21  ;;  %12087 = vst [vmem:[#allocation92_spill] sm:$0xff] %v10114_v2  ;;  %v10126_v21 = vpack.c.bf16 %v217_v45, %v213_v32  ;;  %v10138_v54 = vpack.c.bf16 %v214_v24, %v210_v30  ;;  %v219_v32 = vld [vmem:[%s11736_s6 + $0x148] sm:$0xff]  ;;  %v218_v30 = vld [vmem:[%s11736_s6 + $0x140] sm:$0xff] }
  0x7f   :  { %v223_v45 = vld [vmem:[%s11736_s6 + $0x168] sm:$0xff]  ;;  %v222_v24 = vld [vmem:[%s11736_s6 + $0x160] sm:$0xff] }
  0x80   :  { %6773 = vmatpush1.bf16.msra.mxu0 %v10095_v41  ;;  %12088 = vst [vmem:[#allocation93_spill] sm:$0xff] %v10126_v21  ;;  %v216_v41 = vld [vmem:[%s11736_s6 + $0x130] sm:$0xff]  ;;  %12089 = vst [vmem:[#allocation94_spill] sm:$0xff] %v10138_v54  ;;  %v10152_v60 = vpack.c.bf16 %v223_v45, %v219_v32 }
  0x81   :  { %6805 = vmatpush1.bf16.msra.mxu1 %v10104_v43  ;;  %6775 = vmatprep.subr.bf16.mxu0 %v10114_v2  ;;  %v10140_v48 = vpack.c.bf16 %v216_v41, %v212_v36  ;;  %v221_v43 = vld [vmem:[%s11736_s6 + $0x158] sm:$0xff]  ;;  %v10166_v2 = vpack.c.bf16 %v222_v24, %v218_v30  ;;  %v220_v32 = vld [vmem:[%s11736_s6 + $0x150] sm:$0xff] }
  0x82   :  { %6807 = vmatprep.subr.bf16.mxu1 %v10126_v21  ;;  %12091 = vst [vmem:[#allocation96_spill] sm:$0xff] %v10152_v60  ;;  %v225_v41 = vld [vmem:[%s11736_s6 + $0x178] sm:$0xff]  ;;  %v224_v45 = vld [vmem:[%s11736_s6 + $0x170] sm:$0xff]  ;;  %v227_v21 = vld [vmem:[%s11736_s6 + $0x188] sm:$0xff] }
  0x83   :  { %12090 = vst [vmem:[#allocation95_spill] sm:$0xff] %v10140_v48  ;;  %v10164_v36 = vpack.c.bf16 %v225_v41, %v221_v43  ;;  %12093 = vst [vmem:[#allocation98_spill] sm:$0xff] %v10166_v2  ;;  %v10179_v43 = vpack.c.bf16 %v224_v45, %v220_v32  ;;  %v231_v41 = vld [vmem:[%s11736_s6 + $0x1a8] sm:$0xff]  ;;  %v229_v30 = vld [vmem:[%s11736_s6 + $0x198] sm:$0xff] }
  0x84   :  { %6777 = vmatpush1.bf16.msra.mxu0 %v10138_v54  ;;  %v233_v24 = vld [vmem:[%s11736_s6 + $0x1b8] sm:$0xff]  ;;  %v10191_v54 = vpack.c.bf16 %v231_v41, %v227_v21  ;;  %v226_v32 = vld [vmem:[%s11736_s6 + $0x180] sm:$0xff]  ;;  %v235_v21 = vld [vmem:[%s11736_s6 + $0x1c8] sm:$0xff] }
  0x85   :  { %12092 = vst [vmem:[#allocation97_spill] sm:$0xff] %v10164_v36  ;;  %6809 = vmatpush1.bf16.msra.mxu1 %v10140_v48  ;;  %6779 = vmatprep.subr.bf16.mxu0 %v10152_v60  ;;  %12094 = vst [vmem:[#allocation99_spill] sm:$0xff] %v10179_v43  ;;  %v10193_v48 = vpack.c.bf16 %v233_v24, %v229_v30  ;;  %v230_v45 = vld [vmem:[%s11736_s6 + $0x1a0] sm:$0xff]  ;;  %v228_v60 = vld [vmem:[%s11736_s6 + $0x190] sm:$0xff] }
  0x86   :  { %6811 = vmatprep.subr.bf16.mxu1 %v10164_v36  ;;  %12095 = vst [vmem:[#allocation100_spill] sm:$0xff] %v10191_v54  ;;  %v232_v36 = vld [vmem:[%s11736_s6 + $0x1b0] sm:$0xff]  ;;  %v239_v41 = vld [vmem:[%s11736_s6 + $0x1e8] sm:$0xff]  ;;  %v10214_v30 = vpack.c.bf16 %v230_v45, %v226_v32  ;;  %v237_v24 = vld [vmem:[%s11736_s6 + $0x1d8] sm:$0xff] }
  0x87   :  { %12096 = vst [vmem:[#allocation101_spill] sm:$0xff] %v10193_v48  ;;  %v10224_v61 = vpack.c.bf16 %v232_v36, %v228_v60  ;;  %v10226_v49 = vpack.c.bf16 %v239_v41, %v235_v21  ;;  %v234_v32 = vld [vmem:[%s11736_s6 + $0x1c0] sm:$0xff]  ;;  %v240_v60 = vld [vmem:[%s11736_s6 + $0x1f0] sm:$0xff] }
  0x88   :  { %6781 = vmatpush1.bf16.msra.mxu0 %v10166_v2  ;;  %12097 = vst [vmem:[#allocation102_spill] sm:$0xff] %v10214_v30  ;;  %v238_v45 = vld [vmem:[%s11736_s6 + $0x1e0] sm:$0xff]  ;;  %v10235_v2 = vpack.c.bf16 %v241_v47, %v237_v24  ;;  %v11890_v47 = vlaneseq }
  0x89   :  { %6813 = vmatpush1.bf16.msra.mxu1 %v10179_v43  ;;  %6783 = vmatprep.subr.bf16.mxu0 %v10191_v54  ;;  %12098 = vst [vmem:[#allocation103_spill] sm:$0xff] %v10224_v61  ;;  %12099 = vst [vmem:[#allocation104_spill] sm:$0xff] %v10226_v49  ;;  %v236_v54 = vld [vmem:[%s11736_s6 + $0x1d0] sm:$0xff]  ;;  %v10244_v36 = vpack.c.bf16 %v238_v45, %v234_v32  ;;  %v177_v32 = vld [vmem:[%s11735_s5] sm:$0xf]  ;;  %s5843_s6 = sld [smem:[#allocation3 + $0x2]] }
  0x8a   :  { %6815 = vmatprep.subr.bf16.mxu1 %v10193_v48  ;;  %12100 = vst [vmem:[#allocation105_spill] sm:$0xff] %v10235_v2  ;;  %v10248_v21 = vpack.c.bf16 %v240_v60, %v236_v54  ;;  %v10254_v41 = vshrl.u32 %v11890_v47, 7 }
  0x8b   :  { %12101 = vst [vmem:[#allocation106_spill] sm:$0xff] %v10244_v36 }
  0x8c   :  { %6785 = vmatpush1.bf16.msra.mxu0 %v10214_v30  ;;  %12102 = vst [vmem:[#allocation107_spill] sm:$0xff] %v10248_v21  ;;  %v11905_v24 = vsub.s32 0, %v10254_v41  ;;  %v11906_v45 = vsub.s32 1, %v10254_v41  ;;  %v11913_v47 = vsub.s32 3, %v10254_v41 }
  0x8d   :  { %6817 = vmatpush1.bf16.msra.mxu1 %v10224_v61  ;;  %6787 = vmatprep.subr.bf16.mxu0 %v10226_v49 }
  0x8e   :  { %6819 = vmatprep.subr.bf16.mxu1 %v10235_v2  ;;  %v10263_v54 = vrot.slane %v177_v32, %v11905_v24  ;;  %v10267_v60 = vrot.slane %v177_v32, %v11906_v45  ;;  %v10274_v24 = vrot.slane %v177_v32, %v11913_v47  ;;  %v11916_v45 = vsub.s32 2, %v10254_v41 }
  0x8f   :  { %s1962_s19 = scvt.s32.f32 %s5843_s6 }
  0x90   :  { %6789 = vmatpush1.bf16.msra.mxu0 %v10244_v36  ;;  %12103 = vst [vmem:[#allocation108_spill] sm:$0xff] %v10263_v54  ;;  %12104 = vst [vmem:[#allocation109_spill] sm:$0xff] %v10267_v60 }
  0x91   :  { %6821 = vmatpush1.bf16.msra.mxu1 %v10248_v21  ;;  %12105 = vst [vmem:[#allocation110_spill] sm:$0xff] %v10274_v24  ;;  %s1965_s5 = ssub.f32 1.0, %s1962_s19 }
 0x126   :  { %v559_v21 = vpop.f32.mrb[0].mxu0 }
 0x127   :  { %v656_v36 = vadd.f32 %v10263_v54, %v559_v21  ;;  %v630_v2 = vpop.f32.mrb[0].mxu1  ;;  %v561_v49 = vpop.f32.mrb[1].mxu0  ;;  %v10280_v21 = vrot.slane %v177_v32, %v11916_v45 }
 0x128   :  { %v657_v61 = vadd.f32 %v10267_v60, %v561_v49  ;;  %v632_v30 = vpop.f32.mrb[1].mxu1 }
 0x129   :  { %v5823_v48 = vmul.f32 -1.442695, %v656_v36  ;;  %v659_v12 = vadd.f32 %v10274_v24, %v632_v30  ;;  %12106 = vst [vmem:[#allocation111_spill] sm:$0xff] %v10280_v21  ;;  %v658_v49 = vadd.f32 %v10280_v21, %v630_v2 }
 0x12a   :  { %v5824_v43 = vmul.f32 -1.442695, %v657_v61 }
 0x12b   :  { %8734 = vpow2.f32 %v5823_v48  ;;  %v5825_v54 = vmul.f32 -1.442695, %v659_v12 }
 0x12c   :  { %8736 = vpow2.f32 %v5824_v43  ;;  %v343_v43 = vld [vmem:[%s11742_s12] sm:$0xff] }
 0x12d   :  { %8738 = vpow2.f32 %v5825_v54 }
 0x12e   :  { %8740 = vtanh.f32 %v658_v49 }
 0x135   :  { %v8735_v60 = vpop.eup %8734 }
 0x136   :  { %v8737_v36 = vpop.eup %8736  ;;  %v663_v61 = vadd.f32 1.0, %v8735_v60 }
 0x137   :  { %v669_v47 = vadd.f32 1.0, %v8737_v36  ;;  %v8739_v48 = vpop.eup %8738  ;;  %v309_v36 = vld [vmem:[%s11739_s9 + $0x10] sm:$0xff] }
 0x138   :  { %8742 = vrcp.f32 %v663_v61  ;;  %v8741_v56 = vpop.eup %8740  ;;  %v676_v12 = vadd.f32 1.0, %v8739_v48  ;;  %v310_v61 = vld [vmem:[%s11739_s9 + $0x18] sm:$0xff] }
 0x139   :  { %8744 = vrcp.f32 %v669_v47  ;;  %v307_v47 = vld [vmem:[%s11739_s9] sm:$0xff]  ;;  %v10311_v48 = vpack.c.bf16 %v310_v61, %v309_v36  ;;  %v317_v61 = vld [vmem:[%s11739_s9 + $0x50] sm:$0xff] }
 0x13a   :  { %8746 = vrcp.f32 %v676_v12  ;;  %v313_v12 = vld [vmem:[%s11739_s9 + $0x30] sm:$0xff] }
 0x13b   :  { %12109 = vst [vmem:[#allocation114_spill] sm:$0xff] %v10311_v48 }
 0x142   :  { %v8743_v30 = vpop.eup %8742 }
 0x143   :  { %v8745_v32 = vpop.eup %8744  ;;  %v680_v45 = vmul.f32 %v8743_v30, %v8741_v56  ;;  %v308_v56 = vld [vmem:[%s11739_s9 + $0x8] sm:$0xff] }
 0x144   :  { %v679_v24 = vmul.f32 %v8745_v32, %v343_v43  ;;  %v8747_v54 = vpop.eup %8746  ;;  %v311_v43 = vld [vmem:[%s11739_s9 + $0x20] sm:$0xff]  ;;  %v312_v30 = vld [vmem:[%s11739_s9 + $0x28] sm:$0xff] }
 0x145   :  { %v10321_v32 = vpack.c.bf16 %v312_v30, %v311_v43  ;;  %v318_v43 = vld [vmem:[%s11739_s9 + $0x58] sm:$0xff] }
 0x146   :  { %v10286_v2 = vadd.f32 %v680_v45, %v679_v24  ;;  %v10299_v24 = vpack.c.bf16 %v308_v56, %v307_v47  ;;  %v11927_v45 = vmov 0.0|0.0   ;;  %v315_v47 = vld [vmem:[%s11739_s9 + $0x40] sm:$0xff]  ;;  %v316_v56 = vld [vmem:[%s11739_s9 + $0x48] sm:$0xff]  ;;  %v10351_v30 = vpack.c.bf16 %v318_v43, %v317_v61  ;;  %v321_v61 = vld [vmem:[%s11739_s9 + $0x70] sm:$0xff] }
 0x147   :  { %6822 = vmatprep.subr.bf16.mxu0 %v11927_v45  ;;  %6846 = vmatprep.subr.bf16.mxu1 %v11927_v45  ;;  %12110 = vst [vmem:[#allocation115_spill] sm:$0xff] %v10321_v32  ;;  %v10341_v36 = vpack.c.bf16 %v316_v56, %v315_v47  ;;  %v10359_v47 = vld [vmem:[#allocation4] sm:$0xff]  ;;  %v322_v43 = vld [vmem:[%s11739_s9 + $0x78] sm:$0xff] }
 0x148   :  { %12107 = vst [vmem:[#allocation112_spill] sm:$0xff] %v10286_v2  ;;  %8748 = vtanh.f32 %v10286_v2  ;;  %12108 = vst [vmem:[#allocation113_spill] sm:$0xff] %v10299_v24  ;;  %v12119_v2 = vsub.s32 3, %v10254_v41 }
 0x149   :  { %12112 = vst [vmem:[#allocation117_spill] sm:$0xff] %v10341_v36  ;;  %12113 = vst [vmem:[#allocation118_spill] sm:$0xff] %v10351_v30 }
 0x152   :  { %v8749_v60 = vpop.eup %8748 }
 0x153   :  { %v10289_v49 = vmul.f32 %v8749_v60, %v8747_v54  ;;  %v314_v54 = vld [vmem:[%s11739_s9 + $0x38] sm:$0xff] }
 0x154   :  { %v10331_v60 = vpack.c.bf16 %v314_v54, %v313_v12  ;;  %v319_v12 = vld [vmem:[%s11739_s9 + $0x60] sm:$0xff]  ;;  %v320_v54 = vld [vmem:[%s11739_s9 + $0x68] sm:$0xff] }
 0x155   :  { %891 = vmatmul.mubr.f32.vlgmr.msra.gmra.mrb[2].mxu0 %v10289_v49  ;;  %962 = vmatmul.mubr.f32.vlgmr.msra.gmra.mrb[2].mxu1 %v10289_v49  ;;  %v10366_v56 = vpack.c.bf16 %v320_v54, %v319_v12  ;;  %v306_v12 = vld [vmem:[%s11738_s8] sm:$0xf]  ;;  %v12116_v54 = vsub.s32 0, %v10254_v41  ;;  %s3535_s8 = ssub.f32 1.0, %s3532_s27 }
 0x156   :  { %6824 = vmatpush3.bf16.msra.mxu0 %v10299_v24  ;;  %12111 = vst [vmem:[#allocation116_spill] sm:$0xff] %v10331_v60  ;;  %6143 = vmatprep.mubr.msk.f32.mxu0 %vm9005_vm0, %v10359_v47  ;;  %v10396_v21 = vrot.slane %v306_v12, %v12119_v2 }
 0x157   :  { %6825 = vmatprep.subr.bf16.mxu0 %v11927_v45  ;;  %6178 = vmatprep.mubr.msk.f32.mxu1 %vm9005_vm0, %v10359_v47  ;;  %12114 = vst [vmem:[#allocation119_spill] sm:$0xff] %v10366_v56 }
 0x15a   :  { %6827 = vmatpush3.bf16.msra.mxu0 %v10311_v48 }
 0x15b   :  { %6828 = vmatprep.subr.bf16.mxu0 %v11927_v45 }
 0x15e   :  { %6830 = vmatpush3.bf16.msra.mxu0 %v10321_v32 }
 0x15f   :  { %6831 = vmatprep.subr.bf16.mxu0 %v11927_v45 }
 0x162   :  { %6833 = vmatpush3.bf16.msra.mxu0 %v10331_v60  ;;  %v12118_v60 = vsub.s32 1, %v10254_v41 }
 0x163   :  { %6834 = vmatprep.subr.bf16.mxu0 %v11927_v45 }
 0x164   :  { %v10390_v32 = vrot.slane %v306_v12, %v12118_v60  ;;  %v12120_v60 = vsub.s32 2, %v10254_v41 }
 0x166   :  { %6836 = vmatpush3.bf16.msra.mxu0 %v10341_v36  ;;  %v10376_v36 = vpack.c.bf16 %v322_v43, %v321_v61  ;;  %v10401_v59 = vrot.slane %v306_v12, %v12120_v60  ;;  %v10451_v60 = vld [vmem:[%s11740_s10] ss:$0 sm:$0xff] }
 0x167   :  { %6837 = vmatprep.subr.bf16.mxu0 %v11927_v45  ;;  %12121 = vst [vmem:[#allocation122_spill] sm:$0xff] %v10451_v60 }
 0x168   :  { %12115 = vst [vmem:[#allocation120_spill] sm:$0xff] %v10376_v36 }
 0x16a   :  { %6839 = vmatpush3.bf16.msra.mxu0 %v10351_v30  ;;  %v10386_v30 = vrot.slane %v306_v12, %v12116_v54 }
 0x16b   :  { %6840 = vmatprep.subr.bf16.mxu0 %v11927_v45 }
 0x16c   :  { %12117 = vst [vmem:[#allocation121_spill] sm:$0xff] %v10386_v30 }
 0x16e   :  { %6842 = vmatpush3.bf16.msra.mxu0 %v10366_v56 }
 0x16f   :  { %6843 = vmatprep.subr.bf16.mxu0 %v11927_v45 }
 0x172   :  { %6845 = vmatpush3.bf16.msra.mxu0 %v10376_v36 }
 0x173   :  { %6871 = vmatprep.subr.bf16.mxu0 %v9092_v3 }
 0x228   :  { %v892_v61 = vpop.f32.mrb[2].mxu0  ;;  %v963_v43 = vpop.f32.mrb[2].mxu1 }
 0x229   :  { %v989_v45 = vadd.f32 %v10386_v30, %v892_v61  ;;  %v894_v56 = vpop.f32.mrb[3].mxu0  ;;  %v965_v36 = vpop.f32.mrb[3].mxu1  ;;  %v991_v61 = vadd.f32 %v10401_v59, %v963_v43 }
 0x22a   :  { %v990_v3 = vadd.f32 %v10390_v32, %v894_v56  ;;  %v992_v54 = vadd.f32 %v10396_v21, %v965_v36 }
 0x22b   :  { %v5826_v48 = vmul.f32 -1.442695, %v989_v45 }
 0x22c   :  { %v5827_v24 = vmul.f32 -1.442695, %v990_v3  ;;  %v5828_v25 = vmul.f32 -1.442695, %v992_v54 }
 0x22d   :  { %8750 = vpow2.f32 %v5826_v48 }
 0x22e   :  { %8752 = vpow2.f32 %v5827_v24  ;;  %v5822_v24 = vld [vmem:[%s11742_s12 + $0x8] sm:$0xff] }
 0x22f   :  { %8754 = vpow2.f32 %v5828_v25 }
 0x230   :  { %8756 = vtanh.f32 %v991_v61 }
 0x237   :  { %v8751_v30 = vpop.eup %8750 }
 0x238   :  { %v8753_v19 = vpop.eup %8752  ;;  %v996_v56 = vadd.f32 1.0, %v8751_v30 }
 0x239   :  { %v1002_v3 = vadd.f32 1.0, %v8753_v19  ;;  %v8755_v2 = vpop.eup %8754 }
 0x23a   :  { %8758 = vrcp.f32 %v996_v56  ;;  %v8757_v45 = vpop.eup %8756  ;;  %v1009_v12 = vadd.f32 1.0, %v8755_v2  ;;  %v324_v2 = vld [vmem:[%s11732_s2] sm:$0xff] }
 0x23b   :  { %8760 = vrcp.f32 %v1002_v3 }
 0x23c   :  { %8762 = vrcp.f32 %v1009_v12  ;;  %v12123_v12 = vmov 0.0|0.0  }
 0x244   :  { %v8759_v41 = vpop.eup %8758 }
 0x245   :  { %v8761_v48 = vpop.eup %8760  ;;  %v1013_v36 = vmul.f32 %v8759_v41, %v8757_v45  ;;  %v325_v45 = vld [vmem:[%s11732_s2 + $0x8] sm:$0xff] }
 0x246   :  { %v1012_v54 = vmul.f32 %v8761_v48, %v5822_v24  ;;  %v8763_v25 = vpop.eup %8762  ;;  %v326_v24 = vld [vmem:[%s11732_s2 + $0x10] sm:$0xff]  ;;  %v10463_v41 = vpack.c.bf16 %v325_v45, %v324_v2  ;;  %v327_v48 = vld [vmem:[%s11732_s2 + $0x18] sm:$0xff]  ;;  %v332_v45 = vld [vmem:[%s11732_s2 + $0x40] sm:$0xff] }
 0x248   :  { %v10407_v43 = vadd.f32 %v1013_v36, %v1012_v54  ;;  %6848 = vmatpush3.bf16.msra.mxu1 %v10463_v41  ;;  %v10469_v36 = vpack.c.bf16 %v327_v48, %v326_v24  ;;  %v328_v54 = vld [vmem:[%s11732_s2 + $0x20] sm:$0xff]  ;;  %v333_v24 = vld [vmem:[%s11732_s2 + $0x48] sm:$0xff] }
 0x249   :  { %6849 = vmatprep.subr.bf16.mxu1 %v12123_v12  ;;  %v10499_v48 = vpack.c.bf16 %v333_v24, %v332_v45  ;;  %v337_v45 = vld [vmem:[%s11732_s2 + $0x68] sm:$0xff] }
 0x24a   :  { %8764 = vtanh.f32 %v10407_v43  ;;  %12122 = vst [vmem:[#allocation123_spill] sm:$0xff] %v10469_v36 }
 0x24b   :  { %12126 = vst [vmem:[#allocation126_spill] sm:$0xff] %v10499_v48 }
 0x24c   :  { %6851 = vmatpush3.bf16.msra.mxu1 %v10469_v36 }
 0x24d   :  { %6852 = vmatprep.subr.bf16.mxu1 %v12123_v12 }
 0x254   :  { %v8765_v19 = vpop.eup %8764 }
 0x255   :  { %v10410_v30 = vmul.f32 %v8765_v19, %v8763_v25  ;;  %v329_v25 = vld [vmem:[%s11732_s2 + $0x28] sm:$0xff] }
 0x256   :  { %v10479_v19 = vpack.c.bf16 %v329_v25, %v328_v54  ;;  %v334_v54 = vld [vmem:[%s11732_s2 + $0x50] sm:$0xff]  ;;  %v335_v25 = vld [vmem:[%s11732_s2 + $0x58] sm:$0xff] }
 0x257   :  { %6144 = vmatmul.mubr.f32.vlgmr.msra.gmra.mrb[4].mxu0 %v10410_v30 }
 0x258   :  { %6873 = vmatpush1.bf16.msra.mxu0 %v9108_v9  ;;  %1248 = vmatprep.mubr.f32.mxu0 %v10359_v47  ;;  %12124 = vst [vmem:[#allocation124_spill] sm:$0xff] %v10479_v19 }
 0x259   :  { %6875 = vmatprep.subr.bf16.mxu0 %v9133_v17  ;;  %6854 = vmatpush3.bf16.msra.mxu1 %v10479_v19 }
 0x25a   :  { %6855 = vmatprep.subr.bf16.mxu1 %v12123_v12 }
 0x25c   :  { %6877 = vmatpush1.bf16.msra.mxu0 %v9147_v22 }
 0x25d   :  { %6879 = vmatprep.subr.bf16.mxu0 %v9162_v27 }
 0x260   :  { %6881 = vmatpush1.bf16.msra.mxu0 %v9185_v35 }
 0x261   :  { %6883 = vmatprep.subr.bf16.mxu0 %v9200_v40 }
 0x264   :  { %6885 = vmatpush1.bf16.msra.mxu0 %v9233_v51 }
 0x265   :  { %6887 = vmatprep.subr.bf16.mxu0 %v9239_v53 }
 0x268   :  { %6889 = vmatpush1.bf16.msra.mxu0 %v9269_v63 }
 0x269   :  { %6891 = vmatprep.subr.bf16.mxu0 %v9275_v1 }
 0x26c   :  { %6893 = vmatpush1.bf16.msra.mxu0 %v9305_v16 }
 0x26d   :  { %6895 = vmatprep.subr.bf16.mxu0 %v9311_v20 }
 0x270   :  { %6897 = vmatpush1.bf16.msra.mxu0 %v9341_v34 }
 0x271   :  { %6899 = vmatprep.subr.bf16.mxu0 %v9347_v37 }
 0x274   :  { %6901 = vmatpush1.bf16.msra.mxu0 %v9377_v50 }
 0x275   :  { %6935 = vmatprep.subr.bf16.mxu0 %v9383_v55 }
 0x277   :  { %1249 = vmatmul.mubr.f32.vlgmr.msra.gmra.mrb[6].mxu0 %v10289_v49 }
 0x278   :  { %6937 = vmatpush1.bf16.msra.mxu0 %v9416_v11  ;;  %1390 = vmatprep.mubr.f32.mxu0 %v10359_v47 }
 0x279   :  { %6939 = vmatprep.subr.bf16.mxu0 %v9422_v14 }
 0x27c   :  { %6941 = vmatpush1.bf16.msra.mxu0 %v9452_v38 }
 0x27d   :  { %6943 = vmatprep.subr.bf16.mxu0 %v9458_v42 }
 0x280   :  { %6945 = vmatpush1.bf16.msra.mxu0 %v9490_v62 }
 0x281   :  { %6947 = vmatprep.subr.bf16.mxu0 %v9496_v4 }
 0x284   :  { %6949 = vmatpush1.bf16.msra.mxu0 %v9526_v33 }
 0x285   :  { %6951 = vmatprep.subr.bf16.mxu0 %v9532_v46 }
 0x288   :  { %6953 = vmatpush1.bf16.msra.mxu0 %v9562_v23 }
 0x289   :  { %6955 = vmatprep.subr.bf16.mxu0 %v9568_v29 }
 0x28c   :  { %6957 = vmatpush1.bf16.msra.mxu0 %v9598_v15 }
 0x28d   :  { %6959 = vmatprep.subr.bf16.mxu0 %v9604_v58 }
 0x290   :  { %6961 = vmatpush1.bf16.msra.mxu0 %v9634_v10 }
 0x291   :  { %6963 = vmatprep.subr.bf16.mxu0 %v9640_v28 }
 0x294   :  { %6965 = vmatpush1.bf16.msra.mxu0 %v9670_v5 }
 0x295   :  { %6999 = vmatprep.subr.bf16.mxu0 %v9676_v7 }
 0x32a   :  { %v1089_v61 = vpop.f32.mrb[4].mxu0 }
 0x32b   :  { %v1090_v56 = vadd.f32 %v10451_v60, %v1089_v61  ;;  %v6145_v3 = vpop.f32.mrb[5].mxu0  ;;  %v330_v61 = vld [vmem:[%s11732_s2 + $0x30] sm:$0xff] }
 0x32c   :  { %v331_v3 = vld [vmem:[%s11732_s2 + $0x38] sm:$0xff] }
 0x32d   :  { %1094 = vst [vmem:[#allocation4 + $0x8] sm:$0xff] %v1090_v56  ;;  %1095 = vmax.xlane.f32.xlu0 %v1090_v56  ;;  %v10489_v2 = vpack.c.bf16 %v331_v3, %v330_v61  ;;  %v10509_v61 = vpack.c.bf16 %v335_v25, %v334_v54  ;;  %v336_v3 = vld [vmem:[%s11732_s2 + $0x60] sm:$0xff]  ;;  %v338_v54 = vld [vmem:[%s11732_s2 + $0x70] sm:$0xff]  ;;  %v339_v25 = vld [vmem:[%s11732_s2 + $0x78] sm:$0xff]  ;;  %s5833_s2 = sld [smem:[#allocation3 + $0x1]] }
 0x32e   :  { %v10519_v24 = vpack.c.bf16 %v337_v45, %v336_v3  ;;  %v10529_v60 = vpack.c.bf16 %v339_v25, %v338_v54  ;;  %v12130_v3 = vlaneseq  ;;  %v11959_v54 = vmov 1.0   ;;  %v12136_v25 = vld [vmem:[#allocation24_spill] sm:$0xff] }
 0x32f   :  { %12125 = vst [vmem:[#allocation125_spill] sm:$0xff] %v10489_v2  ;;  %6857 = vmatpush3.bf16.msra.mxu1 %v10489_v2  ;;  %12127 = vst [vmem:[#allocation127_spill] sm:$0xff] %v10509_v61 }
 0x330   :  { %6858 = vmatprep.subr.bf16.mxu1 %v12123_v12  ;;  %12128 = vst [vmem:[#allocation128_spill] sm:$0xff] %v10519_v24  ;;  %12129 = vst [vmem:[#allocation129_spill] sm:$0xff] %v10529_v60  ;;  %v348_v45 = vand.u32 127, %v12130_v3  ;;  %v12137_v3 = vld [vmem:[#allocation25_spill] sm:$0xff] }
 0x332   :  { %v10535_v7 = vcvt.s32.f32 %v348_v45  ;;  %v12138_v45 = vld [vmem:[#allocation26_spill] sm:$0xff] }
 0x333   :  { %6860 = vmatpush3.bf16.msra.mxu1 %v10499_v48  ;;  %s1177_s0 = scvt.s32.f32 %s5833_s2  ;;  %s5883_s2 = sld [smem:[#allocation3 + $0x6]] }
 0x334   :  { %6861 = vmatprep.subr.bf16.mxu1 %v12123_v12  ;;  %12131 = vst [vmem:[#allocation130_spill] sm:$0xff] %v10535_v7 }
 0x335   :  { %s1180_s17 = ssub.f32 1.0, %s1177_s0 }
 0x337   :  { %6863 = vmatpush3.bf16.msra.mxu1 %v10509_v61 }
 0x338   :  { %6864 = vmatprep.subr.bf16.mxu1 %v12123_v12 }
 0x33b   :  { %6866 = vmatpush3.bf16.msra.mxu1 %v10519_v24 }
 0x33c   :  { %6867 = vmatprep.subr.bf16.mxu1 %v12123_v12 }
 0x33f   :  { %6869 = vmatpush3.bf16.msra.mxu1 %v10529_v60 }
 0x340   :  { %6903 = vmatprep.subr.bf16.mxu1 %v9106_v8 }
 0x3ba   :  { %v1096_v5 = vpop.xlane.xlu0 %1095 }
 0x3bb   :  { %vm1097_vm1 = vcmp.eq.f32.partialorder %v1090_v56, %v1096_v5  ;;  %v12134_v5 = vld [vmem:[#allocation22_spill] sm:$0xff]  ;;  %v12135_v56 = vld [vmem:[#allocation23_spill] sm:$0xff] }
 0x3bc   :  { %v1098_v28 = vsel %vm1097_vm1, %v10535_v7, 128.0 }
 0x3bd   :  { %1099 = vmin.xlane.f32.xlu0 %v1098_v28  ;;  %v12132_v28 = vld [vmem:[#allocation20_spill] sm:$0xff] }
 0x44a   :  { %v1100_v10 = vpop.xlane.xlu0 %1099 }
 0x44b   :  { %vm1101_vm2 = vcmp.eq.f32.partialorder %v10535_v7, %v1100_v10  ;;  %v12133_v10 = vld [vmem:[#allocation21_spill] sm:$0xff] }
 0x44c   :  { %6179 = vmatmul.mubr.msk.f32.vlgmr.msra.gmra.mrb[4].mxu1 %vm1101_vm2, %v11959_v54  ;;  %v12139_v54 = vld [vmem:[#allocation27_spill] sm:$0xff] }
 0x44d   :  { %6905 = vmatpush1.bf16.msra.mxu1 %v9120_v13  ;;  %1319 = vmatprep.mubr.f32.mxu1 %v10359_v47 }
 0x44e   :  { %6907 = vmatprep.subr.bf16.mxu1 %v9135_v18 }
 0x451   :  { %6909 = vmatpush1.bf16.msra.mxu1 %v9160_v26 }
 0x452   :  { %6911 = vmatprep.subr.bf16.mxu1 %v9173_v31 }
 0x455   :  { %6913 = vmatpush1.bf16.msra.mxu1 %v9198_v39 }
 0x456   :  { %6915 = vmatprep.subr.bf16.mxu1 %v9212_v44 }
 0x459   :  { %6917 = vmatpush1.bf16.msra.mxu1 %v9237_v52  ;;  %v12158_v52 = vld [vmem:[#allocation50_spill] sm:$0xff] }
 0x45a   :  { %6919 = vmatprep.subr.bf16.mxu1 %v9251_v57  ;;  %v12157_v57 = vld [vmem:[#allocation49_spill] sm:$0xff] }
 0x45d   :  { %6921 = vmatpush1.bf16.msra.mxu1 %v9273_v0  ;;  %v12149_v0 = vld [vmem:[#allocation37_spill] sm:$0xff] }
 0x45e   :  { %6923 = vmatprep.subr.bf16.mxu1 %v9287_v6  ;;  %v12140_v6 = vld [vmem:[#allocation28_spill] sm:$0xff] }
 0x461   :  { %6925 = vmatpush1.bf16.msra.mxu1 %v12132_v28  ;;  %v12141_v28 = vld [vmem:[#allocation29_spill] sm:$0xff] }
 0x462   :  { %6927 = vmatprep.subr.bf16.mxu1 %v12133_v10  ;;  %v12142_v10 = vld [vmem:[#allocation30_spill] sm:$0xff] }
 0x465   :  { %6929 = vmatpush1.bf16.msra.mxu1 %v12134_v5  ;;  %v12143_v5 = vld [vmem:[#allocation31_spill] sm:$0xff] }
 0x466   :  { %6931 = vmatprep.subr.bf16.mxu1 %v12135_v56  ;;  %v12144_v56 = vld [vmem:[#allocation32_spill] sm:$0xff] }
 0x469   :  { %6933 = vmatpush1.bf16.msra.mxu1 %v12136_v25  ;;  %v12145_v25 = vld [vmem:[#allocation33_spill] sm:$0xff] }
 0x46a   :  { %6967 = vmatprep.subr.bf16.mxu1 %v12137_v3  ;;  %v12146_v3 = vld [vmem:[#allocation34_spill] sm:$0xff] }
 0x46c   :  { %1320 = vmatmul.mubr.f32.vlgmr.msra.gmra.mrb[6].mxu1 %v10289_v49  ;;  %v12147_v49 = vld [vmem:[#allocation35_spill] sm:$0xff] }
 0x46d   :  { %6969 = vmatpush1.bf16.msra.mxu1 %v12138_v45  ;;  %1461 = vmatprep.mubr.f32.mxu1 %v10359_v47  ;;  %v12148_v45 = vld [vmem:[#allocation36_spill] sm:$0xff] }
 0x46e   :  { %6971 = vmatprep.subr.bf16.mxu1 %v12139_v54  ;;  %v12150_v54 = vld [vmem:[#allocation39_spill] sm:$0xff] }
 0x471   :  { %6973 = vmatpush1.bf16.msra.mxu1 %v12140_v6  ;;  %v12151_v6 = vld [vmem:[#allocation41_spill] sm:$0xff] }
 0x472   :  { %6975 = vmatprep.subr.bf16.mxu1 %v12141_v28  ;;  %v12152_v28 = vld [vmem:[#allocation43_spill] sm:$0xff] }
 0x475   :  { %6977 = vmatpush1.bf16.msra.mxu1 %v12142_v10  ;;  %v12153_v10 = vld [vmem:[#allocation45_spill] sm:$0xff] }
 0x476   :  { %6979 = vmatprep.subr.bf16.mxu1 %v12143_v5 }
 0x479   :  { %6981 = vmatpush1.bf16.msra.mxu1 %v12144_v56 }
 0x47a   :  { %6983 = vmatprep.subr.bf16.mxu1 %v12145_v25  ;;  %v1181_v25 = vstv %s1180_s17 }
 0x47d   :  { %6985 = vmatpush1.bf16.msra.mxu1 %v12146_v3  ;;  %v5832_v3 = vld [vmem:[%s11731_s1 + $0x8] sm:$0xff] }
 0x47e   :  { %6987 = vmatprep.subr.bf16.mxu1 %v12147_v49  ;;  %v1178_v49 = vstv %s1177_s0  ;;  %s5102_s0 = scvt.s32.f32 %s5883_s2 }
 0x480   :  { %s5105_s17 = ssub.f32 1.0, %s5102_s0 }
 0x481   :  { %6989 = vmatpush1.bf16.msra.mxu1 %v12148_v45  ;;  %v1179_v45 = vmul.f32 %v5832_v3, %v1178_v49  ;;  %v12159_v3 = vld [vmem:[#allocation51_spill] sm:$0xff]  ;;  %v12166_v49 = vld [vmem:[#allocation58_spill] sm:$0xff] }
 0x482   :  { %6991 = vmatprep.subr.bf16.mxu1 %v12149_v0 }
 0x485   :  { %6993 = vmatpush1.bf16.msra.mxu1 %v12150_v54 }
 0x486   :  { %6995 = vmatprep.subr.bf16.mxu1 %v12151_v6  ;;  %v12154_v6 = vld [vmem:[#allocation46_spill] sm:$0xff] }
 0x489   :  { %6997 = vmatpush1.bf16.msra.mxu1 %v12152_v28  ;;  %v12155_v28 = vld [vmem:[#allocation47_spill] sm:$0xff] }
 0x48a   :  { %7031 = vmatprep.subr.bf16.mxu1 %v12153_v10  ;;  %v12156_v10 = vld [vmem:[#allocation48_spill] sm:$0xff] }
 0x51f   :  { %v1170_v56 = vpop.f32.mrb[4].mxu1 }
 0x520   :  { %v1182_v0 = vmul.f32 %v1181_v25, %v1170_v56  ;;  %v6180_v5 = vpop.f32.mrb[5].mxu1  ;;  %v12163_v56 = vld [vmem:[#allocation55_spill] sm:$0xff]  ;;  %v12164_v25 = vld [vmem:[#allocation56_spill] sm:$0xff] }
 0x521   :  { %v12160_v5 = vld [vmem:[#allocation52_spill] sm:$0xff] }
 0x522   :  { %v1183_v54 = vadd.f32 %v1182_v0, %v1179_v45  ;;  %v12161_v0 = vld [vmem:[#allocation53_spill] sm:$0xff] }
 0x523   :  { %v12165_v45 = vld [vmem:[#allocation57_spill] sm:$0xff] }
 0x524   :  { %1391 = vmatmul.mubr.f32.vlgmr.msra.gmra.mrb[6].mxu0 %v1183_v54  ;;  %1462 = vmatmul.mubr.f32.vlgmr.msra.gmra.mrb[6].mxu1 %v1183_v54  ;;  %v12162_v54 = vld [vmem:[#allocation54_spill] sm:$0xff] }
 0x525   :  { %7001 = vmatpush1.bf16.msra.mxu0 %v12154_v6  ;;  %7033 = vmatpush1.bf16.msra.mxu1 %v12155_v28 }
 0x526   :  { %7003 = vmatprep.subr.bf16.mxu0 %v12156_v10  ;;  %7035 = vmatprep.subr.bf16.mxu1 %v12157_v57  ;;  %v12167_v57 = vld [vmem:[#allocation59_spill] sm:$0xff]  ;;  %v12168_v10 = vld [vmem:[#allocation60_spill] sm:$0xff] }
 0x527   :  { %1560 = vmatprep.mubr.f32.mxu0 %v10359_v47  ;;  %1631 = vmatprep.mubr.f32.mxu1 %v10359_v47 }
 0x529   :  { %7005 = vmatpush1.bf16.msra.mxu0 %v12158_v52  ;;  %7037 = vmatpush1.bf16.msra.mxu1 %v12159_v3  ;;  %v12169_v52 = vld [vmem:[#allocation61_spill] sm:$0xff]  ;;  %v12170_v3 = vld [vmem:[#allocation62_spill] sm:$0xff] }
 0x52a   :  { %7007 = vmatprep.subr.bf16.mxu0 %v12160_v5  ;;  %7039 = vmatprep.subr.bf16.mxu1 %v12161_v0  ;;  %v12171_v5 = vld [vmem:[#allocation63_spill] sm:$0xff]  ;;  %v12172_v0 = vld [vmem:[#allocation64_spill] sm:$0xff] }
 0x52d   :  { %7009 = vmatpush1.bf16.msra.mxu0 %v12162_v54  ;;  %7041 = vmatpush1.bf16.msra.mxu1 %v12163_v56  ;;  %v12173_v54 = vld [vmem:[#allocation65_spill] sm:$0xff]  ;;  %v12174_v56 = vld [vmem:[#allocation66_spill] sm:$0xff] }
 0x52e   :  { %7011 = vmatprep.subr.bf16.mxu0 %v12164_v25  ;;  %7043 = vmatprep.subr.bf16.mxu1 %v12165_v45  ;;  %v12175_v25 = vld [vmem:[#allocation67_spill] sm:$0xff]  ;;  %v12176_v45 = vld [vmem:[#allocation68_spill] sm:$0xff] }
 0x531   :  { %7013 = vmatpush1.bf16.msra.mxu0 %v12166_v49  ;;  %7045 = vmatpush1.bf16.msra.mxu1 %v12167_v57  ;;  %v12177_v49 = vld [vmem:[#allocation69_spill] sm:$0xff]  ;;  %v12178_v57 = vld [vmem:[#allocation70_spill] sm:$0xff] }
 0x532   :  { %7015 = vmatprep.subr.bf16.mxu0 %v12168_v10  ;;  %7047 = vmatprep.subr.bf16.mxu1 %v12169_v52  ;;  %v12179_v10 = vld [vmem:[#allocation71_spill] sm:$0xff]  ;;  %v12180_v52 = vld [vmem:[#allocation72_spill] sm:$0xff] }
 0x535   :  { %7017 = vmatpush1.bf16.msra.mxu0 %v12170_v3  ;;  %7049 = vmatpush1.bf16.msra.mxu1 %v12171_v5  ;;  %v12181_v3 = vld [vmem:[#allocation73_spill] sm:$0xff]  ;;  %v12182_v5 = vld [vmem:[#allocation74_spill] sm:$0xff] }
 0x536   :  { %7019 = vmatprep.subr.bf16.mxu0 %v12172_v0  ;;  %7051 = vmatprep.subr.bf16.mxu1 %v12173_v54  ;;  %v12183_v0 = vld [vmem:[#allocation75_spill] sm:$0xff]  ;;  %v12184_v54 = vld [vmem:[#allocation76_spill] sm:$0xff] }
 0x539   :  { %7021 = vmatpush1.bf16.msra.mxu0 %v12174_v56  ;;  %7053 = vmatpush1.bf16.msra.mxu1 %v12175_v25  ;;  %v12185_v56 = vld [vmem:[#allocation77_spill] sm:$0xff] }
 0x53a   :  { %7023 = vmatprep.subr.bf16.mxu0 %v12176_v45  ;;  %7055 = vmatprep.subr.bf16.mxu1 %v12177_v49  ;;  %v12186_v49 = vld [vmem:[#allocation78_spill] sm:$0xff]  ;;  %v12200_v45 = vld [vmem:[#allocation92_spill] sm:$0xff]  ;;  %v12217_v25 = vld [vmem:[#allocation109_spill] sm:$0xff] }
 0x53d   :  { %7025 = vmatpush1.bf16.msra.mxu0 %v12178_v57  ;;  %7057 = vmatpush1.bf16.msra.mxu1 %v12179_v10  ;;  %v12187_v57 = vld [vmem:[#allocation79_spill] sm:$0xff]  ;;  %v12188_v10 = vld [vmem:[#allocation80_spill] sm:$0xff] }
 0x53e   :  { %7027 = vmatprep.subr.bf16.mxu0 %v12180_v52  ;;  %7059 = vmatprep.subr.bf16.mxu1 %v12181_v3  ;;  %v12189_v52 = vld [vmem:[#allocation81_spill] sm:$0xff]  ;;  %v12199_v3 = vld [vmem:[#allocation91_spill] sm:$0xff] }
 0x541   :  { %7029 = vmatpush1.bf16.msra.mxu0 %v12182_v5  ;;  %7061 = vmatpush1.bf16.msra.mxu1 %v12183_v0  ;;  %v12190_v0 = vld [vmem:[#allocation82_spill] sm:$0xff]  ;;  %v12193_v5 = vld [vmem:[#allocation85_spill] sm:$0xff] }
 0x542   :  { %7063 = vmatprep.subr.bf16.mxu0 %v12184_v54  ;;  %7095 = vmatprep.subr.bf16.mxu1 %v12185_v56  ;;  %v12191_v54 = vld [vmem:[#allocation83_spill] sm:$0xff]  ;;  %v12192_v56 = vld [vmem:[#allocation84_spill] sm:$0xff] }
 0x544   :  { %1561 = vmatmul.mubr.f32.vlgmr.msra.gmra.mrb[8].mxu0 %v10410_v30  ;;  %1632 = vmatmul.mubr.f32.vlgmr.msra.gmra.mrb[8].mxu1 %v10410_v30  ;;  %v12194_v30 = vld [vmem:[#allocation86_spill] sm:$0xff] }
 0x545   :  { %7065 = vmatpush1.bf16.msra.mxu0 %v12186_v49  ;;  %7097 = vmatpush1.bf16.msra.mxu1 %v12187_v57  ;;  %v12195_v49 = vld [vmem:[#allocation87_spill] sm:$0xff]  ;;  %v12196_v57 = vld [vmem:[#allocation88_spill] sm:$0xff] }
 0x546   :  { %7067 = vmatprep.subr.bf16.mxu0 %v12188_v10  ;;  %7099 = vmatprep.subr.bf16.mxu1 %v12189_v52  ;;  %v12197_v10 = vld [vmem:[#allocation89_spill] sm:$0xff]  ;;  %v12198_v52 = vld [vmem:[#allocation90_spill] sm:$0xff] }
 0x547   :  { %1702 = vmatprep.mubr.f32.mxu0 %v10359_v47  ;;  %1773 = vmatprep.mubr.f32.mxu1 %v10359_v47 }
 0x549   :  { %7069 = vmatpush1.bf16.msra.mxu0 %v12190_v0  ;;  %7101 = vmatpush1.bf16.msra.mxu1 %v12191_v54  ;;  %v12201_v0 = vld [vmem:[#allocation93_spill] sm:$0xff]  ;;  %v12202_v54 = vld [vmem:[#allocation94_spill] sm:$0xff] }
 0x54a   :  { %7071 = vmatprep.subr.bf16.mxu0 %v12192_v56  ;;  %7103 = vmatprep.subr.bf16.mxu1 %v12193_v5  ;;  %v12203_v56 = vld [vmem:[#allocation95_spill] sm:$0xff]  ;;  %v12204_v5 = vld [vmem:[#allocation96_spill] sm:$0xff] }
 0x54d   :  { %7073 = vmatpush1.bf16.msra.mxu0 %v12194_v30  ;;  %7105 = vmatpush1.bf16.msra.mxu1 %v12195_v49  ;;  %v12205_v30 = vld [vmem:[#allocation97_spill] sm:$0xff]  ;;  %v12206_v49 = vld [vmem:[#allocation98_spill] sm:$0xff] }
 0x54e   :  { %7075 = vmatprep.subr.bf16.mxu0 %v12196_v57  ;;  %7107 = vmatprep.subr.bf16.mxu1 %v12197_v10  ;;  %v12207_v57 = vld [vmem:[#allocation99_spill] sm:$0xff]  ;;  %v12208_v10 = vld [vmem:[#allocation100_spill] sm:$0xff] }
 0x551   :  { %7077 = vmatpush1.bf16.msra.mxu0 %v12198_v52  ;;  %7109 = vmatpush1.bf16.msra.mxu1 %v12199_v3  ;;  %v12209_v52 = vld [vmem:[#allocation101_spill] sm:$0xff]  ;;  %v12210_v3 = vld [vmem:[#allocation102_spill] sm:$0xff] }
 0x552   :  { %7079 = vmatprep.subr.bf16.mxu0 %v12200_v45  ;;  %7111 = vmatprep.subr.bf16.mxu1 %v12201_v0  ;;  %v12211_v45 = vld [vmem:[#allocation103_spill] sm:$0xff]  ;;  %v12212_v0 = vld [vmem:[#allocation104_spill] sm:$0xff] }
 0x555   :  { %7081 = vmatpush1.bf16.msra.mxu0 %v12202_v54  ;;  %7113 = vmatpush1.bf16.msra.mxu1 %v12203_v56  ;;  %v12213_v54 = vld [vmem:[#allocation105_spill] sm:$0xff]  ;;  %v12214_v56 = vld [vmem:[#allocation106_spill] sm:$0xff] }
 0x556   :  { %7083 = vmatprep.subr.bf16.mxu0 %v12204_v5  ;;  %7115 = vmatprep.subr.bf16.mxu1 %v12205_v30  ;;  %v12215_v5 = vld [vmem:[#allocation107_spill] sm:$0xff] }
 0x559   :  { %7085 = vmatpush1.bf16.msra.mxu0 %v12206_v49  ;;  %7117 = vmatpush1.bf16.msra.mxu1 %v12207_v57  ;;  %v12216_v49 = vld [vmem:[#allocation108_spill] sm:$0xff] }
 0x55a   :  { %7087 = vmatprep.subr.bf16.mxu0 %v12208_v10  ;;  %7119 = vmatprep.subr.bf16.mxu1 %v12209_v52 }
 0x55d   :  { %7089 = vmatpush1.bf16.msra.mxu0 %v12210_v3  ;;  %7121 = vmatpush1.bf16.msra.mxu1 %v12211_v45 }
 0x55e   :  { %7091 = vmatprep.subr.bf16.mxu0 %v12212_v0  ;;  %7123 = vmatprep.subr.bf16.mxu1 %v12213_v54  ;;  %v12218_v54 = vld [vmem:[#allocation110_spill] sm:$0xff] }
 0x561   :  { %7093 = vmatpush1.bf16.msra.mxu0 %v12214_v56  ;;  %7125 = vmatpush1.bf16.msra.mxu1 %v12215_v5  ;;  %v12219_v5 = vld [vmem:[#allocation111_spill] sm:$0xff] }
 0x562   :  { %7126 = vmatprep.subr.bf16.mxu0 %v12123_v12  ;;  %7150 = vmatprep.subr.bf16.mxu1 %v12123_v12 }
 0x5f7   :  { %v1392_v57 = vpop.f32.mrb[6].mxu0  ;;  %v1463_v10 = vpop.f32.mrb[6].mxu1 }
 0x5f8   :  { %v1468_v52 = vadd.f32 %v1392_v57, %v12216_v49  ;;  %v1394_v30 = vpop.f32.mrb[7].mxu0  ;;  %v1465_v3 = vpop.f32.mrb[7].mxu1  ;;  %v1470_v44 = vadd.f32 %v1463_v10, %v12219_v5 }
 0x5f9   :  { %v1469_v45 = vadd.f32 %v1394_v30, %v12217_v25  ;;  %v1471_v56 = vadd.f32 %v1465_v3, %v12218_v54 }
 0x5fa   :  { %v5834_v28 = vmul.f32 -1.442695, %v1468_v52 }
 0x5fb   :  { %v5835_v0 = vmul.f32 -1.442695, %v1469_v45  ;;  %v5836_v6 = vmul.f32 -1.442695, %v1471_v56  ;;  %v12225_v56 = vld [vmem:[#allocation117_spill] sm:$0xff] }
 0x5fc   :  { %8766 = vpow2.f32 %v5834_v28 }
 0x5fd   :  { %8768 = vpow2.f32 %v5835_v0  ;;  %v12220_v0 = vld [vmem:[#allocation112_spill] sm:$0xff] }
 0x5fe   :  { %8770 = vpow2.f32 %v5836_v6 }
 0x5ff   :  { %8772 = vtanh.f32 %v1470_v44  ;;  %v12224_v44 = vld [vmem:[#allocation116_spill] sm:$0xff] }
 0x606   :  { %v8767_v39 = vpop.eup %8766 }
 0x607   :  { %v8769_v31 = vpop.eup %8768  ;;  %v1475_v26 = vadd.f32 1.0, %v8767_v39 }
 0x608   :  { %v1481_v18 = vadd.f32 1.0, %v8769_v31  ;;  %v8771_v57 = vpop.eup %8770  ;;  %v12223_v31 = vld [vmem:[#allocation115_spill] sm:$0xff] }
 0x609   :  { %8774 = vrcp.f32 %v1475_v26  ;;  %v8773_v49 = vpop.eup %8772  ;;  %v1488_v28 = vadd.f32 1.0, %v8771_v57  ;;  %v12222_v26 = vld [vmem:[#allocation114_spill] sm:$0xff]  ;;  %v12228_v57 = vld [vmem:[#allocation120_spill] sm:$0xff] }
 0x60a   :  { %8776 = vrcp.f32 %v1481_v18  ;;  %v12221_v18 = vld [vmem:[#allocation113_spill] sm:$0xff] }
 0x60b   :  { %8778 = vrcp.f32 %v1488_v28  ;;  %v12230_v28 = vld [vmem:[#allocation121_spill] sm:$0xff] }
 0x613   :  { %v8775_v30 = vpop.eup %8774 }
 0x614   :  { %v8777_v52 = vpop.eup %8776  ;;  %v1492_v45 = vmul.f32 %v8775_v30, %v8773_v49  ;;  %v12227_v49 = vld [vmem:[#allocation119_spill] sm:$0xff]  ;;  %v12229_v30 = vld [vmem:[#allocation8_spill] sm:$0xff] }
 0x615   :  { %v1491_v25 = vmul.f32 %v8777_v52, %v12220_v0  ;;  %v8779_v10 = vpop.eup %8778 }
 0x617   :  { %v10653_v3 = vadd.f32 %v1492_v45, %v1491_v25  ;;  %v12226_v25 = vld [vmem:[#allocation118_spill] sm:$0xff] }
 0x619   :  { %8780 = vtanh.f32 %v10653_v3 }
 0x623   :  { %v8781_v39 = vpop.eup %8780 }
 0x624   :  { %v10656_v6 = vmul.f32 %v8781_v39, %v8779_v10 }
 0x626   :  { %1703 = vmatmul.mubr.f32.vlgmr.msra.gmra.mrb[8].mxu0 %v10656_v6  ;;  %1774 = vmatmul.mubr.f32.vlgmr.msra.gmra.mrb[8].mxu1 %v10656_v6 }
 0x627   :  { %7128 = vmatpush3.bf16.msra.mxu0 %v12221_v18  ;;  %6213 = vmatprep.mubr.msk.f32.mxu0 %vm9005_vm0, %v10359_v47 }
 0x628   :  { %7129 = vmatprep.subr.bf16.mxu0 %v12123_v12  ;;  %7152 = vmatpush3.bf16.msra.mxu1 %v10463_v41 }
 0x629   :  { %7153 = vmatprep.subr.bf16.mxu1 %v12123_v12  ;;  %6248 = vmatprep.mubr.msk.f32.mxu1 %vm9005_vm0, %v10359_v47 }
 0x62b   :  { %7131 = vmatpush3.bf16.msra.mxu0 %v12222_v26 }
 0x62c   :  { %7132 = vmatprep.subr.bf16.mxu0 %v12123_v12  ;;  %7155 = vmatpush3.bf16.msra.mxu1 %v10469_v36 }
 0x62d   :  { %7156 = vmatprep.subr.bf16.mxu1 %v12123_v12 }
 0x62f   :  { %7134 = vmatpush3.bf16.msra.mxu0 %v12223_v31 }
 0x630   :  { %7135 = vmatprep.subr.bf16.mxu0 %v12123_v12  ;;  %7158 = vmatpush3.bf16.msra.mxu1 %v10479_v19 }
 0x631   :  { %7159 = vmatprep.subr.bf16.mxu1 %v12123_v12 }
 0x633   :  { %7137 = vmatpush3.bf16.msra.mxu0 %v12224_v44 }
 0x634   :  { %7138 = vmatprep.subr.bf16.mxu0 %v12123_v12  ;;  %7161 = vmatpush3.bf16.msra.mxu1 %v10489_v2 }
 0x635   :  { %7162 = vmatprep.subr.bf16.mxu1 %v12123_v12 }
 0x637   :  { %7140 = vmatpush3.bf16.msra.mxu0 %v12225_v56 }
 0x638   :  { %7141 = vmatprep.subr.bf16.mxu0 %v12123_v12  ;;  %7164 = vmatpush3.bf16.msra.mxu1 %v10499_v48 }
 0x639   :  { %7165 = vmatprep.subr.bf16.mxu1 %v12123_v12 }
 0x63b   :  { %7143 = vmatpush3.bf16.msra.mxu0 %v12226_v25 }
 0x63c   :  { %7144 = vmatprep.subr.bf16.mxu0 %v12123_v12  ;;  %7167 = vmatpush3.bf16.msra.mxu1 %v10509_v61 }
 0x63d   :  { %7168 = vmatprep.subr.bf16.mxu1 %v12123_v12 }
 0x63f   :  { %7146 = vmatpush3.bf16.msra.mxu0 %v12227_v49 }
 0x640   :  { %7147 = vmatprep.subr.bf16.mxu0 %v12123_v12  ;;  %7170 = vmatpush3.bf16.msra.mxu1 %v10519_v24 }
 0x641   :  { %7171 = vmatprep.subr.bf16.mxu1 %v12123_v12 }
 0x643   :  { %7149 = vmatpush3.bf16.msra.mxu0 %v12228_v57 }
 0x644   :  { %7175 = vmatprep.subr.bf16.mxu0 %v12229_v30  ;;  %7173 = vmatpush3.bf16.msra.mxu1 %v10529_v60 }
 0x645   :  { %7207 = vmatprep.subr.bf16.mxu1 %v9106_v8 }
 0x6f9   :  { %v1704_v52 = vpop.f32.mrb[8].mxu0  ;;  %v1775_v45 = vpop.f32.mrb[8].mxu1 }
 0x6fa   :  { %v1780_v0 = vadd.f32 %v1704_v52, %v12230_v28  ;;  %v1706_v10 = vpop.f32.mrb[9].mxu0  ;;  %v1777_v39 = vpop.f32.mrb[9].mxu1  ;;  %v1782_v30 = vadd.f32 %v1775_v45, %v10401_v59  ;;  %v12235_v45 = vld [vmem:[#allocation122_spill] sm:$0xff] }
 0x6fb   :  { %v1781_v49 = vadd.f32 %v1706_v10, %v10390_v32  ;;  %v1783_v57 = vadd.f32 %v1777_v39, %v10396_v21 }
 0x6fc   :  { %v5837_v61 = vmul.f32 -1.442695, %v1780_v0 }
 0x6fd   :  { %v5838_v24 = vmul.f32 -1.442695, %v1781_v49  ;;  %v5839_v25 = vmul.f32 -1.442695, %v1783_v57 }
 0x6fe   :  { %8782 = vpow2.f32 %v5837_v61 }
 0x6ff   :  { %8784 = vpow2.f32 %v5838_v24 }
 0x700   :  { %8786 = vpow2.f32 %v5839_v25 }
 0x701   :  { %8788 = vtanh.f32 %v1782_v30 }
 0x708   :  { %v8783_v60 = vpop.eup %8782 }
 0x709   :  { %v8785_v48 = vpop.eup %8784  ;;  %v1787_v8 = vadd.f32 1.0, %v8783_v60 }
 0x70a   :  { %v1793_v56 = vadd.f32 1.0, %v8785_v48  ;;  %v8787_v52 = vpop.eup %8786  ;;  %v12233_v48 = vld [vmem:[#allocation42_spill] sm:$0xff] }
 0x70b   :  { %8790 = vrcp.f32 %v1787_v8  ;;  %v8789_v28 = vpop.eup %8788  ;;  %v1800_v61 = vadd.f32 1.0, %v8787_v52  ;;  %v12231_v8 = vld [vmem:[#allocation38_spill] sm:$0xff] }
 0x70c   :  { %8792 = vrcp.f32 %v1793_v56  ;;  %v12234_v56 = vld [vmem:[#allocation44_spill] sm:$0xff] }
 0x70d   :  { %8794 = vrcp.f32 %v1800_v61  ;;  %v12236_v61 = vmov 1.0  }
 0x715   :  { %v8791_v10 = vpop.eup %8790 }
 0x716   :  { %v8793_v0 = vpop.eup %8792  ;;  %v1804_v49 = vmul.f32 %v8791_v10, %v8789_v28 }
 0x717   :  { %v1803_v24 = vmul.f32 %v8793_v0, %v10407_v43  ;;  %v8795_v57 = vpop.eup %8794  ;;  %v12232_v43 = vld [vmem:[#allocation40_spill] sm:$0xff] }
 0x719   :  { %v10701_v39 = vadd.f32 %v1804_v49, %v1803_v24  ;;  %v12237_v24 = vld [vmem:[#allocation11_spill] sm:$0xff] }
 0x71b   :  { %8796 = vtanh.f32 %v10701_v39 }
 0x725   :  { %v8797_v60 = vpop.eup %8796 }
 0x726   :  { %v10704_v25 = vmul.f32 %v8797_v60, %v8795_v57  ;;  %v12238_v57 = vld [vmem:[#allocation12_spill] sm:$0xff]  ;;  %v12239_v60 = vld [vmem:[#allocation13_spill] sm:$0xff] }
 0x728   :  { %6214 = vmatmul.mubr.f32.vlgmr.msra.gmra.mrb[10].mxu0 %v10704_v25 }
 0x729   :  { %7177 = vmatpush1.bf16.msra.mxu0 %v9108_v9  ;;  %2033 = vmatprep.mubr.f32.mxu0 %v10359_v47 }
 0x72a   :  { %7179 = vmatprep.subr.bf16.mxu0 %v9133_v17 }
 0x72d   :  { %7181 = vmatpush1.bf16.msra.mxu0 %v9147_v22 }
 0x72e   :  { %7183 = vmatprep.subr.bf16.mxu0 %v9162_v27 }
 0x731   :  { %7185 = vmatpush1.bf16.msra.mxu0 %v9185_v35 }
 0x732   :  { %7187 = vmatprep.subr.bf16.mxu0 %v9200_v40 }
 0x735   :  { %7189 = vmatpush1.bf16.msra.mxu0 %v9233_v51 }
 0x736   :  { %7191 = vmatprep.subr.bf16.mxu0 %v9239_v53 }
 0x739   :  { %7193 = vmatpush1.bf16.msra.mxu0 %v9269_v63 }
 0x73a   :  { %7195 = vmatprep.subr.bf16.mxu0 %v9275_v1 }
 0x73d   :  { %7197 = vmatpush1.bf16.msra.mxu0 %v9305_v16 }
 0x73e   :  { %7199 = vmatprep.subr.bf16.mxu0 %v9311_v20 }
 0x741   :  { %7201 = vmatpush1.bf16.msra.mxu0 %v9341_v34 }
 0x742   :  { %7203 = vmatprep.subr.bf16.mxu0 %v9347_v37 }
 0x745   :  { %7205 = vmatpush1.bf16.msra.mxu0 %v9377_v50 }
 0x746   :  { %7239 = vmatprep.subr.bf16.mxu0 %v9383_v55 }
 0x748   :  { %2034 = vmatmul.mubr.f32.vlgmr.msra.gmra.mrb[12].mxu0 %v10656_v6 }
 0x749   :  { %7241 = vmatpush1.bf16.msra.mxu0 %v9416_v11  ;;  %2175 = vmatprep.mubr.f32.mxu0 %v10359_v47 }
 0x74a   :  { %7243 = vmatprep.subr.bf16.mxu0 %v9422_v14 }
 0x74d   :  { %7245 = vmatpush1.bf16.msra.mxu0 %v9452_v38 }
 0x74e   :  { %7247 = vmatprep.subr.bf16.mxu0 %v9458_v42 }
 0x751   :  { %7249 = vmatpush1.bf16.msra.mxu0 %v9490_v62 }
 0x752   :  { %7251 = vmatprep.subr.bf16.mxu0 %v9496_v4 }
 0x755   :  { %7253 = vmatpush1.bf16.msra.mxu0 %v9526_v33 }
 0x756   :  { %7255 = vmatprep.subr.bf16.mxu0 %v9532_v46 }
 0x759   :  { %7257 = vmatpush1.bf16.msra.mxu0 %v9562_v23 }
 0x75a   :  { %7259 = vmatprep.subr.bf16.mxu0 %v9568_v29 }
 0x75d   :  { %7261 = vmatpush1.bf16.msra.mxu0 %v9598_v15 }
 0x75e   :  { %7263 = vmatprep.subr.bf16.mxu0 %v9604_v58 }
 0x761   :  { %7265 = vmatpush1.bf16.msra.mxu0 %v12231_v8 }
 0x762   :  { %7267 = vmatprep.subr.bf16.mxu0 %v12232_v43 }
 0x765   :  { %7269 = vmatpush1.bf16.msra.mxu0 %v12233_v48 }
 0x766   :  { %7303 = vmatprep.subr.bf16.mxu0 %v12234_v56 }
 0x7fb   :  { %v1874_v30 = vpop.f32.mrb[10].mxu0 }
 0x7fc   :  { %v1875_v28 = vadd.f32 %v12235_v45, %v1874_v30  ;;  %v6215_v52 = vpop.f32.mrb[11].mxu0  ;;  %v12240_v30 = vld [vmem:[#allocation14_spill] sm:$0xff]  ;;  %v12241_v45 = vld [vmem:[#allocation15_spill] sm:$0xff] }
 0x7fd   :  { %v12243_v52 = vld [vmem:[#allocation17_spill] sm:$0xff] }
 0x7fe   :  { %1879 = vst [vmem:[#allocation4 + $0x10] sm:$0xff] %v1875_v28  ;;  %1880 = vmax.xlane.f32.xlu1 %v1875_v28 }
 0x88b   :  { %v1881_v10 = vpop.xlane.xlu1 %1880 }
 0x88c   :  { %vm1882_vm3 = vcmp.eq.f32.partialorder %v1875_v28, %v1881_v10  ;;  %v12242_v28 = vld [vmem:[#allocation16_spill] sm:$0xff]  ;;  %v12244_v10 = vld [vmem:[#allocation18_spill] sm:$0xff] }
 0x88d   :  { %v1883_v0 = vsel %vm1882_vm3, %v10535_v7, 128.0 }
 0x88e   :  { %1884 = vmin.xlane.f32.xlu1 %v1883_v0  ;;  %v12245_v0 = vld [vmem:[#allocation19_spill] sm:$0xff] }
 0x91b   :  { %v1885_v49 = vpop.xlane.xlu1 %1884 }
 0x91c   :  { %vm1886_vm4 = vcmp.eq.f32.partialorder %v10535_v7, %v1885_v49  ;;  %v12246_v49 = vld [vmem:[#allocation20_spill] sm:$0xff] }
 0x91d   :  { %6249 = vmatmul.mubr.msk.f32.vlgmr.msra.gmra.mrb[10].mxu1 %vm1886_vm4, %v12236_v61  ;;  %v12272_v61 = vld [vmem:[#allocation50_spill] sm:$0xff] }
 0x91e   :  { %7209 = vmatpush1.bf16.msra.mxu1 %v9120_v13  ;;  %2104 = vmatprep.mubr.f32.mxu1 %v10359_v47  ;;  %v12247_v13 = vld [vmem:[#allocation21_spill] sm:$0xff] }
 0x91f   :  { %7211 = vmatprep.subr.bf16.mxu1 %v12237_v24  ;;  %v12248_v24 = vld [vmem:[#allocation22_spill] sm:$0xff] }
 0x922   :  { %7213 = vmatpush1.bf16.msra.mxu1 %v12238_v57  ;;  %v12249_v57 = vld [vmem:[#allocation23_spill] sm:$0xff] }
 0x923   :  { %7215 = vmatprep.subr.bf16.mxu1 %v12239_v60  ;;  %v12250_v60 = vld [vmem:[#allocation24_spill] sm:$0xff] }
 0x926   :  { %7217 = vmatpush1.bf16.msra.mxu1 %v12240_v30  ;;  %v12251_v30 = vld [vmem:[#allocation25_spill] sm:$0xff] }
 0x927   :  { %7219 = vmatprep.subr.bf16.mxu1 %v12241_v45  ;;  %v12271_v45 = vld [vmem:[#allocation49_spill] sm:$0xff] }
 0x92a   :  { %7221 = vmatpush1.bf16.msra.mxu1 %v12242_v28  ;;  %v12252_v28 = vld [vmem:[#allocation26_spill] sm:$0xff] }
 0x92b   :  { %7223 = vmatprep.subr.bf16.mxu1 %v12243_v52  ;;  %v12263_v52 = vld [vmem:[#allocation37_spill] sm:$0xff] }
 0x92e   :  { %7225 = vmatpush1.bf16.msra.mxu1 %v12244_v10  ;;  %v12253_v10 = vld [vmem:[#allocation27_spill] sm:$0xff] }
 0x92f   :  { %7227 = vmatprep.subr.bf16.mxu1 %v12245_v0  ;;  %v12254_v0 = vld [vmem:[#allocation28_spill] sm:$0xff] }
 0x932   :  { %7229 = vmatpush1.bf16.msra.mxu1 %v12246_v49  ;;  %v12255_v49 = vld [vmem:[#allocation29_spill] sm:$0xff] }
 0x933   :  { %7231 = vmatprep.subr.bf16.mxu1 %v12247_v13  ;;  %v12256_v13 = vld [vmem:[#allocation30_spill] sm:$0xff] }
 0x936   :  { %7233 = vmatpush1.bf16.msra.mxu1 %v12248_v24  ;;  %v12257_v24 = vld [vmem:[#allocation31_spill] sm:$0xff] }
 0x937   :  { %7235 = vmatprep.subr.bf16.mxu1 %v12249_v57  ;;  %v12258_v57 = vld [vmem:[#allocation32_spill] sm:$0xff] }
 0x93a   :  { %7237 = vmatpush1.bf16.msra.mxu1 %v12250_v60  ;;  %v12259_v60 = vld [vmem:[#allocation33_spill] sm:$0xff] }
 0x93b   :  { %7271 = vmatprep.subr.bf16.mxu1 %v12251_v30  ;;  %v12260_v30 = vld [vmem:[#allocation34_spill] sm:$0xff] }
 0x93d   :  { %2105 = vmatmul.mubr.f32.vlgmr.msra.gmra.mrb[12].mxu1 %v10656_v6  ;;  %v12261_v6 = vld [vmem:[#allocation35_spill] sm:$0xff] }
 0x93e   :  { %7273 = vmatpush1.bf16.msra.mxu1 %v12252_v28  ;;  %2246 = vmatprep.mubr.f32.mxu1 %v10359_v47  ;;  %v12262_v28 = vld [vmem:[#allocation36_spill] sm:$0xff] }
 0x93f   :  { %7275 = vmatprep.subr.bf16.mxu1 %v12253_v10  ;;  %v12264_v10 = vld [vmem:[#allocation39_spill] sm:$0xff] }
 0x942   :  { %7277 = vmatpush1.bf16.msra.mxu1 %v12254_v0  ;;  %v12265_v0 = vld [vmem:[#allocation41_spill] sm:$0xff] }
 0x943   :  { %7279 = vmatprep.subr.bf16.mxu1 %v12255_v49  ;;  %v12266_v49 = vld [vmem:[#allocation43_spill] sm:$0xff] }
 0x946   :  { %7281 = vmatpush1.bf16.msra.mxu1 %v12256_v13  ;;  %v12267_v13 = vld [vmem:[#allocation45_spill] sm:$0xff] }
 0x947   :  { %7283 = vmatprep.subr.bf16.mxu1 %v12257_v24 }
 0x94a   :  { %7285 = vmatpush1.bf16.msra.mxu1 %v12258_v57 }
 0x94b   :  { %7287 = vmatprep.subr.bf16.mxu1 %v12259_v60  ;;  %v1966_v60 = vstv %s1965_s5 }
 0x94e   :  { %7289 = vmatpush1.bf16.msra.mxu1 %v12260_v30  ;;  %v5842_v30 = vld [vmem:[%s11731_s1 + $0x10] sm:$0xff] }
 0x94f   :  { %7291 = vmatprep.subr.bf16.mxu1 %v12261_v6  ;;  %v1963_v6 = vstv %s1962_s19 }
 0x952   :  { %7293 = vmatpush1.bf16.msra.mxu1 %v12262_v28  ;;  %v1964_v28 = vmul.f32 %v5842_v30, %v1963_v6  ;;  %v12273_v30 = vld [vmem:[#allocation51_spill] sm:$0xff]  ;;  %v12280_v6 = vld [vmem:[#allocation58_spill] sm:$0xff] }
 0x953   :  { %7295 = vmatprep.subr.bf16.mxu1 %v12263_v52 }
 0x956   :  { %7297 = vmatpush1.bf16.msra.mxu1 %v12264_v10 }
 0x957   :  { %7299 = vmatprep.subr.bf16.mxu1 %v12265_v0  ;;  %v12268_v0 = vld [vmem:[#allocation46_spill] sm:$0xff] }
 0x95a   :  { %7301 = vmatpush1.bf16.msra.mxu1 %v12266_v49  ;;  %v12269_v49 = vld [vmem:[#allocation47_spill] sm:$0xff] }
 0x95b   :  { %7335 = vmatprep.subr.bf16.mxu1 %v12267_v13  ;;  %v12270_v13 = vld [vmem:[#allocation48_spill] sm:$0xff] }
 0x9f0   :  { %v1955_v57 = vpop.f32.mrb[10].mxu1 }
 0x9f1   :  { %v1967_v52 = vmul.f32 %v1966_v60, %v1955_v57  ;;  %v6250_v24 = vpop.f32.mrb[11].mxu1  ;;  %v12275_v57 = vld [vmem:[#allocation53_spill] sm:$0xff]  ;;  %v12276_v60 = vld [vmem:[#allocation54_spill] sm:$0xff] }
 0x9f2   :  { %v12274_v24 = vld [vmem:[#allocation52_spill] sm:$0xff] }
 0x9f3   :  { %v1968_v10 = vadd.f32 %v1967_v52, %v1964_v28  ;;  %v12277_v28 = vld [vmem:[#allocation55_spill] sm:$0xff]  ;;  %v12278_v52 = vld [vmem:[#allocation56_spill] sm:$0xff] }
 0x9f5   :  { %2176 = vmatmul.mubr.f32.vlgmr.msra.gmra.mrb[12].mxu0 %v1968_v10  ;;  %2247 = vmatmul.mubr.f32.vlgmr.msra.gmra.mrb[12].mxu1 %v1968_v10  ;;  %v12279_v10 = vld [vmem:[#allocation57_spill] sm:$0xff] }
 0x9f6   :  { %7305 = vmatpush1.bf16.msra.mxu0 %v12268_v0  ;;  %7337 = vmatpush1.bf16.msra.mxu1 %v12269_v49 }
 0x9f7   :  { %7307 = vmatprep.subr.bf16.mxu0 %v12270_v13  ;;  %7339 = vmatprep.subr.bf16.mxu1 %v12271_v45  ;;  %v12281_v45 = vld [vmem:[#allocation59_spill] sm:$0xff]  ;;  %v12282_v13 = vld [vmem:[#allocation60_spill] sm:$0xff] }
 0x9f8   :  { %2345 = vmatprep.mubr.f32.mxu0 %v10359_v47  ;;  %2416 = vmatprep.mubr.f32.mxu1 %v10359_v47 }
 0x9fa   :  { %7309 = vmatpush1.bf16.msra.mxu0 %v12272_v61  ;;  %7341 = vmatpush1.bf16.msra.mxu1 %v12273_v30  ;;  %v12283_v61 = vld [vmem:[#allocation61_spill] sm:$0xff]  ;;  %v12284_v30 = vld [vmem:[#allocation62_spill] sm:$0xff] }
 0x9fb   :  { %7311 = vmatprep.subr.bf16.mxu0 %v12274_v24  ;;  %7343 = vmatprep.subr.bf16.mxu1 %v12275_v57  ;;  %v12285_v24 = vld [vmem:[#allocation63_spill] sm:$0xff]  ;;  %v12286_v57 = vld [vmem:[#allocation64_spill] sm:$0xff] }
 0x9fe   :  { %7313 = vmatpush1.bf16.msra.mxu0 %v12276_v60  ;;  %7345 = vmatpush1.bf16.msra.mxu1 %v12277_v28  ;;  %v12287_v60 = vld [vmem:[#allocation65_spill] sm:$0xff]  ;;  %v12288_v28 = vld [vmem:[#allocation66_spill] sm:$0xff] }
 0x9ff   :  { %7315 = vmatprep.subr.bf16.mxu0 %v12278_v52  ;;  %7347 = vmatprep.subr.bf16.mxu1 %v12279_v10  ;;  %v12289_v52 = vld [vmem:[#allocation67_spill] sm:$0xff]  ;;  %v12290_v10 = vld [vmem:[#allocation68_spill] sm:$0xff] }
 0xa02   :  { %7317 = vmatpush1.bf16.msra.mxu0 %v12280_v6  ;;  %7349 = vmatpush1.bf16.msra.mxu1 %v12281_v45  ;;  %v12291_v6 = vld [vmem:[#allocation69_spill] sm:$0xff]  ;;  %v12292_v45 = vld [vmem:[#allocation70_spill] sm:$0xff] }
 0xa03   :  { %7319 = vmatprep.subr.bf16.mxu0 %v12282_v13  ;;  %7351 = vmatprep.subr.bf16.mxu1 %v12283_v61  ;;  %v12293_v13 = vld [vmem:[#allocation71_spill] sm:$0xff]  ;;  %v12294_v61 = vld [vmem:[#allocation72_spill] sm:$0xff] }
 0xa06   :  { %7321 = vmatpush1.bf16.msra.mxu0 %v12284_v30  ;;  %7353 = vmatpush1.bf16.msra.mxu1 %v12285_v24  ;;  %v12295_v30 = vld [vmem:[#allocation73_spill] sm:$0xff]  ;;  %v12296_v24 = vld [vmem:[#allocation74_spill] sm:$0xff] }
 0xa07   :  { %7323 = vmatprep.subr.bf16.mxu0 %v12286_v57  ;;  %7355 = vmatprep.subr.bf16.mxu1 %v12287_v60  ;;  %v12297_v57 = vld [vmem:[#allocation75_spill] sm:$0xff]  ;;  %v12298_v60 = vld [vmem:[#allocation76_spill] sm:$0xff] }
 0xa0a   :  { %7325 = vmatpush1.bf16.msra.mxu0 %v12288_v28  ;;  %7357 = vmatpush1.bf16.msra.mxu1 %v12289_v52  ;;  %v12299_v28 = vld [vmem:[#allocation77_spill] sm:$0xff] }
 0xa0b   :  { %7327 = vmatprep.subr.bf16.mxu0 %v12290_v10  ;;  %7359 = vmatprep.subr.bf16.mxu1 %v12291_v6  ;;  %v12300_v6 = vld [vmem:[#allocation78_spill] sm:$0xff]  ;;  %v12331_v10 = vld [vmem:[#allocation109_spill] sm:$0xff] }
 0xa0e   :  { %7329 = vmatpush1.bf16.msra.mxu0 %v12292_v45  ;;  %7361 = vmatpush1.bf16.msra.mxu1 %v12293_v13  ;;  %v12301_v45 = vld [vmem:[#allocation79_spill] sm:$0xff]  ;;  %v12302_v13 = vld [vmem:[#allocation80_spill] sm:$0xff] }
 0xa0f   :  { %7331 = vmatprep.subr.bf16.mxu0 %v12294_v61  ;;  %7363 = vmatprep.subr.bf16.mxu1 %v12295_v30  ;;  %v12303_v61 = vld [vmem:[#allocation81_spill] sm:$0xff]  ;;  %v12313_v30 = vld [vmem:[#allocation91_spill] sm:$0xff] }
 0xa12   :  { %7333 = vmatpush1.bf16.msra.mxu0 %v12296_v24  ;;  %7365 = vmatpush1.bf16.msra.mxu1 %v12297_v57  ;;  %v12304_v57 = vld [vmem:[#allocation82_spill] sm:$0xff]  ;;  %v12307_v24 = vld [vmem:[#allocation85_spill] sm:$0xff] }
 0xa13   :  { %7367 = vmatprep.subr.bf16.mxu0 %v12298_v60  ;;  %7399 = vmatprep.subr.bf16.mxu1 %v12299_v28  ;;  %v12305_v60 = vld [vmem:[#allocation83_spill] sm:$0xff]  ;;  %v12306_v28 = vld [vmem:[#allocation84_spill] sm:$0xff] }
 0xa15   :  { %2346 = vmatmul.mubr.f32.vlgmr.msra.gmra.mrb[14].mxu0 %v10704_v25  ;;  %2417 = vmatmul.mubr.f32.vlgmr.msra.gmra.mrb[14].mxu1 %v10704_v25  ;;  %v12308_v25 = vld [vmem:[#allocation86_spill] sm:$0xff] }
 0xa16   :  { %7369 = vmatpush1.bf16.msra.mxu0 %v12300_v6  ;;  %7401 = vmatpush1.bf16.msra.mxu1 %v12301_v45  ;;  %v12309_v6 = vld [vmem:[#allocation87_spill] sm:$0xff]  ;;  %v12310_v45 = vld [vmem:[#allocation88_spill] sm:$0xff] }
 0xa17   :  { %7371 = vmatprep.subr.bf16.mxu0 %v12302_v13  ;;  %7403 = vmatprep.subr.bf16.mxu1 %v12303_v61  ;;  %v12311_v13 = vld [vmem:[#allocation89_spill] sm:$0xff]  ;;  %v12312_v61 = vld [vmem:[#allocation90_spill] sm:$0xff] }
 0xa18   :  { %2487 = vmatprep.mubr.f32.mxu0 %v10359_v47  ;;  %2558 = vmatprep.mubr.f32.mxu1 %v10359_v47  ;;  %v12314_v47 = vld [vmem:[#allocation92_spill] sm:$0xff] }
 0xa1a   :  { %7373 = vmatpush1.bf16.msra.mxu0 %v12304_v57  ;;  %7405 = vmatpush1.bf16.msra.mxu1 %v12305_v60  ;;  %v12315_v57 = vld [vmem:[#allocation93_spill] sm:$0xff]  ;;  %v12316_v60 = vld [vmem:[#allocation94_spill] sm:$0xff] }
 0xa1b   :  { %7375 = vmatprep.subr.bf16.mxu0 %v12306_v28  ;;  %7407 = vmatprep.subr.bf16.mxu1 %v12307_v24  ;;  %v12317_v28 = vld [vmem:[#allocation95_spill] sm:$0xff]  ;;  %v12318_v24 = vld [vmem:[#allocation96_spill] sm:$0xff] }
 0xa1e   :  { %7377 = vmatpush1.bf16.msra.mxu0 %v12308_v25  ;;  %7409 = vmatpush1.bf16.msra.mxu1 %v12309_v6  ;;  %v12319_v25 = vld [vmem:[#allocation97_spill] sm:$0xff]  ;;  %v12320_v6 = vld [vmem:[#allocation98_spill] sm:$0xff] }
 0xa1f   :  { %7379 = vmatprep.subr.bf16.mxu0 %v12310_v45  ;;  %7411 = vmatprep.subr.bf16.mxu1 %v12311_v13  ;;  %v12321_v45 = vld [vmem:[#allocation99_spill] sm:$0xff]  ;;  %v12322_v13 = vld [vmem:[#allocation100_spill] sm:$0xff] }
 0xa22   :  { %7381 = vmatpush1.bf16.msra.mxu0 %v12312_v61  ;;  %7413 = vmatpush1.bf16.msra.mxu1 %v12313_v30  ;;  %v12323_v61 = vld [vmem:[#allocation101_spill] sm:$0xff]  ;;  %v12324_v30 = vld [vmem:[#allocation102_spill] sm:$0xff] }
 0xa23   :  { %7383 = vmatprep.subr.bf16.mxu0 %v12314_v47  ;;  %7415 = vmatprep.subr.bf16.mxu1 %v12315_v57  ;;  %v12325_v47 = vld [vmem:[#allocation103_spill] sm:$0xff]  ;;  %v12326_v57 = vld [vmem:[#allocation104_spill] sm:$0xff] }
 0xa26   :  { %7385 = vmatpush1.bf16.msra.mxu0 %v12316_v60  ;;  %7417 = vmatpush1.bf16.msra.mxu1 %v12317_v28  ;;  %v12327_v60 = vld [vmem:[#allocation105_spill] sm:$0xff]  ;;  %v12328_v28 = vld [vmem:[#allocation106_spill] sm:$0xff] }
 0xa27   :  { %7387 = vmatprep.subr.bf16.mxu0 %v12318_v24  ;;  %7419 = vmatprep.subr.bf16.mxu1 %v12319_v25  ;;  %v12329_v24 = vld [vmem:[#allocation107_spill] sm:$0xff] }
 0xa2a   :  { %7389 = vmatpush1.bf16.msra.mxu0 %v12320_v6  ;;  %7421 = vmatpush1.bf16.msra.mxu1 %v12321_v45  ;;  %v12330_v6 = vld [vmem:[#allocation108_spill] sm:$0xff] }
 0xa2b   :  { %7391 = vmatprep.subr.bf16.mxu0 %v12322_v13  ;;  %7423 = vmatprep.subr.bf16.mxu1 %v12323_v61 }
 0xa2e   :  { %7393 = vmatpush1.bf16.msra.mxu0 %v12324_v30  ;;  %7425 = vmatpush1.bf16.msra.mxu1 %v12325_v47 }
 0xa2f   :  { %7395 = vmatprep.subr.bf16.mxu0 %v12326_v57  ;;  %7427 = vmatprep.subr.bf16.mxu1 %v12327_v60 }
 0xa32   :  { %7397 = vmatpush1.bf16.msra.mxu0 %v12328_v28  ;;  %7429 = vmatpush1.bf16.msra.mxu1 %v12329_v24 }
 0xa33   :  { %7430 = vmatprep.subr.bf16.mxu0 %v12123_v12  ;;  %7454 = vmatprep.subr.bf16.mxu1 %v12123_v12 }
 0xac8   :  { %v2177_v45 = vpop.f32.mrb[12].mxu0  ;;  %v2248_v13 = vpop.f32.mrb[12].mxu1 }
 0xac9   :  { %v2253_v61 = vadd.f32 %v2177_v45, %v12330_v6  ;;  %v2179_v25 = vpop.f32.mrb[13].mxu0  ;;  %v2250_v30 = vpop.f32.mrb[13].mxu1  ;;  %v2255_v24 = vadd.f32 %v2248_v13, %v12219_v5 }
 0xaca   :  { %v2254_v47 = vadd.f32 %v2179_v25, %v12331_v10  ;;  %v2256_v28 = vadd.f32 %v2250_v30, %v12218_v54 }
 0xacb   :  { %v5844_v52 = vmul.f32 -1.442695, %v2253_v61 }
 0xacc   :  { %v5845_v57 = vmul.f32 -1.442695, %v2254_v47  ;;  %v5846_v60 = vmul.f32 -1.442695, %v2256_v28  ;;  %v12336_v28 = vld [vmem:[#allocation119_spill] sm:$0xff] }
 0xacd   :  { %8798 = vpow2.f32 %v5844_v52 }
 0xace   :  { %8800 = vpow2.f32 %v5845_v57 }
 0xacf   :  { %8802 = vpow2.f32 %v5846_v60 }
 0xad0   :  { %8804 = vtanh.f32 %v2255_v24  ;;  %v12335_v24 = vld [vmem:[#allocation127_spill] sm:$0xff] }
 0xad7   :  { %v8799_v49 = vpop.eup %8798 }
 0xad8   :  { %v8801_v0 = vpop.eup %8800  ;;  %v2260_v7 = vadd.f32 1.0, %v8799_v49 }
 0xad9   :  { %v2266_v56 = vadd.f32 1.0, %v8801_v0  ;;  %v8803_v45 = vpop.eup %8802  ;;  %v12334_v0 = vld [vmem:[#allocation118_spill] sm:$0xff] }
 0xada   :  { %8806 = vrcp.f32 %v2260_v7  ;;  %v8805_v6 = vpop.eup %8804  ;;  %v2273_v52 = vadd.f32 1.0, %v8803_v45  ;;  %v10867_v7 = vld [vmem:[#allocation4] sm:$0xff] }
 0xadb   :  { %8808 = vrcp.f32 %v2266_v56  ;;  %v12333_v56 = vld [vmem:[#allocation126_spill] sm:$0xff]  ;;  %v12338_v45 = vld [vmem:[#allocation120_spill] sm:$0xff] }
 0xadc   :  { %8810 = vrcp.f32 %v2273_v52 }
 0xae4   :  { %v8807_v25 = vpop.eup %8806 }
 0xae5   :  { %v8809_v61 = vpop.eup %8808  ;;  %v2277_v47 = vmul.f32 %v8807_v25, %v8805_v6  ;;  %v12337_v6 = vld [vmem:[#allocation128_spill] sm:$0xff] }
 0xae6   :  { %v2276_v57 = vmul.f32 %v8809_v61, %v10653_v3  ;;  %v8811_v13 = vpop.eup %8810  ;;  %v12332_v3 = vld [vmem:[#allocation117_spill] sm:$0xff]  ;;  %v12339_v25 = vld [vmem:[#allocation8_spill] sm:$0xff] }
 0xae7   :  { %v12340_v61 = vld [vmem:[#allocation129_spill] sm:$0xff] }
 0xae8   :  { %v10859_v30 = vadd.f32 %v2277_v47, %v2276_v57  ;;  %v12341_v47 = vld [vmem:[#allocation9_spill] sm:$0xff] }
 0xaea   :  { %8812 = vtanh.f32 %v10859_v30 }
 0xaf4   :  { %v8813_v49 = vpop.eup %8812 }
 0xaf5   :  { %v10862_v60 = vmul.f32 %v8813_v49, %v8811_v13  ;;  %v12342_v13 = vld [vmem:[#allocation121_spill] sm:$0xff] }
 0xaf7   :  { %2488 = vmatmul.mubr.f32.vlgmr.msra.gmra.mrb[14].mxu0 %v10862_v60  ;;  %2559 = vmatmul.mubr.f32.vlgmr.msra.gmra.mrb[14].mxu1 %v10862_v60 }
 0xaf8   :  { %7432 = vmatpush3.bf16.msra.mxu0 %v12221_v18  ;;  %6283 = vmatprep.mubr.msk.f32.mxu0 %vm9005_vm0, %v10867_v7 }
 0xaf9   :  { %7433 = vmatprep.subr.bf16.mxu0 %v12123_v12  ;;  %7456 = vmatpush3.bf16.msra.mxu1 %v10463_v41 }
 0xafa   :  { %7457 = vmatprep.subr.bf16.mxu1 %v12123_v12  ;;  %6318 = vmatprep.mubr.msk.f32.mxu1 %vm9005_vm0, %v10867_v7 }
 0xafc   :  { %7435 = vmatpush3.bf16.msra.mxu0 %v12222_v26 }
 0xafd   :  { %7436 = vmatprep.subr.bf16.mxu0 %v12123_v12  ;;  %7459 = vmatpush3.bf16.msra.mxu1 %v10469_v36 }
 0xafe   :  { %7460 = vmatprep.subr.bf16.mxu1 %v12123_v12 }
 0xb00   :  { %7438 = vmatpush3.bf16.msra.mxu0 %v12223_v31 }
 0xb01   :  { %7439 = vmatprep.subr.bf16.mxu0 %v12123_v12  ;;  %7462 = vmatpush3.bf16.msra.mxu1 %v10479_v19 }
 0xb02   :  { %7463 = vmatprep.subr.bf16.mxu1 %v12123_v12 }
 0xb04   :  { %7441 = vmatpush3.bf16.msra.mxu0 %v12224_v44 }
 0xb05   :  { %7442 = vmatprep.subr.bf16.mxu0 %v12123_v12  ;;  %7465 = vmatpush3.bf16.msra.mxu1 %v10489_v2 }
 0xb06   :  { %7466 = vmatprep.subr.bf16.mxu1 %v12123_v12 }
 0xb08   :  { %7444 = vmatpush3.bf16.msra.mxu0 %v12332_v3 }
 0xb09   :  { %7445 = vmatprep.subr.bf16.mxu0 %v12123_v12  ;;  %7468 = vmatpush3.bf16.msra.mxu1 %v12333_v56 }
 0xb0a   :  { %7469 = vmatprep.subr.bf16.mxu1 %v12123_v12 }
 0xb0c   :  { %7447 = vmatpush3.bf16.msra.mxu0 %v12334_v0 }
 0xb0d   :  { %7448 = vmatprep.subr.bf16.mxu0 %v12123_v12  ;;  %7471 = vmatpush3.bf16.msra.mxu1 %v12335_v24 }
 0xb0e   :  { %7472 = vmatprep.subr.bf16.mxu1 %v12123_v12 }
 0xb10   :  { %7450 = vmatpush3.bf16.msra.mxu0 %v12336_v28 }
 0xb11   :  { %7451 = vmatprep.subr.bf16.mxu0 %v12123_v12  ;;  %7474 = vmatpush3.bf16.msra.mxu1 %v12337_v6 }
 0xb12   :  { %7475 = vmatprep.subr.bf16.mxu1 %v12123_v12 }
 0xb14   :  { %7453 = vmatpush3.bf16.msra.mxu0 %v12338_v45 }
 0xb15   :  { %7479 = vmatprep.subr.bf16.mxu0 %v12339_v25  ;;  %7477 = vmatpush3.bf16.msra.mxu1 %v12340_v61 }
 0xb16   :  { %7511 = vmatprep.subr.bf16.mxu1 %v12341_v47 }
 0xbca   :  { %v2489_v52 = vpop.f32.mrb[14].mxu0  ;;  %v2560_v57 = vpop.f32.mrb[14].mxu1 }
 0xbcb   :  { %v2565_v49 = vadd.f32 %v2489_v52, %v12342_v13  ;;  %v2491_v24 = vpop.f32.mrb[15].mxu0  ;;  %v2562_v28 = vpop.f32.mrb[15].mxu1  ;;  %v2567_v25 = vadd.f32 %v2560_v57, %v10401_v59 }
 0xbcc   :  { %v2566_v0 = vadd.f32 %v2491_v24, %v10390_v32  ;;  %v2568_v45 = vadd.f32 %v2562_v28, %v10396_v21 }
 0xbcd   :  { %v5847_v56 = vmul.f32 -1.442695, %v2565_v49 }
 0xbce   :  { %v5848_v6 = vmul.f32 -1.442695, %v2566_v0  ;;  %v5849_v3 = vmul.f32 -1.442695, %v2568_v45 }
 0xbcf   :  { %8814 = vpow2.f32 %v5847_v56 }
 0xbd0   :  { %8816 = vpow2.f32 %v5848_v6 }
 0xbd1   :  { %8818 = vpow2.f32 %v5849_v3 }
 0xbd2   :  { %8820 = vtanh.f32 %v2567_v25 }
 0xbd9   :  { %v8815_v61 = vpop.eup %8814 }
 0xbda   :  { %v8817_v2 = vpop.eup %8816  ;;  %v2572_v47 = vadd.f32 1.0, %v8815_v61 }
 0xbdb   :  { %v2578_v44 = vadd.f32 1.0, %v8817_v2  ;;  %v8819_v52 = vpop.eup %8818  ;;  %v12343_v2 = vld [vmem:[#allocation44_spill] sm:$0xff] }
 0xbdc   :  { %8822 = vrcp.f32 %v2572_v47  ;;  %v8821_v13 = vpop.eup %8820  ;;  %v2585_v56 = vadd.f32 1.0, %v8819_v52 }
 0xbdd   :  { %8824 = vrcp.f32 %v2578_v44 }
 0xbde   :  { %8826 = vrcp.f32 %v2585_v56  ;;  %v12348_v56 = vld [vmem:[#allocation11_spill] sm:$0xff] }
 0xbe6   :  { %v8823_v24 = vpop.eup %8822 }
 0xbe7   :  { %v8825_v49 = vpop.eup %8824  ;;  %v2589_v0 = vmul.f32 %v8823_v24, %v8821_v13  ;;  %v12345_v13 = vld [vmem:[#allocation130_spill] sm:$0xff] }
 0xbe8   :  { %v2588_v6 = vmul.f32 %v8825_v49, %v10701_v39  ;;  %v8827_v45 = vpop.eup %8826  ;;  %v10953_v39 = vld [vmem:[%s11740_s10] ss:$0 sm:$0xff]  ;;  %v12346_v49 = vmov 1.0  }
 0xbe9   :  { %12344 = vst [vmem:[#allocation110_spill] sm:$0xff] %v10953_v39 }
 0xbea   :  { %v10909_v28 = vadd.f32 %v2589_v0, %v2588_v6  ;;  %v12347_v0 = vld [vmem:[#allocation10_spill] sm:$0xff]  ;;  %v12349_v6 = vld [vmem:[#allocation12_spill] sm:$0xff] }
 0xbec   :  { %8828 = vtanh.f32 %v10909_v28 }
 0xbf6   :  { %v8829_v61 = vpop.eup %8828 }
 0xbf7   :  { %v10912_v3 = vmul.f32 %v8829_v61, %v8827_v45  ;;  %v12350_v45 = vld [vmem:[#allocation13_spill] sm:$0xff]  ;;  %v12351_v61 = vld [vmem:[#allocation14_spill] sm:$0xff] }
 0xbf9   :  { %6284 = vmatmul.mubr.f32.vlgmr.msra.gmra.mrb[16].mxu0 %v10912_v3 }
 0xbfa   :  { %7481 = vmatpush1.bf16.msra.mxu0 %v9108_v9  ;;  %2818 = vmatprep.mubr.f32.mxu0 %v10867_v7 }
 0xbfb   :  { %7483 = vmatprep.subr.bf16.mxu0 %v9133_v17 }
 0xbfe   :  { %7485 = vmatpush1.bf16.msra.mxu0 %v9147_v22 }
 0xbff   :  { %7487 = vmatprep.subr.bf16.mxu0 %v9162_v27 }
 0xc02   :  { %7489 = vmatpush1.bf16.msra.mxu0 %v9185_v35 }
 0xc03   :  { %7491 = vmatprep.subr.bf16.mxu0 %v9200_v40 }
 0xc06   :  { %7493 = vmatpush1.bf16.msra.mxu0 %v9233_v51 }
 0xc07   :  { %7495 = vmatprep.subr.bf16.mxu0 %v9239_v53 }
 0xc0a   :  { %7497 = vmatpush1.bf16.msra.mxu0 %v9269_v63 }
 0xc0b   :  { %7499 = vmatprep.subr.bf16.mxu0 %v9275_v1 }
 0xc0e   :  { %7501 = vmatpush1.bf16.msra.mxu0 %v9305_v16 }
 0xc0f   :  { %7503 = vmatprep.subr.bf16.mxu0 %v9311_v20 }
 0xc12   :  { %7505 = vmatpush1.bf16.msra.mxu0 %v9341_v34 }
 0xc13   :  { %7507 = vmatprep.subr.bf16.mxu0 %v9347_v37 }
 0xc16   :  { %7509 = vmatpush1.bf16.msra.mxu0 %v9377_v50 }
 0xc17   :  { %7543 = vmatprep.subr.bf16.mxu0 %v9383_v55 }
 0xc19   :  { %2819 = vmatmul.mubr.f32.vlgmr.msra.gmra.mrb[18].mxu0 %v10862_v60 }
 0xc1a   :  { %7545 = vmatpush1.bf16.msra.mxu0 %v9416_v11  ;;  %2960 = vmatprep.mubr.f32.mxu0 %v10867_v7 }
 0xc1b   :  { %7547 = vmatprep.subr.bf16.mxu0 %v9422_v14 }
 0xc1e   :  { %7549 = vmatpush1.bf16.msra.mxu0 %v9452_v38 }
 0xc1f   :  { %7551 = vmatprep.subr.bf16.mxu0 %v9458_v42 }
 0xc22   :  { %7553 = vmatpush1.bf16.msra.mxu0 %v9490_v62 }
 0xc23   :  { %7555 = vmatprep.subr.bf16.mxu0 %v9496_v4 }
 0xc26   :  { %7557 = vmatpush1.bf16.msra.mxu0 %v9526_v33 }
 0xc27   :  { %7559 = vmatprep.subr.bf16.mxu0 %v9532_v46 }
 0xc2a   :  { %7561 = vmatpush1.bf16.msra.mxu0 %v9562_v23 }
 0xc2b   :  { %7563 = vmatprep.subr.bf16.mxu0 %v9568_v29 }
 0xc2e   :  { %7565 = vmatpush1.bf16.msra.mxu0 %v9598_v15 }
 0xc2f   :  { %7567 = vmatprep.subr.bf16.mxu0 %v9604_v58 }
 0xc32   :  { %7569 = vmatpush1.bf16.msra.mxu0 %v12231_v8 }
 0xc33   :  { %7571 = vmatprep.subr.bf16.mxu0 %v12232_v43 }
 0xc36   :  { %7573 = vmatpush1.bf16.msra.mxu0 %v12233_v48 }
 0xc37   :  { %7607 = vmatprep.subr.bf16.mxu0 %v12343_v2 }
 0xccc   :  { %v2659_v44 = vpop.f32.mrb[16].mxu0 }
 0xccd   :  { %v2660_v25 = vadd.f32 %v10953_v39, %v2659_v44  ;;  %v6285_v47 = vpop.f32.mrb[17].mxu0  ;;  %v12352_v44 = vld [vmem:[#allocation15_spill] sm:$0xff] }
 0xcce   :  { %v12354_v47 = vld [vmem:[#allocation17_spill] sm:$0xff] }
 0xccf   :  { %2664 = vst [vmem:[#allocation4 + $0x18] sm:$0xff] %v2660_v25  ;;  %2665 = vmax.xlane.f32.xlu0 %v2660_v25 }
 0xd5c   :  { %v2666_v57 = vpop.xlane.xlu0 %2665 }
 0xd5d   :  { %vm2667_vm5 = vcmp.eq.f32.partialorder %v2660_v25, %v2666_v57  ;;  %v12353_v25 = vld [vmem:[#allocation16_spill] sm:$0xff]  ;;  %v12355_v57 = vld [vmem:[#allocation18_spill] sm:$0xff] }
 0xd5e   :  { %v2668_v52 = vsel %vm2667_vm5, %v12345_v13, 128.0 }
 0xd5f   :  { %2669 = vmin.xlane.f32.xlu1 %v2668_v52  ;;  %v12356_v52 = vld [vmem:[#allocation19_spill] sm:$0xff] }
 0xdec   :  { %v2670_v24 = vpop.xlane.xlu1 %2669 }
 0xded   :  { %vm2671_vm6 = vcmp.eq.f32.partialorder %v12345_v13, %v2670_v24  ;;  %v12357_v24 = vld [vmem:[#allocation20_spill] sm:$0xff] }
 0xdee   :  { %6319 = vmatmul.mubr.msk.f32.vlgmr.msra.gmra.mrb[16].mxu1 %vm2671_vm6, %v12346_v49  ;;  %v12383_v49 = vld [vmem:[#allocation50_spill] sm:$0xff] }
 0xdef   :  { %7513 = vmatpush1.bf16.msra.mxu1 %v12347_v0  ;;  %2889 = vmatprep.mubr.f32.mxu1 %v10867_v7  ;;  %v12358_v0 = vld [vmem:[#allocation21_spill] sm:$0xff] }
 0xdf0   :  { %7515 = vmatprep.subr.bf16.mxu1 %v12348_v56  ;;  %v12359_v56 = vld [vmem:[#allocation22_spill] sm:$0xff] }
 0xdf3   :  { %7517 = vmatpush1.bf16.msra.mxu1 %v12349_v6  ;;  %v12360_v6 = vld [vmem:[#allocation23_spill] sm:$0xff] }
 0xdf4   :  { %7519 = vmatprep.subr.bf16.mxu1 %v12350_v45  ;;  %v12361_v45 = vld [vmem:[#allocation24_spill] sm:$0xff] }
 0xdf7   :  { %7521 = vmatpush1.bf16.msra.mxu1 %v12351_v61  ;;  %v12362_v61 = vld [vmem:[#allocation25_spill] sm:$0xff] }
 0xdf8   :  { %7523 = vmatprep.subr.bf16.mxu1 %v12352_v44  ;;  %v12382_v44 = vld [vmem:[#allocation49_spill] sm:$0xff] }
 0xdfb   :  { %7525 = vmatpush1.bf16.msra.mxu1 %v12353_v25  ;;  %v12363_v25 = vld [vmem:[#allocation26_spill] sm:$0xff] }
 0xdfc   :  { %7527 = vmatprep.subr.bf16.mxu1 %v12354_v47  ;;  %v12374_v47 = vld [vmem:[#allocation37_spill] sm:$0xff] }
 0xdff   :  { %7529 = vmatpush1.bf16.msra.mxu1 %v12355_v57  ;;  %v12364_v57 = vld [vmem:[#allocation27_spill] sm:$0xff] }
 0xe00   :  { %7531 = vmatprep.subr.bf16.mxu1 %v12356_v52  ;;  %v12365_v52 = vld [vmem:[#allocation28_spill] sm:$0xff] }
 0xe03   :  { %7533 = vmatpush1.bf16.msra.mxu1 %v12357_v24  ;;  %v12366_v24 = vld [vmem:[#allocation29_spill] sm:$0xff] }
 0xe04   :  { %7535 = vmatprep.subr.bf16.mxu1 %v12358_v0  ;;  %v12367_v0 = vld [vmem:[#allocation30_spill] sm:$0xff] }
 0xe07   :  { %7537 = vmatpush1.bf16.msra.mxu1 %v12359_v56  ;;  %v12368_v56 = vld [vmem:[#allocation31_spill] sm:$0xff] }
 0xe08   :  { %7539 = vmatprep.subr.bf16.mxu1 %v12360_v6  ;;  %v12369_v6 = vld [vmem:[#allocation32_spill] sm:$0xff] }
 0xe0b   :  { %7541 = vmatpush1.bf16.msra.mxu1 %v12361_v45  ;;  %v12370_v45 = vld [vmem:[#allocation33_spill] sm:$0xff] }
 0xe0c   :  { %7575 = vmatprep.subr.bf16.mxu1 %v12362_v61  ;;  %v12371_v61 = vld [vmem:[#allocation34_spill] sm:$0xff] }
 0xe0e   :  { %2890 = vmatmul.mubr.f32.vlgmr.msra.gmra.mrb[18].mxu1 %v10862_v60  ;;  %v12372_v60 = vld [vmem:[#allocation35_spill] sm:$0xff] }
 0xe0f   :  { %7577 = vmatpush1.bf16.msra.mxu1 %v12363_v25  ;;  %3031 = vmatprep.mubr.f32.mxu1 %v10867_v7  ;;  %v12373_v25 = vld [vmem:[#allocation36_spill] sm:$0xff] }
 0xe10   :  { %7579 = vmatprep.subr.bf16.mxu1 %v12364_v57  ;;  %v12375_v57 = vld [vmem:[#allocation39_spill] sm:$0xff] }
 0xe13   :  { %7581 = vmatpush1.bf16.msra.mxu1 %v12365_v52  ;;  %v12376_v52 = vld [vmem:[#allocation41_spill] sm:$0xff] }
 0xe14   :  { %7583 = vmatprep.subr.bf16.mxu1 %v12366_v24  ;;  %v12377_v24 = vld [vmem:[#allocation43_spill] sm:$0xff] }
 0xe17   :  { %7585 = vmatpush1.bf16.msra.mxu1 %v12367_v0  ;;  %v12378_v0 = vld [vmem:[#allocation45_spill] sm:$0xff] }
 0xe18   :  { %7587 = vmatprep.subr.bf16.mxu1 %v12368_v56 }
 0xe1b   :  { %7589 = vmatpush1.bf16.msra.mxu1 %v12369_v6 }
 0xe1c   :  { %7591 = vmatprep.subr.bf16.mxu1 %v12370_v45  ;;  %v2751_v45 = vstv %s2750_s24 }
 0xe1f   :  { %7593 = vmatpush1.bf16.msra.mxu1 %v12371_v61  ;;  %v5852_v61 = vld [vmem:[%s11731_s1 + $0x18] sm:$0xff] }
 0xe20   :  { %7595 = vmatprep.subr.bf16.mxu1 %v12372_v60  ;;  %v2748_v60 = vstv %s2747_s23 }
 0xe23   :  { %7597 = vmatpush1.bf16.msra.mxu1 %v12373_v25  ;;  %v2749_v25 = vmul.f32 %v5852_v61, %v2748_v60  ;;  %v12384_v61 = vld [vmem:[#allocation51_spill] sm:$0xff]  ;;  %v12391_v60 = vld [vmem:[#allocation58_spill] sm:$0xff] }
 0xe24   :  { %7599 = vmatprep.subr.bf16.mxu1 %v12374_v47 }
 0xe27   :  { %7601 = vmatpush1.bf16.msra.mxu1 %v12375_v57 }
 0xe28   :  { %7603 = vmatprep.subr.bf16.mxu1 %v12376_v52  ;;  %v12379_v52 = vld [vmem:[#allocation46_spill] sm:$0xff] }
 0xe2b   :  { %7605 = vmatpush1.bf16.msra.mxu1 %v12377_v24  ;;  %v12380_v24 = vld [vmem:[#allocation47_spill] sm:$0xff] }
 0xe2c   :  { %7639 = vmatprep.subr.bf16.mxu1 %v12378_v0  ;;  %v12381_v0 = vld [vmem:[#allocation48_spill] sm:$0xff] }
 0xec1   :  { %v2740_v6 = vpop.f32.mrb[16].mxu1 }
 0xec2   :  { %v2752_v47 = vmul.f32 %v2751_v45, %v2740_v6  ;;  %v6320_v56 = vpop.f32.mrb[17].mxu1  ;;  %v12386_v6 = vld [vmem:[#allocation53_spill] sm:$0xff]  ;;  %v12387_v45 = vld [vmem:[#allocation54_spill] sm:$0xff] }
 0xec3   :  { %v12385_v56 = vld [vmem:[#allocation52_spill] sm:$0xff] }
 0xec4   :  { %v2753_v57 = vadd.f32 %v2752_v47, %v2749_v25  ;;  %v12388_v25 = vld [vmem:[#allocation55_spill] sm:$0xff]  ;;  %v12389_v47 = vld [vmem:[#allocation56_spill] sm:$0xff] }
 0xec6   :  { %2961 = vmatmul.mubr.f32.vlgmr.msra.gmra.mrb[18].mxu0 %v2753_v57  ;;  %3032 = vmatmul.mubr.f32.vlgmr.msra.gmra.mrb[18].mxu1 %v2753_v57  ;;  %v12390_v57 = vld [vmem:[#allocation57_spill] sm:$0xff] }
 0xec7   :  { %7609 = vmatpush1.bf16.msra.mxu0 %v12379_v52  ;;  %7641 = vmatpush1.bf16.msra.mxu1 %v12380_v24 }
 0xec8   :  { %7611 = vmatprep.subr.bf16.mxu0 %v12381_v0  ;;  %7643 = vmatprep.subr.bf16.mxu1 %v12382_v44  ;;  %v12392_v44 = vld [vmem:[#allocation59_spill] sm:$0xff]  ;;  %v12393_v0 = vld [vmem:[#allocation60_spill] sm:$0xff] }
 0xec9   :  { %3130 = vmatprep.mubr.f32.mxu0 %v10867_v7  ;;  %3201 = vmatprep.mubr.f32.mxu1 %v10867_v7 }
 0xecb   :  { %7613 = vmatpush1.bf16.msra.mxu0 %v12383_v49  ;;  %7645 = vmatpush1.bf16.msra.mxu1 %v12384_v61  ;;  %v12394_v49 = vld [vmem:[#allocation61_spill] sm:$0xff]  ;;  %v12395_v61 = vld [vmem:[#allocation62_spill] sm:$0xff] }
 0xecc   :  { %7615 = vmatprep.subr.bf16.mxu0 %v12385_v56  ;;  %7647 = vmatprep.subr.bf16.mxu1 %v12386_v6  ;;  %v12396_v56 = vld [vmem:[#allocation63_spill] sm:$0xff]  ;;  %v12397_v6 = vld [vmem:[#allocation64_spill] sm:$0xff] }
 0xecf   :  { %7617 = vmatpush1.bf16.msra.mxu0 %v12387_v45  ;;  %7649 = vmatpush1.bf16.msra.mxu1 %v12388_v25  ;;  %v12398_v45 = vld [vmem:[#allocation65_spill] sm:$0xff]  ;;  %v12399_v25 = vld [vmem:[#allocation66_spill] sm:$0xff] }
 0xed0   :  { %7619 = vmatprep.subr.bf16.mxu0 %v12389_v47  ;;  %7651 = vmatprep.subr.bf16.mxu1 %v12390_v57  ;;  %v12400_v47 = vld [vmem:[#allocation67_spill] sm:$0xff]  ;;  %v12401_v57 = vld [vmem:[#allocation68_spill] sm:$0xff] }
 0xed3   :  { %7621 = vmatpush1.bf16.msra.mxu0 %v12391_v60  ;;  %7653 = vmatpush1.bf16.msra.mxu1 %v12392_v44  ;;  %v12402_v60 = vld [vmem:[#allocation69_spill] sm:$0xff]  ;;  %v12403_v44 = vld [vmem:[#allocation70_spill] sm:$0xff] }
 0xed4   :  { %7623 = vmatprep.subr.bf16.mxu0 %v12393_v0  ;;  %7655 = vmatprep.subr.bf16.mxu1 %v12394_v49  ;;  %v12404_v0 = vld [vmem:[#allocation71_spill] sm:$0xff]  ;;  %v12405_v49 = vld [vmem:[#allocation72_spill] sm:$0xff] }
 0xed7   :  { %7625 = vmatpush1.bf16.msra.mxu0 %v12395_v61  ;;  %7657 = vmatpush1.bf16.msra.mxu1 %v12396_v56  ;;  %v12406_v61 = vld [vmem:[#allocation73_spill] sm:$0xff]  ;;  %v12407_v56 = vld [vmem:[#allocation74_spill] sm:$0xff] }
 0xed8   :  { %7627 = vmatprep.subr.bf16.mxu0 %v12397_v6  ;;  %7659 = vmatprep.subr.bf16.mxu1 %v12398_v45  ;;  %v12408_v6 = vld [vmem:[#allocation75_spill] sm:$0xff]  ;;  %v12409_v45 = vld [vmem:[#allocation76_spill] sm:$0xff] }
 0xedb   :  { %7629 = vmatpush1.bf16.msra.mxu0 %v12399_v25  ;;  %7661 = vmatpush1.bf16.msra.mxu1 %v12400_v47  ;;  %v12410_v25 = vld [vmem:[#allocation77_spill] sm:$0xff] }
 0xedc   :  { %7631 = vmatprep.subr.bf16.mxu0 %v12401_v57  ;;  %7663 = vmatprep.subr.bf16.mxu1 %v12402_v60  ;;  %v12411_v60 = vld [vmem:[#allocation78_spill] sm:$0xff]  ;;  %v12425_v57 = vld [vmem:[#allocation92_spill] sm:$0xff] }
 0xedf   :  { %7633 = vmatpush1.bf16.msra.mxu0 %v12403_v44  ;;  %7665 = vmatpush1.bf16.msra.mxu1 %v12404_v0  ;;  %v12412_v44 = vld [vmem:[#allocation79_spill] sm:$0xff]  ;;  %v12413_v0 = vld [vmem:[#allocation80_spill] sm:$0xff] }
 0xee0   :  { %7635 = vmatprep.subr.bf16.mxu0 %v12405_v49  ;;  %7667 = vmatprep.subr.bf16.mxu1 %v12406_v61  ;;  %v12414_v49 = vld [vmem:[#allocation81_spill] sm:$0xff]  ;;  %v12424_v61 = vld [vmem:[#allocation91_spill] sm:$0xff] }
 0xee3   :  { %7637 = vmatpush1.bf16.msra.mxu0 %v12407_v56  ;;  %7669 = vmatpush1.bf16.msra.mxu1 %v12408_v6  ;;  %v12415_v6 = vld [vmem:[#allocation82_spill] sm:$0xff]  ;;  %v12418_v56 = vld [vmem:[#allocation85_spill] sm:$0xff] }
 0xee4   :  { %7671 = vmatprep.subr.bf16.mxu0 %v12409_v45  ;;  %7703 = vmatprep.subr.bf16.mxu1 %v12410_v25  ;;  %v12416_v45 = vld [vmem:[#allocation83_spill] sm:$0xff]  ;;  %v12417_v25 = vld [vmem:[#allocation84_spill] sm:$0xff] }
 0xee6   :  { %3131 = vmatmul.mubr.f32.vlgmr.msra.gmra.mrb[20].mxu0 %v10912_v3  ;;  %3202 = vmatmul.mubr.f32.vlgmr.msra.gmra.mrb[20].mxu1 %v10912_v3  ;;  %v12419_v3 = vld [vmem:[#allocation86_spill] sm:$0xff] }
 0xee7   :  { %7673 = vmatpush1.bf16.msra.mxu0 %v12411_v60  ;;  %7705 = vmatpush1.bf16.msra.mxu1 %v12412_v44  ;;  %v12420_v60 = vld [vmem:[#allocation87_spill] sm:$0xff]  ;;  %v12421_v44 = vld [vmem:[#allocation88_spill] sm:$0xff] }
 0xee8   :  { %7675 = vmatprep.subr.bf16.mxu0 %v12413_v0  ;;  %7707 = vmatprep.subr.bf16.mxu1 %v12414_v49  ;;  %v12422_v0 = vld [vmem:[#allocation89_spill] sm:$0xff]  ;;  %v12423_v49 = vld [vmem:[#allocation90_spill] sm:$0xff] }
 0xee9   :  { %3272 = vmatprep.mubr.f32.mxu0 %v10867_v7  ;;  %3343 = vmatprep.mubr.f32.mxu1 %v10867_v7 }
 0xeeb   :  { %7677 = vmatpush1.bf16.msra.mxu0 %v12415_v6  ;;  %7709 = vmatpush1.bf16.msra.mxu1 %v12416_v45  ;;  %v12426_v6 = vld [vmem:[#allocation93_spill] sm:$0xff]  ;;  %v12427_v45 = vld [vmem:[#allocation94_spill] sm:$0xff] }
 0xeec   :  { %7679 = vmatprep.subr.bf16.mxu0 %v12417_v25  ;;  %7711 = vmatprep.subr.bf16.mxu1 %v12418_v56  ;;  %v12428_v25 = vld [vmem:[#allocation95_spill] sm:$0xff]  ;;  %v12429_v56 = vld [vmem:[#allocation96_spill] sm:$0xff] }
 0xeef   :  { %7681 = vmatpush1.bf16.msra.mxu0 %v12419_v3  ;;  %7713 = vmatpush1.bf16.msra.mxu1 %v12420_v60  ;;  %v12430_v3 = vld [vmem:[#allocation97_spill] sm:$0xff]  ;;  %v12431_v60 = vld [vmem:[#allocation98_spill] sm:$0xff] }
 0xef0   :  { %7683 = vmatprep.subr.bf16.mxu0 %v12421_v44  ;;  %7715 = vmatprep.subr.bf16.mxu1 %v12422_v0  ;;  %v12432_v44 = vld [vmem:[#allocation99_spill] sm:$0xff]  ;;  %v12433_v0 = vld [vmem:[#allocation100_spill] sm:$0xff] }
 0xef3   :  { %7685 = vmatpush1.bf16.msra.mxu0 %v12423_v49  ;;  %7717 = vmatpush1.bf16.msra.mxu1 %v12424_v61  ;;  %v12434_v49 = vld [vmem:[#allocation101_spill] sm:$0xff]  ;;  %v12435_v61 = vld [vmem:[#allocation102_spill] sm:$0xff] }
 0xef4   :  { %7687 = vmatprep.subr.bf16.mxu0 %v12425_v57  ;;  %7719 = vmatprep.subr.bf16.mxu1 %v12426_v6  ;;  %v12436_v57 = vld [vmem:[#allocation103_spill] sm:$0xff]  ;;  %v12437_v6 = vld [vmem:[#allocation104_spill] sm:$0xff] }
 0xef7   :  { %7689 = vmatpush1.bf16.msra.mxu0 %v12427_v45  ;;  %7721 = vmatpush1.bf16.msra.mxu1 %v12428_v25  ;;  %v12438_v45 = vld [vmem:[#allocation105_spill] sm:$0xff]  ;;  %v12439_v25 = vld [vmem:[#allocation106_spill] sm:$0xff] }
 0xef8   :  { %7691 = vmatprep.subr.bf16.mxu0 %v12429_v56  ;;  %7723 = vmatprep.subr.bf16.mxu1 %v12430_v3  ;;  %v12440_v56 = vld [vmem:[#allocation107_spill] sm:$0xff] }
 0xefb   :  { %7693 = vmatpush1.bf16.msra.mxu0 %v12431_v60  ;;  %7725 = vmatpush1.bf16.msra.mxu1 %v12432_v44  ;;  %v12441_v60 = vld [vmem:[#allocation108_spill] sm:$0xff] }
 0xefc   :  { %7695 = vmatprep.subr.bf16.mxu0 %v12433_v0  ;;  %7727 = vmatprep.subr.bf16.mxu1 %v12434_v49 }
 0xeff   :  { %7697 = vmatpush1.bf16.msra.mxu0 %v12435_v61  ;;  %7729 = vmatpush1.bf16.msra.mxu1 %v12436_v57 }
 0xf00   :  { %7699 = vmatprep.subr.bf16.mxu0 %v12437_v6  ;;  %7731 = vmatprep.subr.bf16.mxu1 %v12438_v45 }
 0xf03   :  { %7701 = vmatpush1.bf16.msra.mxu0 %v12439_v25  ;;  %7733 = vmatpush1.bf16.msra.mxu1 %v12440_v56 }
 0xf04   :  { %7734 = vmatprep.subr.bf16.mxu0 %v12123_v12  ;;  %7758 = vmatprep.subr.bf16.mxu1 %v12123_v12 }
 0xf99   :  { %v2962_v44 = vpop.f32.mrb[18].mxu0  ;;  %v3033_v0 = vpop.f32.mrb[18].mxu1 }
 0xf9a   :  { %v3038_v49 = vadd.f32 %v2962_v44, %v12441_v60  ;;  %v2964_v3 = vpop.f32.mrb[19].mxu0  ;;  %v3035_v61 = vpop.f32.mrb[19].mxu1  ;;  %v3040_v56 = vadd.f32 %v3033_v0, %v12219_v5 }
 0xf9b   :  { %v3039_v57 = vadd.f32 %v2964_v3, %v12331_v10  ;;  %v3041_v25 = vadd.f32 %v3035_v61, %v12218_v54 }
 0xf9c   :  { %v5854_v47 = vmul.f32 -1.442695, %v3038_v49 }
 0xf9d   :  { %v5855_v6 = vmul.f32 -1.442695, %v3039_v57  ;;  %v5856_v45 = vmul.f32 -1.442695, %v3041_v25  ;;  %v12447_v25 = vld [vmem:[#allocation127_spill] sm:$0xff] }
 0xf9e   :  { %8830 = vpow2.f32 %v5854_v47 }
 0xf9f   :  { %8832 = vpow2.f32 %v5855_v6 }
 0xfa0   :  { %8834 = vpow2.f32 %v5856_v45 }
 0xfa1   :  { %8836 = vtanh.f32 %v3040_v56  ;;  %v12446_v56 = vld [vmem:[#allocation118_spill] sm:$0xff] }
 0xfa8   :  { %v8831_v24 = vpop.eup %8830 }
 0xfa9   :  { %v8833_v52 = vpop.eup %8832  ;;  %v3045_v13 = vadd.f32 1.0, %v8831_v24 }
 0xfaa   :  { %v3051_v39 = vadd.f32 1.0, %v8833_v52  ;;  %v8835_v44 = vpop.eup %8834  ;;  %v12445_v52 = vld [vmem:[#allocation126_spill] sm:$0xff] }
 0xfab   :  { %8838 = vrcp.f32 %v3045_v13  ;;  %v8837_v60 = vpop.eup %8836  ;;  %v3058_v47 = vadd.f32 1.0, %v8835_v44  ;;  %v12444_v13 = vld [vmem:[#allocation117_spill] sm:$0xff]  ;;  %v12449_v44 = vld [vmem:[#allocation128_spill] sm:$0xff] }
 0xfac   :  { %8840 = vrcp.f32 %v3051_v39  ;;  %v12443_v39 = vld [vmem:[#allocation125_spill] sm:$0xff] }
 0xfad   :  { %8842 = vrcp.f32 %v3058_v47  ;;  %v12453_v47 = vld [vmem:[#allocation9_spill] sm:$0xff] }
 0xfb5   :  { %v8839_v3 = vpop.eup %8838 }
 0xfb6   :  { %v8841_v49 = vpop.eup %8840  ;;  %v3062_v57 = vmul.f32 %v8839_v3, %v8837_v60  ;;  %v12448_v60 = vld [vmem:[#allocation119_spill] sm:$0xff]  ;;  %v12450_v3 = vld [vmem:[#allocation120_spill] sm:$0xff] }
 0xfb7   :  { %v3061_v6 = vmul.f32 %v8841_v49, %v10859_v30  ;;  %v8843_v0 = vpop.eup %8842  ;;  %v12442_v30 = vld [vmem:[#allocation116_spill] sm:$0xff] }
 0xfb8   :  { %v12451_v49 = vld [vmem:[#allocation8_spill] sm:$0xff] }
 0xfb9   :  { %v11072_v61 = vadd.f32 %v3062_v57, %v3061_v6  ;;  %v12452_v57 = vld [vmem:[#allocation129_spill] sm:$0xff] }
 0xfbb   :  { %8844 = vtanh.f32 %v11072_v61 }
 0xfc5   :  { %v8845_v24 = vpop.eup %8844 }
 0xfc6   :  { %v11075_v45 = vmul.f32 %v8845_v24, %v8843_v0  ;;  %v12454_v24 = vld [vmem:[#allocation121_spill] sm:$0xff] }
 0xfc8   :  { %3273 = vmatmul.mubr.f32.vlgmr.msra.gmra.mrb[20].mxu0 %v11075_v45  ;;  %3344 = vmatmul.mubr.f32.vlgmr.msra.gmra.mrb[20].mxu1 %v11075_v45 }
 0xfc9   :  { %7736 = vmatpush3.bf16.msra.mxu0 %v12221_v18  ;;  %6353 = vmatprep.mubr.msk.f32.mxu0 %vm9005_vm0, %v10867_v7 }
 0xfca   :  { %7737 = vmatprep.subr.bf16.mxu0 %v12123_v12  ;;  %7760 = vmatpush3.bf16.msra.mxu1 %v10463_v41 }
 0xfcb   :  { %7761 = vmatprep.subr.bf16.mxu1 %v12123_v12  ;;  %6388 = vmatprep.mubr.msk.f32.mxu1 %vm9005_vm0, %v10867_v7 }
 0xfcd   :  { %7739 = vmatpush3.bf16.msra.mxu0 %v12222_v26 }
 0xfce   :  { %7740 = vmatprep.subr.bf16.mxu0 %v12123_v12  ;;  %7763 = vmatpush3.bf16.msra.mxu1 %v10469_v36 }
 0xfcf   :  { %7764 = vmatprep.subr.bf16.mxu1 %v12123_v12 }
 0xfd1   :  { %7742 = vmatpush3.bf16.msra.mxu0 %v12223_v31 }
 0xfd2   :  { %7743 = vmatprep.subr.bf16.mxu0 %v12123_v12  ;;  %7766 = vmatpush3.bf16.msra.mxu1 %v10479_v19 }
 0xfd3   :  { %7767 = vmatprep.subr.bf16.mxu1 %v12123_v12 }
 0xfd5   :  { %7745 = vmatpush3.bf16.msra.mxu0 %v12442_v30 }
 0xfd6   :  { %7746 = vmatprep.subr.bf16.mxu0 %v12123_v12  ;;  %7769 = vmatpush3.bf16.msra.mxu1 %v12443_v39 }
 0xfd7   :  { %7770 = vmatprep.subr.bf16.mxu1 %v12123_v12 }
 0xfd9   :  { %7748 = vmatpush3.bf16.msra.mxu0 %v12444_v13 }
 0xfda   :  { %7749 = vmatprep.subr.bf16.mxu0 %v12123_v12  ;;  %7772 = vmatpush3.bf16.msra.mxu1 %v12445_v52 }
 0xfdb   :  { %7773 = vmatprep.subr.bf16.mxu1 %v12123_v12 }
 0xfdd   :  { %7751 = vmatpush3.bf16.msra.mxu0 %v12446_v56 }
 0xfde   :  { %7752 = vmatprep.subr.bf16.mxu0 %v12123_v12  ;;  %7775 = vmatpush3.bf16.msra.mxu1 %v12447_v25 }
 0xfdf   :  { %7776 = vmatprep.subr.bf16.mxu1 %v12123_v12 }
 0xfe1   :  { %7754 = vmatpush3.bf16.msra.mxu0 %v12448_v60 }
 0xfe2   :  { %7755 = vmatprep.subr.bf16.mxu0 %v12123_v12  ;;  %7778 = vmatpush3.bf16.msra.mxu1 %v12449_v44 }
 0xfe3   :  { %7779 = vmatprep.subr.bf16.mxu1 %v12123_v12 }
 0xfe5   :  { %7757 = vmatpush3.bf16.msra.mxu0 %v12450_v3 }
 0xfe6   :  { %7783 = vmatprep.subr.bf16.mxu0 %v12451_v49  ;;  %7781 = vmatpush3.bf16.msra.mxu1 %v12452_v57 }
 0xfe7   :  { %7815 = vmatprep.subr.bf16.mxu1 %v12453_v47 }
0x109b   :  { %v3274_v6 = vpop.f32.mrb[20].mxu0  ;;  %v3345_v0 = vpop.f32.mrb[20].mxu1 }
0x109c   :  { %v3350_v25 = vadd.f32 %v3274_v6, %v12454_v24  ;;  %v3276_v56 = vpop.f32.mrb[21].mxu0  ;;  %v3347_v60 = vpop.f32.mrb[21].mxu1  ;;  %v3352_v49 = vadd.f32 %v3345_v0, %v10401_v59  ;;  %v12456_v0 = vld [vmem:[#allocation130_spill] sm:$0xff] }
0x109d   :  { %v3351_v52 = vadd.f32 %v3276_v56, %v10390_v32  ;;  %v3353_v3 = vadd.f32 %v3347_v60, %v10396_v21 }
0x109e   :  { %v5857_v13 = vmul.f32 -1.442695, %v3350_v25 }
0x109f   :  { %v5858_v44 = vmul.f32 -1.442695, %v3351_v52  ;;  %v5859_v39 = vmul.f32 -1.442695, %v3353_v3 }
0x10a0   :  { %8846 = vpow2.f32 %v5857_v13 }
0x10a1   :  { %8848 = vpow2.f32 %v5858_v44 }
0x10a2   :  { %8850 = vpow2.f32 %v5859_v39 }
0x10a3   :  { %8852 = vtanh.f32 %v3352_v49 }
0x10aa   :  { %v8847_v57 = vpop.eup %8846 }
0x10ab   :  { %v8849_v30 = vpop.eup %8848  ;;  %v3357_v47 = vadd.f32 1.0, %v8847_v57 }
0x10ac   :  { %v3363_v19 = vadd.f32 1.0, %v8849_v30  ;;  %v8851_v6 = vpop.eup %8850 }
0x10ad   :  { %8854 = vrcp.f32 %v3357_v47  ;;  %v8853_v24 = vpop.eup %8852  ;;  %v3370_v13 = vadd.f32 1.0, %v8851_v6 }
0x10ae   :  { %8856 = vrcp.f32 %v3363_v19 }
0x10af   :  { %8858 = vrcp.f32 %v3370_v13  ;;  %v12460_v13 = vld [vmem:[#allocation12_spill] sm:$0xff] }
0x10b7   :  { %v8855_v56 = vpop.eup %8854 }
0x10b8   :  { %v8857_v25 = vpop.eup %8856  ;;  %v3374_v52 = vmul.f32 %v8855_v56, %v8853_v24  ;;  %v12457_v56 = vmov 1.0  }
0x10b9   :  { %v3373_v44 = vmul.f32 %v8857_v25, %v10909_v28  ;;  %v8859_v3 = vpop.eup %8858  ;;  %v12455_v28 = vld [vmem:[#allocation110_spill] sm:$0xff] }
0x10ba   :  { %v12458_v25 = vld [vmem:[#allocation10_spill] sm:$0xff] }
0x10bb   :  { %v11120_v60 = vadd.f32 %v3374_v52, %v3373_v44  ;;  %v12459_v52 = vld [vmem:[#allocation11_spill] sm:$0xff]  ;;  %v12461_v44 = vld [vmem:[#allocation13_spill] sm:$0xff] }
0x10bd   :  { %8860 = vtanh.f32 %v11120_v60 }
0x10c7   :  { %v8861_v57 = vpop.eup %8860 }
0x10c8   :  { %v11123_v39 = vmul.f32 %v8861_v57, %v8859_v3  ;;  %v12462_v3 = vld [vmem:[#allocation14_spill] sm:$0xff]  ;;  %v12463_v57 = vld [vmem:[#allocation15_spill] sm:$0xff] }
0x10ca   :  { %6354 = vmatmul.mubr.f32.vlgmr.msra.gmra.mrb[22].mxu0 %v11123_v39 }
0x10cb   :  { %7785 = vmatpush1.bf16.msra.mxu0 %v9108_v9  ;;  %3603 = vmatprep.mubr.f32.mxu0 %v10867_v7 }
0x10cc   :  { %7787 = vmatprep.subr.bf16.mxu0 %v9133_v17 }
0x10cf   :  { %7789 = vmatpush1.bf16.msra.mxu0 %v9147_v22 }
0x10d0   :  { %7791 = vmatprep.subr.bf16.mxu0 %v9162_v27 }
0x10d3   :  { %7793 = vmatpush1.bf16.msra.mxu0 %v9185_v35 }
0x10d4   :  { %7795 = vmatprep.subr.bf16.mxu0 %v9200_v40 }
0x10d7   :  { %7797 = vmatpush1.bf16.msra.mxu0 %v9233_v51 }
0x10d8   :  { %7799 = vmatprep.subr.bf16.mxu0 %v9239_v53 }
0x10db   :  { %7801 = vmatpush1.bf16.msra.mxu0 %v9269_v63 }
0x10dc   :  { %7803 = vmatprep.subr.bf16.mxu0 %v9275_v1 }
0x10df   :  { %7805 = vmatpush1.bf16.msra.mxu0 %v9305_v16 }
0x10e0   :  { %7807 = vmatprep.subr.bf16.mxu0 %v9311_v20 }
0x10e3   :  { %7809 = vmatpush1.bf16.msra.mxu0 %v9341_v34 }
0x10e4   :  { %7811 = vmatprep.subr.bf16.mxu0 %v9347_v37 }
0x10e7   :  { %7813 = vmatpush1.bf16.msra.mxu0 %v9377_v50 }
0x10e8   :  { %7847 = vmatprep.subr.bf16.mxu0 %v9383_v55 }
0x10ea   :  { %3604 = vmatmul.mubr.f32.vlgmr.msra.gmra.mrb[24].mxu0 %v11075_v45 }
0x10eb   :  { %7849 = vmatpush1.bf16.msra.mxu0 %v9416_v11  ;;  %3745 = vmatprep.mubr.f32.mxu0 %v10867_v7 }
0x10ec   :  { %7851 = vmatprep.subr.bf16.mxu0 %v9422_v14 }
0x10ef   :  { %7853 = vmatpush1.bf16.msra.mxu0 %v9452_v38 }
0x10f0   :  { %7855 = vmatprep.subr.bf16.mxu0 %v9458_v42 }
0x10f3   :  { %7857 = vmatpush1.bf16.msra.mxu0 %v9490_v62 }
0x10f4   :  { %7859 = vmatprep.subr.bf16.mxu0 %v9496_v4 }
0x10f7   :  { %7861 = vmatpush1.bf16.msra.mxu0 %v9526_v33 }
0x10f8   :  { %7863 = vmatprep.subr.bf16.mxu0 %v9532_v46 }
0x10fb   :  { %7865 = vmatpush1.bf16.msra.mxu0 %v9562_v23 }
0x10fc   :  { %7867 = vmatprep.subr.bf16.mxu0 %v9568_v29 }
0x10ff   :  { %7869 = vmatpush1.bf16.msra.mxu0 %v9598_v15 }
0x1100   :  { %7871 = vmatprep.subr.bf16.mxu0 %v9604_v58 }
0x1103   :  { %7873 = vmatpush1.bf16.msra.mxu0 %v12231_v8 }
0x1104   :  { %7875 = vmatprep.subr.bf16.mxu0 %v12232_v43 }
0x1107   :  { %7877 = vmatpush1.bf16.msra.mxu0 %v12233_v48 }
0x1108   :  { %7911 = vmatprep.subr.bf16.mxu0 %v12343_v2 }
0x119d   :  { %v3444_v19 = vpop.f32.mrb[22].mxu0 }
0x119e   :  { %v3445_v30 = vadd.f32 %v12455_v28, %v3444_v19  ;;  %v6355_v49 = vpop.f32.mrb[23].mxu0  ;;  %v12464_v19 = vld [vmem:[#allocation16_spill] sm:$0xff]  ;;  %v12465_v28 = vld [vmem:[#allocation17_spill] sm:$0xff] }
0x119f   :  { %v12467_v49 = vld [vmem:[#allocation19_spill] sm:$0xff] }
0x11a0   :  { %3449 = vst [vmem:[#allocation4 + $0x20] sm:$0xff] %v3445_v30  ;;  %3450 = vmax.xlane.f32.xlu0 %v3445_v30 }
0x122d   :  { %v3451_v47 = vpop.xlane.xlu0 %3450 }
0x122e   :  { %vm3452_vm7 = vcmp.eq.f32.partialorder %v3445_v30, %v3451_v47  ;;  %v12466_v30 = vld [vmem:[#allocation18_spill] sm:$0xff]  ;;  %v12468_v47 = vld [vmem:[#allocation20_spill] sm:$0xff] }
0x122f   :  { %v3453_v24 = vsel %vm3452_vm7, %v12456_v0, 128.0 }
0x1230   :  { %3454 = vmin.xlane.f32.xlu1 %v3453_v24  ;;  %v12469_v24 = vld [vmem:[#allocation21_spill] sm:$0xff] }
0x12bd   :  { %v3455_v6 = vpop.xlane.xlu1 %3454 }
0x12be   :  { %vm3456_vm8 = vcmp.eq.f32.partialorder %v12456_v0, %v3455_v6  ;;  %v12470_v6 = vld [vmem:[#allocation22_spill] sm:$0xff] }
0x12bf   :  { %6389 = vmatmul.mubr.msk.f32.vlgmr.msra.gmra.mrb[22].mxu1 %vm3456_vm8, %v12457_v56 }
0x12c0   :  { %7817 = vmatpush1.bf16.msra.mxu1 %v12458_v25  ;;  %3674 = vmatprep.mubr.f32.mxu1 %v10867_v7 }
0x12c1   :  { %7819 = vmatprep.subr.bf16.mxu1 %v12459_v52  ;;  %v12494_v52 = vld [vmem:[#allocation50_spill] sm:$0xff] }
0x12c4   :  { %7821 = vmatpush1.bf16.msra.mxu1 %v12460_v13  ;;  %v12471_v13 = vld [vmem:[#allocation23_spill] sm:$0xff] }
0x12c5   :  { %7823 = vmatprep.subr.bf16.mxu1 %v12461_v44  ;;  %v12472_v44 = vld [vmem:[#allocation24_spill] sm:$0xff] }
0x12c8   :  { %7825 = vmatpush1.bf16.msra.mxu1 %v12462_v3  ;;  %v12473_v3 = vld [vmem:[#allocation25_spill] sm:$0xff] }
0x12c9   :  { %7827 = vmatprep.subr.bf16.mxu1 %v12463_v57  ;;  %v12493_v57 = vld [vmem:[#allocation49_spill] sm:$0xff] }
0x12cc   :  { %7829 = vmatpush1.bf16.msra.mxu1 %v12464_v19  ;;  %v12474_v19 = vld [vmem:[#allocation26_spill] sm:$0xff] }
0x12cd   :  { %7831 = vmatprep.subr.bf16.mxu1 %v12465_v28  ;;  %v12485_v28 = vld [vmem:[#allocation37_spill] sm:$0xff] }
0x12d0   :  { %7833 = vmatpush1.bf16.msra.mxu1 %v12466_v30  ;;  %v12475_v30 = vld [vmem:[#allocation27_spill] sm:$0xff] }
0x12d1   :  { %7835 = vmatprep.subr.bf16.mxu1 %v12467_v49  ;;  %v12476_v49 = vld [vmem:[#allocation28_spill] sm:$0xff] }
0x12d4   :  { %7837 = vmatpush1.bf16.msra.mxu1 %v12468_v47  ;;  %v12477_v47 = vld [vmem:[#allocation29_spill] sm:$0xff] }
0x12d5   :  { %7839 = vmatprep.subr.bf16.mxu1 %v12469_v24  ;;  %v12478_v24 = vld [vmem:[#allocation30_spill] sm:$0xff] }
0x12d8   :  { %7841 = vmatpush1.bf16.msra.mxu1 %v12470_v6  ;;  %v12479_v6 = vld [vmem:[#allocation31_spill] sm:$0xff] }
0x12d9   :  { %7843 = vmatprep.subr.bf16.mxu1 %v12471_v13  ;;  %v12480_v13 = vld [vmem:[#allocation32_spill] sm:$0xff] }
0x12dc   :  { %7845 = vmatpush1.bf16.msra.mxu1 %v12472_v44  ;;  %v12481_v44 = vld [vmem:[#allocation33_spill] sm:$0xff] }
0x12dd   :  { %7879 = vmatprep.subr.bf16.mxu1 %v12473_v3  ;;  %v12482_v3 = vld [vmem:[#allocation34_spill] sm:$0xff] }
0x12df   :  { %3675 = vmatmul.mubr.f32.vlgmr.msra.gmra.mrb[24].mxu1 %v11075_v45  ;;  %v12483_v45 = vld [vmem:[#allocation35_spill] sm:$0xff] }
0x12e0   :  { %7881 = vmatpush1.bf16.msra.mxu1 %v12474_v19  ;;  %3816 = vmatprep.mubr.f32.mxu1 %v10867_v7  ;;  %v12484_v19 = vld [vmem:[#allocation36_spill] sm:$0xff] }
0x12e1   :  { %7883 = vmatprep.subr.bf16.mxu1 %v12475_v30  ;;  %v12486_v30 = vld [vmem:[#allocation39_spill] sm:$0xff] }
0x12e4   :  { %7885 = vmatpush1.bf16.msra.mxu1 %v12476_v49  ;;  %v12487_v49 = vld [vmem:[#allocation41_spill] sm:$0xff] }
0x12e5   :  { %7887 = vmatprep.subr.bf16.mxu1 %v12477_v47  ;;  %v12488_v47 = vld [vmem:[#allocation43_spill] sm:$0xff] }
0x12e8   :  { %7889 = vmatpush1.bf16.msra.mxu1 %v12478_v24  ;;  %v12489_v24 = vld [vmem:[#allocation45_spill] sm:$0xff] }
0x12e9   :  { %7891 = vmatprep.subr.bf16.mxu1 %v12479_v6 }
0x12ec   :  { %7893 = vmatpush1.bf16.msra.mxu1 %v12480_v13 }
0x12ed   :  { %7895 = vmatprep.subr.bf16.mxu1 %v12481_v44  ;;  %v3536_v44 = vstv %s3535_s8 }
0x12f0   :  { %7897 = vmatpush1.bf16.msra.mxu1 %v12482_v3  ;;  %v5862_v3 = vld [vmem:[%s11731_s1 + $0x20] sm:$0xff] }
0x12f1   :  { %7899 = vmatprep.subr.bf16.mxu1 %v12483_v45  ;;  %v3533_v45 = vstv %s3532_s27 }
0x12f4   :  { %7901 = vmatpush1.bf16.msra.mxu1 %v12484_v19  ;;  %v3534_v19 = vmul.f32 %v5862_v3, %v3533_v45  ;;  %v12495_v3 = vld [vmem:[#allocation51_spill] sm:$0xff]  ;;  %v12502_v45 = vld [vmem:[#allocation58_spill] sm:$0xff] }
0x12f5   :  { %7903 = vmatprep.subr.bf16.mxu1 %v12485_v28 }
0x12f8   :  { %7905 = vmatpush1.bf16.msra.mxu1 %v12486_v30 }
0x12f9   :  { %7907 = vmatprep.subr.bf16.mxu1 %v12487_v49  ;;  %v12490_v49 = vld [vmem:[#allocation46_spill] sm:$0xff] }
0x12fc   :  { %7909 = vmatpush1.bf16.msra.mxu1 %v12488_v47  ;;  %v12491_v47 = vld [vmem:[#allocation47_spill] sm:$0xff] }
0x12fd   :  { %7943 = vmatprep.subr.bf16.mxu1 %v12489_v24  ;;  %v12492_v24 = vld [vmem:[#allocation48_spill] sm:$0xff] }
0x1392   :  { %v3525_v13 = vpop.f32.mrb[22].mxu1 }
0x1393   :  { %v3537_v28 = vmul.f32 %v3536_v44, %v3525_v13  ;;  %v6390_v6 = vpop.f32.mrb[23].mxu1  ;;  %v12496_v13 = vld [vmem:[#allocation52_spill] sm:$0xff]  ;;  %v12497_v44 = vld [vmem:[#allocation53_spill] sm:$0xff] }
0x1394   :  { %v12501_v6 = vld [vmem:[#allocation57_spill] sm:$0xff] }
0x1395   :  { %v3538_v30 = vadd.f32 %v3537_v28, %v3534_v19  ;;  %v12498_v19 = vld [vmem:[#allocation54_spill] sm:$0xff]  ;;  %v12499_v28 = vld [vmem:[#allocation55_spill] sm:$0xff] }
0x1397   :  { %3746 = vmatmul.mubr.f32.vlgmr.msra.gmra.mrb[24].mxu0 %v3538_v30  ;;  %3817 = vmatmul.mubr.f32.vlgmr.msra.gmra.mrb[24].mxu1 %v3538_v30  ;;  %v12500_v30 = vld [vmem:[#allocation56_spill] sm:$0xff] }
0x1398   :  { %7913 = vmatpush1.bf16.msra.mxu0 %v12490_v49  ;;  %7945 = vmatpush1.bf16.msra.mxu1 %v12491_v47 }
0x1399   :  { %7915 = vmatprep.subr.bf16.mxu0 %v12492_v24  ;;  %7947 = vmatprep.subr.bf16.mxu1 %v12493_v57  ;;  %v12503_v57 = vld [vmem:[#allocation59_spill] sm:$0xff]  ;;  %v12504_v24 = vld [vmem:[#allocation60_spill] sm:$0xff] }
0x139a   :  { %3915 = vmatprep.mubr.f32.mxu0 %v10867_v7  ;;  %3986 = vmatprep.mubr.f32.mxu1 %v10867_v7 }
0x139c   :  { %7917 = vmatpush1.bf16.msra.mxu0 %v12494_v52  ;;  %7949 = vmatpush1.bf16.msra.mxu1 %v12495_v3  ;;  %v12505_v52 = vld [vmem:[#allocation61_spill] sm:$0xff]  ;;  %v12506_v3 = vld [vmem:[#allocation62_spill] sm:$0xff] }
0x139d   :  { %7919 = vmatprep.subr.bf16.mxu0 %v12496_v13  ;;  %7951 = vmatprep.subr.bf16.mxu1 %v12497_v44  ;;  %v12507_v13 = vld [vmem:[#allocation63_spill] sm:$0xff]  ;;  %v12508_v44 = vld [vmem:[#allocation64_spill] sm:$0xff] }
0x13a0   :  { %7921 = vmatpush1.bf16.msra.mxu0 %v12498_v19  ;;  %7953 = vmatpush1.bf16.msra.mxu1 %v12499_v28  ;;  %v12509_v19 = vld [vmem:[#allocation65_spill] sm:$0xff]  ;;  %v12510_v28 = vld [vmem:[#allocation66_spill] sm:$0xff] }
0x13a1   :  { %7923 = vmatprep.subr.bf16.mxu0 %v12500_v30  ;;  %7955 = vmatprep.subr.bf16.mxu1 %v12501_v6  ;;  %v12511_v30 = vld [vmem:[#allocation67_spill] sm:$0xff]  ;;  %v12512_v6 = vld [vmem:[#allocation68_spill] sm:$0xff] }
0x13a4   :  { %7925 = vmatpush1.bf16.msra.mxu0 %v12502_v45  ;;  %7957 = vmatpush1.bf16.msra.mxu1 %v12503_v57  ;;  %v12513_v45 = vld [vmem:[#allocation69_spill] sm:$0xff]  ;;  %v12514_v57 = vld [vmem:[#allocation70_spill] sm:$0xff] }
0x13a5   :  { %7927 = vmatprep.subr.bf16.mxu0 %v12504_v24  ;;  %7959 = vmatprep.subr.bf16.mxu1 %v12505_v52  ;;  %v12515_v24 = vld [vmem:[#allocation71_spill] sm:$0xff]  ;;  %v12516_v52 = vld [vmem:[#allocation72_spill] sm:$0xff] }
0x13a8   :  { %7929 = vmatpush1.bf16.msra.mxu0 %v12506_v3  ;;  %7961 = vmatpush1.bf16.msra.mxu1 %v12507_v13  ;;  %v12517_v3 = vld [vmem:[#allocation73_spill] sm:$0xff]  ;;  %v12518_v13 = vld [vmem:[#allocation74_spill] sm:$0xff] }
0x13a9   :  { %7931 = vmatprep.subr.bf16.mxu0 %v12508_v44  ;;  %7963 = vmatprep.subr.bf16.mxu1 %v12509_v19  ;;  %v12519_v44 = vld [vmem:[#allocation75_spill] sm:$0xff]  ;;  %v12520_v19 = vld [vmem:[#allocation76_spill] sm:$0xff] }
0x13ac   :  { %7933 = vmatpush1.bf16.msra.mxu0 %v12510_v28  ;;  %7965 = vmatpush1.bf16.msra.mxu1 %v12511_v30  ;;  %v12521_v28 = vld [vmem:[#allocation77_spill] sm:$0xff] }
0x13ad   :  { %7935 = vmatprep.subr.bf16.mxu0 %v12512_v6  ;;  %7967 = vmatprep.subr.bf16.mxu1 %v12513_v45  ;;  %v12522_v45 = vld [vmem:[#allocation78_spill] sm:$0xff] }
0x13b0   :  { %7937 = vmatpush1.bf16.msra.mxu0 %v12514_v57  ;;  %7969 = vmatpush1.bf16.msra.mxu1 %v12515_v24  ;;  %v12523_v57 = vld [vmem:[#allocation79_spill] sm:$0xff]  ;;  %v12524_v24 = vld [vmem:[#allocation80_spill] sm:$0xff] }
0x13b1   :  { %7939 = vmatprep.subr.bf16.mxu0 %v12516_v52  ;;  %7971 = vmatprep.subr.bf16.mxu1 %v12517_v3  ;;  %v12525_v52 = vld [vmem:[#allocation81_spill] sm:$0xff]  ;;  %v12535_v3 = vld [vmem:[#allocation91_spill] sm:$0xff] }
0x13b4   :  { %7941 = vmatpush1.bf16.msra.mxu0 %v12518_v13  ;;  %7973 = vmatpush1.bf16.msra.mxu1 %v12519_v44  ;;  %v12526_v44 = vld [vmem:[#allocation82_spill] sm:$0xff]  ;;  %v12529_v13 = vld [vmem:[#allocation85_spill] sm:$0xff] }
0x13b5   :  { %7975 = vmatprep.subr.bf16.mxu0 %v12520_v19  ;;  %8007 = vmatprep.subr.bf16.mxu1 %v12521_v28  ;;  %v12527_v19 = vld [vmem:[#allocation83_spill] sm:$0xff]  ;;  %v12528_v28 = vld [vmem:[#allocation84_spill] sm:$0xff] }
0x13b7   :  { %3916 = vmatmul.mubr.f32.vlgmr.msra.gmra.mrb[26].mxu0 %v11123_v39  ;;  %3987 = vmatmul.mubr.f32.vlgmr.msra.gmra.mrb[26].mxu1 %v11123_v39  ;;  %v12530_v39 = vld [vmem:[#allocation86_spill] sm:$0xff] }
0x13b8   :  { %7977 = vmatpush1.bf16.msra.mxu0 %v12522_v45  ;;  %8009 = vmatpush1.bf16.msra.mxu1 %v12523_v57  ;;  %v12531_v45 = vld [vmem:[#allocation87_spill] sm:$0xff]  ;;  %v12532_v57 = vld [vmem:[#allocation88_spill] sm:$0xff] }
0x13b9   :  { %7979 = vmatprep.subr.bf16.mxu0 %v12524_v24  ;;  %8011 = vmatprep.subr.bf16.mxu1 %v12525_v52  ;;  %v12533_v24 = vld [vmem:[#allocation89_spill] sm:$0xff]  ;;  %v12534_v52 = vld [vmem:[#allocation90_spill] sm:$0xff] }
0x13ba   :  { %4057 = vmatprep.mubr.f32.mxu0 %v10867_v7  ;;  %4128 = vmatprep.mubr.f32.mxu1 %v10867_v7  ;;  %v12536_v7 = vld [vmem:[#allocation92_spill] sm:$0xff] }
0x13bc   :  { %7981 = vmatpush1.bf16.msra.mxu0 %v12526_v44  ;;  %8013 = vmatpush1.bf16.msra.mxu1 %v12527_v19  ;;  %v12537_v44 = vld [vmem:[#allocation93_spill] sm:$0xff]  ;;  %v12538_v19 = vld [vmem:[#allocation94_spill] sm:$0xff] }
0x13bd   :  { %7983 = vmatprep.subr.bf16.mxu0 %v12528_v28  ;;  %8015 = vmatprep.subr.bf16.mxu1 %v12529_v13  ;;  %v12539_v28 = vld [vmem:[#allocation95_spill] sm:$0xff]  ;;  %v12540_v13 = vld [vmem:[#allocation96_spill] sm:$0xff] }
0x13c0   :  { %7985 = vmatpush1.bf16.msra.mxu0 %v12530_v39  ;;  %8017 = vmatpush1.bf16.msra.mxu1 %v12531_v45  ;;  %v12541_v39 = vld [vmem:[#allocation97_spill] sm:$0xff]  ;;  %v12542_v45 = vld [vmem:[#allocation98_spill] sm:$0xff] }
0x13c1   :  { %7987 = vmatprep.subr.bf16.mxu0 %v12532_v57  ;;  %8019 = vmatprep.subr.bf16.mxu1 %v12533_v24  ;;  %v12543_v57 = vld [vmem:[#allocation99_spill] sm:$0xff]  ;;  %v12544_v24 = vld [vmem:[#allocation100_spill] sm:$0xff] }
0x13c4   :  { %7989 = vmatpush1.bf16.msra.mxu0 %v12534_v52  ;;  %8021 = vmatpush1.bf16.msra.mxu1 %v12535_v3  ;;  %v12545_v52 = vld [vmem:[#allocation101_spill] sm:$0xff]  ;;  %v12546_v3 = vld [vmem:[#allocation102_spill] sm:$0xff] }
0x13c5   :  { %7991 = vmatprep.subr.bf16.mxu0 %v12536_v7  ;;  %8023 = vmatprep.subr.bf16.mxu1 %v12537_v44  ;;  %v12547_v7 = vld [vmem:[#allocation103_spill] sm:$0xff]  ;;  %v12548_v44 = vld [vmem:[#allocation104_spill] sm:$0xff] }
0x13c8   :  { %7993 = vmatpush1.bf16.msra.mxu0 %v12538_v19  ;;  %8025 = vmatpush1.bf16.msra.mxu1 %v12539_v28  ;;  %v12549_v19 = vld [vmem:[#allocation105_spill] sm:$0xff]  ;;  %v12550_v28 = vld [vmem:[#allocation106_spill] sm:$0xff] }
0x13c9   :  { %7995 = vmatprep.subr.bf16.mxu0 %v12540_v13  ;;  %8027 = vmatprep.subr.bf16.mxu1 %v12541_v39  ;;  %v12551_v13 = vld [vmem:[#allocation107_spill] sm:$0xff] }
0x13cc   :  { %7997 = vmatpush1.bf16.msra.mxu0 %v12542_v45  ;;  %8029 = vmatpush1.bf16.msra.mxu1 %v12543_v57  ;;  %v12552_v45 = vld [vmem:[#allocation108_spill] sm:$0xff] }
0x13cd   :  { %7999 = vmatprep.subr.bf16.mxu0 %v12544_v24  ;;  %8031 = vmatprep.subr.bf16.mxu1 %v12545_v52 }
0x13d0   :  { %8001 = vmatpush1.bf16.msra.mxu0 %v12546_v3  ;;  %8033 = vmatpush1.bf16.msra.mxu1 %v12547_v7 }
0x13d1   :  { %8003 = vmatprep.subr.bf16.mxu0 %v12548_v44  ;;  %8035 = vmatprep.subr.bf16.mxu1 %v12549_v19 }
0x13d4   :  { %8005 = vmatpush1.bf16.msra.mxu0 %v12550_v28  ;;  %8037 = vmatpush1.bf16.msra.mxu1 %v12551_v13 }
0x13d5   :  { %8038 = vmatprep.subr.bf16.mxu0 %v12123_v12  ;;  %8062 = vmatprep.subr.bf16.mxu1 %v12123_v12 }
0x146a   :  { %v3747_v57 = vpop.f32.mrb[24].mxu0  ;;  %v3818_v24 = vpop.f32.mrb[24].mxu1 }
0x146b   :  { %v3823_v52 = vadd.f32 %v3747_v57, %v12552_v45  ;;  %v3749_v39 = vpop.f32.mrb[25].mxu0  ;;  %v3820_v3 = vpop.f32.mrb[25].mxu1  ;;  %v3825_v13 = vadd.f32 %v3818_v24, %v12219_v5 }
0x146c   :  { %v3824_v7 = vadd.f32 %v3749_v39, %v12331_v10  ;;  %v3826_v28 = vadd.f32 %v3820_v3, %v12218_v54 }
0x146d   :  { %v5864_v6 = vmul.f32 -1.442695, %v3823_v52 }
0x146e   :  { %v5865_v44 = vmul.f32 -1.442695, %v3824_v7  ;;  %v5866_v19 = vmul.f32 -1.442695, %v3826_v28 }
0x146f   :  { %8862 = vpow2.f32 %v5864_v6 }
0x1470   :  { %8864 = vpow2.f32 %v5865_v44 }
0x1471   :  { %8866 = vpow2.f32 %v5866_v19 }
0x1472   :  { %8868 = vtanh.f32 %v3825_v13  ;;  %v12556_v13 = vld [vmem:[#allocation117_spill] sm:$0xff] }
0x1479   :  { %v8863_v30 = vpop.eup %8862 }
0x147a   :  { %v8865_v47 = vpop.eup %8864  ;;  %v3830_v49 = vadd.f32 1.0, %v8863_v30  ;;  %v12557_v30 = vld [vmem:[#allocation126_spill] sm:$0xff] }
0x147b   :  { %v3836_v25 = vadd.f32 1.0, %v8865_v47  ;;  %v8867_v57 = vpop.eup %8866  ;;  %v12555_v47 = vld [vmem:[#allocation125_spill] sm:$0xff] }
0x147c   :  { %8870 = vrcp.f32 %v3830_v49  ;;  %v8869_v45 = vpop.eup %8868  ;;  %v3843_v6 = vadd.f32 1.0, %v8867_v57  ;;  %v12554_v49 = vld [vmem:[#allocation116_spill] sm:$0xff]  ;;  %v12559_v57 = vld [vmem:[#allocation127_spill] sm:$0xff] }
0x147d   :  { %8872 = vrcp.f32 %v3836_v25  ;;  %v11286_v25 = vld [vmem:[#allocation4] sm:$0xff] }
0x147e   :  { %8874 = vrcp.f32 %v3843_v6  ;;  %v12563_v6 = vld [vmem:[#allocation8_spill] sm:$0xff] }
0x1486   :  { %v8871_v39 = vpop.eup %8870 }
0x1487   :  { %v8873_v52 = vpop.eup %8872  ;;  %v3847_v7 = vmul.f32 %v8871_v39, %v8869_v45  ;;  %v12558_v45 = vld [vmem:[#allocation118_spill] sm:$0xff]  ;;  %v12560_v39 = vld [vmem:[#allocation119_spill] sm:$0xff] }
0x1488   :  { %v3846_v44 = vmul.f32 %v8873_v52, %v11072_v61  ;;  %v8875_v24 = vpop.eup %8874  ;;  %v12553_v61 = vld [vmem:[#allocation124_spill] sm:$0xff] }
0x1489   :  { %v12561_v52 = vld [vmem:[#allocation128_spill] sm:$0xff] }
0x148a   :  { %v11278_v3 = vadd.f32 %v3847_v7, %v3846_v44  ;;  %v12562_v7 = vld [vmem:[#allocation120_spill] sm:$0xff]  ;;  %v12564_v44 = vld [vmem:[#allocation129_spill] sm:$0xff] }
0x148c   :  { %8876 = vtanh.f32 %v11278_v3 }
0x1496   :  { %v8877_v28 = vpop.eup %8876 }
0x1497   :  { %v11281_v19 = vmul.f32 %v8877_v28, %v8875_v24  ;;  %v12565_v24 = vld [vmem:[#allocation9_spill] sm:$0xff] }
0x1499   :  { %4058 = vmatmul.mubr.f32.vlgmr.msra.gmra.mrb[26].mxu0 %v11281_v19  ;;  %4129 = vmatmul.mubr.f32.vlgmr.msra.gmra.mrb[26].mxu1 %v11281_v19 }
0x149a   :  { %8040 = vmatpush3.bf16.msra.mxu0 %v12221_v18  ;;  %6423 = vmatprep.mubr.msk.f32.mxu0 %vm9005_vm0, %v11286_v25 }
0x149b   :  { %8041 = vmatprep.subr.bf16.mxu0 %v12123_v12  ;;  %8064 = vmatpush3.bf16.msra.mxu1 %v10463_v41 }
0x149c   :  { %8065 = vmatprep.subr.bf16.mxu1 %v12123_v12  ;;  %6458 = vmatprep.mubr.msk.f32.mxu1 %vm9005_vm0, %v11286_v25 }
0x149e   :  { %8043 = vmatpush3.bf16.msra.mxu0 %v12222_v26 }
0x149f   :  { %8044 = vmatprep.subr.bf16.mxu0 %v12123_v12  ;;  %8067 = vmatpush3.bf16.msra.mxu1 %v10469_v36 }
0x14a0   :  { %8068 = vmatprep.subr.bf16.mxu1 %v12123_v12 }
0x14a2   :  { %8046 = vmatpush3.bf16.msra.mxu0 %v12223_v31 }
0x14a3   :  { %8047 = vmatprep.subr.bf16.mxu0 %v12123_v12  ;;  %8070 = vmatpush3.bf16.msra.mxu1 %v12553_v61 }
0x14a4   :  { %8071 = vmatprep.subr.bf16.mxu1 %v12123_v12 }
0x14a6   :  { %8049 = vmatpush3.bf16.msra.mxu0 %v12554_v49 }
0x14a7   :  { %8050 = vmatprep.subr.bf16.mxu0 %v12123_v12  ;;  %8073 = vmatpush3.bf16.msra.mxu1 %v12555_v47 }
0x14a8   :  { %8074 = vmatprep.subr.bf16.mxu1 %v12123_v12 }
0x14aa   :  { %8052 = vmatpush3.bf16.msra.mxu0 %v12556_v13 }
0x14ab   :  { %8053 = vmatprep.subr.bf16.mxu0 %v12123_v12  ;;  %8076 = vmatpush3.bf16.msra.mxu1 %v12557_v30 }
0x14ac   :  { %8077 = vmatprep.subr.bf16.mxu1 %v12123_v12 }
0x14ae   :  { %8055 = vmatpush3.bf16.msra.mxu0 %v12558_v45  ;;  %v12566_v45 = vld [vmem:[#allocation121_spill] sm:$0xff] }
0x14af   :  { %8056 = vmatprep.subr.bf16.mxu0 %v12123_v12  ;;  %8079 = vmatpush3.bf16.msra.mxu1 %v12559_v57 }
0x14b0   :  { %8080 = vmatprep.subr.bf16.mxu1 %v12123_v12 }
0x14b2   :  { %8058 = vmatpush3.bf16.msra.mxu0 %v12560_v39 }
0x14b3   :  { %8059 = vmatprep.subr.bf16.mxu0 %v12123_v12  ;;  %8082 = vmatpush3.bf16.msra.mxu1 %v12561_v52 }
0x14b4   :  { %8083 = vmatprep.subr.bf16.mxu1 %v12123_v12 }
0x14b6   :  { %8061 = vmatpush3.bf16.msra.mxu0 %v12562_v7 }
0x14b7   :  { %8087 = vmatprep.subr.bf16.mxu0 %v12563_v6  ;;  %8085 = vmatpush3.bf16.msra.mxu1 %v12564_v44 }
0x14b8   :  { %8119 = vmatprep.subr.bf16.mxu1 %v12565_v24 }
0x156c   :  { %v4059_v28 = vpop.f32.mrb[26].mxu0  ;;  %v4130_v57 = vpop.f32.mrb[26].mxu1 }
0x156d   :  { %v4135_v30 = vadd.f32 %v4059_v28, %v12566_v45  ;;  %v4061_v13 = vpop.f32.mrb[27].mxu0  ;;  %v4132_v39 = vpop.f32.mrb[27].mxu1  ;;  %v4137_v6 = vadd.f32 %v4130_v57, %v10401_v59 }
0x156e   :  { %v4136_v47 = vadd.f32 %v4061_v13, %v10390_v32  ;;  %v4138_v7 = vadd.f32 %v4132_v39, %v10396_v21 }
0x156f   :  { %v5867_v49 = vmul.f32 -1.442695, %v4135_v30 }
0x1570   :  { %v5868_v52 = vmul.f32 -1.442695, %v4136_v47  ;;  %v5869_v61 = vmul.f32 -1.442695, %v4138_v7 }
0x1571   :  { %8878 = vpow2.f32 %v5867_v49 }
0x1572   :  { %8880 = vpow2.f32 %v5868_v52 }
0x1573   :  { %8882 = vpow2.f32 %v5869_v61 }
0x1574   :  { %8884 = vtanh.f32 %v4137_v6 }
0x157b   :  { %v8879_v44 = vpop.eup %8878 }
0x157c   :  { %v8881_v31 = vpop.eup %8880  ;;  %v4142_v24 = vadd.f32 1.0, %v8879_v44 }
0x157d   :  { %v4148_v36 = vadd.f32 1.0, %v8881_v31  ;;  %v8883_v28 = vpop.eup %8882  ;;  %v11372_v31 = vld [vmem:[%s11740_s10] ss:$0 sm:$0xff]  ;;  %s5873_s10 = sld [smem:[#allocation3 + $0x5]] }
0x157e   :  { %8886 = vrcp.f32 %v4142_v24  ;;  %v8885_v45 = vpop.eup %8884  ;;  %v4155_v49 = vadd.f32 1.0, %v8883_v28  ;;  %v12567_v28 = vld [vmem:[#allocation10_spill] sm:$0xff] }
0x157f   :  { %8888 = vrcp.f32 %v4148_v36 }
0x1580   :  { %8890 = vrcp.f32 %v4155_v49  ;;  %v12571_v49 = vld [vmem:[#allocation14_spill] sm:$0xff] }
0x1583   :  { %s4317_s30 = scvt.s32.f32 %s5873_s10 }
0x1585   :  { %s4320_s14 = ssub.f32 1.0, %s4317_s30 }
0x1588   :  { %v8887_v13 = vpop.eup %8886 }
0x1589   :  { %v8889_v30 = vpop.eup %8888  ;;  %v4159_v47 = vmul.f32 %v8887_v13, %v8885_v45  ;;  %v12568_v13 = vld [vmem:[#allocation11_spill] sm:$0xff] }
0x158a   :  { %v4158_v52 = vmul.f32 %v8889_v30, %v11120_v60  ;;  %v8891_v57 = vpop.eup %8890  ;;  %v12569_v30 = vld [vmem:[#allocation12_spill] sm:$0xff] }
0x158c   :  { %v11328_v39 = vadd.f32 %v4159_v47, %v4158_v52  ;;  %v12570_v47 = vld [vmem:[#allocation13_spill] sm:$0xff]  ;;  %v12572_v52 = vld [vmem:[#allocation15_spill] sm:$0xff] }
0x158e   :  { %8892 = vtanh.f32 %v11328_v39 }
0x1598   :  { %v8893_v7 = vpop.eup %8892 }
0x1599   :  { %v11331_v61 = vmul.f32 %v8893_v7, %v8891_v57  ;;  %v12573_v57 = vld [vmem:[#allocation16_spill] sm:$0xff]  ;;  %v12574_v7 = vld [vmem:[#allocation17_spill] sm:$0xff] }
0x159b   :  { %6424 = vmatmul.mubr.f32.vlgmr.msra.gmra.mrb[28].mxu0 %v11331_v61 }
0x159c   :  { %8089 = vmatpush1.bf16.msra.mxu0 %v9108_v9  ;;  %4388 = vmatprep.mubr.f32.mxu0 %v11286_v25 }
0x159d   :  { %8091 = vmatprep.subr.bf16.mxu0 %v9133_v17 }
0x15a0   :  { %8093 = vmatpush1.bf16.msra.mxu0 %v9147_v22 }
0x15a1   :  { %8095 = vmatprep.subr.bf16.mxu0 %v9162_v27 }
0x15a4   :  { %8097 = vmatpush1.bf16.msra.mxu0 %v9185_v35 }
0x15a5   :  { %8099 = vmatprep.subr.bf16.mxu0 %v9200_v40 }
0x15a8   :  { %8101 = vmatpush1.bf16.msra.mxu0 %v9233_v51 }
0x15a9   :  { %8103 = vmatprep.subr.bf16.mxu0 %v9239_v53 }
0x15ac   :  { %8105 = vmatpush1.bf16.msra.mxu0 %v9269_v63 }
0x15ad   :  { %8107 = vmatprep.subr.bf16.mxu0 %v9275_v1 }
0x15b0   :  { %8109 = vmatpush1.bf16.msra.mxu0 %v9305_v16 }
0x15b1   :  { %8111 = vmatprep.subr.bf16.mxu0 %v9311_v20 }
0x15b4   :  { %8113 = vmatpush1.bf16.msra.mxu0 %v9341_v34 }
0x15b5   :  { %8115 = vmatprep.subr.bf16.mxu0 %v9347_v37 }
0x15b8   :  { %8117 = vmatpush1.bf16.msra.mxu0 %v9377_v50 }
0x15b9   :  { %8151 = vmatprep.subr.bf16.mxu0 %v9383_v55 }
0x15bb   :  { %4389 = vmatmul.mubr.f32.vlgmr.msra.gmra.mrb[30].mxu0 %v11281_v19 }
0x15bc   :  { %8153 = vmatpush1.bf16.msra.mxu0 %v9416_v11  ;;  %4530 = vmatprep.mubr.f32.mxu0 %v11286_v25 }
0x15bd   :  { %8155 = vmatprep.subr.bf16.mxu0 %v9422_v14 }
0x15c0   :  { %8157 = vmatpush1.bf16.msra.mxu0 %v9452_v38 }
0x15c1   :  { %8159 = vmatprep.subr.bf16.mxu0 %v9458_v42 }
0x15c4   :  { %8161 = vmatpush1.bf16.msra.mxu0 %v9490_v62 }
0x15c5   :  { %8163 = vmatprep.subr.bf16.mxu0 %v9496_v4 }
0x15c8   :  { %8165 = vmatpush1.bf16.msra.mxu0 %v9526_v33 }
0x15c9   :  { %8167 = vmatprep.subr.bf16.mxu0 %v9532_v46 }
0x15cc   :  { %8169 = vmatpush1.bf16.msra.mxu0 %v9562_v23 }
0x15cd   :  { %8171 = vmatprep.subr.bf16.mxu0 %v9568_v29 }
0x15d0   :  { %8173 = vmatpush1.bf16.msra.mxu0 %v9598_v15 }
0x15d1   :  { %8175 = vmatprep.subr.bf16.mxu0 %v9604_v58 }
0x15d4   :  { %8177 = vmatpush1.bf16.msra.mxu0 %v12231_v8 }
0x15d5   :  { %8179 = vmatprep.subr.bf16.mxu0 %v12232_v43 }
0x15d8   :  { %8181 = vmatpush1.bf16.msra.mxu0 %v12233_v48 }
0x15d9   :  { %8215 = vmatprep.subr.bf16.mxu0 %v12343_v2 }
0x166e   :  { %v4229_v36 = vpop.f32.mrb[28].mxu0 }
0x166f   :  { %v4230_v60 = vadd.f32 %v11372_v31, %v4229_v36  ;;  %v6425_v45 = vpop.f32.mrb[29].mxu0  ;;  %v12575_v36 = vld [vmem:[#allocation18_spill] sm:$0xff] }
0x1670   :  { %v12577_v45 = vld [vmem:[#allocation20_spill] sm:$0xff] }
0x1671   :  { %4234 = vst [vmem:[#allocation4 + $0x28] sm:$0xff] %v4230_v60  ;;  %4235 = vmax.xlane.f32.xlu0 %v4230_v60 }
0x16fe   :  { %v4236_v6 = vpop.xlane.xlu0 %4235 }
0x16ff   :  { %vm4237_vm9 = vcmp.eq.f32.partialorder %v4230_v60, %v4236_v6  ;;  %v12576_v60 = vld [vmem:[#allocation19_spill] sm:$0xff]  ;;  %v12578_v6 = vld [vmem:[#allocation21_spill] sm:$0xff] }
0x1700   :  { %v4238_v44 = vsel %vm4237_vm9, %v12456_v0, 128.0 }
0x1701   :  { %4239 = vmin.xlane.f32.xlu1 %v4238_v44  ;;  %v12579_v44 = vld [vmem:[#allocation22_spill] sm:$0xff] }
0x178e   :  { %v4240_v24 = vpop.xlane.xlu1 %4239 }
0x178f   :  { %vm4241_vm10 = vcmp.eq.f32.partialorder %v12456_v0, %v4240_v24  ;;  %v12580_v24 = vld [vmem:[#allocation23_spill] sm:$0xff] }
0x1790   :  { %6459 = vmatmul.mubr.msk.f32.vlgmr.msra.gmra.mrb[28].mxu1 %vm4241_vm10, %v12457_v56 }
0x1791   :  { %8121 = vmatpush1.bf16.msra.mxu1 %v12567_v28  ;;  %4459 = vmatprep.mubr.f32.mxu1 %v11286_v25 }
0x1792   :  { %8123 = vmatprep.subr.bf16.mxu1 %v12568_v13 }
0x1795   :  { %8125 = vmatpush1.bf16.msra.mxu1 %v12569_v30  ;;  %v12603_v30 = vld [vmem:[#allocation50_spill] sm:$0xff] }
0x1796   :  { %8127 = vmatprep.subr.bf16.mxu1 %v12570_v47  ;;  %v12581_v47 = vld [vmem:[#allocation24_spill] sm:$0xff] }
0x1799   :  { %8129 = vmatpush1.bf16.msra.mxu1 %v12571_v49  ;;  %v12582_v49 = vld [vmem:[#allocation25_spill] sm:$0xff] }
0x179a   :  { %8131 = vmatprep.subr.bf16.mxu1 %v12572_v52  ;;  %v12602_v52 = vld [vmem:[#allocation49_spill] sm:$0xff] }
0x179d   :  { %8133 = vmatpush1.bf16.msra.mxu1 %v12573_v57  ;;  %v12583_v57 = vld [vmem:[#allocation26_spill] sm:$0xff] }
0x179e   :  { %8135 = vmatprep.subr.bf16.mxu1 %v12574_v7  ;;  %v12594_v7 = vld [vmem:[#allocation37_spill] sm:$0xff] }
0x17a1   :  { %8137 = vmatpush1.bf16.msra.mxu1 %v12575_v36  ;;  %v12584_v36 = vld [vmem:[#allocation27_spill] sm:$0xff] }
0x17a2   :  { %8139 = vmatprep.subr.bf16.mxu1 %v12576_v60  ;;  %v12585_v60 = vld [vmem:[#allocation28_spill] sm:$0xff] }
0x17a5   :  { %8141 = vmatpush1.bf16.msra.mxu1 %v12577_v45  ;;  %v12586_v45 = vld [vmem:[#allocation29_spill] sm:$0xff] }
0x17a6   :  { %8143 = vmatprep.subr.bf16.mxu1 %v12578_v6  ;;  %v12587_v6 = vld [vmem:[#allocation30_spill] sm:$0xff] }
0x17a9   :  { %8145 = vmatpush1.bf16.msra.mxu1 %v12579_v44  ;;  %v12588_v44 = vld [vmem:[#allocation31_spill] sm:$0xff] }
0x17aa   :  { %8147 = vmatprep.subr.bf16.mxu1 %v12580_v24  ;;  %v12589_v24 = vld [vmem:[#allocation32_spill] sm:$0xff] }
0x17ad   :  { %8149 = vmatpush1.bf16.msra.mxu1 %v12581_v47  ;;  %v12590_v47 = vld [vmem:[#allocation33_spill] sm:$0xff] }
0x17ae   :  { %8183 = vmatprep.subr.bf16.mxu1 %v12582_v49  ;;  %v12591_v49 = vld [vmem:[#allocation34_spill] sm:$0xff] }
0x17b0   :  { %4460 = vmatmul.mubr.f32.vlgmr.msra.gmra.mrb[30].mxu1 %v11281_v19  ;;  %v12592_v19 = vld [vmem:[#allocation35_spill] sm:$0xff] }
0x17b1   :  { %8185 = vmatpush1.bf16.msra.mxu1 %v12583_v57  ;;  %4601 = vmatprep.mubr.f32.mxu1 %v11286_v25  ;;  %v12593_v57 = vld [vmem:[#allocation36_spill] sm:$0xff] }
0x17b2   :  { %8187 = vmatprep.subr.bf16.mxu1 %v12584_v36  ;;  %v12595_v36 = vld [vmem:[#allocation39_spill] sm:$0xff] }
0x17b5   :  { %8189 = vmatpush1.bf16.msra.mxu1 %v12585_v60  ;;  %v12596_v60 = vld [vmem:[#allocation41_spill] sm:$0xff] }
0x17b6   :  { %8191 = vmatprep.subr.bf16.mxu1 %v12586_v45  ;;  %v12597_v45 = vld [vmem:[#allocation43_spill] sm:$0xff] }
0x17b9   :  { %8193 = vmatpush1.bf16.msra.mxu1 %v12587_v6  ;;  %v12598_v6 = vld [vmem:[#allocation45_spill] sm:$0xff] }
0x17ba   :  { %8195 = vmatprep.subr.bf16.mxu1 %v12588_v44 }
0x17bd   :  { %8197 = vmatpush1.bf16.msra.mxu1 %v12589_v24 }
0x17be   :  { %8199 = vmatprep.subr.bf16.mxu1 %v12590_v47  ;;  %v4321_v47 = vstv %s4320_s14 }
0x17c1   :  { %8201 = vmatpush1.bf16.msra.mxu1 %v12591_v49  ;;  %v5872_v49 = vld [vmem:[%s11731_s1 + $0x28] sm:$0xff] }
0x17c2   :  { %8203 = vmatprep.subr.bf16.mxu1 %v12592_v19  ;;  %v4318_v19 = vstv %s4317_s30 }
0x17c5   :  { %8205 = vmatpush1.bf16.msra.mxu1 %v12593_v57  ;;  %v4319_v57 = vmul.f32 %v5872_v49, %v4318_v19  ;;  %v12604_v49 = vld [vmem:[#allocation51_spill] sm:$0xff]  ;;  %v12611_v19 = vld [vmem:[#allocation58_spill] sm:$0xff] }
0x17c6   :  { %8207 = vmatprep.subr.bf16.mxu1 %v12594_v7 }
0x17c9   :  { %8209 = vmatpush1.bf16.msra.mxu1 %v12595_v36 }
0x17ca   :  { %8211 = vmatprep.subr.bf16.mxu1 %v12596_v60  ;;  %v12599_v60 = vld [vmem:[#allocation46_spill] sm:$0xff] }
0x17cd   :  { %8213 = vmatpush1.bf16.msra.mxu1 %v12597_v45  ;;  %v12600_v45 = vld [vmem:[#allocation47_spill] sm:$0xff] }
0x17ce   :  { %8247 = vmatprep.subr.bf16.mxu1 %v12598_v6  ;;  %v12601_v6 = vld [vmem:[#allocation48_spill] sm:$0xff] }
0x1863   :  { %v4310_v24 = vpop.f32.mrb[28].mxu1 }
0x1864   :  { %v4322_v7 = vmul.f32 %v4321_v47, %v4310_v24  ;;  %v6460_v44 = vpop.f32.mrb[29].mxu1  ;;  %v12605_v47 = vld [vmem:[#allocation52_spill] sm:$0xff]  ;;  %v12610_v24 = vld [vmem:[#allocation57_spill] sm:$0xff] }
0x1865   :  { %v12609_v44 = vld [vmem:[#allocation56_spill] sm:$0xff] }
0x1866   :  { %v4323_v36 = vadd.f32 %v4322_v7, %v4319_v57  ;;  %v12606_v57 = vld [vmem:[#allocation53_spill] sm:$0xff]  ;;  %v12607_v7 = vld [vmem:[#allocation54_spill] sm:$0xff] }
0x1868   :  { %4531 = vmatmul.mubr.f32.vlgmr.msra.gmra.mrb[30].mxu0 %v4323_v36  ;;  %4602 = vmatmul.mubr.f32.vlgmr.msra.gmra.mrb[30].mxu1 %v4323_v36  ;;  %v12608_v36 = vld [vmem:[#allocation55_spill] sm:$0xff] }
0x1869   :  { %8217 = vmatpush1.bf16.msra.mxu0 %v12599_v60  ;;  %8249 = vmatpush1.bf16.msra.mxu1 %v12600_v45 }
0x186a   :  { %8219 = vmatprep.subr.bf16.mxu0 %v12601_v6  ;;  %8251 = vmatprep.subr.bf16.mxu1 %v12602_v52  ;;  %v12612_v52 = vld [vmem:[#allocation59_spill] sm:$0xff]  ;;  %v12613_v6 = vld [vmem:[#allocation60_spill] sm:$0xff] }
0x186b   :  { %4700 = vmatprep.mubr.f32.mxu0 %v11286_v25  ;;  %4771 = vmatprep.mubr.f32.mxu1 %v11286_v25 }
0x186d   :  { %8221 = vmatpush1.bf16.msra.mxu0 %v12603_v30  ;;  %8253 = vmatpush1.bf16.msra.mxu1 %v12604_v49  ;;  %v12614_v30 = vld [vmem:[#allocation61_spill] sm:$0xff]  ;;  %v12615_v49 = vld [vmem:[#allocation62_spill] sm:$0xff] }
0x186e   :  { %8223 = vmatprep.subr.bf16.mxu0 %v12605_v47  ;;  %8255 = vmatprep.subr.bf16.mxu1 %v12606_v57  ;;  %v12616_v47 = vld [vmem:[#allocation63_spill] sm:$0xff]  ;;  %v12617_v57 = vld [vmem:[#allocation64_spill] sm:$0xff] }
0x1871   :  { %8225 = vmatpush1.bf16.msra.mxu0 %v12607_v7  ;;  %8257 = vmatpush1.bf16.msra.mxu1 %v12608_v36  ;;  %v12618_v7 = vld [vmem:[#allocation65_spill] sm:$0xff]  ;;  %v12619_v36 = vld [vmem:[#allocation66_spill] sm:$0xff] }
0x1872   :  { %8227 = vmatprep.subr.bf16.mxu0 %v12609_v44  ;;  %8259 = vmatprep.subr.bf16.mxu1 %v12610_v24  ;;  %v12620_v44 = vld [vmem:[#allocation67_spill] sm:$0xff]  ;;  %v12621_v24 = vld [vmem:[#allocation68_spill] sm:$0xff] }
0x1875   :  { %8229 = vmatpush1.bf16.msra.mxu0 %v12611_v19  ;;  %8261 = vmatpush1.bf16.msra.mxu1 %v12612_v52  ;;  %v12622_v19 = vld [vmem:[#allocation69_spill] sm:$0xff]  ;;  %v12623_v52 = vld [vmem:[#allocation70_spill] sm:$0xff] }
0x1876   :  { %8231 = vmatprep.subr.bf16.mxu0 %v12613_v6  ;;  %8263 = vmatprep.subr.bf16.mxu1 %v12614_v30  ;;  %v12624_v6 = vld [vmem:[#allocation71_spill] sm:$0xff]  ;;  %v12625_v30 = vld [vmem:[#allocation72_spill] sm:$0xff] }
0x1879   :  { %8233 = vmatpush1.bf16.msra.mxu0 %v12615_v49  ;;  %8265 = vmatpush1.bf16.msra.mxu1 %v12616_v47  ;;  %v12626_v49 = vld [vmem:[#allocation73_spill] sm:$0xff]  ;;  %v12627_v47 = vld [vmem:[#allocation74_spill] sm:$0xff] }
0x187a   :  { %8235 = vmatprep.subr.bf16.mxu0 %v12617_v57  ;;  %8267 = vmatprep.subr.bf16.mxu1 %v12618_v7  ;;  %v12628_v57 = vld [vmem:[#allocation75_spill] sm:$0xff]  ;;  %v12629_v7 = vld [vmem:[#allocation76_spill] sm:$0xff] }
0x187d   :  { %8237 = vmatpush1.bf16.msra.mxu0 %v12619_v36  ;;  %8269 = vmatpush1.bf16.msra.mxu1 %v12620_v44  ;;  %v12630_v36 = vld [vmem:[#allocation77_spill] sm:$0xff] }
0x187e   :  { %8239 = vmatprep.subr.bf16.mxu0 %v12621_v24  ;;  %8271 = vmatprep.subr.bf16.mxu1 %v12622_v19  ;;  %v12631_v19 = vld [vmem:[#allocation78_spill] sm:$0xff]  ;;  %v12645_v24 = vld [vmem:[#allocation92_spill] sm:$0xff] }
0x1881   :  { %8241 = vmatpush1.bf16.msra.mxu0 %v12623_v52  ;;  %8273 = vmatpush1.bf16.msra.mxu1 %v12624_v6  ;;  %v12632_v52 = vld [vmem:[#allocation79_spill] sm:$0xff]  ;;  %v12633_v6 = vld [vmem:[#allocation80_spill] sm:$0xff] }
0x1882   :  { %8243 = vmatprep.subr.bf16.mxu0 %v12625_v30  ;;  %8275 = vmatprep.subr.bf16.mxu1 %v12626_v49  ;;  %v12634_v30 = vld [vmem:[#allocation81_spill] sm:$0xff]  ;;  %v12644_v49 = vld [vmem:[#allocation91_spill] sm:$0xff] }
0x1885   :  { %8245 = vmatpush1.bf16.msra.mxu0 %v12627_v47  ;;  %8277 = vmatpush1.bf16.msra.mxu1 %v12628_v57  ;;  %v12635_v57 = vld [vmem:[#allocation82_spill] sm:$0xff]  ;;  %v12638_v47 = vld [vmem:[#allocation85_spill] sm:$0xff] }
0x1886   :  { %8279 = vmatprep.subr.bf16.mxu0 %v12629_v7  ;;  %8311 = vmatprep.subr.bf16.mxu1 %v12630_v36  ;;  %v12636_v7 = vld [vmem:[#allocation83_spill] sm:$0xff]  ;;  %v12637_v36 = vld [vmem:[#allocation84_spill] sm:$0xff] }
0x1888   :  { %4701 = vmatmul.mubr.f32.vlgmr.msra.gmra.mrb[32].mxu0 %v11331_v61  ;;  %4772 = vmatmul.mubr.f32.vlgmr.msra.gmra.mrb[32].mxu1 %v11331_v61  ;;  %v12639_v61 = vld [vmem:[#allocation86_spill] sm:$0xff] }
0x1889   :  { %8281 = vmatpush1.bf16.msra.mxu0 %v12631_v19  ;;  %8313 = vmatpush1.bf16.msra.mxu1 %v12632_v52  ;;  %v12640_v19 = vld [vmem:[#allocation87_spill] sm:$0xff]  ;;  %v12641_v52 = vld [vmem:[#allocation88_spill] sm:$0xff] }
0x188a   :  { %8283 = vmatprep.subr.bf16.mxu0 %v12633_v6  ;;  %8315 = vmatprep.subr.bf16.mxu1 %v12634_v30  ;;  %v12642_v6 = vld [vmem:[#allocation89_spill] sm:$0xff]  ;;  %v12643_v30 = vld [vmem:[#allocation90_spill] sm:$0xff] }
0x188b   :  { %4842 = vmatprep.mubr.f32.mxu0 %v11286_v25  ;;  %4913 = vmatprep.mubr.f32.mxu1 %v11286_v25 }
0x188d   :  { %8285 = vmatpush1.bf16.msra.mxu0 %v12635_v57  ;;  %8317 = vmatpush1.bf16.msra.mxu1 %v12636_v7  ;;  %v12646_v57 = vld [vmem:[#allocation93_spill] sm:$0xff]  ;;  %v12647_v7 = vld [vmem:[#allocation94_spill] sm:$0xff] }
0x188e   :  { %8287 = vmatprep.subr.bf16.mxu0 %v12637_v36  ;;  %8319 = vmatprep.subr.bf16.mxu1 %v12638_v47  ;;  %v12648_v36 = vld [vmem:[#allocation95_spill] sm:$0xff]  ;;  %v12649_v47 = vld [vmem:[#allocation96_spill] sm:$0xff] }
0x1891   :  { %8289 = vmatpush1.bf16.msra.mxu0 %v12639_v61  ;;  %8321 = vmatpush1.bf16.msra.mxu1 %v12640_v19  ;;  %v12650_v61 = vld [vmem:[#allocation97_spill] sm:$0xff]  ;;  %v12651_v19 = vld [vmem:[#allocation98_spill] sm:$0xff] }
0x1892   :  { %8291 = vmatprep.subr.bf16.mxu0 %v12641_v52  ;;  %8323 = vmatprep.subr.bf16.mxu1 %v12642_v6  ;;  %v12652_v52 = vld [vmem:[#allocation99_spill] sm:$0xff]  ;;  %v12653_v6 = vld [vmem:[#allocation100_spill] sm:$0xff] }
0x1895   :  { %8293 = vmatpush1.bf16.msra.mxu0 %v12643_v30  ;;  %8325 = vmatpush1.bf16.msra.mxu1 %v12644_v49  ;;  %v12654_v30 = vld [vmem:[#allocation101_spill] sm:$0xff]  ;;  %v12655_v49 = vld [vmem:[#allocation102_spill] sm:$0xff] }
0x1896   :  { %8295 = vmatprep.subr.bf16.mxu0 %v12645_v24  ;;  %8327 = vmatprep.subr.bf16.mxu1 %v12646_v57  ;;  %v12656_v24 = vld [vmem:[#allocation103_spill] sm:$0xff]  ;;  %v12657_v57 = vld [vmem:[#allocation104_spill] sm:$0xff] }
0x1899   :  { %8297 = vmatpush1.bf16.msra.mxu0 %v12647_v7  ;;  %8329 = vmatpush1.bf16.msra.mxu1 %v12648_v36  ;;  %v12658_v7 = vld [vmem:[#allocation105_spill] sm:$0xff]  ;;  %v12659_v36 = vld [vmem:[#allocation106_spill] sm:$0xff] }
0x189a   :  { %8299 = vmatprep.subr.bf16.mxu0 %v12649_v47  ;;  %8331 = vmatprep.subr.bf16.mxu1 %v12650_v61  ;;  %v12660_v47 = vld [vmem:[#allocation107_spill] sm:$0xff] }
0x189d   :  { %8301 = vmatpush1.bf16.msra.mxu0 %v12651_v19  ;;  %8333 = vmatpush1.bf16.msra.mxu1 %v12652_v52  ;;  %v12661_v19 = vld [vmem:[#allocation108_spill] sm:$0xff] }
0x189e   :  { %8303 = vmatprep.subr.bf16.mxu0 %v12653_v6  ;;  %8335 = vmatprep.subr.bf16.mxu1 %v12654_v30 }
0x18a1   :  { %8305 = vmatpush1.bf16.msra.mxu0 %v12655_v49  ;;  %8337 = vmatpush1.bf16.msra.mxu1 %v12656_v24 }
0x18a2   :  { %8307 = vmatprep.subr.bf16.mxu0 %v12657_v57  ;;  %8339 = vmatprep.subr.bf16.mxu1 %v12658_v7 }
0x18a5   :  { %8309 = vmatpush1.bf16.msra.mxu0 %v12659_v36  ;;  %8341 = vmatpush1.bf16.msra.mxu1 %v12660_v47 }
0x18a6   :  { %8342 = vmatprep.subr.bf16.mxu0 %v12123_v12  ;;  %8366 = vmatprep.subr.bf16.mxu1 %v12123_v12 }
0x193b   :  { %v4532_v52 = vpop.f32.mrb[30].mxu0  ;;  %v4603_v6 = vpop.f32.mrb[30].mxu1 }
0x193c   :  { %v4608_v30 = vadd.f32 %v4532_v52, %v12661_v19  ;;  %v4534_v61 = vpop.f32.mrb[31].mxu0  ;;  %v4605_v49 = vpop.f32.mrb[31].mxu1  ;;  %v4610_v47 = vadd.f32 %v4603_v6, %v12219_v5 }
0x193d   :  { %v4609_v24 = vadd.f32 %v4534_v61, %v12331_v10  ;;  %v4611_v36 = vadd.f32 %v4605_v49, %v12218_v54 }
0x193e   :  { %v5874_v44 = vmul.f32 -1.442695, %v4608_v30 }
0x193f   :  { %v5875_v57 = vmul.f32 -1.442695, %v4609_v24  ;;  %v5876_v7 = vmul.f32 -1.442695, %v4611_v36  ;;  %v12668_v36 = vld [vmem:[#allocation126_spill] sm:$0xff] }
0x1940   :  { %8894 = vpow2.f32 %v5874_v44 }
0x1941   :  { %8896 = vpow2.f32 %v5875_v57 }
0x1942   :  { %8898 = vpow2.f32 %v5876_v7 }
0x1943   :  { %8900 = vtanh.f32 %v4610_v47  ;;  %v12667_v47 = vld [vmem:[#allocation117_spill] sm:$0xff] }
0x194a   :  { %v8895_v45 = vpop.eup %8894 }
0x194b   :  { %v8897_v60 = vpop.eup %8896  ;;  %v4615_v13 = vadd.f32 1.0, %v8895_v45 }
0x194c   :  { %v4621_v28 = vadd.f32 1.0, %v8897_v60  ;;  %v8899_v52 = vpop.eup %8898  ;;  %v12666_v60 = vld [vmem:[#allocation125_spill] sm:$0xff] }
0x194d   :  { %8902 = vrcp.f32 %v4615_v13  ;;  %v8901_v19 = vpop.eup %8900  ;;  %v4628_v44 = vadd.f32 1.0, %v8899_v52  ;;  %v12664_v13 = vld [vmem:[#allocation124_spill] sm:$0xff]  ;;  %v12670_v52 = vld [vmem:[#allocation127_spill] sm:$0xff] }
0x194e   :  { %8904 = vrcp.f32 %v4621_v28  ;;  %v12663_v28 = vld [vmem:[#allocation115_spill] sm:$0xff] }
0x194f   :  { %8906 = vrcp.f32 %v4628_v44  ;;  %v12674_v44 = vld [vmem:[#allocation8_spill] sm:$0xff] }
0x1957   :  { %v8903_v61 = vpop.eup %8902 }
0x1958   :  { %v8905_v30 = vpop.eup %8904  ;;  %v4632_v24 = vmul.f32 %v8903_v61, %v8901_v19  ;;  %v12669_v19 = vld [vmem:[#allocation118_spill] sm:$0xff]  ;;  %v12671_v61 = vld [vmem:[#allocation119_spill] sm:$0xff] }
0x1959   :  { %v4631_v57 = vmul.f32 %v8905_v30, %v11278_v3  ;;  %v8907_v6 = vpop.eup %8906  ;;  %v12662_v3 = vld [vmem:[#allocation123_spill] sm:$0xff]  ;;  %v12672_v30 = vld [vmem:[#allocation128_spill] sm:$0xff] }
0x195b   :  { %v11491_v49 = vadd.f32 %v4632_v24, %v4631_v57  ;;  %v12673_v24 = vld [vmem:[#allocation120_spill] sm:$0xff]  ;;  %v12675_v57 = vld [vmem:[#allocation129_spill] sm:$0xff] }
0x195d   :  { %8908 = vtanh.f32 %v11491_v49 }
0x1967   :  { %v8909_v45 = vpop.eup %8908 }
0x1968   :  { %v11494_v7 = vmul.f32 %v8909_v45, %v8907_v6  ;;  %v12676_v6 = vld [vmem:[#allocation9_spill] sm:$0xff] }
0x196a   :  { %4843 = vmatmul.mubr.f32.vlgmr.msra.gmra.mrb[32].mxu0 %v11494_v7  ;;  %4914 = vmatmul.mubr.f32.vlgmr.msra.gmra.mrb[32].mxu1 %v11494_v7 }
0x196b   :  { %8344 = vmatpush3.bf16.msra.mxu0 %v12221_v18  ;;  %6493 = vmatprep.mubr.msk.f32.mxu0 %vm9005_vm0, %v11286_v25 }
0x196c   :  { %8345 = vmatprep.subr.bf16.mxu0 %v12123_v12  ;;  %8368 = vmatpush3.bf16.msra.mxu1 %v10463_v41  ;;  %v12665_v41 = vld [vmem:[#allocation116_spill] sm:$0xff] }
0x196d   :  { %8369 = vmatprep.subr.bf16.mxu1 %v12123_v12  ;;  %6528 = vmatprep.mubr.msk.f32.mxu1 %vm9005_vm0, %v11286_v25 }
0x196f   :  { %8347 = vmatpush3.bf16.msra.mxu0 %v12222_v26 }
0x1970   :  { %8348 = vmatprep.subr.bf16.mxu0 %v12123_v12  ;;  %8371 = vmatpush3.bf16.msra.mxu1 %v12662_v3 }
0x1971   :  { %8372 = vmatprep.subr.bf16.mxu1 %v12123_v12 }
0x1973   :  { %8350 = vmatpush3.bf16.msra.mxu0 %v12663_v28 }
0x1974   :  { %8351 = vmatprep.subr.bf16.mxu0 %v12123_v12  ;;  %8374 = vmatpush3.bf16.msra.mxu1 %v12664_v13  ;;  %v12677_v13 = vld [vmem:[#allocation121_spill] sm:$0xff] }
0x1975   :  { %8375 = vmatprep.subr.bf16.mxu1 %v12123_v12 }
0x1977   :  { %8353 = vmatpush3.bf16.msra.mxu0 %v12665_v41 }
0x1978   :  { %8354 = vmatprep.subr.bf16.mxu0 %v12123_v12  ;;  %8377 = vmatpush3.bf16.msra.mxu1 %v12666_v60 }
0x1979   :  { %8378 = vmatprep.subr.bf16.mxu1 %v12123_v12 }
0x197b   :  { %8356 = vmatpush3.bf16.msra.mxu0 %v12667_v47 }
0x197c   :  { %8357 = vmatprep.subr.bf16.mxu0 %v12123_v12  ;;  %8380 = vmatpush3.bf16.msra.mxu1 %v12668_v36 }
0x197d   :  { %8381 = vmatprep.subr.bf16.mxu1 %v12123_v12 }
0x197f   :  { %8359 = vmatpush3.bf16.msra.mxu0 %v12669_v19 }
0x1980   :  { %8360 = vmatprep.subr.bf16.mxu0 %v12123_v12  ;;  %8383 = vmatpush3.bf16.msra.mxu1 %v12670_v52 }
0x1981   :  { %8384 = vmatprep.subr.bf16.mxu1 %v12123_v12 }
0x1983   :  { %8362 = vmatpush3.bf16.msra.mxu0 %v12671_v61 }
0x1984   :  { %8363 = vmatprep.subr.bf16.mxu0 %v12123_v12  ;;  %8386 = vmatpush3.bf16.msra.mxu1 %v12672_v30 }
0x1985   :  { %8387 = vmatprep.subr.bf16.mxu1 %v12123_v12 }
0x1987   :  { %8365 = vmatpush3.bf16.msra.mxu0 %v12673_v24 }
0x1988   :  { %8391 = vmatprep.subr.bf16.mxu0 %v12674_v44  ;;  %8389 = vmatpush3.bf16.msra.mxu1 %v12675_v57 }
0x1989   :  { %8423 = vmatprep.subr.bf16.mxu1 %v12676_v6 }
0x1a3d   :  { %v4844_v45 = vpop.f32.mrb[32].mxu0  ;;  %v4915_v3 = vpop.f32.mrb[32].mxu1 }
0x1a3e   :  { %v4920_v60 = vadd.f32 %v4844_v45, %v12677_v13  ;;  %v4846_v36 = vpop.f32.mrb[33].mxu0  ;;  %v4917_v52 = vpop.f32.mrb[33].mxu1  ;;  %v4922_v44 = vadd.f32 %v4915_v3, %v10401_v59 }
0x1a3f   :  { %v4921_v61 = vadd.f32 %v4846_v36, %v10390_v32  ;;  %v4923_v24 = vadd.f32 %v4917_v52, %v10396_v21 }
0x1a40   :  { %v5877_v19 = vmul.f32 -1.442695, %v4920_v60 }
0x1a41   :  { %v5878_v30 = vmul.f32 -1.442695, %v4921_v61  ;;  %v5879_v47 = vmul.f32 -1.442695, %v4923_v24 }
0x1a42   :  { %8910 = vpow2.f32 %v5877_v19 }
0x1a43   :  { %8912 = vpow2.f32 %v5878_v30 }
0x1a44   :  { %8914 = vpow2.f32 %v5879_v47 }
0x1a45   :  { %8916 = vtanh.f32 %v4922_v44  ;;  %v5103_v44 = vstv %s5102_s0 }
0x1a4c   :  { %v8911_v57 = vpop.eup %8910 }
0x1a4d   :  { %v8913_v41 = vpop.eup %8912  ;;  %v4927_v6 = vadd.f32 1.0, %v8911_v57  ;;  %v5106_v57 = vstv %s5105_s17 }
0x1a4e   :  { %v4933_v28 = vadd.f32 1.0, %v8913_v41  ;;  %v8915_v45 = vpop.eup %8914  ;;  %v12709_v41 = vld [vmem:[#allocation45_spill] sm:$0xff] }
0x1a4f   :  { %8918 = vrcp.f32 %v4927_v6  ;;  %v8917_v13 = vpop.eup %8916  ;;  %v4940_v19 = vadd.f32 1.0, %v8915_v45 }
0x1a50   :  { %8920 = vrcp.f32 %v4933_v28  ;;  %v12708_v28 = vld [vmem:[#allocation43_spill] sm:$0xff] }
0x1a51   :  { %8922 = vrcp.f32 %v4940_v19  ;;  %v12710_v19 = vld [vmem:[#allocation46_spill] sm:$0xff] }
0x1a59   :  { %v8919_v36 = vpop.eup %8918 }
0x1a5a   :  { %v8921_v60 = vpop.eup %8920  ;;  %v4944_v61 = vmul.f32 %v8919_v36, %v8917_v13  ;;  %v5882_v13 = vld [vmem:[%s11731_s1 + $0x30] sm:$0xff]  ;;  %s9007_s1 = smov [#allocation4]  }
0x1a5b   :  { %v4943_v30 = vmul.f32 %v8921_v60, %v11328_v39  ;;  %v8923_v24 = vpop.eup %8922  ;;  %v12706_v39 = vld [vmem:[#allocation39_spill] sm:$0xff]  ;;  %v5104_v6 = vmul.f32 %v5882_v13, %v5103_v44  ;;  %v12753_v13 = vld [vmem:[#allocation89_spill] sm:$0xff]  ;;  %v12754_v44 = vld [vmem:[#allocation90_spill] sm:$0xff]  ;;  %s5810_s6 = sshll.u32 %s9007_s1, 4  ;;  %s5811_s6 = int_to_ptr.vmem [resolvable:$true] %s5810_s6 }
0x1a5c   :  { %s8976_s19 = scalar_lea.vmem %s5811_s6, 1024  ;;  %p8981_p6 = scmp.lt.s32.totalorder %s5811_s6, %s5811_s6 }
0x1a5d   :  { %v11539_v52 = vadd.f32 %v4944_v61, %v4943_v30  ;;  %v12711_v30 = vld [vmem:[#allocation47_spill] sm:$0xff]  ;;  %p8977_p5 = scmp.ne.s32.totalorder %s5811_s6, %s8976_s19  ;;  %p8982_p7 = scmp.lt.s32.totalorder %s8976_s19, %s8976_s19 }
0x1a5f   :  { %8924 = vtanh.f32 %v11539_v52  ;;  %p8983_p8 = por %p8982_p7, %p8981_p6 }
0x1a61   :  { %p8984_p9 = pnand %p8983_p8, %p8977_p5 }
0x1a69   :  { %v8925_v3 = vpop.eup %8924 }
0x1a6a   :  { %v11542_v47 = vmul.f32 %v8925_v3, %v8923_v24  ;;  %v12712_v24 = vld [vmem:[#allocation48_spill] sm:$0xff]  ;;  %v12713_v3 = vld [vmem:[#allocation49_spill] sm:$0xff] }
0x1a6c   :  { %6494 = vmatmul.mubr.f32.vlgmr.msra.gmra.mrb[34].mxu0 %v11542_v47 }
0x1a6d   :  { %8393 = vmatpush1.bf16.msra.mxu0 %v9108_v9  ;;  %5173 = vmatprep.mubr.f32.mxu0 %v11286_v25 }
0x1a6e   :  { %8395 = vmatprep.subr.bf16.mxu0 %v9133_v17 }
0x1a71   :  { %8397 = vmatpush1.bf16.msra.mxu0 %v9147_v22 }
0x1a72   :  { %8399 = vmatprep.subr.bf16.mxu0 %v9162_v27 }
0x1a75   :  { %8401 = vmatpush1.bf16.msra.mxu0 %v9185_v35 }
0x1a76   :  { %8403 = vmatprep.subr.bf16.mxu0 %v9200_v40 }
0x1a79   :  { %8405 = vmatpush1.bf16.msra.mxu0 %v9233_v51  ;;  %v12678_v51 = vld [vmem:[#allocation10_spill] sm:$0xff] }
0x1a7a   :  { %8407 = vmatprep.subr.bf16.mxu0 %v9239_v53  ;;  %v12679_v53 = vld [vmem:[#allocation11_spill] sm:$0xff] }
0x1a7d   :  { %8409 = vmatpush1.bf16.msra.mxu0 %v9269_v63  ;;  %v12680_v63 = vld [vmem:[#allocation12_spill] sm:$0xff] }
0x1a7e   :  { %8411 = vmatprep.subr.bf16.mxu0 %v9275_v1  ;;  %v12681_v1 = vld [vmem:[#allocation13_spill] sm:$0xff] }
0x1a81   :  { %8413 = vmatpush1.bf16.msra.mxu0 %v9305_v16  ;;  %v12682_v16 = vld [vmem:[#allocation14_spill] sm:$0xff] }
0x1a82   :  { %8415 = vmatprep.subr.bf16.mxu0 %v9311_v20  ;;  %v12683_v20 = vld [vmem:[#allocation15_spill] sm:$0xff] }
0x1a85   :  { %8417 = vmatpush1.bf16.msra.mxu0 %v9341_v34  ;;  %v12684_v34 = vld [vmem:[#allocation16_spill] sm:$0xff] }
0x1a86   :  { %8419 = vmatprep.subr.bf16.mxu0 %v9347_v37  ;;  %v12685_v37 = vld [vmem:[#allocation17_spill] sm:$0xff] }
0x1a89   :  { %8421 = vmatpush1.bf16.msra.mxu0 %v9377_v50  ;;  %v12686_v50 = vld [vmem:[#allocation18_spill] sm:$0xff] }
0x1a8a   :  { %8455 = vmatprep.subr.bf16.mxu0 %v9383_v55  ;;  %v12687_v55 = vld [vmem:[#allocation19_spill] sm:$0xff] }
0x1a8c   :  { %5174 = vmatmul.mubr.f32.vlgmr.msra.gmra.mrb[36].mxu0 %v11494_v7 }
0x1a8d   :  { %8457 = vmatpush1.bf16.msra.mxu0 %v9416_v11  ;;  %5315 = vmatprep.mubr.f32.mxu0 %v11286_v25  ;;  %v12688_v11 = vld [vmem:[#allocation20_spill] sm:$0xff] }
0x1a8e   :  { %8459 = vmatprep.subr.bf16.mxu0 %v9422_v14  ;;  %v12689_v14 = vld [vmem:[#allocation21_spill] sm:$0xff] }
0x1a91   :  { %8461 = vmatpush1.bf16.msra.mxu0 %v9452_v38  ;;  %v12690_v38 = vld [vmem:[#allocation22_spill] sm:$0xff] }
0x1a92   :  { %8463 = vmatprep.subr.bf16.mxu0 %v9458_v42  ;;  %v12691_v42 = vld [vmem:[#allocation23_spill] sm:$0xff] }
0x1a95   :  { %8465 = vmatpush1.bf16.msra.mxu0 %v9490_v62  ;;  %v12692_v62 = vld [vmem:[#allocation24_spill] sm:$0xff] }
0x1a96   :  { %8467 = vmatprep.subr.bf16.mxu0 %v9496_v4  ;;  %v12693_v4 = vld [vmem:[#allocation25_spill] sm:$0xff] }
0x1a99   :  { %8469 = vmatpush1.bf16.msra.mxu0 %v9526_v33  ;;  %v12694_v33 = vld [vmem:[#allocation26_spill] sm:$0xff] }
0x1a9a   :  { %8471 = vmatprep.subr.bf16.mxu0 %v9532_v46  ;;  %v12695_v46 = vld [vmem:[#allocation27_spill] sm:$0xff] }
0x1a9d   :  { %8473 = vmatpush1.bf16.msra.mxu0 %v9562_v23  ;;  %v12697_v23 = vld [vmem:[#allocation29_spill] sm:$0xff] }
0x1a9e   :  { %8475 = vmatprep.subr.bf16.mxu0 %v9568_v29  ;;  %v12698_v29 = vld [vmem:[#allocation30_spill] sm:$0xff] }
0x1aa1   :  { %8477 = vmatpush1.bf16.msra.mxu0 %v9598_v15  ;;  %v12699_v15 = vld [vmem:[#allocation31_spill] sm:$0xff] }
0x1aa2   :  { %8479 = vmatprep.subr.bf16.mxu0 %v9604_v58  ;;  %v12696_v58 = vld [vmem:[#allocation28_spill] sm:$0xff] }
0x1aa5   :  { %8481 = vmatpush1.bf16.msra.mxu0 %v12231_v8  ;;  %v12700_v8 = vld [vmem:[#allocation32_spill] sm:$0xff] }
0x1aa6   :  { %8483 = vmatprep.subr.bf16.mxu0 %v12232_v43  ;;  %v12701_v43 = vld [vmem:[#allocation33_spill] sm:$0xff] }
0x1aa9   :  { %8485 = vmatpush1.bf16.msra.mxu0 %v12233_v48  ;;  %v12702_v48 = vld [vmem:[#allocation34_spill] sm:$0xff] }
0x1aaa   :  { %8519 = vmatprep.subr.bf16.mxu0 %v12343_v2  ;;  %v12703_v2 = vld [vmem:[#allocation35_spill] sm:$0xff] }
0x1b3f   :  { %v5014_v9 = vpop.f32.mrb[34].mxu0 }
0x1b40   :  { %v5015_v17 = vadd.f32 %v11372_v31, %v5014_v9  ;;  %v6495_v22 = vpop.f32.mrb[35].mxu0  ;;  %v12714_v9 = vld [vmem:[#allocation50_spill] sm:$0xff] }
0x1b41   :  { %v12716_v22 = vld [vmem:[#allocation52_spill] sm:$0xff] }
0x1b42   :  { %5019 = vst [vmem:[#allocation4 + $0x30] sm:$0xff] %v5015_v17  ;;  %5020 = vmax.xlane.f32.xlu0 %v5015_v17 }
0x1bcf   :  { %v5021_v27 = vpop.xlane.xlu0 %5020 }
0x1bd0   :  { %vm5022_vm11 = vcmp.eq.f32.partialorder %v5015_v17, %v5021_v27  ;;  %v12715_v17 = vld [vmem:[#allocation51_spill] sm:$0xff]  ;;  %v12717_v27 = vld [vmem:[#allocation53_spill] sm:$0xff] }
0x1bd1   :  { %v5023_v35 = vsel %vm5022_vm11, %v12456_v0, 128.0 }
0x1bd2   :  { %5024 = vmin.xlane.f32.xlu1 %v5023_v35  ;;  %v12718_v35 = vld [vmem:[#allocation54_spill] sm:$0xff] }
0x1c5f   :  { %v5025_v40 = vpop.xlane.xlu1 %5024 }
0x1c60   :  { %vm5026_vm12 = vcmp.eq.f32.partialorder %v12456_v0, %v5025_v40  ;;  %v12704_v0 = vld [vmem:[#allocation36_spill] sm:$0xff]  ;;  %v12719_v40 = vld [vmem:[#allocation55_spill] sm:$0xff] }
0x1c61   :  { %6529 = vmatmul.mubr.msk.f32.vlgmr.msra.gmra.mrb[34].mxu1 %vm5026_vm12, %v12457_v56  ;;  %v12705_v56 = vld [vmem:[#allocation37_spill] sm:$0xff] }
0x1c62   :  { %8425 = vmatpush1.bf16.msra.mxu1 %v12678_v51  ;;  %5244 = vmatprep.mubr.f32.mxu1 %v11286_v25  ;;  %v12720_v51 = vld [vmem:[#allocation56_spill] sm:$0xff] }
0x1c63   :  { %8427 = vmatprep.subr.bf16.mxu1 %v12679_v53  ;;  %v12721_v53 = vld [vmem:[#allocation57_spill] sm:$0xff] }
0x1c66   :  { %8429 = vmatpush1.bf16.msra.mxu1 %v12680_v63  ;;  %v12722_v63 = vld [vmem:[#allocation58_spill] sm:$0xff] }
0x1c67   :  { %8431 = vmatprep.subr.bf16.mxu1 %v12681_v1  ;;  %v12723_v1 = vld [vmem:[#allocation59_spill] sm:$0xff] }
0x1c6a   :  { %8433 = vmatpush1.bf16.msra.mxu1 %v12682_v16  ;;  %v12724_v16 = vld [vmem:[#allocation60_spill] sm:$0xff] }
0x1c6b   :  { %8435 = vmatprep.subr.bf16.mxu1 %v12683_v20  ;;  %v12725_v20 = vld [vmem:[#allocation61_spill] sm:$0xff] }
0x1c6e   :  { %8437 = vmatpush1.bf16.msra.mxu1 %v12684_v34  ;;  %v12726_v34 = vld [vmem:[#allocation62_spill] sm:$0xff] }
0x1c6f   :  { %8439 = vmatprep.subr.bf16.mxu1 %v12685_v37  ;;  %v12727_v37 = vld [vmem:[#allocation63_spill] sm:$0xff] }
0x1c72   :  { %8441 = vmatpush1.bf16.msra.mxu1 %v12686_v50  ;;  %v12728_v50 = vld [vmem:[#allocation64_spill] sm:$0xff] }
0x1c73   :  { %8443 = vmatprep.subr.bf16.mxu1 %v12687_v55  ;;  %v12729_v55 = vld [vmem:[#allocation65_spill] sm:$0xff] }
0x1c76   :  { %8445 = vmatpush1.bf16.msra.mxu1 %v12688_v11  ;;  %v12730_v11 = vld [vmem:[#allocation66_spill] sm:$0xff] }
0x1c77   :  { %8447 = vmatprep.subr.bf16.mxu1 %v12689_v14  ;;  %v12731_v14 = vld [vmem:[#allocation67_spill] sm:$0xff] }
0x1c7a   :  { %8449 = vmatpush1.bf16.msra.mxu1 %v12690_v38  ;;  %v12732_v38 = vld [vmem:[#allocation68_spill] sm:$0xff] }
0x1c7b   :  { %8451 = vmatprep.subr.bf16.mxu1 %v12691_v42  ;;  %v12733_v42 = vld [vmem:[#allocation69_spill] sm:$0xff] }
0x1c7e   :  { %8453 = vmatpush1.bf16.msra.mxu1 %v12692_v62  ;;  %v12734_v62 = vld [vmem:[#allocation70_spill] sm:$0xff] }
0x1c7f   :  { %8487 = vmatprep.subr.bf16.mxu1 %v12693_v4  ;;  %v12735_v4 = vld [vmem:[#allocation71_spill] sm:$0xff] }
0x1c81   :  { %5245 = vmatmul.mubr.f32.vlgmr.msra.gmra.mrb[36].mxu1 %v11494_v7  ;;  %v12707_v7 = vld [vmem:[#allocation41_spill] sm:$0xff] }
0x1c82   :  { %8489 = vmatpush1.bf16.msra.mxu1 %v12694_v33  ;;  %5386 = vmatprep.mubr.f32.mxu1 %v11286_v25  ;;  %v12736_v33 = vld [vmem:[#allocation72_spill] sm:$0xff] }
0x1c83   :  { %8491 = vmatprep.subr.bf16.mxu1 %v12695_v46  ;;  %v12737_v46 = vld [vmem:[#allocation73_spill] sm:$0xff] }
0x1c86   :  { %8493 = vmatpush1.bf16.msra.mxu1 %v12696_v58  ;;  %v12738_v58 = vld [vmem:[#allocation74_spill] sm:$0xff] }
0x1c87   :  { %8495 = vmatprep.subr.bf16.mxu1 %v12697_v23  ;;  %v12739_v23 = vld [vmem:[#allocation75_spill] sm:$0xff] }
0x1c8a   :  { %8497 = vmatpush1.bf16.msra.mxu1 %v12698_v29  ;;  %v12740_v29 = vld [vmem:[#allocation76_spill] sm:$0xff] }
0x1c8b   :  { %8499 = vmatprep.subr.bf16.mxu1 %v12699_v15  ;;  %v12741_v15 = vld [vmem:[#allocation77_spill] sm:$0xff] }
0x1c8e   :  { %8501 = vmatpush1.bf16.msra.mxu1 %v12700_v8  ;;  %v12742_v8 = vld [vmem:[#allocation78_spill] sm:$0xff] }
0x1c8f   :  { %8503 = vmatprep.subr.bf16.mxu1 %v12701_v43  ;;  %v12743_v43 = vld [vmem:[#allocation79_spill] sm:$0xff] }
0x1c92   :  { %8505 = vmatpush1.bf16.msra.mxu1 %v12702_v48  ;;  %v12744_v48 = vld [vmem:[#allocation80_spill] sm:$0xff] }
0x1c93   :  { %8507 = vmatprep.subr.bf16.mxu1 %v12703_v2  ;;  %v12745_v2 = vld [vmem:[#allocation81_spill] sm:$0xff] }
0x1c96   :  { %8509 = vmatpush1.bf16.msra.mxu1 %v12704_v0  ;;  %v12746_v0 = vld [vmem:[#allocation82_spill] sm:$0xff] }
0x1c97   :  { %8511 = vmatprep.subr.bf16.mxu1 %v12705_v56  ;;  %v12747_v56 = vld [vmem:[#allocation83_spill] sm:$0xff] }
0x1c9a   :  { %8513 = vmatpush1.bf16.msra.mxu1 %v12706_v39  ;;  %v12748_v39 = vld [vmem:[#allocation84_spill] sm:$0xff] }
0x1c9b   :  { %8515 = vmatprep.subr.bf16.mxu1 %v12707_v7  ;;  %v12749_v7 = vld [vmem:[#allocation85_spill] sm:$0xff] }
0x1c9e   :  { %8517 = vmatpush1.bf16.msra.mxu1 %v12708_v28  ;;  %v12751_v28 = vld [vmem:[#allocation87_spill] sm:$0xff] }
0x1c9f   :  { %8551 = vmatprep.subr.bf16.mxu1 %v12709_v41  ;;  %v12752_v41 = vld [vmem:[#allocation88_spill] sm:$0xff] }
0x1d34   :  { %v5095_v45 = vpop.f32.mrb[34].mxu1 }
0x1d35   :  { %v5107_v36 = vmul.f32 %v5106_v57, %v5095_v45  ;;  %v6530_v60 = vpop.f32.mrb[35].mxu1  ;;  %v12755_v57 = vld [vmem:[#allocation91_spill] sm:$0xff]  ;;  %v12758_v45 = vld [vmem:[#allocation94_spill] sm:$0xff] }
0x1d36   :  { %v12760_v60 = vld [vmem:[#allocation96_spill] sm:$0xff] }
0x1d37   :  { %v5108_v61 = vadd.f32 %v5107_v36, %v5104_v6  ;;  %v12757_v6 = vld [vmem:[#allocation93_spill] sm:$0xff]  ;;  %v12759_v36 = vld [vmem:[#allocation95_spill] sm:$0xff] }
0x1d39   :  { %5316 = vmatmul.mubr.f32.vlgmr.msra.gmra.mrb[36].mxu0 %v5108_v61  ;;  %5387 = vmatmul.mubr.f32.vlgmr.msra.gmra.mrb[36].mxu1 %v5108_v61  ;;  %v12761_v61 = vld [vmem:[#allocation97_spill] sm:$0xff] }
0x1d3a   :  { %8521 = vmatpush1.bf16.msra.mxu0 %v12710_v19  ;;  %8553 = vmatpush1.bf16.msra.mxu1 %v12711_v30  ;;  %v12762_v19 = vld [vmem:[#allocation98_spill] sm:$0xff]  ;;  %v12763_v30 = vld [vmem:[#allocation99_spill] sm:$0xff] }
0x1d3b   :  { %8523 = vmatprep.subr.bf16.mxu0 %v12712_v24  ;;  %8555 = vmatprep.subr.bf16.mxu1 %v12713_v3  ;;  %v12764_v24 = vld [vmem:[#allocation100_spill] sm:$0xff]  ;;  %v12765_v3 = vld [vmem:[#allocation101_spill] sm:$0xff] }
0x1d3c   :  { %5485 = vmatprep.mubr.f32.mxu0 %v11286_v25  ;;  %5556 = vmatprep.mubr.f32.mxu1 %v11286_v25 }
0x1d3e   :  { %8525 = vmatpush1.bf16.msra.mxu0 %v12714_v9  ;;  %8557 = vmatpush1.bf16.msra.mxu1 %v12715_v17  ;;  %v12766_v9 = vld [vmem:[#allocation102_spill] sm:$0xff]  ;;  %v12767_v17 = vld [vmem:[#allocation103_spill] sm:$0xff] }
0x1d3f   :  { %8527 = vmatprep.subr.bf16.mxu0 %v12716_v22  ;;  %8559 = vmatprep.subr.bf16.mxu1 %v12717_v27  ;;  %v12768_v22 = vld [vmem:[#allocation104_spill] sm:$0xff]  ;;  %v12769_v27 = vld [vmem:[#allocation105_spill] sm:$0xff] }
0x1d42   :  { %8529 = vmatpush1.bf16.msra.mxu0 %v12718_v35  ;;  %8561 = vmatpush1.bf16.msra.mxu1 %v12719_v40  ;;  %v12770_v35 = vld [vmem:[#allocation106_spill] sm:$0xff]  ;;  %v12771_v40 = vld [vmem:[#allocation107_spill] sm:$0xff] }
0x1d43   :  { %8531 = vmatprep.subr.bf16.mxu0 %v12720_v51  ;;  %8563 = vmatprep.subr.bf16.mxu1 %v12721_v53 }
0x1d46   :  { %8533 = vmatpush1.bf16.msra.mxu0 %v12722_v63  ;;  %8565 = vmatpush1.bf16.msra.mxu1 %v12723_v1  ;;  %v12772_v63 = vld [vmem:[#allocation108_spill] sm:$0xff] }
0x1d47   :  { %8535 = vmatprep.subr.bf16.mxu0 %v12724_v16  ;;  %8567 = vmatprep.subr.bf16.mxu1 %v12725_v20 }
0x1d4a   :  { %8537 = vmatpush1.bf16.msra.mxu0 %v12726_v34  ;;  %8569 = vmatpush1.bf16.msra.mxu1 %v12727_v37 }
0x1d4b   :  { %8539 = vmatprep.subr.bf16.mxu0 %v12728_v50  ;;  %8571 = vmatprep.subr.bf16.mxu1 %v12729_v55 }
0x1d4e   :  { %8541 = vmatpush1.bf16.msra.mxu0 %v12730_v11  ;;  %8573 = vmatpush1.bf16.msra.mxu1 %v12731_v14 }
0x1d4f   :  { %8543 = vmatprep.subr.bf16.mxu0 %v12732_v38  ;;  %8575 = vmatprep.subr.bf16.mxu1 %v12733_v42 }
0x1d52   :  { %8545 = vmatpush1.bf16.msra.mxu0 %v12734_v62  ;;  %8577 = vmatpush1.bf16.msra.mxu1 %v12735_v4 }
0x1d53   :  { %8547 = vmatprep.subr.bf16.mxu0 %v12736_v33  ;;  %8579 = vmatprep.subr.bf16.mxu1 %v12737_v46 }
0x1d56   :  { %8549 = vmatpush1.bf16.msra.mxu0 %v12738_v58  ;;  %8581 = vmatpush1.bf16.msra.mxu1 %v12739_v23 }
0x1d57   :  { %8583 = vmatprep.subr.bf16.mxu0 %v12740_v29  ;;  %8615 = vmatprep.subr.bf16.mxu1 %v12741_v15 }
0x1d59   :  { %5486 = vmatmul.mubr.f32.vlgmr.msra.gmra.mrb[38].mxu0 %v11542_v47  ;;  %5557 = vmatmul.mubr.f32.vlgmr.msra.gmra.mrb[38].mxu1 %v11542_v47  ;;  %v12750_v47 = vld [vmem:[#allocation86_spill] sm:$0xff] }
0x1d5a   :  { %8585 = vmatpush1.bf16.msra.mxu0 %v12742_v8  ;;  %8617 = vmatpush1.bf16.msra.mxu1 %v12743_v43 }
0x1d5b   :  { %8587 = vmatprep.subr.bf16.mxu0 %v12744_v48  ;;  %8619 = vmatprep.subr.bf16.mxu1 %v12745_v2  ;;  %v8963_v48 = vld [vmem:[#allocation4] sm:$0xff] }
0x1d5c   :  { %5627 = vmatprep.mubr.f32.mxu0 %v11286_v25  ;;  %5698 = vmatprep.mubr.f32.mxu1 %v11286_v25  ;;  %v12756_v25 = vld [vmem:[#allocation92_spill] sm:$0xff] }
0x1d5d   :  { %v12774_v2 = vld [vmem:[#allocation116_spill] sm:$0xff] }
0x1d5e   :  { %8589 = vmatpush1.bf16.msra.mxu0 %v12746_v0  ;;  %8621 = vmatpush1.bf16.msra.mxu1 %v12747_v56  ;;  %v12775_v0 = vld [vmem:[#allocation117_spill] sm:$0xff]  ;;  %v12777_v56 = vld [vmem:[#allocation119_spill] sm:$0xff] }
0x1d5f   :  { %8591 = vmatprep.subr.bf16.mxu0 %v12748_v39  ;;  %8623 = vmatprep.subr.bf16.mxu1 %v12749_v7 }
0x1d62   :  { %8593 = vmatpush1.bf16.msra.mxu0 %v12750_v47  ;;  %8625 = vmatpush1.bf16.msra.mxu1 %v12751_v28  ;;  %v12779_v47 = vld [vmem:[#allocation121_spill] sm:$0xff] }
0x1d63   :  { %8595 = vmatprep.subr.bf16.mxu0 %v12752_v41  ;;  %8627 = vmatprep.subr.bf16.mxu1 %v12753_v13 }
0x1d66   :  { %8597 = vmatpush1.bf16.msra.mxu0 %v12754_v44  ;;  %8629 = vmatpush1.bf16.msra.mxu1 %v12755_v57 }
0x1d67   :  { %8599 = vmatprep.subr.bf16.mxu0 %v12756_v25  ;;  %8631 = vmatprep.subr.bf16.mxu1 %v12757_v6 }
0x1d6a   :  { %8601 = vmatpush1.bf16.msra.mxu0 %v12758_v45  ;;  %8633 = vmatpush1.bf16.msra.mxu1 %v12759_v36 }
0x1d6b   :  { %8603 = vmatprep.subr.bf16.mxu0 %v12760_v60  ;;  %8635 = vmatprep.subr.bf16.mxu1 %v12761_v61 }
0x1d6e   :  { %8605 = vmatpush1.bf16.msra.mxu0 %v12762_v19  ;;  %8637 = vmatpush1.bf16.msra.mxu1 %v12763_v30 }
0x1d6f   :  { %8607 = vmatprep.subr.bf16.mxu0 %v12764_v24  ;;  %8639 = vmatprep.subr.bf16.mxu1 %v12765_v3 }
0x1d72   :  { %8609 = vmatpush1.bf16.msra.mxu0 %v12766_v9  ;;  %8641 = vmatpush1.bf16.msra.mxu1 %v12767_v17 }
0x1d73   :  { %8611 = vmatprep.subr.bf16.mxu0 %v12768_v22  ;;  %8643 = vmatprep.subr.bf16.mxu1 %v12769_v27 }
0x1d76   :  { %8613 = vmatpush1.bf16.msra.mxu0 %v12770_v35  ;;  %8645 = vmatpush1.bf16.msra.mxu1 %v12771_v40 }
0x1d77   :  { %8646 = vmatprep.subr.bf16.mxu0 %v12123_v12 }
0x1e0c   :  { %v5317_v51 = vpop.f32.mrb[36].mxu0  ;;  %v5388_v53 = vpop.f32.mrb[36].mxu1 }
0x1e0d   :  { %v5393_v1 = vadd.f32 %v5317_v51, %v12772_v63  ;;  %v5319_v16 = vpop.f32.mrb[37].mxu0  ;;  %v5390_v20 = vpop.f32.mrb[37].mxu1  ;;  %v5395_v14 = vadd.f32 %v5388_v53, %v12219_v5 }
0x1e0e   :  { %v5394_v34 = vadd.f32 %v5319_v16, %v12331_v10  ;;  %v5396_v55 = vadd.f32 %v5390_v20, %v12218_v54 }
0x1e0f   :  { %v5884_v37 = vmul.f32 -1.442695, %v5393_v1 }
0x1e10   :  { %v5885_v50 = vmul.f32 -1.442695, %v5394_v34  ;;  %v5886_v11 = vmul.f32 -1.442695, %v5396_v55 }
0x1e11   :  { %8926 = vpow2.f32 %v5884_v37 }
0x1e12   :  { %8928 = vpow2.f32 %v5885_v50 }
0x1e13   :  { %8930 = vpow2.f32 %v5886_v11 }
0x1e14   :  { %8932 = vtanh.f32 %v5395_v14 }
0x1e1b   :  { %v8927_v38 = vpop.eup %8926 }
0x1e1c   :  { %v8929_v42 = vpop.eup %8928  ;;  %v5400_v62 = vadd.f32 1.0, %v8927_v38 }
0x1e1d   :  { %v5406_v4 = vadd.f32 1.0, %v8929_v42  ;;  %v8931_v33 = vpop.eup %8930 }
0x1e1e   :  { %8934 = vrcp.f32 %v5400_v62  ;;  %v8933_v46 = vpop.eup %8932  ;;  %v5413_v29 = vadd.f32 1.0, %v8931_v33 }
0x1e1f   :  { %8936 = vrcp.f32 %v5406_v4 }
0x1e20   :  { %8938 = vrcp.f32 %v5413_v29 }
0x1e28   :  { %v8935_v10 = vpop.eup %8934 }
0x1e29   :  { %v8937_v58 = vpop.eup %8936  ;;  %v5417_v23 = vmul.f32 %v8935_v10, %v8933_v46 }
0x1e2a   :  { %v5416_v15 = vmul.f32 %v8937_v58, %v11491_v49  ;;  %v8939_v5 = vpop.eup %8938  ;;  %v12773_v49 = vld [vmem:[#allocation115_spill] sm:$0xff] }
0x1e2c   :  { %v5418_v54 = vadd.f32 %v5417_v23, %v5416_v15 }
0x1e2e   :  { %8940 = vtanh.f32 %v5418_v54 }
0x1e38   :  { %v8941_v8 = vpop.eup %8940 }
0x1e39   :  { %v5420_v43 = vmul.f32 %v8941_v8, %v8939_v5 }
0x1e3b   :  { %5628 = vmatmul.mubr.f32.vlgmr.msra.gmra.mrb[38].mxu0 %v5420_v43  ;;  %5699 = vmatmul.mubr.f32.vlgmr.msra.gmra.mrb[38].mxu1 %v5420_v43 }
0x1e3c   :  { %8648 = vmatpush3.bf16.msra.mxu0 %v12221_v18  ;;  %6563 = vmatprep.mubr.msk.f32.mxu0 %vm9005_vm0, %v8963_v48  ;;  %v12776_v18 = vld [vmem:[#allocation118_spill] sm:$0xff] }
0x1e3d   :  { %8649 = vmatprep.subr.bf16.mxu0 %v12123_v12 }
0x1e40   :  { %8651 = vmatpush3.bf16.msra.mxu0 %v12222_v26  ;;  %v12778_v26 = vld [vmem:[#allocation120_spill] sm:$0xff] }
0x1e41   :  { %8652 = vmatprep.subr.bf16.mxu0 %v12123_v12 }
0x1e44   :  { %8654 = vmatpush3.bf16.msra.mxu0 %v12773_v49 }
0x1e45   :  { %8655 = vmatprep.subr.bf16.mxu0 %v12123_v12 }
0x1e48   :  { %8657 = vmatpush3.bf16.msra.mxu0 %v12774_v2 }
0x1e49   :  { %8658 = vmatprep.subr.bf16.mxu0 %v12123_v12 }
0x1e4c   :  { %8660 = vmatpush3.bf16.msra.mxu0 %v12775_v0 }
0x1e4d   :  { %8661 = vmatprep.subr.bf16.mxu0 %v12123_v12 }
0x1e50   :  { %8663 = vmatpush3.bf16.msra.mxu0 %v12776_v18 }
0x1e51   :  { %8664 = vmatprep.subr.bf16.mxu0 %v12123_v12 }
0x1e54   :  { %8666 = vmatpush3.bf16.msra.mxu0 %v12777_v56 }
0x1e55   :  { %8667 = vmatprep.subr.bf16.mxu0 %v12123_v12 }
0x1e58   :  { %8669 = vmatpush3.bf16.msra.mxu0 %v12778_v26 }
0x1f0e   :  { %v5629_v39 = vpop.f32.mrb[38].mxu0  ;;  %v5700_v7 = vpop.f32.mrb[38].mxu1 }
0x1f0f   :  { %v5705_v28 = vadd.f32 %v5629_v39, %v12779_v47  ;;  %v5631_v41 = vpop.f32.mrb[39].mxu0  ;;  %v5702_v13 = vpop.f32.mrb[39].mxu1  ;;  %v5707_v36 = vadd.f32 %v5700_v7, %v10401_v59 }
0x1f10   :  { %v5706_v44 = vadd.f32 %v5631_v41, %v10390_v32  ;;  %v5708_v6 = vadd.f32 %v5702_v13, %v10396_v21 }
0x1f11   :  { %v5887_v57 = vmul.f32 -1.442695, %v5705_v28 }
0x1f12   :  { %v5888_v25 = vmul.f32 -1.442695, %v5706_v44  ;;  %v5889_v45 = vmul.f32 -1.442695, %v5708_v6 }
0x1f13   :  { %8942 = vpow2.f32 %v5887_v57 }
0x1f14   :  { %8944 = vpow2.f32 %v5888_v25 }
0x1f15   :  { %8946 = vpow2.f32 %v5889_v45 }
0x1f16   :  { %8948 = vtanh.f32 %v5707_v36 }
0x1f1d   :  { %v8943_v12 = vpop.eup %8942 }
0x1f1e   :  { %v8945_v60 = vpop.eup %8944  ;;  %v5712_v61 = vadd.f32 1.0, %v8943_v12 }
0x1f1f   :  { %v5718_v19 = vadd.f32 1.0, %v8945_v60  ;;  %v8947_v30 = vpop.eup %8946 }
0x1f20   :  { %8950 = vrcp.f32 %v5712_v61  ;;  %v8949_v24 = vpop.eup %8948  ;;  %v5725_v17 = vadd.f32 1.0, %v8947_v30 }
0x1f21   :  { %8952 = vrcp.f32 %v5718_v19 }
0x1f22   :  { %8954 = vrcp.f32 %v5725_v17 }
0x1f2a   :  { %v8951_v32 = vpop.eup %8950 }
0x1f2b   :  { %v8953_v3 = vpop.eup %8952  ;;  %v5729_v9 = vmul.f32 %v8951_v32, %v8949_v24 }
0x1f2c   :  { %v5728_v22 = vmul.f32 %v8953_v3, %v11539_v52  ;;  %v8955_v59 = vpop.eup %8954 }
0x1f2e   :  { %v5730_v21 = vadd.f32 %v5729_v9, %v5728_v22 }
0x1f30   :  { %8956 = vtanh.f32 %v5730_v21 }
0x1f3a   :  { %v8957_v27 = vpop.eup %8956 }
0x1f3b   :  { %v5732_v35 = vmul.f32 %v8957_v27, %v8955_v59 }
0x1f3d   :  { %6564 = vmatmul.mubr.f32.vlgmr.msra.gmra.mrb[40].mxu0 %v5732_v35 }
0x2010   :  { %v5799_v40 = vpop.f32.mrb[40].mxu0 }
0x2011   :  { %v5800_v51 = vadd.f32 %v11372_v31, %v5799_v40  ;;  %v6565_v53 = vpop.f32.mrb[41].mxu0 }
0x2013   :  { %5804 = vst [vmem:[#allocation4 + $0x38] sm:$0xff] %v5800_v51 }
0x2014   :  { %8987 = shalt.err (!%p8984_p9)
}
0x2015   :  { %s8988_s21 = scalar_lea.hbm %s11743_s13, 1024 }
0x2016   :  { %p8989_p10 = scmp.ne.s32.totalorder %s11743_s13, %s8988_s21  ;;  %p8992_p11 = scmp.lt.u32.totalorder %s8988_s21, %s11743_s13 }
0x2018   :  { %p8994_p12 = pnand %p8992_p11, %p8989_p10 }
0x201a   :  { %8997 = shalt.err (!%p8994_p12)
}
0x201b   :  { %s9008_s24 = smov 128   ;;  %s9009_s7 = smov 8  }
0x201c   :  { %5816 = dma.vmem_to_hbm [thread:$0]  %s5811_s6, 1024, %s11743_s13, [#allocation5], %s9008_s24, %s9008_s24, %s9009_s7  }
0x201d   :  { %9000 = dma.done.wait [#allocation5], 1024  }
0x201e   :  { %9001 = vsyncadd [#allocation5], 4294966272 }
0x201f   :  { %5820 = vsyncpa [#allocation5], 1 }

</bundles_post_ra>
